<compile_context>
chip_gen: v7x
topology: tpu7x:2x2x1
jax: 0.10.0
libtpu: 0.0.40
codegen_flags: <defaults>
</compile_context>

<pallas_src>
import math
from functools import partial

import jax
import jax.numpy as jnp
from jax.experimental import pallas as pl
from jax.experimental.pallas import tpu as pltpu

HID = 500          # hidden width of the PyTorch module
HID_PAD = 512      # lane-aligned hidden width
LIN1_IN = 2 * HID_PAD     # 1024  ([gmp || gap] of padded hidden)
LIN1_OUT = 2048           # 2000 padded to a multiple of 1024
LIN2_OUT = 4096           # 4000 padded to a multiple of 1024
LIN3_OUT_PAD = 128        # multi_label padded to one lane tile

_VMEM = lambda: pl.BlockSpec(memory_space=pltpu.MemorySpace.VMEM)


# ---------------- GraphConv (+ fused ReLU + fused TopK score) ----------------
def _graphconv_kernel(x_ref, a_ref, w_self_ref, w_nbr_ref, b_ref, p_ref,
                      h_ref, s_ref):
    x = x_ref[...]
    agg = jnp.dot(a_ref[...], x, preferred_element_type=jnp.float32)        # A @ X
    h = (jnp.dot(x, w_self_ref[...], preferred_element_type=jnp.float32)    # X @ W_root
         + jnp.dot(agg, w_nbr_ref[...], preferred_element_type=jnp.float32)  # (A@X) @ W_rel
         + b_ref[...])
    h = jnp.maximum(h, 0.0)                                                  # fused ReLU
    h_ref[...] = h
    # TopKPooling score: tanh(h @ (p / ||p||)); 1/||p|| already folded into p.
    s_ref[...] = jnp.tanh(jnp.dot(h, p_ref[...],
                                  preferred_element_type=jnp.float32))


def graph_conv_relu_score(x, a, w_self, w_nbr, b, p):
    n = x.shape[0]
    c = w_self.shape[1]
    return pl.pallas_call(
        _graphconv_kernel,
        out_shape=(jax.ShapeDtypeStruct((n, c), jnp.float32),
                   jax.ShapeDtypeStruct((n, 1), jnp.float32)),
        in_specs=[_VMEM() for _ in range(6)],
        out_specs=(_VMEM(), _VMEM()),
    )(x, a, w_self, w_nbr, b, p)


# ----------------------------- TopKPooling glue ------------------------------
def topk_pool(h, a, score, ratio=0.5):
    """Keep top ceil(ratio*N) nodes; x <- x*score, dense adjacency filtered."""
    n = h.shape[0]
    k = int(math.ceil(ratio * n))
    _, perm = jax.lax.top_k(score, k)            # data-dependent selection = JAX glue
    x_new = h[perm] * score[perm][:, None]
    a_new = a[perm][:, perm]                     # filter_adj on dense adjacency
    return x_new, a_new


# ---------------------- global max pool || global mean pool ------------------
def _global_pool_kernel(x_ref, o_ref):
    x = x_ref[...]
    c = x.shape[1]
    o_ref[:, :c] = jnp.max(x, axis=0, keepdims=True)    # gmp half
    o_ref[:, c:] = jnp.mean(x, axis=0, keepdims=True)   # gap half (no concat)


def global_pool(x):
    c = x.shape[1]
    return pl.pallas_call(
        _global_pool_kernel,
        out_shape=jax.ShapeDtypeStruct((1, 2 * c), jnp.float32),
        in_specs=[_VMEM()],
        out_specs=_VMEM(),
    )(x)


# ---------------------- Linear (+ fused relu), N-tiled -----------------------
def _linear_kernel(x_ref, w_ref, b_ref, o_ref, *, activation):
    x = x_ref[...].astype(jnp.bfloat16)                                  # bf16 MXU path
    y = jnp.dot(x, w_ref[...], preferred_element_type=jnp.float32) + b_ref[...]
    if activation == "relu":
        y = jnp.maximum(y, 0.0)
    elif activation == "sigmoid":
        y = jax.nn.sigmoid(y)
    o_ref[...] = y.astype(o_ref.dtype)


def pallas_linear(x, w, b, activation="none", tn=1024):
    m, k = x.shape
    k2, n = w.shape
    assert k == k2 and n % tn == 0, (k, k2, n, tn)   # weights pre-padded at init
    flops = 2 * m * k * n
    bytes_accessed = (x.size * 4 + w.size * w.dtype.itemsize
                      + b.size * 4 + m * n * 4)
    return pl.pallas_call(
        partial(_linear_kernel, activation=activation),
        out_shape=jax.ShapeDtypeStruct((m, n), jnp.float32),
        grid=(n // tn,),
        in_specs=[
            pl.BlockSpec((m, k), lambda j: (0, 0)),
            pl.BlockSpec((k, tn), lambda j: (0, j)),
            pl.BlockSpec((1, tn), lambda j: (0, j)),
        ],
        out_specs=pl.BlockSpec((m, tn), lambda j: (0, j)),
        compiler_params=pltpu.CompilerParams(
            dimension_semantics=("parallel",),
            vmem_limit_bytes=32 * 1024 * 1024),
        cost_estimate=pl.CostEstimate(flops=flops, transcendentals=0,
                                      bytes_accessed=bytes_accessed),
    )(x, w, b)


# -------------- fused lin2(+relu) -> lin3(+sigmoid) tail kernel --------------
def _mlp_tail_kernel(x_ref, w2_ref, b2_ref, w3_ref, b3_ref, o_ref, acc_ref):
    j = pl.program_id(0)

    @pl.when(j == 0)
    def _():
        acc_ref[...] = jnp.zeros_like(acc_ref)

    x = x_ref[...].astype(jnp.bfloat16)
    h = jnp.dot(x, w2_ref[...], preferred_element_type=jnp.float32) + b2_ref[...]
    h = jnp.maximum(h, 0.0)                                            # relu(lin2)
    # TODO(synk): dropout(p=0.3) between lin2 and lin3 omitted — inference mode.
    acc_ref[...] += jnp.dot(h.astype(jnp.bfloat16), w3_ref[...],
                            preferred_element_type=jnp.float32)

    @pl.when(j == pl.num_programs(0) - 1)
    def _():
        o_ref[...] = jax.nn.sigmoid(acc_ref[...] + b3_ref[...])        # sigmoid(lin3)


def mlp_tail(x, w2, b2, w3, b3, tn=1024):
    m, k = x.shape
    _, n2 = w2.shape
    _, n3 = w3.shape
    assert n2 % tn == 0 and w3.shape[0] == n2
    flops = 2 * m * k * n2 + 2 * m * n2 * n3
    bytes_accessed = (x.size * 4 + w2.size * w2.dtype.itemsize
                      + w3.size * w3.dtype.itemsize + b2.size * 4
                      + b3.size * 4 + m * n3 * 4)
    return pl.pallas_call(
        _mlp_tail_kernel,
        out_shape=jax.ShapeDtypeStruct((m, n3), jnp.float32),
        grid=(n2 // tn,),
        in_specs=[
            pl.BlockSpec((m, k), lambda j: (0, 0)),
            pl.BlockSpec((k, tn), lambda j: (0, j)),
            pl.BlockSpec((1, tn), lambda j: (0, j)),
            pl.BlockSpec((tn, n3), lambda j: (j, 0)),
            pl.BlockSpec((1, n3), lambda j: (0, 0)),
        ],
        out_specs=pl.BlockSpec((m, n3), lambda j: (0, 0)),
        scratch_shapes=[pltpu.VMEM((m, n3), jnp.float32)],
        compiler_params=pltpu.CompilerParams(
            dimension_semantics=("arbitrary",),
            vmem_limit_bytes=32 * 1024 * 1024),
        cost_estimate=pl.CostEstimate(flops=flops, transcendentals=m * n3,
                                      bytes_accessed=bytes_accessed),
    )(x, w2, b2, w3, b3)


# ------------------------ one-time parameter preparation ---------------------
def _pad_to(x, shape):
    return jnp.pad(x, [(0, t - s) for s, t in zip(x.shape, shape)])


def prepare_params(raw):
    """One-time prep (NOT inside the jitted forward):
       pad HID 500->512 and MLP dims to lane multiples, fold 1/||p|| into the
       TopK score weights, and cast the large Linear weights to bfloat16."""
    f_in = raw["w1_self"].shape[0]
    p = {}
    # GraphConv(num_features, 500) -> 512 output lanes
    p["w1_self"] = _pad_to(raw["w1_self"], (f_in, HID_PAD))
    p["w1_nbr"] = _pad_to(raw["w1_nbr"], (f_in, HID_PAD))
    p["b1"] = _pad_to(raw["b1"], (1, HID_PAD))
    p["p1"] = _pad_to(raw["p1"] / jnp.linalg.norm(raw["p1"]), (HID_PAD, 1))
    # GraphConv(500, 500)
    p["w2_self"] = _pad_to(raw["w2_self"], (HID_PAD, HID_PAD))
    p["w2_nbr"] = _pad_to(raw["w2_nbr"], (HID_PAD, HID_PAD))
    p["b2"] = _pad_to(raw["b2"], (1, HID_PAD))
    p["p2"] = _pad_to(raw["p2"] / jnp.linalg.norm(raw["p2"]), (HID_PAD, 1))
    # Linear(1000, 2000) -> (1024, 2048).  Original rows are [gmp(500)||gap(500)];
    # after HID padding the pooled vector is [gmp(512)||gap(512)], so remap rows.
    lw1 = raw["lw1"]
    lw1_pad = jnp.zeros((LIN1_IN, LIN1_OUT), lw1.dtype)
    lw1_pad = lw1_pad.at[:HID, :lw1.shape[1]].set(lw1[:HID])
    lw1_pad = lw1_pad.at[HID_PAD:HID_PAD + HID, :lw1.shape[1]].set(lw1[HID:])
    p["lw1"] = lw1_pad.astype(jnp.bfloat16)
    p["lb1"] = _pad_to(raw["lb1"], (1, LIN1_OUT))
    # Linear(2000, 4000) -> (2048, 4096)
    p["lw2"] = _pad_to(raw["lw2"], (LIN1_OUT, LIN2_OUT)).astype(jnp.bfloat16)
    p["lb2"] = _pad_to(raw["lb2"], (1, LIN2_OUT))
    # Linear(4000, multi_label) -> (4096, 128)
    p["lw3"] = _pad_to(raw["lw3"], (LIN2_OUT, LIN3_OUT_PAD)).astype(jnp.bfloat16)
    p["lb3"] = _pad_to(raw["lb3"], (1, LIN3_OUT_PAD))
    return p


# ----------------------------------- forward ---------------------------------
def net_forward(x, a, params, out_dim):
    h, s1 = graph_conv_relu_score(x, a, params["w1_self"], params["w1_nbr"],
                                  params["b1"], params["p1"])
    h, a1 = topk_pool(h, a, s1[:, 0], ratio=0.5)
    x1 = global_pool(h)                                   # [1, 1024]

    h, s2 = graph_conv_relu_score(h, a1, params["w2_self"], params["w2_nbr"],
                                  params["b2"], params["p2"])
    h, _a2 = topk_pool(h, a1, s2[:, 0], ratio=0.5)
    x2 = global_pool(h)                                   # [1, 1024]

    z = x1 + x2
    z = pallas_linear(z, params["lw1"], params["lb1"], "relu", tn=1024)
    # TODO(synk): dropout(p=0.3) omitted — inference mode (self.training = False).
    z = mlp_tail(z, params["lw2"], params["lb2"],
                 params["lw3"], params["lb3"], tn=1024)   # lin2+relu+lin3+sigmoid
    return z[:, :out_dim]


if __name__ == "__main__":
    N, F_IN, E = 16, 32, 48        # nodes, num_features, edges
    MULTI = 6                      # multi_label

    key = jax.random.PRNGKey(0)
    keys = jax.random.split(key, 16)

    # Graph data
    x = jax.random.normal(keys[0], (N, F_IN), jnp.float32)
    src = jax.random.randint(keys[1], (E,), 0, N)
    dst = jax.random.randint(keys[2], (E,), 0, N)
    edge_attr = jax.random.uniform(keys[3], (E,), jnp.float32)
    # dense weighted adjacency: A[target, source] += edge_weight
    A = jnp.zeros((N, N), jnp.float32).at[dst, src].add(edge_attr)

    def init(k, shape, fan_in):
        return jax.random.normal(k, shape, jnp.float32) / jnp.sqrt(float(fan_in))

    raw_params = {
        "w1_self": init(keys[4], (F_IN, HID), F_IN),
        "w1_nbr":  init(keys[5], (F_IN, HID), F_IN),
        "b1":      jnp.zeros((1, HID), jnp.float32),
        "p1":      init(keys[6], (HID, 1), HID),
        "w2_self": init(keys[7], (HID, HID), HID),
        "w2_nbr":  init(keys[8], (HID, HID), HID),
        "b2":      jnp.zeros((1, HID), jnp.float32),
        "p2":      init(keys[9], (HID, 1), HID),
        "lw1": init(keys[10], (1000, 2000), 1000), "lb1": jnp.zeros((1, 2000), jnp.float32),
        "lw2": init(keys[11], (2000, 4000), 2000), "lb2": jnp.zeros((1, 4000), jnp.float32),
        "lw3": init(keys[12], (4000, MULTI), 4000), "lb3": jnp.zeros((1, MULTI), jnp.float32),
    }
    params = prepare_params(raw_params)        # one-time pad / bf16 cast / norm fold

    fwd = jax.jit(partial(net_forward, out_dim=MULTI))
    out = jax.block_until_ready(fwd(x, A, params))

    assert out.shape == (1, MULTI), out.shape
    assert bool(jnp.all(jnp.isfinite(out)))
    assert bool(jnp.all((out >= 0.0) & (out <= 1.0)))
    print("KERNEL_OK")
</pallas_src>

<mosaic_0001>
module attributes {stable_mosaic.version = 11 : i64} {
  func.func @_graphconv_kernel(%arg0: memref<16x32xf32, #tpu.memory_space<vmem>>, %arg1: memref<16x16xf32, #tpu.memory_space<vmem>>, %arg2: memref<32x512xf32, #tpu.memory_space<vmem>>, %arg3: memref<32x512xf32, #tpu.memory_space<vmem>>, %arg4: memref<1x512xf32, #tpu.memory_space<vmem>>, %arg5: memref<512x1xf32, #tpu.memory_space<vmem>>, %arg6: memref<16x512xf32, #tpu.memory_space<vmem>>, %arg7: memref<16x1xf32, #tpu.memory_space<vmem>>) attributes {dimension_semantics = [], scalar_prefetch = 0 : i64, scratch_operands = 0 : i64, tpu.core_type = #tpu.core_type<tc>} {
    %c0 = arith.constant 0 : index
    %c0_0 = arith.constant 0 : index
    %0 = vector.load %arg0[%c0, %c0_0] : memref<16x32xf32, #tpu.memory_space<vmem>>, vector<16x32xf32>
    %c0_1 = arith.constant 0 : index
    %c0_2 = arith.constant 0 : index
    %1 = vector.load %arg1[%c0_1, %c0_2] : memref<16x16xf32, #tpu.memory_space<vmem>>, vector<16x16xf32>
    %cst = arith.constant dense<0.000000e+00> : vector<16x32xf32>
    %2 = tpu.matmul %1, %0, %cst {dimension_numbers = #tpu.dot_dimension_numbers<[1], [0], [0], [1], [0, 0, 1, 1], [], []>} : vector<16x16xf32>, vector<16x32xf32>, vector<16x32xf32> -> vector<16x32xf32>
    %c0_3 = arith.constant 0 : index
    %c0_4 = arith.constant 0 : index
    %3 = vector.load %arg2[%c0_3, %c0_4] : memref<32x512xf32, #tpu.memory_space<vmem>>, vector<32x512xf32>
    %cst_5 = arith.constant dense<0.000000e+00> : vector<16x512xf32>
    %4 = tpu.matmul %0, %3, %cst_5 {dimension_numbers = #tpu.dot_dimension_numbers<[1], [0], [0], [1], [0, 0, 1, 1], [], []>} : vector<16x32xf32>, vector<32x512xf32>, vector<16x512xf32> -> vector<16x512xf32>
    %c0_6 = arith.constant 0 : index
    %c0_7 = arith.constant 0 : index
    %5 = vector.load %arg3[%c0_6, %c0_7] : memref<32x512xf32, #tpu.memory_space<vmem>>, vector<32x512xf32>
    %cst_8 = arith.constant dense<0.000000e+00> : vector<16x512xf32>
    %6 = tpu.matmul %2, %5, %cst_8 {dimension_numbers = #tpu.dot_dimension_numbers<[1], [0], [0], [1], [0, 0, 1, 1], [], []>} : vector<16x32xf32>, vector<32x512xf32>, vector<16x512xf32> -> vector<16x512xf32>
    %7 = arith.addf %4, %6 : vector<16x512xf32>
    %c0_9 = arith.constant 0 : index
    %c0_10 = arith.constant 0 : index
    %8 = vector.load %arg4[%c0_9, %c0_10] : memref<1x512xf32, #tpu.memory_space<vmem>>, vector<1x512xf32>
    %9 = vector.broadcast %8 : vector<1x512xf32> to vector<16x512xf32>
    %10 = arith.addf %7, %9 : vector<16x512xf32>
    %cst_11 = arith.constant 0.000000e+00 : f32
    %11 = vector.broadcast %cst_11 : f32 to vector<16x512xf32>
    %12 = arith.maximumf %10, %11 : vector<16x512xf32>
    %c0_12 = arith.constant 0 : index
    %c0_13 = arith.constant 0 : index
    %13 = vector.load %arg6[%c0_12, %c0_13] : memref<16x512xf32, #tpu.memory_space<vmem>>, vector<16x512xf32>
    tpu.vector_store %arg6[%c0_12, %c0_13], %12 {strides = array<i32>} : memref<16x512xf32, #tpu.memory_space<vmem>>, vector<16x512xf32>,
    %c0_14 = arith.constant 0 : index
    %c0_15 = arith.constant 0 : index
    %14 = vector.load %arg5[%c0_14, %c0_15] : memref<512x1xf32, #tpu.memory_space<vmem>>, vector<512x1xf32>
    %cst_16 = arith.constant dense<0.000000e+00> : vector<16x1xf32>
    %15 = tpu.matmul %12, %14, %cst_16 {dimension_numbers = #tpu.dot_dimension_numbers<[1], [0], [0], [1], [0, 0, 1, 1], [], []>} : vector<16x512xf32>, vector<512x1xf32>, vector<16x1xf32> -> vector<16x1xf32>
    %16 = math.tanh %15 : vector<16x1xf32>
    %c0_17 = arith.constant 0 : index
    %c0_18 = arith.constant 0 : index
    %17 = vector.load %arg7[%c0_17, %c0_18] : memref<16x1xf32, #tpu.memory_space<vmem>>, vector<16x1xf32>
    tpu.vector_store %arg7[%c0_17, %c0_18], %16 {strides = array<i32>} : memref<16x1xf32, #tpu.memory_space<vmem>>, vector<16x1xf32>,
    return
  }
}

module attributes {stable_mosaic.version = 11 : i64} {
  func.func @_graphconv_kernel(%arg0: memref<8x512xf32, #tpu.memory_space<vmem>>, %arg1: memref<8x8xf32, #tpu.memory_space<vmem>>, %arg2: memref<512x512xf32, #tpu.memory_space<vmem>>, %arg3: memref<512x512xf32, #tpu.memory_space<vmem>>, %arg4: memref<1x512xf32, #tpu.memory_space<vmem>>, %arg5: memref<512x1xf32, #tpu.memory_space<vmem>>, %arg6: memref<8x512xf32, #tpu.memory_space<vmem>>, %arg7: memref<8x1xf32, #tpu.memory_space<vmem>>) attributes {dimension_semantics = [], scalar_prefetch = 0 : i64, scratch_operands = 0 : i64, tpu.core_type = #tpu.core_type<tc>} {
    %c0 = arith.constant 0 : index
    %c0_0 = arith.constant 0 : index
    %0 = vector.load %arg0[%c0, %c0_0] : memref<8x512xf32, #tpu.memory_space<vmem>>, vector<8x512xf32>
    %c0_1 = arith.constant 0 : index
    %c0_2 = arith.constant 0 : index
    %1 = vector.load %arg1[%c0_1, %c0_2] : memref<8x8xf32, #tpu.memory_space<vmem>>, vector<8x8xf32>
    %cst = arith.constant dense<0.000000e+00> : vector<8x512xf32>
    %2 = tpu.matmul %1, %0, %cst {dimension_numbers = #tpu.dot_dimension_numbers<[1], [0], [0], [1], [0, 0, 1, 1], [], []>} : vector<8x8xf32>, vector<8x512xf32>, vector<8x512xf32> -> vector<8x512xf32>
    %c0_3 = arith.constant 0 : index
    %c0_4 = arith.constant 0 : index
    %3 = vector.load %arg2[%c0_3, %c0_4] : memref<512x512xf32, #tpu.memory_space<vmem>>, vector<512x512xf32>
    %cst_5 = arith.constant dense<0.000000e+00> : vector<8x512xf32>
    %4 = tpu.matmul %0, %3, %cst_5 {dimension_numbers = #tpu.dot_dimension_numbers<[1], [0], [0], [1], [0, 0, 1, 1], [], []>} : vector<8x512xf32>, vector<512x512xf32>, vector<8x512xf32> -> vector<8x512xf32>
    %c0_6 = arith.constant 0 : index
    %c0_7 = arith.constant 0 : index
    %5 = vector.load %arg3[%c0_6, %c0_7] : memref<512x512xf32, #tpu.memory_space<vmem>>, vector<512x512xf32>
    %cst_8 = arith.constant dense<0.000000e+00> : vector<8x512xf32>
    %6 = tpu.matmul %2, %5, %cst_8 {dimension_numbers = #tpu.dot_dimension_numbers<[1], [0], [0], [1], [0, 0, 1, 1], [], []>} : vector<8x512xf32>, vector<512x512xf32>, vector<8x512xf32> -> vector<8x512xf32>
    %7 = arith.addf %4, %6 : vector<8x512xf32>
    %c0_9 = arith.constant 0 : index
    %c0_10 = arith.constant 0 : index
    %8 = vector.load %arg4[%c0_9, %c0_10] : memref<1x512xf32, #tpu.memory_space<vmem>>, vector<1x512xf32>
    %9 = vector.broadcast %8 : vector<1x512xf32> to vector<8x512xf32>
    %10 = arith.addf %7, %9 : vector<8x512xf32>
    %cst_11 = arith.constant 0.000000e+00 : f32
    %11 = vector.broadcast %cst_11 : f32 to vector<8x512xf32>
    %12 = arith.maximumf %10, %11 : vector<8x512xf32>
    %c0_12 = arith.constant 0 : index
    %c0_13 = arith.constant 0 : index
    %13 = vector.load %arg6[%c0_12, %c0_13] : memref<8x512xf32, #tpu.memory_space<vmem>>, vector<8x512xf32>
    tpu.vector_store %arg6[%c0_12, %c0_13], %12 {strides = array<i32>} : memref<8x512xf32, #tpu.memory_space<vmem>>, vector<8x512xf32>,
    %c0_14 = arith.constant 0 : index
    %c0_15 = arith.constant 0 : index
    %14 = vector.load %arg5[%c0_14, %c0_15] : memref<512x1xf32, #tpu.memory_space<vmem>>, vector<512x1xf32>
    %cst_16 = arith.constant dense<0.000000e+00> : vector<8x1xf32>
    %15 = tpu.matmul %12, %14, %cst_16 {dimension_numbers = #tpu.dot_dimension_numbers<[1], [0], [0], [1], [0, 0, 1, 1], [], []>} : vector<8x512xf32>, vector<512x1xf32>, vector<8x1xf32> -> vector<8x1xf32>
    %16 = math.tanh %15 : vector<8x1xf32>
    %c0_17 = arith.constant 0 : index
    %c0_18 = arith.constant 0 : index
    %17 = vector.load %arg7[%c0_17, %c0_18] : memref<8x1xf32, #tpu.memory_space<vmem>>, vector<8x1xf32>
    tpu.vector_store %arg7[%c0_17, %c0_18], %16 {strides = array<i32>} : memref<8x1xf32, #tpu.memory_space<vmem>>, vector<8x1xf32>,
    return
  }
}

module attributes {stable_mosaic.version = 11 : i64} {
  func.func @_global_pool_kernel(%arg0: memref<8x512xf32, #tpu.memory_space<vmem>>, %arg1: memref<1x1024xf32, #tpu.memory_space<vmem>>) attributes {dimension_semantics = [], scalar_prefetch = 0 : i64, scratch_operands = 0 : i64, tpu.core_type = #tpu.core_type<tc>} {
    %c0 = arith.constant 0 : index
    %c0_0 = arith.constant 0 : index
    %0 = vector.load %arg0[%c0, %c0_0] : memref<8x512xf32, #tpu.memory_space<vmem>>, vector<8x512xf32>
    %cst = arith.constant dense<0xFF800000> : vector<512xf32>
    %1 = vector.multi_reduction <maximumf>, %0, %cst [0] : vector<8x512xf32> to vector<512xf32>
    %2 = vector.shape_cast %1 : vector<512xf32> to vector<1x512xf32>
    %c0_1 = arith.constant 0 : index
    %c0_2 = arith.constant 0 : index
    %3 = vector.load %arg1[%c0_1, %c0_2] : memref<1x1024xf32, #tpu.memory_space<vmem>>, vector<1x512xf32>
    tpu.vector_store %arg1[%c0_1, %c0_2], %2 {strides = array<i32>} : memref<1x1024xf32, #tpu.memory_space<vmem>>, vector<1x512xf32>,
    %cst_3 = arith.constant dense<0.000000e+00> : vector<512xf32>
    %4 = vector.multi_reduction <add>, %0, %cst_3 [0] : vector<8x512xf32> to vector<512xf32>
    %5 = vector.shape_cast %4 : vector<512xf32> to vector<1x512xf32>
    %cst_4 = arith.constant 8.000000e+00 : f32
    %6 = vector.broadcast %cst_4 : f32 to vector<1x512xf32>
    %7 = arith.divf %5, %6 : vector<1x512xf32>
    %c0_5 = arith.constant 0 : index
    %c512 = arith.constant 512 : index
    %8 = vector.load %arg1[%c0_5, %c512] : memref<1x1024xf32, #tpu.memory_space<vmem>>, vector<1x512xf32>
    tpu.vector_store %arg1[%c0_5, %c512], %7 {strides = array<i32>} : memref<1x1024xf32, #tpu.memory_space<vmem>>, vector<1x512xf32>,
    return
  }
}

module attributes {stable_mosaic.version = 11 : i64} {
  func.func @_global_pool_kernel(%arg0: memref<4x512xf32, #tpu.memory_space<vmem>>, %arg1: memref<1x1024xf32, #tpu.memory_space<vmem>>) attributes {dimension_semantics = [], scalar_prefetch = 0 : i64, scratch_operands = 0 : i64, tpu.core_type = #tpu.core_type<tc>} {
    %c0 = arith.constant 0 : index
    %c0_0 = arith.constant 0 : index
    %0 = vector.load %arg0[%c0, %c0_0] : memref<4x512xf32, #tpu.memory_space<vmem>>, vector<4x512xf32>
    %cst = arith.constant dense<0xFF800000> : vector<512xf32>
    %1 = vector.multi_reduction <maximumf>, %0, %cst [0] : vector<4x512xf32> to vector<512xf32>
    %2 = vector.shape_cast %1 : vector<512xf32> to vector<1x512xf32>
    %c0_1 = arith.constant 0 : index
    %c0_2 = arith.constant 0 : index
    %3 = vector.load %arg1[%c0_1, %c0_2] : memref<1x1024xf32, #tpu.memory_space<vmem>>, vector<1x512xf32>
    tpu.vector_store %arg1[%c0_1, %c0_2], %2 {strides = array<i32>} : memref<1x1024xf32, #tpu.memory_space<vmem>>, vector<1x512xf32>,
    %cst_3 = arith.constant dense<0.000000e+00> : vector<512xf32>
    %4 = vector.multi_reduction <add>, %0, %cst_3 [0] : vector<4x512xf32> to vector<512xf32>
    %5 = vector.shape_cast %4 : vector<512xf32> to vector<1x512xf32>
    %cst_4 = arith.constant 4.000000e+00 : f32
    %6 = vector.broadcast %cst_4 : f32 to vector<1x512xf32>
    %7 = arith.divf %5, %6 : vector<1x512xf32>
    %c0_5 = arith.constant 0 : index
    %c512 = arith.constant 512 : index
    %8 = vector.load %arg1[%c0_5, %c512] : memref<1x1024xf32, #tpu.memory_space<vmem>>, vector<1x512xf32>
    tpu.vector_store %arg1[%c0_5, %c512], %7 {strides = array<i32>} : memref<1x1024xf32, #tpu.memory_space<vmem>>, vector<1x512xf32>,
    return
  }
}

module attributes {stable_mosaic.version = 11 : i64} {
  func.func @_linear_kernel(%arg0: i32, %arg1: memref<1x1024xf32, #tpu.memory_space<vmem>>, %arg2: memref<1024x1024xbf16, #tpu.memory_space<vmem>>, %arg3: memref<1x1024xf32, #tpu.memory_space<vmem>>, %arg4: memref<1x1024xf32, #tpu.memory_space<vmem>>) attributes {dimension_semantics = [#tpu.dimension_semantics<parallel>], iteration_bounds = array<i64: 2>, scalar_prefetch = 0 : i64, scratch_operands = 0 : i64, tpu.core_type = #tpu.core_type<tc>, window_params = [{pipeline_mode = #tpu.pipeline_mode<synchronous>, transform_indices = @transform_0, window_bounds = array<i64: 1, 1024>}, {transform_indices = @transform_1, window_bounds = array<i64: 1024, 1024>}, {transform_indices = @transform_2, window_bounds = array<i64: 1, 1024>}, {transform_indices = @transform_3, window_bounds = array<i64: 1, 1024>}]} {
    %c0 = arith.constant 0 : index
    %c0_0 = arith.constant 0 : index
    %0 = vector.load %arg1[%c0, %c0_0] : memref<1x1024xf32, #tpu.memory_space<vmem>>, vector<1x1024xf32>
    %1 = arith.truncf %0 : vector<1x1024xf32> to vector<1x1024xbf16>
    %c0_1 = arith.constant 0 : index
    %c0_2 = arith.constant 0 : index
    %2 = vector.load %arg2[%c0_1, %c0_2] : memref<1024x1024xbf16, #tpu.memory_space<vmem>>, vector<1024x1024xbf16>
    %cst = arith.constant dense<0.000000e+00> : vector<1x1024xf32>
    %3 = tpu.matmul %1, %2, %cst {dimension_numbers = #tpu.dot_dimension_numbers<[1], [0], [0], [1], [0, 0, 1, 1], [], []>} : vector<1x1024xbf16>, vector<1024x1024xbf16>, vector<1x1024xf32> -> vector<1x1024xf32>
    %c0_3 = arith.constant 0 : index
    %c0_4 = arith.constant 0 : index
    %4 = vector.load %arg3[%c0_3, %c0_4] : memref<1x1024xf32, #tpu.memory_space<vmem>>, vector<1x1024xf32>
    %5 = arith.addf %3, %4 : vector<1x1024xf32>
    %cst_5 = arith.constant 0.000000e+00 : f32
    %6 = vector.broadcast %cst_5 : f32 to vector<1x1024xf32>
    %7 = arith.maximumf %5, %6 : vector<1x1024xf32>
    %c0_6 = arith.constant 0 : index
    %c0_7 = arith.constant 0 : index
    %8 = vector.load %arg4[%c0_6, %c0_7] : memref<1x1024xf32, #tpu.memory_space<vmem>>, vector<1x1024xf32>
    tpu.vector_store %arg4[%c0_6, %c0_7], %7 {strides = array<i32>} : memref<1x1024xf32, #tpu.memory_space<vmem>>, vector<1x1024xf32>,
    return
  }
  func.func @transform_0(%arg0: i32) -> (i32, i32) {
    %c0_i32 = arith.constant 0 : i32
    %c0_i32_0 = arith.constant 0 : i32
    %c0_i32_1 = arith.constant 0 : i32
    return %c0_i32, %c0_i32_0 : i32, i32
  }
  func.func @transform_1(%arg0: i32) -> (i32, i32) {
    %c0_i32 = arith.constant 0 : i32
    %c0_i32_0 = arith.constant 0 : i32
    return %c0_i32, %arg0 : i32, i32
  }
  func.func @transform_2(%arg0: i32) -> (i32, i32) {
    %c0_i32 = arith.constant 0 : i32
    %c0_i32_0 = arith.constant 0 : i32
    return %c0_i32, %arg0 : i32, i32
  }
  func.func @transform_3(%arg0: i32) -> (i32, i32) {
    %c0_i32 = arith.constant 0 : i32
    %c0_i32_0 = arith.constant 0 : i32
    return %c0_i32, %arg0 : i32, i32
  }
}

module attributes {stable_mosaic.version = 11 : i64} {
  func.func @_mlp_tail_kernel(%arg0: i32, %arg1: memref<1x2048xf32, #tpu.memory_space<vmem>>, %arg2: memref<2048x1024xbf16, #tpu.memory_space<vmem>>, %arg3: memref<1x1024xf32, #tpu.memory_space<vmem>>, %arg4: memref<1024x128xbf16, #tpu.memory_space<vmem>>, %arg5: memref<1x128xf32, #tpu.memory_space<vmem>>, %arg6: memref<1x128xf32, #tpu.memory_space<vmem>>, %arg7: memref<1x128xf32, #tpu.memory_space<vmem>>) attributes {dimension_semantics = [#tpu.dimension_semantics<arbitrary>], iteration_bounds = array<i64: 4>, scalar_prefetch = 0 : i64, scratch_operands = 1 : i64, tpu.core_type = #tpu.core_type<tc>, window_params = [{pipeline_mode = #tpu.pipeline_mode<synchronous>, transform_indices = @transform_0, window_bounds = array<i64: 1, 2048>}, {transform_indices = @transform_1, window_bounds = array<i64: 2048, 1024>}, {transform_indices = @transform_2, window_bounds = array<i64: 1, 1024>}, {transform_indices = @transform_3, window_bounds = array<i64: 1024, 128>}, {pipeline_mode = #tpu.pipeline_mode<synchronous>, transform_indices = @transform_4, window_bounds = array<i64: 1, 128>}, {pipeline_mode = #tpu.pipeline_mode<synchronous>, transform_indices = @transform_5, window_bounds = array<i64: 1, 128>}]} {
    %c0_i32 = arith.constant 0 : i32
    %0 = arith.cmpi eq, %arg0, %c0_i32 : i32
    %1 = arith.extui %0 : i1 to i32
    %c0_i32_0 = arith.constant 0 : i32
    %2 = arith.cmpi ne, %1, %c0_i32_0 : i32
    scf.if %2 {
      %cst_15 = arith.constant 0.000000e+00 : f32
      %20 = vector.broadcast %cst_15 : f32 to vector<1x128xf32>
      %c0_16 = arith.constant 0 : index
      %c0_17 = arith.constant 0 : index
      %21 = vector.load %arg7[%c0_16, %c0_17] : memref<1x128xf32, #tpu.memory_space<vmem>>, vector<1x128xf32>
      tpu.vector_store %arg7[%c0_16, %c0_17], %20 {strides = array<i32>} : memref<1x128xf32, #tpu.memory_space<vmem>>, vector<1x128xf32>,
    } else {
    }
    %c0 = arith.constant 0 : index
    %c0_1 = arith.constant 0 : index
    %3 = vector.load %arg1[%c0, %c0_1] : memref<1x2048xf32, #tpu.memory_space<vmem>>, vector<1x2048xf32>
    %4 = arith.truncf %3 : vector<1x2048xf32> to vector<1x2048xbf16>
    %c0_2 = arith.constant 0 : index
    %c0_3 = arith.constant 0 : index
    %5 = vector.load %arg2[%c0_2, %c0_3] : memref<2048x1024xbf16, #tpu.memory_space<vmem>>, vector<2048x1024xbf16>
    %cst = arith.constant dense<0.000000e+00> : vector<1x1024xf32>
    %6 = tpu.matmul %4, %5, %cst {dimension_numbers = #tpu.dot_dimension_numbers<[1], [0], [0], [1], [0, 0, 1, 1], [], []>} : vector<1x2048xbf16>, vector<2048x1024xbf16>, vector<1x1024xf32> -> vector<1x1024xf32>
    %c0_4 = arith.constant 0 : index
    %c0_5 = arith.constant 0 : index
    %7 = vector.load %arg3[%c0_4, %c0_5] : memref<1x1024xf32, #tpu.memory_space<vmem>>, vector<1x1024xf32>
    %8 = arith.addf %6, %7 : vector<1x1024xf32>
    %cst_6 = arith.constant 0.000000e+00 : f32
    %9 = vector.broadcast %cst_6 : f32 to vector<1x1024xf32>
    %10 = arith.maximumf %8, %9 : vector<1x1024xf32>
    %c0_7 = arith.constant 0 : index
    %c0_8 = arith.constant 0 : index
    %11 = vector.load %arg7[%c0_7, %c0_8] : memref<1x128xf32, #tpu.memory_space<vmem>>, vector<1x128xf32>
    %12 = arith.truncf %10 : vector<1x1024xf32> to vector<1x1024xbf16>
    %c0_9 = arith.constant 0 : index
    %c0_10 = arith.constant 0 : index
    %13 = vector.load %arg4[%c0_9, %c0_10] : memref<1024x128xbf16, #tpu.memory_space<vmem>>, vector<1024x128xbf16>
    %cst_11 = arith.constant dense<0.000000e+00> : vector<1x128xf32>
    %14 = tpu.matmul %12, %13, %cst_11 {dimension_numbers = #tpu.dot_dimension_numbers<[1], [0], [0], [1], [0, 0, 1, 1], [], []>} : vector<1x1024xbf16>, vector<1024x128xbf16>, vector<1x128xf32> -> vector<1x128xf32>
    %15 = arith.addf %11, %14 : vector<1x128xf32>
    %c0_12 = arith.constant 0 : index
    %c0_13 = arith.constant 0 : index
    %16 = vector.load %arg7[%c0_12, %c0_13] : memref<1x128xf32, #tpu.memory_space<vmem>>, vector<1x128xf32>
    tpu.vector_store %arg7[%c0_12, %c0_13], %15 {strides = array<i32>} : memref<1x128xf32, #tpu.memory_space<vmem>>, vector<1x128xf32>,
    %c3_i32 = arith.constant 3 : i32
    %17 = arith.cmpi eq, %arg0, %c3_i32 : i32
    %18 = arith.extui %17 : i1 to i32
    %c0_i32_14 = arith.constant 0 : i32
    %19 = arith.cmpi ne, %18, %c0_i32_14 : i32
    scf.if %19 {
      %c0_15 = arith.constant 0 : index
      %c0_16 = arith.constant 0 : index
      %20 = vector.load %arg7[%c0_15, %c0_16] : memref<1x128xf32, #tpu.memory_space<vmem>>, vector<1x128xf32>
      %c0_17 = arith.constant 0 : index
      %c0_18 = arith.constant 0 : index
      %21 = vector.load %arg5[%c0_17, %c0_18] : memref<1x128xf32, #tpu.memory_space<vmem>>, vector<1x128xf32>
      %22 = arith.addf %20, %21 : vector<1x128xf32>
      %23 = arith.negf %22 : vector<1x128xf32>
      %24 = math.exp %23 : vector<1x128xf32>
      %cst_19 = arith.constant 1.000000e+00 : f32
      %25 = vector.broadcast %cst_19 : f32 to vector<1x128xf32>
      %26 = arith.addf %25, %24 : vector<1x128xf32>
      %27 = arith.divf %25, %26 : vector<1x128xf32>
      %c0_20 = arith.constant 0 : index
      %c0_21 = arith.constant 0 : index
      %28 = vector.load %arg6[%c0_20, %c0_21] : memref<1x128xf32, #tpu.memory_space<vmem>>, vector<1x128xf32>
      tpu.vector_store %arg6[%c0_20, %c0_21], %27 {strides = array<i32>} : memref<1x128xf32, #tpu.memory_space<vmem>>, vector<1x128xf32>,
    } else {
    }
    return
  }
  func.func @transform_0(%arg0: i32) -> (i32, i32) {
    %c0_i32 = arith.constant 0 : i32
    %c0_i32_0 = arith.constant 0 : i32
    %c0_i32_1 = arith.constant 0 : i32
    return %c0_i32, %c0_i32_0 : i32, i32
  }
  func.func @transform_1(%arg0: i32) -> (i32, i32) {
    %c0_i32 = arith.constant 0 : i32
    %c0_i32_0 = arith.constant 0 : i32
    return %c0_i32, %arg0 : i32, i32
  }
  func.func @transform_2(%arg0: i32) -> (i32, i32) {
    %c0_i32 = arith.constant 0 : i32
    %c0_i32_0 = arith.constant 0 : i32
    return %c0_i32, %arg0 : i32, i32
  }
  func.func @transform_3(%arg0: i32) -> (i32, i32) {
    %c0_i32 = arith.constant 0 : i32
    %c0_i32_0 = arith.constant 0 : i32
    return %arg0, %c0_i32 : i32, i32
  }
  func.func @transform_4(%arg0: i32) -> (i32, i32) {
    %c0_i32 = arith.constant 0 : i32
    %c0_i32_0 = arith.constant 0 : i32
    %c0_i32_1 = arith.constant 0 : i32
    return %c0_i32, %c0_i32_0 : i32, i32
  }
  func.func @transform_5(%arg0: i32) -> (i32, i32) {
    %c0_i32 = arith.constant 0 : i32
    %c0_i32_0 = arith.constant 0 : i32
    %c0_i32_1 = arith.constant 0 : i32
    return %c0_i32, %c0_i32_0 : i32, i32
  }
}

</mosaic_0001>

<bundles_post_ra>
// kernel: net_forward.6
= control target key start
LH: loop header
LB: loop body
LE: loop exit
PB: predicated region body
PF: predicated region fallthrough
CT: control target
= control target key end

     0   :  { %13 = vsyncpa [#allocation3], 0  ;;  %s1513_s0 = inlined_call_operand.hbm [shape: f32[16,32], index: 0, kind: input, shape index: {}]   ;;  %s1514_s1 = inlined_call_operand.hbm [shape: f32[16,16], index: 1, kind: input, shape index: {}]   ;;  %s1515_s2 = inlined_call_operand.hbm [shape: f32[32,512], index: 2, kind: input, shape index: {}]   ;;  %s1516_s3 = inlined_call_operand.hbm [shape: f32[32,512], index: 3, kind: input, shape index: {}]   ;;  %s1517_s4 = inlined_call_operand.hbm [shape: f32[1,512], index: 4, kind: input, shape index: {}]   ;;  %s1518_s5 = inlined_call_operand.vmem [shape: f32[512,1], index: 5, kind: input, shape index: {}]   ;;  %s1519_s6 = inlined_call_operand.vmem [shape: f32[16,512], index: 6, kind: output, shape index: {0}]   ;;  %s1520_s7 = inlined_call_operand.vmem [shape: f32[16,1], index: 7, kind: output, shape index: {1}]  }
   0x1   :  { %14 = vsyncpa [#allocation5], 0 }
   0x2   :  { %15 = vsyncpa [#allocation8], 0  ;;  %s1141_s24 = smov [#allocation4]   ;;  %s1025_s28 = scalar_lea.hbm %s1514_s1, 256 }
   0x3   :  { %s33_s25 = sshll.u32 %s1141_s24, 4  ;;  %p1026_p0 = scmp.ne.s32.totalorder %s1514_s1, %s1025_s28  ;;  %s34_s25 = int_to_ptr.vmem [resolvable:$true] %s33_s25 }
   0x4   :  { %p1029_p1 = scmp.lt.u32.totalorder %s1025_s28, %s1514_s1 }
   0x6   :  { %p1031_p2 = pnand %p1029_p1, %p1026_p0 }
   0x8   :  { %1034 = shalt.err (!%p1031_p2)
}
   0x9   :  { %s1035_s10 = scalar_lea.vmem %s34_s25, 256  ;;  %p1040_p4 = scmp.lt.s32.totalorder %s34_s25, %s34_s25 }
   0xa   :  { %p1036_p3 = scmp.ne.s32.totalorder %s34_s25, %s1035_s10  ;;  %p1041_p5 = scmp.lt.s32.totalorder %s1035_s10, %s1035_s10 }
   0xc   :  { %p1042_p6 = por %p1041_p5, %p1040_p4 }
   0xe   :  { %p1043_p7 = pnand %p1042_p6, %p1036_p3 }
  0x10   :  { %1046 = shalt.err (!%p1043_p7)
}
  0x11   :  { %s1142_s11 = smov 128   ;;  %s1143_s12 = smov 8  }
  0x12   :  { %39 = dma.hbm_to_vmem [thread:$0]  %s1514_s1, 256, %s34_s25, [#allocation5], %s1142_s11, %s1142_s11, %s1143_s12  }
  0x13   :  { %s1144_s15 = smov [#allocation7]   ;;  %s1145_s17 = smov [#allocation2]  }
  0x14   :  { %s57_s16 = sshll.u32 %s1144_s15, 4  ;;  %s21_s18 = sshll.u32 %s1145_s17, 4  ;;  %s58_s16 = int_to_ptr.vmem [resolvable:$true] %s57_s16  ;;  %s22_s18 = int_to_ptr.vmem [resolvable:$true] %s21_s18 }
  0x15   :  { %s1047_s21 = scalar_lea.hbm %s1516_s3, 2048 }
  0x16   :  { %p1048_p8 = scmp.ne.s32.totalorder %s1516_s3, %s1047_s21  ;;  %p1051_p9 = scmp.lt.u32.totalorder %s1047_s21, %s1516_s3 }
  0x18   :  { %p1053_p10 = pnand %p1051_p9, %p1048_p8 }
  0x1a   :  { %1056 = shalt.err (!%p1053_p10)
}
  0x1b   :  { %s1057_s1 = scalar_lea.vmem %s58_s16, 2048  ;;  %p1062_p12 = scmp.lt.s32.totalorder %s58_s16, %s58_s16 }
  0x1c   :  { %p1058_p11 = scmp.ne.s32.totalorder %s58_s16, %s1057_s1  ;;  %p1063_p13 = scmp.lt.s32.totalorder %s1057_s1, %s1057_s1 }
  0x1e   :  { %p1064_p0 = por %p1063_p13, %p1062_p12 }
  0x20   :  { %p1065_p1 = pnand %p1064_p0, %p1058_p11 }
  0x22   :  { %1068 = shalt.err (!%p1065_p1)
}
  0x23   :  { %s1146_s25 = smov 512   ;;  %s1147_s27 = smov 32  }
  0x24   :  { %63 = dma.hbm_to_vmem [thread:$0]  %s1516_s3, 2048, %s58_s16, [#allocation8], %s1146_s25, %s1146_s25, %s1147_s27  }
  0x25   :  { %s1069_s9 = scalar_lea.hbm %s1513_s0, 256 }
  0x26   :  { %p1070_p2 = scmp.ne.s32.totalorder %s1513_s0, %s1069_s9  ;;  %p1073_p3 = scmp.lt.u32.totalorder %s1069_s9, %s1513_s0 }
  0x28   :  { %p1075_p4 = pnand %p1073_p3, %p1070_p2 }
  0x2a   :  { %1078 = shalt.err (!%p1075_p4)
}
  0x2b   :  { %s1079_s17 = scalar_lea.vmem %s22_s18, 256  ;;  %p1084_p6 = scmp.lt.s32.totalorder %s22_s18, %s22_s18 }
  0x2c   :  { %p1080_p5 = scmp.ne.s32.totalorder %s22_s18, %s1079_s17  ;;  %p1085_p7 = scmp.lt.s32.totalorder %s1079_s17, %s1079_s17 }
  0x2e   :  { %p1086_p8 = por %p1085_p7, %p1084_p6 }
  0x30   :  { %p1087_p9 = pnand %p1086_p8, %p1080_p5 }
  0x32   :  { %1090 = shalt.err (!%p1087_p9)
}
  0x33   :  { %27 = dma.hbm_to_vmem [thread:$0]  %s1513_s0, 256, %s22_s18, [#allocation3], %s1142_s11, %s1142_s11, %s1143_s12  }
  0x34   :  { %s1148_s19 = smov [#allocation6]   ;;  %s1149_s21 = smov [#allocation9]  }
  0x35   :  { %s45_s20 = sshll.u32 %s1148_s19, 4  ;;  %s70_s22 = sshll.u32 %s1149_s21, 4  ;;  %s46_s20 = int_to_ptr.vmem [resolvable:$true] %s45_s20  ;;  %s71_s22 = int_to_ptr.vmem [resolvable:$true] %s70_s22 }
  0x36   :  { %s1091_s26 = scalar_lea.hbm %s1515_s2, 2048 }
  0x37   :  { %p1092_p10 = scmp.ne.s32.totalorder %s1515_s2, %s1091_s26  ;;  %p1095_p11 = scmp.lt.u32.totalorder %s1091_s26, %s1515_s2 }
  0x39   :  { %p1097_p12 = pnand %p1095_p11, %p1092_p10 }
  0x3b   :  { %1100 = shalt.err (!%p1097_p12)
}
  0x3c   :  { %s1101_s0 = scalar_lea.vmem %s46_s20, 2048  ;;  %p1106_p0 = scmp.lt.s32.totalorder %s46_s20, %s46_s20 }
  0x3d   :  { %p1102_p13 = scmp.ne.s32.totalorder %s46_s20, %s1101_s0  ;;  %p1107_p1 = scmp.lt.s32.totalorder %s1101_s0, %s1101_s0 }
  0x3f   :  { %p1108_p2 = por %p1107_p1, %p1106_p0 }
  0x41   :  { %p1109_p3 = pnand %p1108_p2, %p1102_p13 }
  0x43   :  { %1112 = shalt.err (!%p1109_p3)
}
  0x44   :  { %51 = dma.hbm_to_vmem [thread:$0]  %s1515_s2, 2048, %s46_s20, [#allocation5], %s1146_s25, %s1146_s25, %s1147_s27  }
  0x45   :  { %s1113_s9 = scalar_lea.hbm %s1517_s4, 64 }
  0x46   :  { %p1114_p4 = scmp.ne.s32.totalorder %s1517_s4, %s1113_s9  ;;  %p1117_p5 = scmp.lt.u32.totalorder %s1113_s9, %s1517_s4 }
  0x48   :  { %p1119_p6 = pnand %p1117_p5, %p1114_p4 }
  0x4a   :  { %1122 = shalt.err (!%p1119_p6)
}
  0x4b   :  { %s1123_s17 = scalar_lea.vmem %s71_s22, 64  ;;  %p1128_p8 = scmp.lt.s32.totalorder %s71_s22, %s71_s22 }
  0x4c   :  { %p1124_p7 = scmp.ne.s32.totalorder %s71_s22, %s1123_s17  ;;  %p1129_p9 = scmp.lt.s32.totalorder %s1123_s17, %s1123_s17 }
  0x4e   :  { %p1130_p10 = por %p1129_p9, %p1128_p8 }
  0x50   :  { %p1131_p11 = pnand %p1130_p10, %p1124_p7 }
  0x52   :  { %1134 = shalt.err (!%p1131_p11)
}
  0x53   :  { %73 = dma.hbm_to_vmem [thread:$0]  %s1517_s4, 64, %s71_s22, [#allocation8]  }
  0x54   :  { %1135 = dma.done.wait [#allocation3], 256  }
  0x55   :  { %1136 = vsyncadd [#allocation3], 4294967040 }
  0x56   :  { %1137 = dma.done.wait [#allocation5], 2304  }
  0x57   :  { %1138 = vsyncadd [#allocation5], 4294964992 }
  0x58   :  { %1139 = dma.done.wait [#allocation8], 2112  }
  0x59   :  { %1140 = vsyncadd [#allocation8], 4294965184  ;;  %vm95_vm0 = vcmask 130048   ;;  %v1263_v0 = vld [vmem:[#allocation2] sm:$0xff]  ;;  %v1265_v1 = vld [vmem:[#allocation2 + $0x8] sm:$0xff]  ;;  %v1150_v34 = vmov 0.0  }
  0x5a   :  { %v93_v2 = vld [vmem:[#allocation4] sm:$0xff]  ;;  %v903_v3 = vpack.c.bf16 %v1265_v1, %v1263_v0  ;;  %v194_v4 = vld [vmem:[#allocation7 + $0x8] sm:$0xff]  ;;  %v94_v6 = vld [vmem:[#allocation4 + $0x8] sm:$0xff]  ;;  %280 = vmatprep.mubr.f32.mxu1 %v1150_v34  ;;  %vm209_vm1 = vcmask 261120   ;;  %vm792_vm2 = vcmask 7168  }
  0x5b   :  { %900 = vmatprep.mubr.msk.f32.mxu0 %vm95_vm0, %v93_v2  ;;  %v198_v5 = vld [vmem:[#allocation7 + $0x28] sm:$0xff]  ;;  %v196_v8 = vld [vmem:[#allocation7 + $0x18] sm:$0xff]  ;;  %v193_v10 = vld [vmem:[#allocation7] sm:$0xff] }
  0x5c   :  { %v907_v7 = vpack.c.bf16 %v198_v5, %v194_v4  ;;  %v200_v9 = vld [vmem:[#allocation7 + $0x38] sm:$0xff]  ;;  %904 = vmatprep.subr.bf16.mxu0 %v903_v3  ;;  %v197_v12 = vld [vmem:[#allocation7 + $0x20] sm:$0xff]  ;;  %v195_v13 = vld [vmem:[#allocation7 + $0x10] sm:$0xff] }
  0x5d   :  { %v915_v11 = vpack.c.bf16 %v200_v9, %v196_v8  ;;  %v199_v14 = vld [vmem:[#allocation7 + $0x30] sm:$0xff]  ;;  %906 = vmatpush3.bf16.msra.mxu0 %v903_v3  ;;  %v909_v15 = vpack.c.bf16 %v197_v12, %v193_v10  ;;  %v202_v17 = vld [vmem:[#allocation7 + $0x48] sm:$0xff]  ;;  %v204_v19 = vld [vmem:[#allocation7 + $0x58] sm:$0xff] }
  0x5e   :  { %908 = vmatprep.subr.bf16.mxu1 %v907_v7  ;;  %v917_v16 = vpack.c.bf16 %v199_v14, %v195_v13  ;;  %v206_v18 = vld [vmem:[#allocation7 + $0x68] sm:$0xff]  ;;  %v208_v21 = vld [vmem:[#allocation7 + $0x78] sm:$0xff]  ;;  %v201_v22 = vld [vmem:[#allocation7 + $0x40] sm:$0xff] }
  0x5f   :  { %916 = vmatprep.subr.bf16.mxu0 %v915_v11  ;;  %v911_v20 = vpack.c.bf16 %v206_v18, %v202_v17  ;;  %v205_v23 = vld [vmem:[#allocation7 + $0x60] sm:$0xff]  ;;  %910 = vmatpush1.bf16.msra.mxu1 %v909_v15  ;;  %v919_v24 = vpack.c.bf16 %v208_v21, %v204_v19  ;;  %v203_v26 = vld [vmem:[#allocation7 + $0x50] sm:$0xff]  ;;  %v178_v29 = vld [vmem:[#allocation6 + $0x8] sm:$0xff] }
  0x60   :  { %v913_v25 = vpack.c.bf16 %v205_v23, %v201_v22  ;;  %v207_v27 = vld [vmem:[#allocation7 + $0x70] sm:$0xff]  ;;  %901 = vmatmul.mubr.msk.f32.vlgmr.msra.gmra.mrb[0].mxu0 %vm95_vm0, %v94_v6  ;;  %v182_v30 = vld [vmem:[#allocation6 + $0x28] sm:$0xff]  ;;  %v180_v31 = vld [vmem:[#allocation6 + $0x18] sm:$0xff] }
  0x61   :  { %912 = vmatprep.subr.bf16.mxu1 %v911_v20  ;;  %918 = vmatpush1.bf16.msra.mxu0 %v917_v16  ;;  %v921_v28 = vpack.c.bf16 %v207_v27, %v203_v26  ;;  %v923_v32 = vpack.c.bf16 %v182_v30, %v178_v29  ;;  %v184_v33 = vld [vmem:[#allocation6 + $0x38] sm:$0xff]  ;;  %v177_v36 = vld [vmem:[#allocation6] sm:$0xff]  ;;  %v179_v38 = vld [vmem:[#allocation6 + $0x10] sm:$0xff] }
  0x62   :  { %920 = vmatprep.subr.bf16.mxu0 %v919_v24  ;;  %357 = vmatprep.mubr.f32.mxu0 %v1150_v34  ;;  %v931_v35 = vpack.c.bf16 %v184_v33, %v180_v31  ;;  %v181_v37 = vld [vmem:[#allocation6 + $0x20] sm:$0xff]  ;;  %v183_v39 = vld [vmem:[#allocation6 + $0x30] sm:$0xff]  ;;  %v186_v40 = vld [vmem:[#allocation6 + $0x48] sm:$0xff] }
  0x63   :  { %914 = vmatpush1.bf16.msra.mxu1 %v913_v25  ;;  %v190_v41 = vld [vmem:[#allocation6 + $0x68] sm:$0xff]  ;;  %v188_v42 = vld [vmem:[#allocation6 + $0x58] sm:$0xff]  ;;  %v925_v44 = vpack.c.bf16 %v181_v37, %v177_v36  ;;  %v933_v45 = vpack.c.bf16 %v183_v39, %v179_v38  ;;  %v185_v46 = vld [vmem:[#allocation6 + $0x40] sm:$0xff] }
  0x64   :  { %924 = vmatprep.subr.bf16.mxu1 %v923_v32  ;;  %v192_v43 = vld [vmem:[#allocation6 + $0x78] sm:$0xff]  ;;  %v189_v48 = vld [vmem:[#allocation6 + $0x60] sm:$0xff]  ;;  %v187_v49 = vld [vmem:[#allocation6 + $0x50] sm:$0xff]  ;;  %v927_v52 = vpack.c.bf16 %v190_v41, %v186_v40 }
  0x65   :  { %922 = vmatpush1.bf16.msra.mxu0 %v921_v28  ;;  %v191_v50 = vld [vmem:[#allocation6 + $0x70] sm:$0xff]  ;;  %v935_v53 = vpack.c.bf16 %v192_v43, %v188_v42  ;;  %v592_v54 = vld [vmem:[%s1518_s5 + $0x80] sm:$0xff]  ;;  %v593_v55 = vld [vmem:[%s1518_s5 + $0x88] sm:$0xff]  ;;  %v929_v58 = vpack.c.bf16 %v189_v48, %v185_v46 }
  0x66   :  { %932 = vmatprep.subr.bf16.mxu0 %v931_v35  ;;  %v624_v56 = vld [vmem:[%s1518_s5 + $0x180] sm:$0xff]  ;;  %v625_v57 = vld [vmem:[%s1518_s5 + $0x188] sm:$0xff]  ;;  %v937_v59 = vpack.c.bf16 %v191_v50, %v187_v49  ;;  %v939_v62 = vpack.c.bf16 %v593_v55, %v592_v54  ;;  %v594_v4 = vld [vmem:[%s1518_s5 + $0x90] sm:$0xff] }
  0x67   :  { %v576_v60 = vld [vmem:[%s1518_s5] sm:$0xff]  ;;  %v577_v61 = vld [vmem:[%s1518_s5 + $0x8] sm:$0xff]  ;;  %v971_v63 = vpack.c.bf16 %v625_v57, %v624_v56  ;;  %v595_v5 = vld [vmem:[%s1518_s5 + $0x98] sm:$0xff] }
  0x68   :  { %v608_v2 = vld [vmem:[%s1518_s5 + $0x100] sm:$0xff]  ;;  %v609_v3 = vld [vmem:[%s1518_s5 + $0x108] sm:$0xff]  ;;  %v626_v6 = vld [vmem:[%s1518_s5 + $0x190] sm:$0xff]  ;;  %v941_v8 = vpack.c.bf16 %v577_v61, %v576_v60  ;;  %v943_v12 = vpack.c.bf16 %v595_v5, %v594_v4 }
  0x69   :  { %v627_v7 = vld [vmem:[%s1518_s5 + $0x198] sm:$0xff]  ;;  %v973_v9 = vpack.c.bf16 %v609_v3, %v608_v2  ;;  %v578_v10 = vld [vmem:[%s1518_s5 + $0x10] sm:$0xff]  ;;  %v596_v16 = vld [vmem:[%s1518_s5 + $0xa0] sm:$0xff] }
  0x6a   :  { %v579_v11 = vld [vmem:[%s1518_s5 + $0x18] sm:$0xff]  ;;  %v975_v13 = vpack.c.bf16 %v627_v7, %v626_v6  ;;  %v610_v14 = vld [vmem:[%s1518_s5 + $0x110] sm:$0xff]  ;;  %v597_v17 = vld [vmem:[%s1518_s5 + $0xa8] sm:$0xff] }
  0x6b   :  { %v611_v15 = vld [vmem:[%s1518_s5 + $0x118] sm:$0xff]  ;;  %v628_v18 = vld [vmem:[%s1518_s5 + $0x1a0] sm:$0xff]  ;;  %v629_v19 = vld [vmem:[%s1518_s5 + $0x1a8] sm:$0xff]  ;;  %v945_v20 = vpack.c.bf16 %v579_v11, %v578_v10  ;;  %v947_v23 = vpack.c.bf16 %v597_v17, %v596_v16 }
  0x6c   :  { %v580_v21 = vld [vmem:[%s1518_s5 + $0x20] sm:$0xff]  ;;  %v581_v22 = vld [vmem:[%s1518_s5 + $0x28] sm:$0xff]  ;;  %v979_v24 = vpack.c.bf16 %v629_v19, %v628_v18  ;;  %v598_v27 = vld [vmem:[%s1518_s5 + $0xb0] sm:$0xff] }
  0x6d   :  { %v612_v25 = vld [vmem:[%s1518_s5 + $0x120] sm:$0xff]  ;;  %v613_v26 = vld [vmem:[%s1518_s5 + $0x128] sm:$0xff]  ;;  %v599_v28 = vld [vmem:[%s1518_s5 + $0xb8] sm:$0xff]  ;;  %v949_v31 = vpack.c.bf16 %v581_v22, %v580_v21 }
  0x6e   :  { %v630_v29 = vld [vmem:[%s1518_s5 + $0x1b0] sm:$0xff]  ;;  %v631_v30 = vld [vmem:[%s1518_s5 + $0x1b8] sm:$0xff]  ;;  %v981_v32 = vpack.c.bf16 %v613_v26, %v612_v25  ;;  %v600_v38 = vld [vmem:[%s1518_s5 + $0xc0] sm:$0xff]  ;;  %v532_v25 = vlaneseq }
  0x6f   :  { %v583_v33 = vld [vmem:[%s1518_s5 + $0x38] sm:$0xff]  ;;  %v983_v35 = vpack.c.bf16 %v631_v30, %v630_v29  ;;  %v614_v36 = vld [vmem:[%s1518_s5 + $0x130] sm:$0xff]  ;;  %v601_v39 = vld [vmem:[%s1518_s5 + $0xc8] sm:$0xff] }
  0x70   :  { %v615_v37 = vld [vmem:[%s1518_s5 + $0x138] sm:$0xff]  ;;  %v632_v40 = vld [vmem:[%s1518_s5 + $0x1c0] sm:$0xff]  ;;  %v633_v41 = vld [vmem:[%s1518_s5 + $0x1c8] sm:$0xff]  ;;  %v955_v46 = vpack.c.bf16 %v601_v39, %v600_v38  ;;  %v533_v26 = vshrl.u32 %v532_v25, 7 }
  0x71   :  { %v985_v43 = vpack.c.bf16 %v615_v37, %v614_v36  ;;  %v616_v48 = vld [vmem:[%s1518_s5 + $0x140] sm:$0xff]  ;;  %v617_v49 = vld [vmem:[%s1518_s5 + $0x148] sm:$0xff]  ;;  %v602_v50 = vld [vmem:[%s1518_s5 + $0xd0] sm:$0xff] }
  0x72   :  { %v989_v55 = vpack.c.bf16 %v617_v49, %v616_v48  ;;  %v586_v56 = vld [vmem:[%s1518_s5 + $0x50] sm:$0xff]  ;;  %v587_v57 = vld [vmem:[%s1518_s5 + $0x58] sm:$0xff]  ;;  %v636_v2 = vld [vmem:[%s1518_s5 + $0x1e0] sm:$0xff]  ;;  %v538_v30 = vsub.s32 1, %v533_v26 }
  0x73   :  { %v618_v60 = vld [vmem:[%s1518_s5 + $0x150] sm:$0xff]  ;;  %v619_v61 = vld [vmem:[%s1518_s5 + $0x158] sm:$0xff]  ;;  %v637_v3 = vld [vmem:[%s1518_s5 + $0x1e8] sm:$0xff]  ;;  %v961_v4 = vpack.c.bf16 %v587_v57, %v586_v56 }
  0x74   :  { %v993_v5 = vpack.c.bf16 %v619_v61, %v618_v60  ;;  %v995_v7 = vpack.c.bf16 %v637_v3, %v636_v2  ;;  %v620_v10 = vld [vmem:[%s1518_s5 + $0x160] sm:$0xff]  ;;  %v638_v16 = vld [vmem:[%s1518_s5 + $0x1f0] sm:$0xff]  ;;  %v639_v18 = vld [vmem:[%s1518_s5 + $0x1f8] sm:$0xff] }
  0x75   :  { %v590_v19 = vld [vmem:[%s1518_s5 + $0x70] sm:$0xff]  ;;  %v530_v29 = vld [vmem:[#allocation9] sm:$0xf] }
  0x76   :  { %v622_v22 = vld [vmem:[%s1518_s5 + $0x170] sm:$0xff] }
 0x133   :  { %v902_v47 = vpop.f32.mrb[0].mxu0 }
 0x134   :  { %v168_v51 = vpop.f32.mrb[1].mxu0 }
 0x135   :  { %808 = vmatmul.mubr.msk.f32.vlgmr.msra.gmra.mrb[0].mxu1 %vm209_vm1, %v168_v51  ;;  %810 = vmatmul.mubr.msk.f32.vlgmr.msra.gmra.mrb[2].mxu0 %vm209_vm1, %v168_v51  ;;  %v603_v51 = vld [vmem:[%s1518_s5 + $0xd8] sm:$0xff] }
 0x136   :  { %926 = vmatpush1.bf16.msra.mxu1 %v925_v44  ;;  %934 = vmatpush1.bf16.msra.mxu0 %v933_v45  ;;  %v584_v44 = vld [vmem:[%s1518_s5 + $0x40] sm:$0xff]  ;;  %v585_v45 = vld [vmem:[%s1518_s5 + $0x48] sm:$0xff] }
 0x137   :  { %286 = vmatprep.mubr.f32.mxu1 %v1150_v34  ;;  %363 = vmatprep.mubr.f32.mxu0 %v1150_v34  ;;  %v957_v54 = vpack.c.bf16 %v585_v45, %v584_v44 }
 0x138   :  { %928 = vmatprep.subr.bf16.mxu1 %v927_v52  ;;  %936 = vmatprep.subr.bf16.mxu0 %v935_v53  ;;  %v634_v52 = vld [vmem:[%s1518_s5 + $0x1d0] sm:$0xff]  ;;  %v635_v53 = vld [vmem:[%s1518_s5 + $0x1d8] sm:$0xff] }
 0x139   :  { %809 = vmatmul.mubr.msk.f32.gmra.mrb[2].mxu1 %vm209_vm1, %v902_v47  ;;  %811 = vmatmul.mubr.msk.f32.gmra.mrb[4].mxu0 %vm209_vm1, %v902_v47  ;;  %v987_v47 = vpack.c.bf16 %v633_v41, %v632_v40 }
 0x13a   :  { %930 = vmatpush1.bf16.msra.mxu1 %v929_v58  ;;  %938 = vmatpush1.bf16.msra.mxu0 %v937_v59  ;;  %v959_v58 = vpack.c.bf16 %v603_v51, %v602_v50  ;;  %v991_v59 = vpack.c.bf16 %v635_v53, %v634_v52 }
 0x13b   :  { %440 = vmatprep.mubr.f32.mxu1 %v1150_v34  ;;  %517 = vmatprep.mubr.f32.mxu0 %v1150_v34 }
 0x13c   :  { %940 = vmatprep.subr.bf16.mxu1 %v939_v62  ;;  %972 = vmatprep.subr.bf16.mxu0 %v971_v63  ;;  %v604_v62 = vld [vmem:[%s1518_s5 + $0xe0] sm:$0xff]  ;;  %v605_v63 = vld [vmem:[%s1518_s5 + $0xe8] sm:$0xff] }
 0x13d   :  { %812 = vmatmul.mubr.msk.f32.vlgmr.msra.gmra.mrb[0].mxu1 %vm209_vm1, %v1263_v0  ;;  %814 = vmatmul.mubr.msk.f32.vlgmr.msra.gmra.mrb[2].mxu0 %vm209_vm1, %v1263_v0  ;;  %v977_v0 = vpack.c.bf16 %v611_v15, %v610_v14  ;;  %v963_v6 = vpack.c.bf16 %v605_v63, %v604_v62  ;;  %v606_v14 = vld [vmem:[%s1518_s5 + $0xf0] sm:$0xff]  ;;  %v607_v15 = vld [vmem:[%s1518_s5 + $0xf8] sm:$0xff] }
 0x13e   :  { %446 = vmatprep.mubr.f32.mxu1 %v1150_v34  ;;  %523 = vmatprep.mubr.f32.mxu0 %v1150_v34  ;;  %v951_v34 = vpack.c.bf16 %v599_v28, %v598_v27  ;;  %v967_v17 = vpack.c.bf16 %v607_v15, %v606_v14  ;;  %v534_v27 = vsub.s32 0, %v533_v26  ;;  %v542_v28 = vsub.s32 2, %v533_v26 }
 0x13f   :  { %942 = vmatpush3.bf16.msra.mxu1 %v941_v8  ;;  %974 = vmatpush3.bf16.msra.mxu0 %v973_v9  ;;  %v588_v8 = vld [vmem:[%s1518_s5 + $0x60] sm:$0xff]  ;;  %v589_v9 = vld [vmem:[%s1518_s5 + $0x68] sm:$0xff] }
 0x140   :  { %944 = vmatprep.subr.bf16.mxu1 %v943_v12  ;;  %976 = vmatprep.subr.bf16.mxu0 %v975_v13  ;;  %v965_v11 = vpack.c.bf16 %v589_v9, %v588_v8  ;;  %v621_v12 = vld [vmem:[%s1518_s5 + $0x168] sm:$0xff] }
 0x141   :  { %813 = vmatmul.mubr.msk.f32.gmra.mrb[2].mxu1 %vm209_vm1, %v1265_v1  ;;  %815 = vmatmul.mubr.msk.f32.gmra.mrb[4].mxu0 %vm209_vm1, %v1265_v1  ;;  %v582_v1 = vld [vmem:[%s1518_s5 + $0x30] sm:$0xff]  ;;  %v997_v13 = vpack.c.bf16 %v621_v12, %v620_v10 }
 0x142   :  { %v953_v42 = vpack.c.bf16 %v583_v33, %v582_v1  ;;  %v543_v1 = vrot.slane %v530_v29, %v542_v28  ;;  %v539_v33 = vrot.slane %v530_v29, %v538_v30 }
 0x143   :  { %946 = vmatpush3.bf16.msra.mxu1 %v945_v20  ;;  %978 = vmatpush3.bf16.msra.mxu0 %v977_v0  ;;  %v591_v20 = vld [vmem:[%s1518_s5 + $0x78] sm:$0xff]  ;;  %v999_v0 = vpack.c.bf16 %v639_v18, %v638_v16 }
 0x144   :  { %948 = vmatprep.subr.bf16.mxu1 %v947_v23  ;;  %980 = vmatprep.subr.bf16.mxu0 %v979_v24  ;;  %v969_v21 = vpack.c.bf16 %v591_v20, %v590_v19  ;;  %v623_v23 = vld [vmem:[%s1518_s5 + $0x178] sm:$0xff] }
 0x145   :  { %v1001_v24 = vpack.c.bf16 %v623_v23, %v622_v22 }
 0x147   :  { %950 = vmatpush3.bf16.msra.mxu1 %v949_v31  ;;  %982 = vmatpush3.bf16.msra.mxu0 %v981_v32  ;;  %v546_v31 = vsub.s32 3, %v533_v26  ;;  %v535_v32 = vrot.slane %v530_v29, %v534_v27 }
 0x148   :  { %952 = vmatprep.subr.bf16.mxu1 %v951_v34  ;;  %984 = vmatprep.subr.bf16.mxu0 %v983_v35 }
 0x149   :  { %v547_v34 = vrot.slane %v530_v29, %v546_v31 }
 0x14b   :  { %954 = vmatpush3.bf16.msra.mxu1 %v953_v42  ;;  %986 = vmatpush3.bf16.msra.mxu0 %v985_v43 }
 0x14c   :  { %956 = vmatprep.subr.bf16.mxu1 %v955_v46  ;;  %988 = vmatprep.subr.bf16.mxu0 %v987_v47 }
 0x14f   :  { %958 = vmatpush3.bf16.msra.mxu1 %v957_v54  ;;  %990 = vmatpush3.bf16.msra.mxu0 %v989_v55 }
 0x150   :  { %960 = vmatprep.subr.bf16.mxu1 %v959_v58  ;;  %992 = vmatprep.subr.bf16.mxu0 %v991_v59 }
 0x153   :  { %962 = vmatpush3.bf16.msra.mxu1 %v961_v4  ;;  %994 = vmatpush3.bf16.msra.mxu0 %v993_v5 }
 0x154   :  { %964 = vmatprep.subr.bf16.mxu1 %v963_v6  ;;  %996 = vmatprep.subr.bf16.mxu0 %v995_v7 }
 0x157   :  { %966 = vmatpush3.bf16.msra.mxu1 %v965_v11  ;;  %998 = vmatpush3.bf16.msra.mxu0 %v997_v13 }
 0x158   :  { %968 = vmatprep.subr.bf16.mxu1 %v967_v17  ;;  %1000 = vmatprep.subr.bf16.mxu0 %v999_v0 }
 0x15b   :  { %970 = vmatpush3.bf16.msra.mxu1 %v969_v21  ;;  %1002 = vmatpush3.bf16.msra.mxu0 %v1001_v24 }
 0x210   :  { %v442_v35 = vpop.f32.mrb[0].mxu1  ;;  %v519_v36 = vpop.f32.mrb[2].mxu0 }
 0x211   :  { %v552_v37 = vadd.f32 %v535_v32, %v442_v35  ;;  %v554_v38 = vadd.f32 %v543_v1, %v519_v36  ;;  %v444_v39 = vpop.f32.mrb[1].mxu1  ;;  %v521_v40 = vpop.f32.mrb[3].mxu0 }
 0x212   :  { %v553_v41 = vadd.f32 %v539_v33, %v444_v39  ;;  %v555_v42 = vadd.f32 %v547_v34, %v521_v40 }
 0x213   :  { %v560_v43 = vmax.f32 %v552_v37, 0.0  ;;  %v562_v44 = vmax.f32 %v554_v38, 0.0 }
 0x214   :  { %v561_v45 = vmax.f32 %v553_v41, 0.0  ;;  %v563_v46 = vmax.f32 %v555_v42, 0.0  ;;  %v448_v47 = vpop.f32.mrb[2].mxu1  ;;  %v525_v48 = vpop.f32.mrb[4].mxu0 }
 0x215   :  { %568 = vst [vmem:[%s1519_s6] sm:$0xff] %v560_v43  ;;  %570 = vst [vmem:[%s1519_s6 + $0x10] sm:$0xff] %v562_v44  ;;  %v556_v49 = vadd.f32 %v535_v32, %v448_v47  ;;  %v558_v50 = vadd.f32 %v543_v1, %v525_v48  ;;  %v450_v51 = vpop.f32.mrb[3].mxu1  ;;  %v527_v52 = vpop.f32.mrb[5].mxu0 }
 0x216   :  { %569 = vst [vmem:[%s1519_s6 + $0x8] sm:$0xff] %v561_v45  ;;  %571 = vst [vmem:[%s1519_s6 + $0x18] sm:$0xff] %v563_v46  ;;  %v557_v53 = vadd.f32 %v539_v33, %v450_v51  ;;  %v559_v54 = vadd.f32 %v547_v34, %v527_v52  ;;  %704 = vmatprep.mubr.f32.mxu1 %v561_v45  ;;  %779 = vmatprep.mubr.f32.mxu0 %v563_v46 }
 0x217   :  { %v564_v55 = vmax.f32 %v556_v49, 0.0  ;;  %v566_v56 = vmax.f32 %v558_v50, 0.0  ;;  %705 = vmatmul.mubr.f32.vlgmr.msra.gmra.mrb[4].mxu1 %v560_v43  ;;  %780 = vmatmul.mubr.f32.vlgmr.msra.gmra.mrb[6].mxu0 %v562_v44 }
 0x218   :  { %v565_v57 = vmax.f32 %v557_v53, 0.0  ;;  %v567_v58 = vmax.f32 %v559_v54, 0.0 }
 0x219   :  { %572 = vst [vmem:[%s1519_s6 + $0x20] sm:$0xff] %v564_v55  ;;  %574 = vst [vmem:[%s1519_s6 + $0x30] sm:$0xff] %v566_v56 }
 0x21a   :  { %573 = vst [vmem:[%s1519_s6 + $0x28] sm:$0xff] %v565_v57  ;;  %575 = vst [vmem:[%s1519_s6 + $0x38] sm:$0xff] %v567_v58  ;;  %709 = vmatprep.mubr.f32.mxu1 %v565_v57  ;;  %784 = vmatprep.mubr.f32.mxu0 %v567_v58 }
 0x21b   :  { %710 = vmatmul.mubr.f32.gmra.mrb[6].mxu1 %v564_v55  ;;  %785 = vmatmul.mubr.f32.gmra.mrb[8].mxu0 %v566_v56 }
 0x2ea   :  { %v852_v59 = vpop.f32.mrb[4].mxu1  ;;  %v890_v60 = vpop.f32.mrb[6].mxu0 }
 0x2eb   :  { %v853_v61 = vpop.f32.mrb[5].mxu1  ;;  %v891_v62 = vpop.f32.mrb[7].mxu0 }
 0x2ec   :  { %v854_v63 = vadd.f32 %v853_v61, %v852_v59  ;;  %v892_v2 = vadd.f32 %v891_v62, %v890_v60 }
 0x2ee   :  { %v782_v3 = vadd.f32 %v892_v2, %v854_v63  ;;  %v855_v4 = vpop.f32.mrb[6].mxu1  ;;  %v893_v5 = vpop.f32.mrb[8].mxu0 }
 0x2ef   :  { %v856_v6 = vpop.f32.mrb[7].mxu1  ;;  %v894_v7 = vpop.f32.mrb[9].mxu0 }
 0x2f0   :  { %1021 = vtanh.f32 %v782_v3  ;;  %v857_v8 = vadd.f32 %v856_v6, %v855_v4  ;;  %v895_v9 = vadd.f32 %v894_v7, %v893_v5 }
 0x2f2   :  { %v787_v10 = vadd.f32 %v895_v9, %v857_v8 }
 0x2f4   :  { %1023 = vtanh.f32 %v787_v10 }
 0x2fa   :  { %v1022_v11 = vpop.eup %1021 }
 0x2fb   :  { %793 = vst.msk [vmem:[%s1520_s7] sm:$0xff] %vm792_vm2, %v1022_v11 }
 0x2fe   :  { %v1024_v12 = vpop.eup %1023 }
 0x2ff   :  { %794 = vst.msk [vmem:[%s1520_s7 + $0x8] sm:$0xff] %vm792_vm2, %v1024_v12 }
 0x300   :  { %803 = vsyncpa [#allocation3], 1 }
 0x301   :  { %804 = vsyncpa [#allocation5], 1 }
 0x302   :  { %805 = vsyncpa [#allocation8], 1 }

// kernel: net_forward.7
= control target key start
LH: loop header
LB: loop body
LE: loop exit
PB: predicated region body
PF: predicated region fallthrough
CT: control target
= control target key end

     0   :  { %v45_v0 = vlaneseq  ;;  %v134_v4 = vmov 1966171168   ;;  %s165_s0 = inlined_call_operand.vmem [shape: f32[8,512], index: 0, kind: input, shape index: {}]   ;;  %s166_s1 = inlined_call_operand.vmem [shape: f32[1,1024], index: 1, kind: output, shape index: {}]  }
   0x1   :  { %v8_v1 = vld [vmem:[%s165_s0] sm:$0xff]  ;;  %v9_v2 = vld [vmem:[%s165_s0 + $0x8] sm:$0xff]  ;;  %v10_v3 = vld [vmem:[%s165_s0 + $0x10] sm:$0xff]  ;;  %v43_v5 = vunpack.c.l.s4 %v134_v4 }
   0x2   :  { %v11_v6 = vld [vmem:[%s165_s0 + $0x18] sm:$0xff]  ;;  %v12_v7 = vrot.slane %v8_v1, 4  ;;  %v18_v8 = vrot.slane %v9_v2, 4  ;;  %v24_v9 = vrot.slane %v10_v3, 4  ;;  %v46_v10 = vshrl.u32 %v45_v0, 7 }
   0x3   :  { %v30_v11 = vrot.slane %v11_v6, 4  ;;  %v44_v12 = vunpack.c.0.s8 %v43_v5  ;;  %vm67_vm0 = vcmp.lt.s32.totalorder %v45_v0, 512 }
   0x4   :  { %v13_v13 = vmax.f32 %v8_v1, %v12_v7  ;;  %v19_v14 = vmax.f32 %v9_v2, %v18_v8  ;;  %v25_v15 = vmax.f32 %v10_v3, %v24_v9  ;;  %v71_v16 = vadd.f32 %v12_v7, %v8_v1 }
   0x5   :  { %v31_v17 = vmax.f32 %v11_v6, %v30_v11  ;;  %v47_v18 = vsub.s32 %v44_v12, %v46_v10  ;;  %v77_v19 = vadd.f32 %v18_v8, %v9_v2  ;;  %v83_v20 = vadd.f32 %v24_v9, %v10_v3 }
   0x6   :  { %v14_v21 = vrot.slane %v13_v13, 2  ;;  %v20_v22 = vrot.slane %v19_v14, 2  ;;  %v26_v23 = vrot.slane %v25_v15, 2  ;;  %v72_v24 = vrot.slane %v71_v16, 2 }
   0x7   :  { %v32_v25 = vrot.slane %v31_v17, 2  ;;  %v78_v26 = vrot.slane %v77_v19, 2  ;;  %v84_v27 = vrot.slane %v83_v20, 2  ;;  %v89_v28 = vadd.f32 %v30_v11, %v11_v6 }
   0x8   :  { %v15_v29 = vmax.f32 %v13_v13, %v14_v21  ;;  %v21_v30 = vmax.f32 %v19_v14, %v20_v22  ;;  %v27_v31 = vmax.f32 %v25_v15, %v26_v23  ;;  %v73_v32 = vadd.f32 %v72_v24, %v71_v16 }
   0x9   :  { %v33_v33 = vmax.f32 %v31_v17, %v32_v25  ;;  %v79_v34 = vadd.f32 %v78_v26, %v77_v19  ;;  %v85_v35 = vadd.f32 %v84_v27, %v83_v20  ;;  %v90_v36 = vrot.slane %v89_v28, 2 }
   0xa   :  { %v16_v37 = vrot.slane %v15_v29, 1  ;;  %v22_v38 = vrot.slane %v21_v30, 1  ;;  %v28_v39 = vrot.slane %v27_v31, 1  ;;  %v74_v40 = vrot.slane %v73_v32, 1 }
   0xb   :  { %v34_v41 = vrot.slane %v33_v33, 1  ;;  %v80_v42 = vrot.slane %v79_v34, 1  ;;  %v86_v43 = vrot.slane %v85_v35, 1  ;;  %v91_v44 = vadd.f32 %v90_v36, %v89_v28 }
   0xc   :  { %v17_v45 = vmax.f32 %v15_v29, %v16_v37  ;;  %v23_v46 = vmax.f32 %v21_v30, %v22_v38  ;;  %v29_v47 = vmax.f32 %v27_v31, %v28_v39  ;;  %v75_v48 = vadd.f32 %v74_v40, %v73_v32 }
   0xd   :  { %v35_v49 = vmax.f32 %v33_v33, %v34_v41  ;;  %v81_v50 = vadd.f32 %v80_v42, %v79_v34  ;;  %v87_v51 = vadd.f32 %v86_v43, %v85_v35  ;;  %v92_v52 = vrot.slane %v91_v44, 1 }
   0xe   :  { %v40_v53 = vcombine.low %v17_v45, %v23_v46  ;;  %v95_v54 = vmul.f32 0.125, %v75_v48 }
   0xf   :  { %v41_v55 = vcombine.low %v29_v47, %v35_v49  ;;  %v93_v56 = vadd.f32 %v92_v52, %v91_v44  ;;  %v96_v57 = vmul.f32 0.125, %v81_v50  ;;  %v97_v58 = vmul.f32 0.125, %v87_v51 }
  0x10   :  { %v48_v59 = vrot.slane %v40_v53, %v47_v18 }
  0x11   :  { %v55_v60 = vrot.slane %v41_v55, %v47_v18  ;;  %v98_v61 = vmul.f32 0.125, %v93_v56  ;;  %v103_v62 = vcombine.low %v95_v54, %v96_v57 }
  0x13   :  { %v56_v63 = vcombine.low %v48_v59, %v55_v60  ;;  %v104_v1 = vcombine.low %v97_v58, %v98_v61  ;;  %v111_v2 = vrot.slane %v103_v62, %v47_v18 }
  0x15   :  { %v63_v3 = vrot.slane %v56_v63, %v47_v18  ;;  %v118_v4 = vrot.slane %v104_v1, %v47_v18 }
  0x17   :  { %69 = vst.msk [vmem:[%s166_s1] sm:$0xf] %vm67_vm0, %v63_v3  ;;  %v119_v5 = vcombine.low %v111_v2, %v118_v4 }
  0x19   :  { %v126_v6 = vrot.slane %v119_v5, %v47_v18 }
  0x1b   :  { %128 = vst.msk [vmem:[%s166_s1 + $0x4] sm:$0xf] %vm67_vm0, %v126_v6 }

// kernel: net_forward.9
= control target key start
LH: loop header
LB: loop body
LE: loop exit
PB: predicated region body
PF: predicated region fallthrough
CT: control target
= control target key end

     0   :  { %vm16_vm0 = vcmask 1043456   ;;  %v149_v2 = vmov 1966171168   ;;  %v54_v4 = vlaneseq  ;;  %s182_s0 = inlined_call_operand.vmem [shape: f32[4,512], index: 0, kind: input, shape index: {}]   ;;  %s183_s1 = inlined_call_operand.vmem [shape: f32[1,1024], index: 1, kind: output, shape index: {}]  }
   0x1   :  { %v8_v0 = vld [vmem:[%s182_s0] sm:$0xff]  ;;  %v9_v1 = vld [vmem:[%s182_s0 + $0x8] sm:$0xff]  ;;  %v52_v3 = vunpack.c.l.s4 %v149_v2 }
   0x2   :  { %v12_v5 = vcombine.high %v8_v0, %v8_v0  ;;  %v13_v6 = vcombine.high %v9_v1, %v9_v1  ;;  %v17_v7 = vsel %vm16_vm0, %v8_v0, -inf  ;;  %v31_v8 = vsel %vm16_vm0, %v9_v1, -inf }
   0x3   :  { %v18_v9 = vrot.slane %v17_v7, 4  ;;  %v32_v10 = vrot.slane %v31_v8, 4  ;;  %v53_v13 = vunpack.c.0.s8 %v52_v3  ;;  %v79_v14 = vsel %vm16_vm0, %v8_v0, 0.0 }
   0x4   :  { %v24_v11 = vsel %vm16_vm0, %v12_v5, -inf  ;;  %v38_v12 = vsel %vm16_vm0, %v13_v6, -inf  ;;  %v55_v19 = vshrl.u32 %v54_v4, 7  ;;  %v80_v20 = vrot.slane %v79_v14, 4 }
   0x5   :  { %v19_v15 = vmax.f32 %v17_v7, %v18_v9  ;;  %v25_v16 = vrot.slane %v24_v11, 4  ;;  %v33_v17 = vmax.f32 %v31_v8, %v32_v10  ;;  %v39_v18 = vrot.slane %v38_v12, 4 }
   0x6   :  { %v86_v21 = vsel %vm16_vm0, %v12_v5, 0.0  ;;  %v93_v22 = vsel %vm16_vm0, %v9_v1, 0.0  ;;  %v81_v27 = vadd.f32 %v80_v20, %v79_v14  ;;  %v100_v30 = vsel %vm16_vm0, %v13_v6, 0.0 }
   0x7   :  { %v20_v23 = vrot.slane %v19_v15, 2  ;;  %v26_v24 = vmax.f32 %v24_v11, %v25_v16  ;;  %v34_v25 = vrot.slane %v33_v17, 2  ;;  %v40_v26 = vmax.f32 %v38_v12, %v39_v18 }
   0x8   :  { %v87_v28 = vrot.slane %v86_v21, 4  ;;  %v94_v29 = vrot.slane %v93_v22, 4  ;;  %v82_v35 = vrot.slane %v81_v27, 2  ;;  %v101_v38 = vrot.slane %v100_v30, 4 }
   0x9   :  { %v21_v31 = vmax.f32 %v19_v15, %v20_v23  ;;  %v27_v32 = vrot.slane %v26_v24, 2  ;;  %v35_v33 = vmax.f32 %v33_v17, %v34_v25  ;;  %v41_v34 = vrot.slane %v40_v26, 2 }
   0xa   :  { %v88_v36 = vadd.f32 %v87_v28, %v86_v21  ;;  %v95_v37 = vadd.f32 %v94_v29, %v93_v22  ;;  %v83_v43 = vadd.f32 %v82_v35, %v81_v27  ;;  %v102_v46 = vadd.f32 %v101_v38, %v100_v30 }
   0xb   :  { %v22_v39 = vrot.slane %v21_v31, 1  ;;  %v28_v40 = vmax.f32 %v26_v24, %v27_v32  ;;  %v36_v41 = vrot.slane %v35_v33, 1  ;;  %v42_v42 = vmax.f32 %v40_v26, %v41_v34 }
   0xc   :  { %v89_v44 = vrot.slane %v88_v36, 2  ;;  %v96_v45 = vrot.slane %v95_v37, 2  ;;  %v84_v51 = vrot.slane %v83_v43, 1  ;;  %v103_v54 = vrot.slane %v102_v46, 2 }
   0xd   :  { %v23_v47 = vmax.f32 %v21_v31, %v22_v39  ;;  %v29_v48 = vrot.slane %v28_v40, 1  ;;  %v37_v49 = vmax.f32 %v35_v33, %v36_v41  ;;  %v43_v50 = vrot.slane %v42_v42, 1 }
   0xe   :  { %v90_v52 = vadd.f32 %v89_v44, %v88_v36  ;;  %v97_v53 = vadd.f32 %v96_v45, %v95_v37  ;;  %v56_v57 = vsub.s32 %v53_v13, %v55_v19  ;;  %v85_v58 = vadd.f32 %v84_v51, %v83_v43 }
   0xf   :  { %v30_v55 = vmax.f32 %v28_v40, %v29_v48  ;;  %v44_v56 = vmax.f32 %v42_v42, %v43_v50  ;;  %v104_v61 = vadd.f32 %v103_v54, %v102_v46  ;;  %vm76_vm1 = vcmp.lt.s32.totalorder %v54_v4, 512 }
  0x10   :  { %v91_v59 = vrot.slane %v90_v52, 1  ;;  %v98_v60 = vrot.slane %v97_v53, 1  ;;  %v108_v3 = vmul.f32 0.25, %v85_v58 }
  0x11   :  { %v49_v62 = vcombine.low %v23_v47, %v30_v55  ;;  %v50_v63 = vcombine.low %v37_v49, %v44_v56  ;;  %v105_v2 = vrot.slane %v104_v61, 1 }
  0x12   :  { %v92_v0 = vadd.f32 %v91_v59, %v90_v52  ;;  %v99_v1 = vadd.f32 %v98_v60, %v97_v53 }
  0x13   :  { %v57_v5 = vrot.slane %v49_v62, %v56_v57  ;;  %v64_v6 = vrot.slane %v50_v63, %v56_v57  ;;  %v106_v7 = vadd.f32 %v105_v2, %v104_v61 }
  0x14   :  { %v109_v8 = vmul.f32 0.25, %v92_v0  ;;  %v110_v9 = vmul.f32 0.25, %v99_v1 }
  0x15   :  { %v65_v10 = vcombine.low %v57_v5, %v64_v6  ;;  %v111_v11 = vmul.f32 0.25, %v106_v7 }
  0x16   :  { %v116_v12 = vcombine.low %v108_v3, %v109_v8 }
  0x17   :  { %v72_v13 = vrot.slane %v65_v10, %v56_v57  ;;  %v117_v14 = vcombine.low %v110_v9, %v111_v11 }
  0x18   :  { %v124_v15 = vrot.slane %v116_v12, %v56_v57 }
  0x19   :  { %78 = vst.msk [vmem:[%s183_s1] sm:$0xf] %vm76_vm1, %v72_v13  ;;  %v131_v16 = vrot.slane %v117_v14, %v56_v57 }
  0x1b   :  { %v132_v17 = vcombine.low %v124_v15, %v131_v16 }
  0x1d   :  { %v139_v18 = vrot.slane %v132_v17, %v56_v57 }
  0x1f   :  { %141 = vst.msk [vmem:[%s183_s1 + $0x4] sm:$0xf] %vm76_vm1, %v139_v18 }

// kernel: net_forward.8
= control target key start
LH: loop header
LB: loop body
LE: loop exit
PB: predicated region body
PF: predicated region fallthrough
CT: control target
= control target key end

     0   :  { %13 = vsyncpa [#allocation3], 0  ;;  %s2617_s0 = inlined_call_operand.vmem [shape: f32[8,512], index: 0, kind: input, shape index: {}]   ;;  %s2618_s1 = inlined_call_operand.vmem [shape: f32[8,8], index: 1, kind: input, shape index: {}]   ;;  %s2619_s2 = inlined_call_operand.hbm [shape: f32[512,512], index: 2, kind: input, shape index: {}]   ;;  %s2620_s3 = inlined_call_operand.hbm [shape: f32[512,512], index: 3, kind: input, shape index: {}]   ;;  %s2621_s4 = inlined_call_operand.hbm [shape: f32[1,512], index: 4, kind: input, shape index: {}]   ;;  %s2622_s5 = inlined_call_operand.vmem [shape: f32[512,1], index: 5, kind: input, shape index: {}]   ;;  %s2623_s6 = inlined_call_operand.vmem [shape: f32[8,512], index: 6, kind: output, shape index: {0}]   ;;  %s2624_s7 = inlined_call_operand.vmem [shape: f32[8,1], index: 7, kind: output, shape index: {1}]  }
   0x1   :  { %14 = vsyncpa [#allocation5], 0  ;;  %s2288_s24 = smov [#allocation4]   ;;  %s2289_s26 = smov [#allocation2]  }
   0x2   :  { %s36_s25 = sshll.u32 %s2288_s24, 4  ;;  %s24_s27 = sshll.u32 %s2289_s26, 4  ;;  %s37_s25 = int_to_ptr.vmem [resolvable:$true] %s36_s25  ;;  %s2334_s27 = int_to_ptr.vmem [resolvable:$true] %s24_s27 }
   0x3   :  { %s2218_s30 = scalar_lea.hbm %s2620_s3, 32768 }
   0x4   :  { %p2219_p0 = scmp.ne.s32.totalorder %s2620_s3, %s2218_s30  ;;  %p2222_p1 = scmp.lt.u32.totalorder %s2218_s30, %s2620_s3 }
   0x6   :  { %p2224_p2 = pnand %p2222_p1, %p2219_p0 }
   0x8   :  { %2227 = shalt.err (!%p2224_p2)
}
   0x9   :  { %s2228_s12 = scalar_lea.vmem %s37_s25, 32768  ;;  %p2233_p4 = scmp.lt.s32.totalorder %s37_s25, %s37_s25 }
   0xa   :  { %p2229_p3 = scmp.ne.s32.totalorder %s37_s25, %s2228_s12  ;;  %p2234_p5 = scmp.lt.s32.totalorder %s2228_s12, %s2228_s12 }
   0xc   :  { %p2235_p6 = por %p2234_p5, %p2233_p4 }
   0xe   :  { %p2236_p7 = pnand %p2235_p6, %p2229_p3 }
  0x10   :  { %2239 = shalt.err (!%p2236_p7)
}
  0x11   :  { %s2290_s13 = smov 512   ;;  %s2291_s14 = smov 32  }
  0x12   :  { %42 = dma.hbm_to_vmem [thread:$0]  %s2620_s3, 32768, %s37_s25, [#allocation5], %s2290_s13, %s2290_s13, %s2291_s14  }
  0x13   :  { %s2240_s19 = scalar_lea.hbm %s2619_s2, 32768 }
  0x14   :  { %p2241_p8 = scmp.ne.s32.totalorder %s2619_s2, %s2240_s19  ;;  %p2244_p9 = scmp.lt.u32.totalorder %s2240_s19, %s2619_s2 }
  0x16   :  { %p2246_p10 = pnand %p2244_p9, %p2241_p8 }
  0x18   :  { %2249 = shalt.err (!%p2246_p10)
}
  0x19   :  { %s2250_s24 = scalar_lea.vmem %s2334_s27, 32768  ;;  %p2255_p12 = scmp.lt.s32.totalorder %s2334_s27, %s2334_s27 }
  0x1a   :  { %p2251_p11 = scmp.ne.s32.totalorder %s2334_s27, %s2250_s24  ;;  %p2256_p13 = scmp.lt.s32.totalorder %s2250_s24, %s2250_s24 }
  0x1c   :  { %p2257_p0 = por %p2256_p13, %p2255_p12 }
  0x1e   :  { %p2258_p1 = pnand %p2257_p0, %p2251_p11 }
  0x20   :  { %2261 = shalt.err (!%p2258_p1)
}
  0x21   :  { %30 = dma.hbm_to_vmem [thread:$0]  %s2619_s2, 32768, %s2334_s27, [#allocation3], %s2290_s13, %s2290_s13, %s2291_s14  }
  0x22   :  { %s2292_s26 = smov [#allocation6]   ;;  %s2262_s8 = scalar_lea.hbm %s2621_s4, 64 }
  0x23   :  { %s49_s28 = sshll.u32 %s2292_s26, 4  ;;  %p2263_p2 = scmp.ne.s32.totalorder %s2621_s4, %s2262_s8  ;;  %s50_s28 = int_to_ptr.vmem [resolvable:$true] %s49_s28 }
  0x24   :  { %p2266_p3 = scmp.lt.u32.totalorder %s2262_s8, %s2621_s4 }
  0x26   :  { %p2268_p4 = pnand %p2266_p3, %p2263_p2 }
  0x28   :  { %2271 = shalt.err (!%p2268_p4)
}
  0x29   :  { %s2272_s15 = scalar_lea.vmem %s50_s28, 64  ;;  %p2277_p6 = scmp.lt.s32.totalorder %s50_s28, %s50_s28 }
  0x2a   :  { %p2273_p5 = scmp.ne.s32.totalorder %s50_s28, %s2272_s15  ;;  %p2278_p7 = scmp.lt.s32.totalorder %s2272_s15, %s2272_s15 }
  0x2c   :  { %p2279_p8 = por %p2278_p7, %p2277_p6 }
  0x2e   :  { %p2280_p9 = pnand %p2279_p8, %p2273_p5 }
  0x30   :  { %2283 = shalt.err (!%p2280_p9)
}
  0x31   :  { %52 = dma.hbm_to_vmem [thread:$0]  %s2621_s4, 64, %s50_s28, [#allocation5]  }
  0x32   :  { %2284 = dma.done.wait [#allocation3], 32768  }
  0x33   :  { %2285 = vsyncadd [#allocation3], 4294934528 }
  0x34   :  { %2286 = dma.done.wait [#allocation5], 32832  }
  0x35   :  { %2287 = vsyncadd [#allocation5], 4294934464  ;;  %v2293_v0 = vmov 0.0   ;;  %v65_v1 = vld [vmem:[%s2617_s0 + $0x8] sm:$0xff]  ;;  %v64_v2 = vld [vmem:[%s2617_s0] sm:$0xff]  ;;  %vm69_vm0 = vcmask 64512  }
  0x36   :  { %137 = vmatprep.mubr.f32.mxu0 %v2293_v0  ;;  %208 = vmatprep.mubr.f32.mxu1 %v2293_v0  ;;  %v68_v3 = vld [vmem:[%s2618_s1] sm:$0xff]  ;;  %v67_v4 = vld [vmem:[%s2617_s0 + $0x18] sm:$0xff]  ;;  %v66_v5 = vld [vmem:[%s2617_s0 + $0x10] sm:$0xff]  ;;  %vm1534_vm1 = vcmask 7168  }
  0x37   :  { %73 = vmatprep.subr.mxu0 %v65_v1  ;;  %v472_v6 = vld [vmem:[#allocation4 + $0x8] sm:$0xff]  ;;  %144 = vmatprep.subr.mxu1 %v67_v4  ;;  %v474_v8 = vld [vmem:[#allocation4 + $0x18] sm:$0xff]  ;;  %v471_v12 = vld [vmem:[#allocation4] sm:$0xff] }
  0x38   :  { %74 = vmatpush1.msra.mxu0 %v64_v2  ;;  %v476_v7 = vld [vmem:[#allocation4 + $0x28] sm:$0xff]  ;;  %v478_v9 = vld [vmem:[#allocation4 + $0x38] sm:$0xff]  ;;  %145 = vmatpush1.msra.mxu1 %v66_v5  ;;  %v475_v13 = vld [vmem:[#allocation4 + $0x20] sm:$0xff] }
  0x39   :  { %1546 = vmatmul.mubr.msk.f32.vlgmr.msra.gmra.mrb[0].mxu0 %vm69_vm0, %v68_v3  ;;  %v1618_v10 = vpack.c.bf16 %v476_v7, %v472_v6  ;;  %v1746_v11 = vpack.c.bf16 %v478_v9, %v474_v8  ;;  %v473_v14 = vld [vmem:[#allocation4 + $0x10] sm:$0xff]  ;;  %1547 = vmatmul.mubr.msk.f32.vlgmr.msra.gmra.mrb[0].mxu1 %vm69_vm0, %v68_v3  ;;  %v1620_v15 = vpack.c.bf16 %v475_v13, %v471_v12  ;;  %v480_v17 = vld [vmem:[#allocation4 + $0x48] sm:$0xff]  ;;  %v482_v21 = vld [vmem:[#allocation4 + $0x58] sm:$0xff] }
  0x3a   :  { %v477_v16 = vld [vmem:[#allocation4 + $0x30] sm:$0xff]  ;;  %v484_v18 = vld [vmem:[#allocation4 + $0x68] sm:$0xff]  ;;  %v486_v22 = vld [vmem:[#allocation4 + $0x78] sm:$0xff] }
  0x3b   :  { %1619 = vmatprep.subr.bf16.mxu0 %v1618_v10  ;;  %1747 = vmatprep.subr.bf16.mxu1 %v1746_v11  ;;  %v1748_v19 = vpack.c.bf16 %v477_v16, %v473_v14  ;;  %v1622_v20 = vpack.c.bf16 %v484_v18, %v480_v17  ;;  %v479_v23 = vld [vmem:[#allocation4 + $0x40] sm:$0xff]  ;;  %v1750_v24 = vpack.c.bf16 %v486_v22, %v482_v21  ;;  %v481_v26 = vld [vmem:[#allocation4 + $0x50] sm:$0xff]  ;;  %v488_v30 = vld [vmem:[#allocation4 + $0x88] sm:$0xff] }
  0x3c   :  { %1621 = vmatpush1.bf16.msra.mxu0 %v1620_v15  ;;  %v483_v25 = vld [vmem:[#allocation4 + $0x60] sm:$0xff]  ;;  %v485_v27 = vld [vmem:[#allocation4 + $0x70] sm:$0xff]  ;;  %v492_v31 = vld [vmem:[#allocation4 + $0xa8] sm:$0xff] }
  0x3d   :  { %1749 = vmatpush1.bf16.msra.mxu1 %v1748_v19  ;;  %1623 = vmatprep.subr.bf16.mxu0 %v1622_v20  ;;  %v1624_v28 = vpack.c.bf16 %v483_v25, %v479_v23  ;;  %v1752_v29 = vpack.c.bf16 %v485_v27, %v481_v26  ;;  %v490_v32 = vld [vmem:[#allocation4 + $0x98] sm:$0xff]  ;;  %v1626_v33 = vpack.c.bf16 %v492_v31, %v488_v30  ;;  %v487_v35 = vld [vmem:[#allocation4 + $0x80] sm:$0xff]  ;;  %v489_v38 = vld [vmem:[#allocation4 + $0x90] sm:$0xff] }
  0x3e   :  { %1751 = vmatprep.subr.bf16.mxu1 %v1750_v24  ;;  %v494_v34 = vld [vmem:[#allocation4 + $0xb8] sm:$0xff]  ;;  %v491_v36 = vld [vmem:[#allocation4 + $0xa0] sm:$0xff]  ;;  %v493_v39 = vld [vmem:[#allocation4 + $0xb0] sm:$0xff] }
  0x3f   :  { %v1754_v37 = vpack.c.bf16 %v494_v34, %v490_v32  ;;  %v496_v40 = vld [vmem:[#allocation4 + $0xc8] sm:$0xff]  ;;  %v1628_v41 = vpack.c.bf16 %v491_v36, %v487_v35  ;;  %v498_v43 = vld [vmem:[#allocation4 + $0xd8] sm:$0xff]  ;;  %v1756_v45 = vpack.c.bf16 %v493_v39, %v489_v38  ;;  %v495_v47 = vld [vmem:[#allocation4 + $0xc0] sm:$0xff] }
  0x40   :  { %1625 = vmatpush1.bf16.msra.mxu0 %v1624_v28  ;;  %v500_v42 = vld [vmem:[#allocation4 + $0xe8] sm:$0xff]  ;;  %v502_v44 = vld [vmem:[#allocation4 + $0xf8] sm:$0xff]  ;;  %v499_v48 = vld [vmem:[#allocation4 + $0xe0] sm:$0xff] }
  0x41   :  { %1753 = vmatpush1.bf16.msra.mxu1 %v1752_v29  ;;  %1627 = vmatprep.subr.bf16.mxu0 %v1626_v33  ;;  %v1630_v46 = vpack.c.bf16 %v500_v42, %v496_v40  ;;  %v497_v49 = vld [vmem:[#allocation4 + $0xd0] sm:$0xff]  ;;  %v1758_v50 = vpack.c.bf16 %v502_v44, %v498_v43  ;;  %v504_v52 = vld [vmem:[#allocation4 + $0x108] sm:$0xff]  ;;  %v506_v54 = vld [vmem:[#allocation4 + $0x118] sm:$0xff]  ;;  %v1632_v56 = vpack.c.bf16 %v499_v48, %v495_v47 }
  0x42   :  { %1755 = vmatprep.subr.bf16.mxu1 %v1754_v37  ;;  %v501_v51 = vld [vmem:[#allocation4 + $0xf0] sm:$0xff]  ;;  %v508_v53 = vld [vmem:[#allocation4 + $0x128] sm:$0xff]  ;;  %v510_v55 = vld [vmem:[#allocation4 + $0x138] sm:$0xff] }
  0x43   :  { %v1760_v57 = vpack.c.bf16 %v501_v51, %v497_v49  ;;  %v1634_v58 = vpack.c.bf16 %v508_v53, %v504_v52  ;;  %v503_v59 = vld [vmem:[#allocation4 + $0x100] sm:$0xff]  ;;  %v505_v61 = vld [vmem:[#allocation4 + $0x110] sm:$0xff]  ;;  %v1762_v62 = vpack.c.bf16 %v510_v55, %v506_v54  ;;  %v512_v0 = vld [vmem:[#allocation4 + $0x148] sm:$0xff] }
  0x44   :  { %1629 = vmatpush1.bf16.msra.mxu0 %v1628_v41  ;;  %v507_v60 = vld [vmem:[#allocation4 + $0x120] sm:$0xff]  ;;  %v509_v63 = vld [vmem:[#allocation4 + $0x130] sm:$0xff]  ;;  %v516_v1 = vld [vmem:[#allocation4 + $0x168] sm:$0xff] }
  0x45   :  { %1757 = vmatpush1.bf16.msra.mxu1 %v1756_v45  ;;  %1631 = vmatprep.subr.bf16.mxu0 %v1630_v46  ;;  %v514_v2 = vld [vmem:[#allocation4 + $0x158] sm:$0xff]  ;;  %v1636_v4 = vpack.c.bf16 %v507_v60, %v503_v59  ;;  %v1764_v5 = vpack.c.bf16 %v509_v63, %v505_v61  ;;  %v1638_v6 = vpack.c.bf16 %v516_v1, %v512_v0  ;;  %v511_v7 = vld [vmem:[#allocation4 + $0x140] sm:$0xff]  ;;  %v513_v9 = vld [vmem:[#allocation4 + $0x150] sm:$0xff] }
  0x46   :  { %1759 = vmatprep.subr.bf16.mxu1 %v1758_v50  ;;  %v518_v3 = vld [vmem:[#allocation4 + $0x178] sm:$0xff]  ;;  %v515_v8 = vld [vmem:[#allocation4 + $0x160] sm:$0xff]  ;;  %v517_v11 = vld [vmem:[#allocation4 + $0x170] sm:$0xff] }
  0x47   :  { %v1766_v10 = vpack.c.bf16 %v518_v3, %v514_v2  ;;  %v520_v12 = vld [vmem:[#allocation4 + $0x188] sm:$0xff]  ;;  %v522_v14 = vld [vmem:[#allocation4 + $0x198] sm:$0xff]  ;;  %v1640_v16 = vpack.c.bf16 %v515_v8, %v511_v7  ;;  %v1768_v17 = vpack.c.bf16 %v517_v11, %v513_v9  ;;  %v519_v19 = vld [vmem:[#allocation4 + $0x180] sm:$0xff] }
  0x48   :  { %1633 = vmatpush1.bf16.msra.mxu0 %v1632_v56  ;;  %v524_v13 = vld [vmem:[#allocation4 + $0x1a8] sm:$0xff]  ;;  %v526_v15 = vld [vmem:[#allocation4 + $0x1b8] sm:$0xff]  ;;  %v523_v20 = vld [vmem:[#allocation4 + $0x1a0] sm:$0xff] }
  0x49   :  { %1761 = vmatpush1.bf16.msra.mxu1 %v1760_v57  ;;  %1635 = vmatprep.subr.bf16.mxu0 %v1634_v58  ;;  %v1642_v18 = vpack.c.bf16 %v524_v13, %v520_v12  ;;  %v521_v21 = vld [vmem:[#allocation4 + $0x190] sm:$0xff]  ;;  %v1770_v22 = vpack.c.bf16 %v526_v15, %v522_v14  ;;  %v528_v24 = vld [vmem:[#allocation4 + $0x1c8] sm:$0xff]  ;;  %v530_v26 = vld [vmem:[#allocation4 + $0x1d8] sm:$0xff]  ;;  %v1644_v28 = vpack.c.bf16 %v523_v20, %v519_v19 }
  0x4a   :  { %1763 = vmatprep.subr.bf16.mxu1 %v1762_v62  ;;  %v525_v23 = vld [vmem:[#allocation4 + $0x1b0] sm:$0xff]  ;;  %v532_v25 = vld [vmem:[#allocation4 + $0x1e8] sm:$0xff]  ;;  %v534_v27 = vld [vmem:[#allocation4 + $0x1f8] sm:$0xff] }
  0x4b   :  { %v1772_v29 = vpack.c.bf16 %v525_v23, %v521_v21  ;;  %v1646_v30 = vpack.c.bf16 %v532_v25, %v528_v24  ;;  %v527_v31 = vld [vmem:[#allocation4 + $0x1c0] sm:$0xff]  ;;  %v529_v33 = vld [vmem:[#allocation4 + $0x1d0] sm:$0xff]  ;;  %v1774_v34 = vpack.c.bf16 %v534_v27, %v530_v26  ;;  %v536_v36 = vld [vmem:[#allocation4 + $0x208] sm:$0xff] }
  0x4c   :  { %1637 = vmatpush1.bf16.msra.mxu0 %v1636_v4  ;;  %v531_v32 = vld [vmem:[#allocation4 + $0x1e0] sm:$0xff]  ;;  %v533_v35 = vld [vmem:[#allocation4 + $0x1f0] sm:$0xff]  ;;  %v540_v37 = vld [vmem:[#allocation4 + $0x228] sm:$0xff] }
  0x4d   :  { %1765 = vmatpush1.bf16.msra.mxu1 %v1764_v5  ;;  %1639 = vmatprep.subr.bf16.mxu0 %v1638_v6  ;;  %v538_v38 = vld [vmem:[#allocation4 + $0x218] sm:$0xff]  ;;  %v1648_v40 = vpack.c.bf16 %v531_v32, %v527_v31  ;;  %v1776_v41 = vpack.c.bf16 %v533_v35, %v529_v33  ;;  %v1650_v42 = vpack.c.bf16 %v540_v37, %v536_v36  ;;  %v535_v43 = vld [vmem:[#allocation4 + $0x200] sm:$0xff]  ;;  %v537_v45 = vld [vmem:[#allocation4 + $0x210] sm:$0xff] }
  0x4e   :  { %1767 = vmatprep.subr.bf16.mxu1 %v1766_v10  ;;  %v542_v39 = vld [vmem:[#allocation4 + $0x238] sm:$0xff]  ;;  %v539_v44 = vld [vmem:[#allocation4 + $0x220] sm:$0xff]  ;;  %v541_v47 = vld [vmem:[#allocation4 + $0x230] sm:$0xff] }
  0x4f   :  { %v1778_v46 = vpack.c.bf16 %v542_v39, %v538_v38  ;;  %v544_v48 = vld [vmem:[#allocation4 + $0x248] sm:$0xff]  ;;  %v546_v50 = vld [vmem:[#allocation4 + $0x258] sm:$0xff]  ;;  %v1652_v52 = vpack.c.bf16 %v539_v44, %v535_v43  ;;  %v1780_v53 = vpack.c.bf16 %v541_v47, %v537_v45  ;;  %v543_v55 = vld [vmem:[#allocation4 + $0x240] sm:$0xff] }
  0x50   :  { %1641 = vmatpush1.bf16.msra.mxu0 %v1640_v16  ;;  %v548_v49 = vld [vmem:[#allocation4 + $0x268] sm:$0xff]  ;;  %v550_v51 = vld [vmem:[#allocation4 + $0x278] sm:$0xff]  ;;  %v547_v56 = vld [vmem:[#allocation4 + $0x260] sm:$0xff] }
  0x51   :  { %1769 = vmatpush1.bf16.msra.mxu1 %v1768_v17  ;;  %1643 = vmatprep.subr.bf16.mxu0 %v1642_v18  ;;  %v1654_v54 = vpack.c.bf16 %v548_v49, %v544_v48  ;;  %v545_v57 = vld [vmem:[#allocation4 + $0x250] sm:$0xff]  ;;  %v1782_v58 = vpack.c.bf16 %v550_v51, %v546_v50  ;;  %v552_v60 = vld [vmem:[#allocation4 + $0x288] sm:$0xff]  ;;  %v554_v62 = vld [vmem:[#allocation4 + $0x298] sm:$0xff]  ;;  %v1656_v0 = vpack.c.bf16 %v547_v56, %v543_v55 }
  0x52   :  { %1771 = vmatprep.subr.bf16.mxu1 %v1770_v22  ;;  %v549_v59 = vld [vmem:[#allocation4 + $0x270] sm:$0xff]  ;;  %v556_v61 = vld [vmem:[#allocation4 + $0x2a8] sm:$0xff]  ;;  %v558_v63 = vld [vmem:[#allocation4 + $0x2b8] sm:$0xff] }
  0x53   :  { %v1784_v1 = vpack.c.bf16 %v549_v59, %v545_v57  ;;  %v1658_v2 = vpack.c.bf16 %v556_v61, %v552_v60  ;;  %v551_v3 = vld [vmem:[#allocation4 + $0x280] sm:$0xff]  ;;  %v553_v5 = vld [vmem:[#allocation4 + $0x290] sm:$0xff]  ;;  %v1786_v6 = vpack.c.bf16 %v558_v63, %v554_v62  ;;  %v560_v8 = vld [vmem:[#allocation4 + $0x2c8] sm:$0xff] }
  0x54   :  { %1645 = vmatpush1.bf16.msra.mxu0 %v1644_v28  ;;  %v555_v4 = vld [vmem:[#allocation4 + $0x2a0] sm:$0xff]  ;;  %v557_v7 = vld [vmem:[#allocation4 + $0x2b0] sm:$0xff]  ;;  %v564_v9 = vld [vmem:[#allocation4 + $0x2e8] sm:$0xff] }
  0x55   :  { %1773 = vmatpush1.bf16.msra.mxu1 %v1772_v29  ;;  %1647 = vmatprep.subr.bf16.mxu0 %v1646_v30  ;;  %v562_v10 = vld [vmem:[#allocation4 + $0x2d8] sm:$0xff]  ;;  %v1660_v12 = vpack.c.bf16 %v555_v4, %v551_v3  ;;  %v1788_v13 = vpack.c.bf16 %v557_v7, %v553_v5  ;;  %v1662_v14 = vpack.c.bf16 %v564_v9, %v560_v8  ;;  %v559_v15 = vld [vmem:[#allocation4 + $0x2c0] sm:$0xff]  ;;  %v561_v17 = vld [vmem:[#allocation4 + $0x2d0] sm:$0xff] }
  0x56   :  { %1775 = vmatprep.subr.bf16.mxu1 %v1774_v34  ;;  %v566_v11 = vld [vmem:[#allocation4 + $0x2f8] sm:$0xff]  ;;  %v563_v16 = vld [vmem:[#allocation4 + $0x2e0] sm:$0xff]  ;;  %v565_v19 = vld [vmem:[#allocation4 + $0x2f0] sm:$0xff] }
  0x57   :  { %v1790_v18 = vpack.c.bf16 %v566_v11, %v562_v10  ;;  %v568_v20 = vld [vmem:[#allocation4 + $0x308] sm:$0xff]  ;;  %v570_v22 = vld [vmem:[#allocation4 + $0x318] sm:$0xff]  ;;  %v1664_v24 = vpack.c.bf16 %v563_v16, %v559_v15  ;;  %v1792_v25 = vpack.c.bf16 %v565_v19, %v561_v17  ;;  %v567_v27 = vld [vmem:[#allocation4 + $0x300] sm:$0xff] }
  0x58   :  { %1649 = vmatpush1.bf16.msra.mxu0 %v1648_v40  ;;  %v572_v21 = vld [vmem:[#allocation4 + $0x328] sm:$0xff]  ;;  %v574_v23 = vld [vmem:[#allocation4 + $0x338] sm:$0xff]  ;;  %v571_v28 = vld [vmem:[#allocation4 + $0x320] sm:$0xff] }
  0x59   :  { %1777 = vmatpush1.bf16.msra.mxu1 %v1776_v41  ;;  %1651 = vmatprep.subr.bf16.mxu0 %v1650_v42  ;;  %v1666_v26 = vpack.c.bf16 %v572_v21, %v568_v20  ;;  %v569_v29 = vld [vmem:[#allocation4 + $0x310] sm:$0xff]  ;;  %v1794_v30 = vpack.c.bf16 %v574_v23, %v570_v22  ;;  %v576_v32 = vld [vmem:[#allocation4 + $0x348] sm:$0xff]  ;;  %v578_v34 = vld [vmem:[#allocation4 + $0x358] sm:$0xff]  ;;  %v1668_v36 = vpack.c.bf16 %v571_v28, %v567_v27 }
  0x5a   :  { %1779 = vmatprep.subr.bf16.mxu1 %v1778_v46  ;;  %v573_v31 = vld [vmem:[#allocation4 + $0x330] sm:$0xff]  ;;  %v580_v33 = vld [vmem:[#allocation4 + $0x368] sm:$0xff]  ;;  %v582_v35 = vld [vmem:[#allocation4 + $0x378] sm:$0xff] }
  0x5b   :  { %v1796_v37 = vpack.c.bf16 %v573_v31, %v569_v29  ;;  %v1670_v38 = vpack.c.bf16 %v580_v33, %v576_v32  ;;  %v575_v39 = vld [vmem:[#allocation4 + $0x340] sm:$0xff]  ;;  %v577_v41 = vld [vmem:[#allocation4 + $0x350] sm:$0xff]  ;;  %v1798_v42 = vpack.c.bf16 %v582_v35, %v578_v34  ;;  %v584_v44 = vld [vmem:[#allocation4 + $0x388] sm:$0xff] }
  0x5c   :  { %1653 = vmatpush1.bf16.msra.mxu0 %v1652_v52  ;;  %v579_v40 = vld [vmem:[#allocation4 + $0x360] sm:$0xff]  ;;  %v581_v43 = vld [vmem:[#allocation4 + $0x370] sm:$0xff]  ;;  %v588_v45 = vld [vmem:[#allocation4 + $0x3a8] sm:$0xff] }
  0x5d   :  { %1781 = vmatpush1.bf16.msra.mxu1 %v1780_v53  ;;  %1655 = vmatprep.subr.bf16.mxu0 %v1654_v54  ;;  %v586_v46 = vld [vmem:[#allocation4 + $0x398] sm:$0xff]  ;;  %v1672_v48 = vpack.c.bf16 %v579_v40, %v575_v39  ;;  %v1800_v49 = vpack.c.bf16 %v581_v43, %v577_v41  ;;  %v1674_v50 = vpack.c.bf16 %v588_v45, %v584_v44  ;;  %v583_v51 = vld [vmem:[#allocation4 + $0x380] sm:$0xff]  ;;  %v585_v53 = vld [vmem:[#allocation4 + $0x390] sm:$0xff] }
  0x5e   :  { %1783 = vmatprep.subr.bf16.mxu1 %v1782_v58  ;;  %v590_v47 = vld [vmem:[#allocation4 + $0x3b8] sm:$0xff]  ;;  %v587_v52 = vld [vmem:[#allocation4 + $0x3a0] sm:$0xff]  ;;  %v589_v55 = vld [vmem:[#allocation4 + $0x3b0] sm:$0xff] }
  0x5f   :  { %v1802_v54 = vpack.c.bf16 %v590_v47, %v586_v46  ;;  %v592_v56 = vld [vmem:[#allocation4 + $0x3c8] sm:$0xff]  ;;  %v594_v58 = vld [vmem:[#allocation4 + $0x3d8] sm:$0xff]  ;;  %v1676_v60 = vpack.c.bf16 %v587_v52, %v583_v51  ;;  %v1804_v61 = vpack.c.bf16 %v589_v55, %v585_v53  ;;  %v591_v63 = vld [vmem:[#allocation4 + $0x3c0] sm:$0xff] }
  0x60   :  { %1657 = vmatpush1.bf16.msra.mxu0 %v1656_v0  ;;  %v596_v57 = vld [vmem:[#allocation4 + $0x3e8] sm:$0xff]  ;;  %v598_v59 = vld [vmem:[#allocation4 + $0x3f8] sm:$0xff]  ;;  %v595_v0 = vld [vmem:[#allocation4 + $0x3e0] sm:$0xff] }
  0x61   :  { %1785 = vmatpush1.bf16.msra.mxu1 %v1784_v1  ;;  %1659 = vmatprep.subr.bf16.mxu0 %v1658_v2  ;;  %v1678_v62 = vpack.c.bf16 %v596_v57, %v592_v56  ;;  %v1806_v1 = vpack.c.bf16 %v598_v59, %v594_v58  ;;  %v593_v2 = vld [vmem:[#allocation4 + $0x3d0] sm:$0xff]  ;;  %v1680_v4 = vpack.c.bf16 %v595_v0, %v591_v63  ;;  %v604_v7 = vld [vmem:[#allocation4 + $0x428] sm:$0xff]  ;;  %v602_v8 = vld [vmem:[#allocation4 + $0x418] sm:$0xff] }
  0x62   :  { %1787 = vmatprep.subr.bf16.mxu1 %v1786_v6  ;;  %v597_v3 = vld [vmem:[#allocation4 + $0x3f0] sm:$0xff]  ;;  %v600_v6 = vld [vmem:[#allocation4 + $0x408] sm:$0xff]  ;;  %v606_v10 = vld [vmem:[#allocation4 + $0x438] sm:$0xff] }
  0x63   :  { %v1808_v5 = vpack.c.bf16 %v597_v3, %v593_v2  ;;  %v1682_v9 = vpack.c.bf16 %v604_v7, %v600_v6  ;;  %v1810_v11 = vpack.c.bf16 %v606_v10, %v602_v8  ;;  %v605_v15 = vld [vmem:[#allocation4 + $0x430] sm:$0xff]  ;;  %v608_v16 = vld [vmem:[#allocation4 + $0x448] sm:$0xff]  ;;  %v614_v19 = vld [vmem:[#allocation4 + $0x478] sm:$0xff] }
  0x64   :  { %1661 = vmatpush1.bf16.msra.mxu0 %v1660_v12  ;;  %v599_v12 = vld [vmem:[#allocation4 + $0x400] sm:$0xff]  ;;  %v612_v17 = vld [vmem:[#allocation4 + $0x468] sm:$0xff]  ;;  %v609_v28 = vld [vmem:[#allocation4 + $0x450] sm:$0xff] }
  0x65   :  { %1789 = vmatpush1.bf16.msra.mxu1 %v1788_v13  ;;  %1663 = vmatprep.subr.bf16.mxu0 %v1662_v14  ;;  %v603_v13 = vld [vmem:[#allocation4 + $0x420] sm:$0xff]  ;;  %v601_v14 = vld [vmem:[#allocation4 + $0x410] sm:$0xff]  ;;  %v620_v32 = vld [vmem:[#allocation4 + $0x4a8] sm:$0xff] }
  0x66   :  { %1791 = vmatprep.subr.bf16.mxu1 %v1790_v18  ;;  %v610_v18 = vld [vmem:[#allocation4 + $0x458] sm:$0xff]  ;;  %v1684_v21 = vpack.c.bf16 %v603_v13, %v599_v12  ;;  %v1812_v22 = vpack.c.bf16 %v605_v15, %v601_v14  ;;  %v607_v23 = vld [vmem:[#allocation4 + $0x440] sm:$0xff]  ;;  %v613_v29 = vld [vmem:[#allocation4 + $0x470] sm:$0xff] }
  0x67   :  { %v1814_v27 = vpack.c.bf16 %v614_v19, %v610_v18  ;;  %v618_v33 = vld [vmem:[#allocation4 + $0x498] sm:$0xff]  ;;  %v619_v39 = vld [vmem:[#allocation4 + $0x4a0] sm:$0xff]  ;;  %v621_v43 = vld [vmem:[#allocation4 + $0x4b0] sm:$0xff] }
  0x68   :  { %1665 = vmatpush1.bf16.msra.mxu0 %v1664_v24  ;;  %v611_v24 = vld [vmem:[#allocation4 + $0x460] sm:$0xff]  ;;  %v622_v34 = vld [vmem:[#allocation4 + $0x4b8] sm:$0xff]  ;;  %v624_v44 = vld [vmem:[#allocation4 + $0x4c8] sm:$0xff] }
  0x69   :  { %1793 = vmatpush1.bf16.msra.mxu1 %v1792_v25  ;;  %1667 = vmatprep.subr.bf16.mxu0 %v1666_v26  ;;  %v1686_v26 = vpack.c.bf16 %v612_v17, %v608_v16  ;;  %v1818_v41 = vpack.c.bf16 %v622_v34, %v618_v33  ;;  %v628_v45 = vld [vmem:[#allocation4 + $0x4e8] sm:$0xff]  ;;  %v626_v46 = vld [vmem:[#allocation4 + $0x4d8] sm:$0xff]  ;;  %v627_v51 = vld [vmem:[#allocation4 + $0x4e0] sm:$0xff] }
  0x6a   :  { %1795 = vmatprep.subr.bf16.mxu1 %v1794_v30  ;;  %v616_v30 = vld [vmem:[#allocation4 + $0x488] sm:$0xff]  ;;  %v630_v47 = vld [vmem:[#allocation4 + $0x4f8] sm:$0xff]  ;;  %v1694_v52 = vpack.c.bf16 %v628_v45, %v624_v44  ;;  %v629_v55 = vld [vmem:[#allocation4 + $0x4f0] sm:$0xff] }
  0x6b   :  { %v1690_v40 = vpack.c.bf16 %v620_v32, %v616_v30  ;;  %v1822_v53 = vpack.c.bf16 %v630_v47, %v626_v46  ;;  %v632_v56 = vld [vmem:[#allocation4 + $0x508] sm:$0xff]  ;;  %v634_v58 = vld [vmem:[#allocation4 + $0x518] sm:$0xff]  ;;  %v635_v63 = vld [vmem:[#allocation4 + $0x520] sm:$0xff] }
  0x6c   :  { %1669 = vmatpush1.bf16.msra.mxu0 %v1668_v36  ;;  %v1688_v36 = vpack.c.bf16 %v611_v24, %v607_v23  ;;  %v636_v57 = vld [vmem:[#allocation4 + $0x528] sm:$0xff]  ;;  %v638_v59 = vld [vmem:[#allocation4 + $0x538] sm:$0xff]  ;;  %v633_v2 = vld [vmem:[#allocation4 + $0x510] sm:$0xff] }
  0x6d   :  { %1797 = vmatpush1.bf16.msra.mxu1 %v1796_v37  ;;  %1671 = vmatprep.subr.bf16.mxu0 %v1670_v38  ;;  %v1816_v37 = vpack.c.bf16 %v613_v29, %v609_v28  ;;  %v615_v38 = vld [vmem:[#allocation4 + $0x480] sm:$0xff]  ;;  %v1698_v0 = vpack.c.bf16 %v636_v57, %v632_v56  ;;  %v637_v3 = vld [vmem:[#allocation4 + $0x530] sm:$0xff]  ;;  %v642_v6 = vld [vmem:[#allocation4 + $0x558] sm:$0xff] }
  0x6e   :  { %1799 = vmatprep.subr.bf16.mxu1 %v1798_v42  ;;  %v617_v42 = vld [vmem:[#allocation4 + $0x490] sm:$0xff]  ;;  %v646_v7 = vld [vmem:[#allocation4 + $0x578] sm:$0xff]  ;;  %v639_v10 = vld [vmem:[#allocation4 + $0x540] sm:$0xff] }
  0x6f   :  { %v1830_v13 = vpack.c.bf16 %v646_v7, %v642_v6  ;;  %v641_v14 = vld [vmem:[#allocation4 + $0x550] sm:$0xff]  ;;  %v648_v16 = vld [vmem:[#allocation4 + $0x588] sm:$0xff]  ;;  %v650_v18 = vld [vmem:[#allocation4 + $0x598] sm:$0xff] }
  0x70   :  { %1673 = vmatpush1.bf16.msra.mxu0 %v1672_v48  ;;  %v1692_v48 = vpack.c.bf16 %v619_v39, %v615_v38  ;;  %v645_v15 = vld [vmem:[#allocation4 + $0x570] sm:$0xff]  ;;  %v652_v17 = vld [vmem:[#allocation4 + $0x5a8] sm:$0xff]  ;;  %v654_v19 = vld [vmem:[#allocation4 + $0x5b8] sm:$0xff] }
  0x71   :  { %1801 = vmatpush1.bf16.msra.mxu1 %v1800_v49  ;;  %1675 = vmatprep.subr.bf16.mxu0 %v1674_v50  ;;  %v1820_v49 = vpack.c.bf16 %v621_v43, %v617_v42  ;;  %v623_v50 = vld [vmem:[#allocation4 + $0x4c0] sm:$0xff]  ;;  %v1706_v24 = vpack.c.bf16 %v652_v17, %v648_v16  ;;  %v656_v28 = vld [vmem:[#allocation4 + $0x5c8] sm:$0xff]  ;;  %v658_v30 = vld [vmem:[#allocation4 + $0x5d8] sm:$0xff] }
  0x72   :  { %1803 = vmatprep.subr.bf16.mxu1 %v1802_v54  ;;  %v625_v54 = vld [vmem:[#allocation4 + $0x4d0] sm:$0xff]  ;;  %v651_v23 = vld [vmem:[#allocation4 + $0x5a0] sm:$0xff]  ;;  %v660_v29 = vld [vmem:[#allocation4 + $0x5e8] sm:$0xff] }
  0x73   :  { %v662_v32 = vld [vmem:[#allocation4 + $0x5f8] sm:$0xff]  ;;  %v657_v39 = vld [vmem:[#allocation4 + $0x5d0] sm:$0xff]  ;;  %v668_v42 = vld [vmem:[#allocation4 + $0x628] sm:$0xff] }
  0x74   :  { %1677 = vmatpush1.bf16.msra.mxu0 %v1676_v60  ;;  %v1696_v60 = vpack.c.bf16 %v627_v51, %v623_v50  ;;  %v1838_v38 = vpack.c.bf16 %v662_v32, %v658_v30  ;;  %v666_v43 = vld [vmem:[#allocation4 + $0x618] sm:$0xff]  ;;  %v663_v47 = vld [vmem:[#allocation4 + $0x600] sm:$0xff]  ;;  %v665_v51 = vld [vmem:[#allocation4 + $0x610] sm:$0xff] }
  0x75   :  { %1805 = vmatpush1.bf16.msra.mxu1 %v1804_v61  ;;  %1679 = vmatprep.subr.bf16.mxu0 %v1678_v62  ;;  %v1824_v61 = vpack.c.bf16 %v629_v55, %v625_v54  ;;  %v631_v62 = vld [vmem:[#allocation4 + $0x500] sm:$0xff]  ;;  %v670_v44 = vld [vmem:[#allocation4 + $0x638] sm:$0xff]  ;;  %v676_v54 = vld [vmem:[#allocation4 + $0x668] sm:$0xff] }
  0x76   :  { %1807 = vmatprep.subr.bf16.mxu1 %v1806_v1  ;;  %v1826_v1 = vpack.c.bf16 %v638_v59, %v634_v58  ;;  %v1700_v8 = vpack.c.bf16 %v635_v63, %v631_v62  ;;  %v1842_v50 = vpack.c.bf16 %v670_v44, %v666_v43  ;;  %v674_v55 = vld [vmem:[#allocation4 + $0x658] sm:$0xff]  ;;  %v671_v59 = vld [vmem:[#allocation4 + $0x640] sm:$0xff]  ;;  %v673_v63 = vld [vmem:[#allocation4 + $0x650] sm:$0xff] }
  0x77   :  { %v678_v56 = vld [vmem:[#allocation4 + $0x678] sm:$0xff]  ;;  %v679_v7 = vld [vmem:[#allocation4 + $0x680] sm:$0xff] }
  0x78   :  { %1681 = vmatpush1.bf16.msra.mxu0 %v1680_v4  ;;  %v640_v4 = vld [vmem:[#allocation4 + $0x548] sm:$0xff]  ;;  %v1846_v62 = vpack.c.bf16 %v678_v56, %v674_v55  ;;  %v694_v16 = vld [vmem:[#allocation4 + $0x6f8] sm:$0xff]  ;;  %v695_v32 = vld [vmem:[#allocation4 + $0x700] sm:$0xff] }
  0x79   :  { %1809 = vmatpush1.bf16.msra.mxu1 %v1808_v5  ;;  %1683 = vmatprep.subr.bf16.mxu0 %v1682_v9  ;;  %v644_v5 = vld [vmem:[#allocation4 + $0x568] sm:$0xff]  ;;  %v1828_v9 = vpack.c.bf16 %v637_v3, %v633_v2  ;;  %v682_v3 = vld [vmem:[#allocation4 + $0x698] sm:$0xff]  ;;  %v703_v44 = vld [vmem:[#allocation4 + $0x740] sm:$0xff] }
  0x7a   :  { %1811 = vmatprep.subr.bf16.mxu1 %v1810_v11  ;;  %v643_v11 = vld [vmem:[#allocation4 + $0x560] sm:$0xff]  ;;  %v1702_v12 = vpack.c.bf16 %v644_v5, %v640_v4  ;;  %v684_v2 = vld [vmem:[#allocation4 + $0x6a8] sm:$0xff]  ;;  %v686_v4 = vld [vmem:[#allocation4 + $0x6b8] sm:$0xff] }
  0x7b   :  { %v711_v56 = vld [vmem:[#allocation4 + $0x780] sm:$0xff] }
 0x10c   :  { %v139_v20 = vpop.f32.mrb[0].mxu0  ;;  %v2394_v31 = vpop.f32.mrb[0].mxu1 }
 0x10d   :  { %v141_v25 = vpop.f32.mrb[1].mxu0  ;;  %v212_v35 = vpop.f32.mrb[1].mxu1 }
 0x10e   :  { %791 = vmatprep.mubr.f32.mxu0 %v141_v25  ;;  %933 = vmatprep.mubr.f32.mxu1 %v141_v25  ;;  %v1834_v25 = vpack.c.bf16 %v654_v19, %v650_v18  ;;  %v687_v19 = vld [vmem:[#allocation4 + $0x6c0] sm:$0xff] }
 0x10f   :  { %792 = vmatmul.mubr.f32.vlgmr.msra.gmra.mrb[2].mxu0 %v139_v20  ;;  %934 = vmatmul.mubr.f32.vlgmr.msra.gmra.mrb[2].mxu1 %v139_v20  ;;  %v1704_v20 = vpack.c.bf16 %v643_v11, %v639_v10  ;;  %v1850_v10 = vpack.c.bf16 %v686_v4, %v682_v3  ;;  %v681_v11 = vld [vmem:[#allocation4 + $0x690] sm:$0xff]  ;;  %v719_v4 = vld [vmem:[#allocation4 + $0x7c0] sm:$0xff] }
 0x110   :  { %1685 = vmatpush1.bf16.msra.mxu0 %v1684_v21  ;;  %1813 = vmatpush1.bf16.msra.mxu1 %v1812_v22  ;;  %v1832_v21 = vpack.c.bf16 %v645_v15, %v641_v14  ;;  %v647_v22 = vld [vmem:[#allocation4 + $0x580] sm:$0xff]  ;;  %v692_v14 = vld [vmem:[#allocation4 + $0x6e8] sm:$0xff]  ;;  %v690_v15 = vld [vmem:[#allocation4 + $0x6d8] sm:$0xff] }
 0x111   :  { %1687 = vmatprep.subr.bf16.mxu0 %v1686_v26  ;;  %1815 = vmatprep.subr.bf16.mxu1 %v1814_v27  ;;  %v649_v26 = vld [vmem:[#allocation4 + $0x590] sm:$0xff]  ;;  %v1708_v33 = vpack.c.bf16 %v651_v23, %v647_v22  ;;  %v1854_v22 = vpack.c.bf16 %v694_v16, %v690_v15  ;;  %v215_v16 = vld [vmem:[#allocation2] sm:$0xff] }
 0x112   :  { %862 = vmatprep.mubr.f32.mxu0 %v212_v35  ;;  %1004 = vmatprep.mubr.f32.mxu1 %v212_v35  ;;  %v653_v27 = vld [vmem:[#allocation4 + $0x5b0] sm:$0xff]  ;;  %v655_v35 = vld [vmem:[#allocation4 + $0x5c0] sm:$0xff] }
 0x113   :  { %v1836_v34 = vpack.c.bf16 %v653_v27, %v649_v26  ;;  %v689_v23 = vld [vmem:[#allocation4 + $0x6d0] sm:$0xff]  ;;  %v700_v26 = vld [vmem:[#allocation4 + $0x728] sm:$0xff]  ;;  %v698_v27 = vld [vmem:[#allocation4 + $0x718] sm:$0xff] }
 0x114   :  { %1689 = vmatpush1.bf16.msra.mxu0 %v1688_v36  ;;  %1817 = vmatpush1.bf16.msra.mxu1 %v1816_v37  ;;  %v659_v36 = vld [vmem:[#allocation4 + $0x5e0] sm:$0xff]  ;;  %v1710_v37 = vpack.c.bf16 %v660_v29, %v656_v28  ;;  %v702_v28 = vld [vmem:[#allocation4 + $0x738] sm:$0xff] }
 0x115   :  { %1691 = vmatprep.subr.bf16.mxu0 %v1690_v40  ;;  %1819 = vmatprep.subr.bf16.mxu1 %v1818_v41  ;;  %v661_v40 = vld [vmem:[#allocation4 + $0x5f0] sm:$0xff]  ;;  %v664_v41 = vld [vmem:[#allocation4 + $0x608] sm:$0xff]  ;;  %v1712_v45 = vpack.c.bf16 %v659_v36, %v655_v35  ;;  %v1858_v35 = vpack.c.bf16 %v702_v28, %v698_v27  ;;  %v223_v28 = vld [vmem:[#allocation2 + $0x40] sm:$0xff] }
 0x116   :  { %v1840_v46 = vpack.c.bf16 %v661_v40, %v657_v39  ;;  %v697_v36 = vld [vmem:[#allocation4 + $0x710] sm:$0xff]  ;;  %v708_v39 = vld [vmem:[#allocation4 + $0x768] sm:$0xff]  ;;  %v706_v40 = vld [vmem:[#allocation4 + $0x758] sm:$0xff] }
 0x118   :  { %1693 = vmatpush1.bf16.msra.mxu0 %v1692_v48  ;;  %1821 = vmatpush1.bf16.msra.mxu1 %v1820_v49  ;;  %v667_v48 = vld [vmem:[#allocation4 + $0x620] sm:$0xff]  ;;  %v1714_v49 = vpack.c.bf16 %v668_v42, %v664_v41  ;;  %v710_v41 = vld [vmem:[#allocation4 + $0x778] sm:$0xff] }
 0x119   :  { %1695 = vmatprep.subr.bf16.mxu0 %v1694_v52  ;;  %1823 = vmatprep.subr.bf16.mxu1 %v1822_v53  ;;  %v669_v52 = vld [vmem:[#allocation4 + $0x630] sm:$0xff]  ;;  %v672_v53 = vld [vmem:[#allocation4 + $0x648] sm:$0xff]  ;;  %v1716_v57 = vpack.c.bf16 %v667_v48, %v663_v47  ;;  %v1862_v47 = vpack.c.bf16 %v710_v41, %v706_v40  ;;  %v231_v41 = vld [vmem:[#allocation2 + $0x80] sm:$0xff] }
 0x11a   :  { %v1844_v58 = vpack.c.bf16 %v669_v52, %v665_v51  ;;  %v705_v48 = vld [vmem:[#allocation4 + $0x750] sm:$0xff]  ;;  %v716_v51 = vld [vmem:[#allocation4 + $0x7a8] sm:$0xff]  ;;  %v714_v52 = vld [vmem:[#allocation4 + $0x798] sm:$0xff] }
 0x11c   :  { %1697 = vmatpush1.bf16.msra.mxu0 %v1696_v60  ;;  %1825 = vmatpush1.bf16.msra.mxu1 %v1824_v61  ;;  %v675_v60 = vld [vmem:[#allocation4 + $0x660] sm:$0xff]  ;;  %v1718_v61 = vpack.c.bf16 %v676_v54, %v672_v53  ;;  %v718_v53 = vld [vmem:[#allocation4 + $0x7b8] sm:$0xff] }
 0x11d   :  { %1699 = vmatprep.subr.bf16.mxu0 %v1698_v0  ;;  %1827 = vmatprep.subr.bf16.mxu1 %v1826_v1  ;;  %v677_v0 = vld [vmem:[#allocation4 + $0x670] sm:$0xff]  ;;  %v680_v1 = vld [vmem:[#allocation4 + $0x688] sm:$0xff]  ;;  %v1720_v5 = vpack.c.bf16 %v675_v60, %v671_v59  ;;  %v1866_v59 = vpack.c.bf16 %v718_v53, %v714_v52  ;;  %v239_v53 = vld [vmem:[#allocation2 + $0xc0] sm:$0xff] }
 0x11e   :  { %v1848_v6 = vpack.c.bf16 %v677_v0, %v673_v63  ;;  %v713_v60 = vld [vmem:[#allocation4 + $0x790] sm:$0xff]  ;;  %v724_v63 = vld [vmem:[#allocation4 + $0x7e8] sm:$0xff]  ;;  %v722_v0 = vld [vmem:[#allocation4 + $0x7d8] sm:$0xff] }
 0x120   :  { %1701 = vmatpush1.bf16.msra.mxu0 %v1700_v8  ;;  %1829 = vmatpush1.bf16.msra.mxu1 %v1828_v9  ;;  %v683_v8 = vld [vmem:[#allocation4 + $0x6a0] sm:$0xff]  ;;  %v1722_v9 = vpack.c.bf16 %v684_v2, %v680_v1  ;;  %v726_v1 = vld [vmem:[#allocation4 + $0x7f8] sm:$0xff] }
 0x121   :  { %1703 = vmatprep.subr.bf16.mxu0 %v1702_v12  ;;  %1831 = vmatprep.subr.bf16.mxu1 %v1830_v13  ;;  %v685_v12 = vld [vmem:[#allocation4 + $0x6b0] sm:$0xff]  ;;  %v688_v13 = vld [vmem:[#allocation4 + $0x6c8] sm:$0xff]  ;;  %v1724_v17 = vpack.c.bf16 %v683_v8, %v679_v7  ;;  %v1870_v7 = vpack.c.bf16 %v726_v1, %v722_v0  ;;  %v247_v1 = vld [vmem:[#allocation2 + $0x100] sm:$0xff] }
 0x122   :  { %v1852_v18 = vpack.c.bf16 %v685_v12, %v681_v11  ;;  %v721_v8 = vld [vmem:[#allocation4 + $0x7d0] sm:$0xff]  ;;  %v220_v11 = vld [vmem:[#allocation2 + $0x28] sm:$0xff]  ;;  %v218_v12 = vld [vmem:[#allocation2 + $0x18] sm:$0xff] }
 0x124   :  { %1705 = vmatpush1.bf16.msra.mxu0 %v1704_v20  ;;  %1833 = vmatpush1.bf16.msra.mxu1 %v1832_v21  ;;  %v691_v20 = vld [vmem:[#allocation4 + $0x6e0] sm:$0xff]  ;;  %v1726_v21 = vpack.c.bf16 %v692_v14, %v688_v13  ;;  %v222_v13 = vld [vmem:[#allocation2 + $0x38] sm:$0xff] }
 0x125   :  { %1707 = vmatprep.subr.bf16.mxu0 %v1706_v24  ;;  %1835 = vmatprep.subr.bf16.mxu1 %v1834_v25  ;;  %v693_v24 = vld [vmem:[#allocation4 + $0x6f0] sm:$0xff]  ;;  %v696_v25 = vld [vmem:[#allocation4 + $0x708] sm:$0xff]  ;;  %v1728_v29 = vpack.c.bf16 %v691_v20, %v687_v19  ;;  %v2002_v19 = vpack.c.bf16 %v222_v13, %v218_v12  ;;  %v255_v13 = vld [vmem:[#allocation2 + $0x140] sm:$0xff] }
 0x126   :  { %v1856_v30 = vpack.c.bf16 %v693_v24, %v689_v23  ;;  %v217_v20 = vld [vmem:[#allocation2 + $0x10] sm:$0xff]  ;;  %v228_v23 = vld [vmem:[#allocation2 + $0x68] sm:$0xff]  ;;  %v226_v24 = vld [vmem:[#allocation2 + $0x58] sm:$0xff] }
 0x128   :  { %1709 = vmatpush1.bf16.msra.mxu0 %v1708_v33  ;;  %1837 = vmatpush1.bf16.msra.mxu1 %v1836_v34  ;;  %v699_v33 = vld [vmem:[#allocation4 + $0x720] sm:$0xff]  ;;  %v1730_v34 = vpack.c.bf16 %v700_v26, %v696_v25  ;;  %v230_v25 = vld [vmem:[#allocation2 + $0x78] sm:$0xff] }
 0x129   :  { %1711 = vmatprep.subr.bf16.mxu0 %v1710_v37  ;;  %1839 = vmatprep.subr.bf16.mxu1 %v1838_v38  ;;  %v701_v37 = vld [vmem:[#allocation4 + $0x730] sm:$0xff]  ;;  %v704_v38 = vld [vmem:[#allocation4 + $0x748] sm:$0xff]  ;;  %v1732_v42 = vpack.c.bf16 %v699_v33, %v695_v32  ;;  %v2006_v32 = vpack.c.bf16 %v230_v25, %v226_v24  ;;  %v263_v25 = vld [vmem:[#allocation2 + $0x180] sm:$0xff] }
 0x12a   :  { %v1860_v43 = vpack.c.bf16 %v701_v37, %v697_v36  ;;  %v225_v33 = vld [vmem:[#allocation2 + $0x50] sm:$0xff]  ;;  %v236_v36 = vld [vmem:[#allocation2 + $0xa8] sm:$0xff]  ;;  %v234_v37 = vld [vmem:[#allocation2 + $0x98] sm:$0xff] }
 0x12c   :  { %1713 = vmatpush1.bf16.msra.mxu0 %v1712_v45  ;;  %1841 = vmatpush1.bf16.msra.mxu1 %v1840_v46  ;;  %v707_v45 = vld [vmem:[#allocation4 + $0x760] sm:$0xff]  ;;  %v1734_v46 = vpack.c.bf16 %v708_v39, %v704_v38  ;;  %v238_v38 = vld [vmem:[#allocation2 + $0xb8] sm:$0xff] }
 0x12d   :  { %1715 = vmatprep.subr.bf16.mxu0 %v1714_v49  ;;  %1843 = vmatprep.subr.bf16.mxu1 %v1842_v50  ;;  %v709_v49 = vld [vmem:[#allocation4 + $0x770] sm:$0xff]  ;;  %v712_v50 = vld [vmem:[#allocation4 + $0x788] sm:$0xff]  ;;  %v1736_v54 = vpack.c.bf16 %v707_v45, %v703_v44  ;;  %v2010_v44 = vpack.c.bf16 %v238_v38, %v234_v37  ;;  %v271_v38 = vld [vmem:[#allocation2 + $0x1c0] sm:$0xff] }
 0x12e   :  { %v1864_v55 = vpack.c.bf16 %v709_v49, %v705_v48  ;;  %v233_v45 = vld [vmem:[#allocation2 + $0x90] sm:$0xff]  ;;  %v244_v48 = vld [vmem:[#allocation2 + $0xe8] sm:$0xff]  ;;  %v242_v49 = vld [vmem:[#allocation2 + $0xd8] sm:$0xff] }
 0x130   :  { %1717 = vmatpush1.bf16.msra.mxu0 %v1716_v57  ;;  %1845 = vmatpush1.bf16.msra.mxu1 %v1844_v58  ;;  %v715_v57 = vld [vmem:[#allocation4 + $0x7a0] sm:$0xff]  ;;  %v1738_v58 = vpack.c.bf16 %v716_v51, %v712_v50  ;;  %v246_v50 = vld [vmem:[#allocation2 + $0xf8] sm:$0xff] }
 0x131   :  { %1719 = vmatprep.subr.bf16.mxu0 %v1718_v61  ;;  %1847 = vmatprep.subr.bf16.mxu1 %v1846_v62  ;;  %v717_v61 = vld [vmem:[#allocation4 + $0x7b0] sm:$0xff]  ;;  %v720_v62 = vld [vmem:[#allocation4 + $0x7c8] sm:$0xff]  ;;  %v1740_v2 = vpack.c.bf16 %v715_v57, %v711_v56  ;;  %v2014_v56 = vpack.c.bf16 %v246_v50, %v242_v49  ;;  %v279_v50 = vld [vmem:[#allocation2 + $0x200] sm:$0xff] }
 0x132   :  { %v1868_v3 = vpack.c.bf16 %v717_v61, %v713_v60  ;;  %v241_v57 = vld [vmem:[#allocation2 + $0xd0] sm:$0xff]  ;;  %v252_v60 = vld [vmem:[#allocation2 + $0x128] sm:$0xff]  ;;  %v250_v61 = vld [vmem:[#allocation2 + $0x118] sm:$0xff] }
 0x134   :  { %1721 = vmatpush1.bf16.msra.mxu0 %v1720_v5  ;;  %1849 = vmatpush1.bf16.msra.mxu1 %v1848_v6  ;;  %v723_v5 = vld [vmem:[#allocation4 + $0x7e0] sm:$0xff]  ;;  %v1742_v6 = vpack.c.bf16 %v724_v63, %v720_v62  ;;  %v254_v62 = vld [vmem:[#allocation2 + $0x138] sm:$0xff] }
 0x135   :  { %1723 = vmatprep.subr.bf16.mxu0 %v1722_v9  ;;  %1851 = vmatprep.subr.bf16.mxu1 %v1850_v10  ;;  %v725_v9 = vld [vmem:[#allocation4 + $0x7f0] sm:$0xff]  ;;  %v216_v10 = vld [vmem:[#allocation2 + $0x8] sm:$0xff]  ;;  %v1744_v14 = vpack.c.bf16 %v723_v5, %v719_v4  ;;  %v2018_v4 = vpack.c.bf16 %v254_v62, %v250_v61  ;;  %v287_v61 = vld [vmem:[#allocation2 + $0x240] sm:$0xff] }
 0x136   :  { %v1872_v15 = vpack.c.bf16 %v725_v9, %v721_v8  ;;  %v249_v5 = vld [vmem:[#allocation2 + $0x110] sm:$0xff]  ;;  %v260_v8 = vld [vmem:[#allocation2 + $0x168] sm:$0xff]  ;;  %v258_v9 = vld [vmem:[#allocation2 + $0x158] sm:$0xff] }
 0x137   :  { %v291_v62 = vld [vmem:[#allocation2 + $0x260] sm:$0xff] }
 0x138   :  { %1725 = vmatpush1.bf16.msra.mxu0 %v1724_v17  ;;  %1853 = vmatpush1.bf16.msra.mxu1 %v1852_v18  ;;  %v219_v17 = vld [vmem:[#allocation2 + $0x20] sm:$0xff]  ;;  %v1874_v18 = vpack.c.bf16 %v220_v11, %v216_v10  ;;  %v262_v10 = vld [vmem:[#allocation2 + $0x178] sm:$0xff] }
 0x139   :  { %1727 = vmatprep.subr.bf16.mxu0 %v1726_v21  ;;  %1855 = vmatprep.subr.bf16.mxu1 %v1854_v22  ;;  %v221_v21 = vld [vmem:[#allocation2 + $0x30] sm:$0xff]  ;;  %v224_v22 = vld [vmem:[#allocation2 + $0x48] sm:$0xff]  ;;  %v1876_v26 = vpack.c.bf16 %v219_v17, %v215_v16  ;;  %v2022_v16 = vpack.c.bf16 %v262_v10, %v258_v9  ;;  %v295_v9 = vld [vmem:[#allocation2 + $0x280] sm:$0xff] }
 0x13a   :  { %v2004_v27 = vpack.c.bf16 %v221_v21, %v217_v20  ;;  %v257_v17 = vld [vmem:[#allocation2 + $0x150] sm:$0xff]  ;;  %v268_v20 = vld [vmem:[#allocation2 + $0x1a8] sm:$0xff]  ;;  %v266_v21 = vld [vmem:[#allocation2 + $0x198] sm:$0xff] }
 0x13b   :  { %v299_v10 = vld [vmem:[#allocation2 + $0x2a0] sm:$0xff] }
 0x13c   :  { %1729 = vmatpush1.bf16.msra.mxu0 %v1728_v29  ;;  %1857 = vmatpush1.bf16.msra.mxu1 %v1856_v30  ;;  %v227_v29 = vld [vmem:[#allocation2 + $0x60] sm:$0xff]  ;;  %v1878_v30 = vpack.c.bf16 %v228_v23, %v224_v22  ;;  %v270_v22 = vld [vmem:[#allocation2 + $0x1b8] sm:$0xff] }
 0x13d   :  { %1731 = vmatprep.subr.bf16.mxu0 %v1730_v34  ;;  %1859 = vmatprep.subr.bf16.mxu1 %v1858_v35  ;;  %v229_v34 = vld [vmem:[#allocation2 + $0x70] sm:$0xff]  ;;  %v232_v35 = vld [vmem:[#allocation2 + $0x88] sm:$0xff]  ;;  %v1880_v39 = vpack.c.bf16 %v227_v29, %v223_v28  ;;  %v2026_v28 = vpack.c.bf16 %v270_v22, %v266_v21  ;;  %v303_v21 = vld [vmem:[#allocation2 + $0x2c0] sm:$0xff] }
 0x13e   :  { %v2008_v40 = vpack.c.bf16 %v229_v34, %v225_v33  ;;  %v265_v29 = vld [vmem:[#allocation2 + $0x190] sm:$0xff]  ;;  %v276_v33 = vld [vmem:[#allocation2 + $0x1e8] sm:$0xff]  ;;  %v274_v34 = vld [vmem:[#allocation2 + $0x1d8] sm:$0xff] }
 0x13f   :  { %v307_v22 = vld [vmem:[#allocation2 + $0x2e0] sm:$0xff] }
 0x140   :  { %1733 = vmatpush1.bf16.msra.mxu0 %v1732_v42  ;;  %1861 = vmatpush1.bf16.msra.mxu1 %v1860_v43  ;;  %v235_v42 = vld [vmem:[#allocation2 + $0xa0] sm:$0xff]  ;;  %v1882_v43 = vpack.c.bf16 %v236_v36, %v232_v35  ;;  %v278_v35 = vld [vmem:[#allocation2 + $0x1f8] sm:$0xff] }
 0x141   :  { %1735 = vmatprep.subr.bf16.mxu0 %v1734_v46  ;;  %1863 = vmatprep.subr.bf16.mxu1 %v1862_v47  ;;  %v237_v46 = vld [vmem:[#allocation2 + $0xb0] sm:$0xff]  ;;  %v240_v47 = vld [vmem:[#allocation2 + $0xc8] sm:$0xff]  ;;  %v1884_v51 = vpack.c.bf16 %v235_v42, %v231_v41  ;;  %v2030_v41 = vpack.c.bf16 %v278_v35, %v274_v34  ;;  %v311_v34 = vld [vmem:[#allocation2 + $0x300] sm:$0xff] }
 0x142   :  { %v2012_v52 = vpack.c.bf16 %v237_v46, %v233_v45  ;;  %v273_v42 = vld [vmem:[#allocation2 + $0x1d0] sm:$0xff]  ;;  %v284_v45 = vld [vmem:[#allocation2 + $0x228] sm:$0xff]  ;;  %v282_v46 = vld [vmem:[#allocation2 + $0x218] sm:$0xff] }
 0x143   :  { %v315_v35 = vld [vmem:[#allocation2 + $0x320] sm:$0xff] }
 0x144   :  { %1737 = vmatpush1.bf16.msra.mxu0 %v1736_v54  ;;  %1865 = vmatpush1.bf16.msra.mxu1 %v1864_v55  ;;  %v243_v54 = vld [vmem:[#allocation2 + $0xe0] sm:$0xff]  ;;  %v1886_v55 = vpack.c.bf16 %v244_v48, %v240_v47  ;;  %v286_v47 = vld [vmem:[#allocation2 + $0x238] sm:$0xff] }
 0x145   :  { %1739 = vmatprep.subr.bf16.mxu0 %v1738_v58  ;;  %1867 = vmatprep.subr.bf16.mxu1 %v1866_v59  ;;  %v245_v58 = vld [vmem:[#allocation2 + $0xf0] sm:$0xff]  ;;  %v248_v59 = vld [vmem:[#allocation2 + $0x108] sm:$0xff]  ;;  %v1888_v63 = vpack.c.bf16 %v243_v54, %v239_v53 }
 0x146   :  { %v2016_v0 = vpack.c.bf16 %v245_v58, %v241_v57  ;;  %v281_v53 = vld [vmem:[#allocation2 + $0x210] sm:$0xff]  ;;  %v290_v57 = vld [vmem:[#allocation2 + $0x258] sm:$0xff] }
 0x147   :  { %v285_v54 = vld [vmem:[#allocation2 + $0x230] sm:$0xff]  ;;  %v294_v58 = vld [vmem:[#allocation2 + $0x278] sm:$0xff] }
 0x148   :  { %1741 = vmatpush1.bf16.msra.mxu0 %v1740_v2  ;;  %1869 = vmatpush1.bf16.msra.mxu1 %v1868_v3  ;;  %v251_v2 = vld [vmem:[#allocation2 + $0x120] sm:$0xff]  ;;  %v1890_v3 = vpack.c.bf16 %v252_v60, %v248_v59  ;;  %v2036_v60 = vpack.c.bf16 %v285_v54, %v281_v53  ;;  %v330_v53 = vld [vmem:[#allocation2 + $0x398] sm:$0xff] }
 0x149   :  { %1743 = vmatprep.subr.bf16.mxu0 %v1742_v6  ;;  %1871 = vmatprep.subr.bf16.mxu1 %v1870_v7  ;;  %v253_v6 = vld [vmem:[#allocation2 + $0x130] sm:$0xff]  ;;  %v256_v7 = vld [vmem:[#allocation2 + $0x148] sm:$0xff]  ;;  %v1892_v11 = vpack.c.bf16 %v251_v2, %v247_v1  ;;  %v334_v54 = vld [vmem:[#allocation2 + $0x3b8] sm:$0xff] }
 0x14a   :  { %v2020_v12 = vpack.c.bf16 %v253_v6, %v249_v5  ;;  %v289_v1 = vld [vmem:[#allocation2 + $0x250] sm:$0xff]  ;;  %v298_v5 = vld [vmem:[#allocation2 + $0x298] sm:$0xff] }
 0x14b   :  { %v293_v2 = vld [vmem:[#allocation2 + $0x270] sm:$0xff]  ;;  %v302_v6 = vld [vmem:[#allocation2 + $0x2b8] sm:$0xff] }
 0x14c   :  { %1745 = vmatpush1.bf16.msra.mxu0 %v1744_v14  ;;  %1873 = vmatpush1.bf16.msra.mxu1 %v1872_v15  ;;  %v259_v14 = vld [vmem:[#allocation2 + $0x160] sm:$0xff]  ;;  %v1894_v15 = vpack.c.bf16 %v260_v8, %v256_v7  ;;  %v1912_v7 = vpack.c.bf16 %v291_v62, %v287_v61  ;;  %v2040_v8 = vpack.c.bf16 %v293_v2, %v289_v1  ;;  %v329_v61 = vld [vmem:[#allocation2 + $0x390] sm:$0xff]  ;;  %v338_v1 = vld [vmem:[#allocation2 + $0x3d8] sm:$0xff] }
 0x14d   :  { %1875 = vmatprep.subr.bf16.mxu0 %v1874_v18  ;;  %2003 = vmatprep.subr.bf16.mxu1 %v2002_v19  ;;  %v261_v18 = vld [vmem:[#allocation2 + $0x170] sm:$0xff]  ;;  %v264_v19 = vld [vmem:[#allocation2 + $0x188] sm:$0xff]  ;;  %v1896_v23 = vpack.c.bf16 %v259_v14, %v255_v13  ;;  %v342_v2 = vld [vmem:[#allocation2 + $0x3f8] sm:$0xff] }
 0x14e   :  { %v2024_v24 = vpack.c.bf16 %v261_v18, %v257_v17  ;;  %v297_v13 = vld [vmem:[#allocation2 + $0x290] sm:$0xff]  ;;  %v306_v17 = vld [vmem:[#allocation2 + $0x2d8] sm:$0xff] }
 0x14f   :  { %863 = vmatmul.mubr.f32.vlgmr.msra.gmra.mrb[2].mxu0 %v2394_v31  ;;  %1005 = vmatmul.mubr.f32.vlgmr.msra.gmra.mrb[2].mxu1 %v2394_v31  ;;  %v2214_v31 = vld [vmem:[%s2617_s0 + $0x8] sm:$0xff]  ;;  %v301_v14 = vld [vmem:[#allocation2 + $0x2b0] sm:$0xff]  ;;  %v310_v18 = vld [vmem:[#allocation2 + $0x2f8] sm:$0xff] }
 0x150   :  { %1877 = vmatpush1.bf16.msra.mxu0 %v1876_v26  ;;  %2005 = vmatpush1.bf16.msra.mxu1 %v2004_v27  ;;  %v267_v26 = vld [vmem:[#allocation2 + $0x1a0] sm:$0xff]  ;;  %v1898_v27 = vpack.c.bf16 %v268_v20, %v264_v19  ;;  %v1916_v19 = vpack.c.bf16 %v299_v10, %v295_v9  ;;  %v2044_v20 = vpack.c.bf16 %v301_v14, %v297_v13  ;;  %v333_v62 = vld [vmem:[#allocation2 + $0x3b0] sm:$0xff]  ;;  %v346_v13 = vld [vmem:[#allocation2 + $0x418] sm:$0xff] }
 0x151   :  { %1879 = vmatprep.subr.bf16.mxu0 %v1878_v30  ;;  %2007 = vmatprep.subr.bf16.mxu1 %v2006_v32  ;;  %v269_v30 = vld [vmem:[#allocation2 + $0x1b0] sm:$0xff]  ;;  %v272_v32 = vld [vmem:[#allocation2 + $0x1c8] sm:$0xff]  ;;  %v1900_v36 = vpack.c.bf16 %v267_v26, %v263_v25  ;;  %v350_v14 = vld [vmem:[#allocation2 + $0x438] sm:$0xff] }
 0x152   :  { %1075 = vmatprep.mubr.f32.mxu0 %v2214_v31  ;;  %1217 = vmatprep.mubr.f32.mxu1 %v2214_v31  ;;  %v2028_v37 = vpack.c.bf16 %v269_v30, %v265_v29  ;;  %v283_v31 = vld [vmem:[#allocation2 + $0x220] sm:$0xff]  ;;  %v305_v25 = vld [vmem:[#allocation2 + $0x2d0] sm:$0xff]  ;;  %v314_v29 = vld [vmem:[#allocation2 + $0x318] sm:$0xff] }
 0x153   :  { %v1908_v59 = vpack.c.bf16 %v283_v31, %v279_v50  ;;  %v309_v26 = vld [vmem:[#allocation2 + $0x2f0] sm:$0xff]  ;;  %v318_v30 = vld [vmem:[#allocation2 + $0x338] sm:$0xff] }
 0x154   :  { %1881 = vmatpush1.bf16.msra.mxu0 %v1880_v39  ;;  %2009 = vmatpush1.bf16.msra.mxu1 %v2008_v40  ;;  %v275_v39 = vld [vmem:[#allocation2 + $0x1e0] sm:$0xff]  ;;  %v1902_v40 = vpack.c.bf16 %v276_v33, %v272_v32  ;;  %v1920_v32 = vpack.c.bf16 %v307_v22, %v303_v21  ;;  %v2048_v33 = vpack.c.bf16 %v309_v26, %v305_v25  ;;  %v321_v50 = vld [vmem:[#allocation2 + $0x350] sm:$0xff]  ;;  %v354_v25 = vld [vmem:[#allocation2 + $0x458] sm:$0xff] }
 0x155   :  { %1883 = vmatprep.subr.bf16.mxu0 %v1882_v43  ;;  %2011 = vmatprep.subr.bf16.mxu1 %v2010_v44  ;;  %v277_v43 = vld [vmem:[#allocation2 + $0x1f0] sm:$0xff]  ;;  %v280_v44 = vld [vmem:[#allocation2 + $0x208] sm:$0xff]  ;;  %v1904_v48 = vpack.c.bf16 %v275_v39, %v271_v38  ;;  %v358_v26 = vld [vmem:[#allocation2 + $0x478] sm:$0xff] }
 0x156   :  { %v2032_v49 = vpack.c.bf16 %v277_v43, %v273_v42  ;;  %v313_v38 = vld [vmem:[#allocation2 + $0x310] sm:$0xff]  ;;  %v322_v42 = vld [vmem:[#allocation2 + $0x358] sm:$0xff] }
 0x157   :  { %v317_v39 = vld [vmem:[#allocation2 + $0x330] sm:$0xff]  ;;  %v326_v43 = vld [vmem:[#allocation2 + $0x378] sm:$0xff] }
 0x158   :  { %1885 = vmatpush1.bf16.msra.mxu0 %v1884_v51  ;;  %2013 = vmatpush1.bf16.msra.mxu1 %v2012_v52  ;;  %v1906_v51 = vpack.c.bf16 %v284_v45, %v280_v44  ;;  %v2034_v52 = vpack.c.bf16 %v286_v47, %v282_v46  ;;  %v1924_v44 = vpack.c.bf16 %v315_v35, %v311_v34  ;;  %v319_v46 = vld [vmem:[#allocation2 + $0x340] sm:$0xff]  ;;  %v325_v31 = vld [vmem:[#allocation2 + $0x370] sm:$0xff] }
 0x159   :  { %1887 = vmatprep.subr.bf16.mxu0 %v1886_v55  ;;  %2015 = vmatprep.subr.bf16.mxu1 %v2014_v56  ;;  %v288_v55 = vld [vmem:[#allocation2 + $0x248] sm:$0xff]  ;;  %v2052_v45 = vpack.c.bf16 %v317_v39, %v313_v38  ;;  %v323_v47 = vld [vmem:[#allocation2 + $0x360] sm:$0xff]  ;;  %v337_v9 = vld [vmem:[#allocation2 + $0x3d0] sm:$0xff] }
 0x15a   :  { %v292_v56 = vld [vmem:[#allocation2 + $0x268] sm:$0xff]  ;;  %v341_v10 = vld [vmem:[#allocation2 + $0x3f0] sm:$0xff]  ;;  %v362_v38 = vld [vmem:[#allocation2 + $0x498] sm:$0xff] }
 0x15b   :  { %v345_v21 = vld [vmem:[#allocation2 + $0x410] sm:$0xff]  ;;  %v366_v39 = vld [vmem:[#allocation2 + $0x4b8] sm:$0xff] }
 0x15c   :  { %1889 = vmatpush1.bf16.msra.mxu0 %v1888_v63  ;;  %2017 = vmatpush1.bf16.msra.mxu1 %v2016_v0  ;;  %v1910_v63 = vpack.c.bf16 %v292_v56, %v288_v55  ;;  %v2038_v0 = vpack.c.bf16 %v294_v58, %v290_v57  ;;  %v1928_v55 = vpack.c.bf16 %v323_v47, %v319_v46  ;;  %v327_v57 = vld [vmem:[#allocation2 + $0x380] sm:$0xff]  ;;  %v349_v22 = vld [vmem:[#allocation2 + $0x430] sm:$0xff] }
 0x15d   :  { %1891 = vmatprep.subr.bf16.mxu0 %v1890_v3  ;;  %2019 = vmatprep.subr.bf16.mxu1 %v2018_v4  ;;  %v296_v3 = vld [vmem:[#allocation2 + $0x288] sm:$0xff]  ;;  %v2056_v56 = vpack.c.bf16 %v325_v31, %v321_v50  ;;  %v331_v58 = vld [vmem:[#allocation2 + $0x3a0] sm:$0xff]  ;;  %v353_v34 = vld [vmem:[#allocation2 + $0x450] sm:$0xff]  ;;  %v2074_v46 = vpack.c.bf16 %v366_v39, %v362_v38 }
 0x15e   :  { %v300_v4 = vld [vmem:[#allocation2 + $0x2a8] sm:$0xff]  ;;  %v357_v35 = vld [vmem:[#allocation2 + $0x470] sm:$0xff]  ;;  %v370_v31 = vld [vmem:[#allocation2 + $0x4d8] sm:$0xff] }
 0x15f   :  { %v361_v47 = vld [vmem:[#allocation2 + $0x490] sm:$0xff]  ;;  %v372_v50 = vld [vmem:[#allocation2 + $0x4e8] sm:$0xff] }
 0x160   :  { %1893 = vmatpush1.bf16.msra.mxu0 %v1892_v11  ;;  %2021 = vmatpush1.bf16.msra.mxu1 %v2020_v12  ;;  %v1914_v11 = vpack.c.bf16 %v300_v4, %v296_v3  ;;  %v2042_v12 = vpack.c.bf16 %v302_v6, %v298_v5  ;;  %v1932_v3 = vpack.c.bf16 %v331_v58, %v327_v57  ;;  %v335_v5 = vld [vmem:[#allocation2 + $0x3c0] sm:$0xff] }
 0x161   :  { %1895 = vmatprep.subr.bf16.mxu0 %v1894_v15  ;;  %2023 = vmatprep.subr.bf16.mxu1 %v2022_v16  ;;  %v304_v15 = vld [vmem:[#allocation2 + $0x2c8] sm:$0xff]  ;;  %v2060_v4 = vpack.c.bf16 %v333_v62, %v329_v61  ;;  %v339_v6 = vld [vmem:[#allocation2 + $0x3e0] sm:$0xff] }
 0x162   :  { %v308_v16 = vld [vmem:[#allocation2 + $0x2e8] sm:$0xff] }
 0x163   :  { %v376_v61 = vld [vmem:[#allocation2 + $0x508] sm:$0xff] }
 0x164   :  { %1897 = vmatpush1.bf16.msra.mxu0 %v1896_v23  ;;  %2025 = vmatpush1.bf16.msra.mxu1 %v2024_v24  ;;  %v1918_v23 = vpack.c.bf16 %v308_v16, %v304_v15  ;;  %v2046_v24 = vpack.c.bf16 %v310_v18, %v306_v17  ;;  %v1936_v15 = vpack.c.bf16 %v339_v6, %v335_v5  ;;  %v343_v17 = vld [vmem:[#allocation2 + $0x400] sm:$0xff]  ;;  %v380_v62 = vld [vmem:[#allocation2 + $0x528] sm:$0xff] }
 0x165   :  { %1899 = vmatprep.subr.bf16.mxu0 %v1898_v27  ;;  %2027 = vmatprep.subr.bf16.mxu1 %v2026_v28  ;;  %v312_v27 = vld [vmem:[#allocation2 + $0x308] sm:$0xff]  ;;  %v2064_v16 = vpack.c.bf16 %v341_v10, %v337_v9  ;;  %v347_v18 = vld [vmem:[#allocation2 + $0x420] sm:$0xff]  ;;  %v1954_v5 = vpack.c.bf16 %v380_v62, %v376_v61 }
 0x166   :  { %v316_v28 = vld [vmem:[#allocation2 + $0x328] sm:$0xff] }
 0x167   :  { %v384_v9 = vld [vmem:[#allocation2 + $0x548] sm:$0xff] }
 0x168   :  { %1901 = vmatpush1.bf16.msra.mxu0 %v1900_v36  ;;  %2029 = vmatpush1.bf16.msra.mxu1 %v2028_v37  ;;  %v1922_v36 = vpack.c.bf16 %v316_v28, %v312_v27  ;;  %v2050_v37 = vpack.c.bf16 %v318_v30, %v314_v29  ;;  %v1940_v27 = vpack.c.bf16 %v347_v18, %v343_v17  ;;  %v351_v29 = vld [vmem:[#allocation2 + $0x440] sm:$0xff]  ;;  %v388_v10 = vld [vmem:[#allocation2 + $0x568] sm:$0xff] }
 0x169   :  { %1903 = vmatprep.subr.bf16.mxu0 %v1902_v40  ;;  %2031 = vmatprep.subr.bf16.mxu1 %v2030_v41  ;;  %v320_v40 = vld [vmem:[#allocation2 + $0x348] sm:$0xff]  ;;  %v2068_v28 = vpack.c.bf16 %v349_v22, %v345_v21  ;;  %v355_v30 = vld [vmem:[#allocation2 + $0x460] sm:$0xff]  ;;  %v1958_v17 = vpack.c.bf16 %v388_v10, %v384_v9 }
 0x16a   :  { %v324_v41 = vld [vmem:[#allocation2 + $0x368] sm:$0xff] }
 0x16b   :  { %v392_v21 = vld [vmem:[#allocation2 + $0x588] sm:$0xff] }
 0x16c   :  { %1905 = vmatpush1.bf16.msra.mxu0 %v1904_v48  ;;  %2033 = vmatpush1.bf16.msra.mxu1 %v2032_v49  ;;  %v1926_v48 = vpack.c.bf16 %v324_v41, %v320_v40  ;;  %v2054_v49 = vpack.c.bf16 %v326_v43, %v322_v42  ;;  %v2215_v40 = vld [vmem:[%s2617_s0] sm:$0xff]  ;;  %v1944_v41 = vpack.c.bf16 %v355_v30, %v351_v29  ;;  %v396_v22 = vld [vmem:[#allocation2 + $0x5a8] sm:$0xff] }
 0x16d   :  { %1907 = vmatprep.subr.bf16.mxu0 %v1906_v51  ;;  %2035 = vmatprep.subr.bf16.mxu1 %v2034_v52  ;;  %v328_v51 = vld [vmem:[#allocation2 + $0x388] sm:$0xff]  ;;  %v2072_v42 = vpack.c.bf16 %v357_v35, %v353_v34  ;;  %v359_v43 = vld [vmem:[#allocation2 + $0x480] sm:$0xff]  ;;  %v1962_v29 = vpack.c.bf16 %v396_v22, %v392_v21 }
 0x16e   :  { %v332_v52 = vld [vmem:[#allocation2 + $0x3a8] sm:$0xff] }
 0x16f   :  { %v400_v34 = vld [vmem:[#allocation2 + $0x5c8] sm:$0xff] }
 0x170   :  { %1909 = vmatpush1.bf16.msra.mxu0 %v1908_v59  ;;  %2037 = vmatpush1.bf16.msra.mxu1 %v2036_v60  ;;  %v1930_v59 = vpack.c.bf16 %v332_v52, %v328_v51  ;;  %v2058_v60 = vpack.c.bf16 %v334_v54, %v330_v53  ;;  %v374_v51 = vld [vmem:[#allocation2 + $0x4f8] sm:$0xff]  ;;  %v404_v35 = vld [vmem:[#allocation2 + $0x5e8] sm:$0xff] }
 0x171   :  { %1911 = vmatprep.subr.bf16.mxu0 %v1910_v63  ;;  %2039 = vmatprep.subr.bf16.mxu1 %v2038_v0  ;;  %v336_v63 = vld [vmem:[#allocation2 + $0x3c8] sm:$0xff]  ;;  %v2216_v52 = vld [vmem:[%s2617_s0 + $0x18] sm:$0xff]  ;;  %v2078_v58 = vpack.c.bf16 %v374_v51, %v370_v31  ;;  %v407_v51 = vld [vmem:[#allocation2 + $0x600] sm:$0xff] }
 0x172   :  { %v340_v0 = vld [vmem:[#allocation2 + $0x3e8] sm:$0xff] }
 0x174   :  { %1913 = vmatpush1.bf16.msra.mxu0 %v1912_v7  ;;  %2041 = vmatpush1.bf16.msra.mxu1 %v2040_v8  ;;  %v1934_v7 = vpack.c.bf16 %v340_v0, %v336_v63  ;;  %v2062_v8 = vpack.c.bf16 %v342_v2, %v338_v1  ;;  %v378_v63 = vld [vmem:[#allocation2 + $0x518] sm:$0xff] }
 0x175   :  { %1915 = vmatprep.subr.bf16.mxu0 %v1914_v11  ;;  %2043 = vmatprep.subr.bf16.mxu1 %v2042_v12  ;;  %v344_v11 = vld [vmem:[#allocation2 + $0x408] sm:$0xff]  ;;  %v382_v0 = vld [vmem:[#allocation2 + $0x538] sm:$0xff] }
 0x176   :  { %v348_v12 = vld [vmem:[#allocation2 + $0x428] sm:$0xff]  ;;  %v2082_v6 = vpack.c.bf16 %v382_v0, %v378_v63  ;;  %v415_v63 = vld [vmem:[#allocation2 + $0x640] sm:$0xff] }
 0x177   :  { %v419_v0 = vld [vmem:[#allocation2 + $0x660] sm:$0xff] }
 0x178   :  { %1917 = vmatpush1.bf16.msra.mxu0 %v1916_v19  ;;  %2045 = vmatpush1.bf16.msra.mxu1 %v2044_v20  ;;  %v1938_v19 = vpack.c.bf16 %v348_v12, %v344_v11  ;;  %v2066_v20 = vpack.c.bf16 %v350_v14, %v346_v13  ;;  %v386_v11 = vld [vmem:[#allocation2 + $0x558] sm:$0xff]  ;;  %v1976_v9 = vpack.c.bf16 %v419_v0, %v415_v63  ;;  %v457_v63 = vld [vmem:[#allocation2 + $0x790] sm:$0xff] }
 0x179   :  { %1919 = vmatprep.subr.bf16.mxu0 %v1918_v23  ;;  %2047 = vmatprep.subr.bf16.mxu1 %v2046_v24  ;;  %v352_v23 = vld [vmem:[#allocation2 + $0x448] sm:$0xff]  ;;  %v390_v12 = vld [vmem:[#allocation2 + $0x578] sm:$0xff]  ;;  %v461_v0 = vld [vmem:[#allocation2 + $0x7b0] sm:$0xff] }
 0x17a   :  { %v356_v24 = vld [vmem:[#allocation2 + $0x468] sm:$0xff]  ;;  %v2086_v18 = vpack.c.bf16 %v390_v12, %v386_v11  ;;  %v423_v11 = vld [vmem:[#allocation2 + $0x680] sm:$0xff] }
 0x17b   :  { %v427_v12 = vld [vmem:[#allocation2 + $0x6a0] sm:$0xff] }
 0x17c   :  { %1921 = vmatpush1.bf16.msra.mxu0 %v1920_v32  ;;  %2049 = vmatpush1.bf16.msra.mxu1 %v2048_v33  ;;  %v1942_v32 = vpack.c.bf16 %v356_v24, %v352_v23  ;;  %v2070_v33 = vpack.c.bf16 %v358_v26, %v354_v25  ;;  %v394_v23 = vld [vmem:[#allocation2 + $0x598] sm:$0xff]  ;;  %v1980_v21 = vpack.c.bf16 %v427_v12, %v423_v11  ;;  %v465_v11 = vld [vmem:[#allocation2 + $0x7d0] sm:$0xff] }
 0x17d   :  { %1923 = vmatprep.subr.bf16.mxu0 %v1922_v36  ;;  %2051 = vmatprep.subr.bf16.mxu1 %v2050_v37  ;;  %v360_v36 = vld [vmem:[#allocation2 + $0x488] sm:$0xff]  ;;  %v398_v24 = vld [vmem:[#allocation2 + $0x5b8] sm:$0xff]  ;;  %v469_v12 = vld [vmem:[#allocation2 + $0x7f0] sm:$0xff] }
 0x17e   :  { %v364_v37 = vld [vmem:[#allocation2 + $0x4a8] sm:$0xff]  ;;  %v2090_v30 = vpack.c.bf16 %v398_v24, %v394_v23  ;;  %v431_v23 = vld [vmem:[#allocation2 + $0x6c0] sm:$0xff] }
 0x17f   :  { %v435_v24 = vld [vmem:[#allocation2 + $0x6e0] sm:$0xff] }
 0x180   :  { %1925 = vmatpush1.bf16.msra.mxu0 %v1924_v44  ;;  %2053 = vmatpush1.bf16.msra.mxu1 %v2052_v45  ;;  %v363_v44 = vld [vmem:[#allocation2 + $0x4a0] sm:$0xff]  ;;  %v1946_v45 = vpack.c.bf16 %v364_v37, %v360_v36  ;;  %v402_v36 = vld [vmem:[#allocation2 + $0x5d8] sm:$0xff] }
 0x181   :  { %1927 = vmatprep.subr.bf16.mxu0 %v1926_v48  ;;  %2055 = vmatprep.subr.bf16.mxu1 %v2054_v49  ;;  %v365_v48 = vld [vmem:[#allocation2 + $0x4b0] sm:$0xff]  ;;  %v368_v49 = vld [vmem:[#allocation2 + $0x4c8] sm:$0xff]  ;;  %v1948_v53 = vpack.c.bf16 %v363_v44, %v359_v43  ;;  %v406_v37 = vld [vmem:[#allocation2 + $0x5f8] sm:$0xff] }
 0x182   :  { %v2076_v54 = vpack.c.bf16 %v365_v48, %v361_v47  ;;  %v1950_v57 = vpack.c.bf16 %v372_v50, %v368_v49  ;;  %v2094_v43 = vpack.c.bf16 %v406_v37, %v402_v36  ;;  %v401_v44 = vld [vmem:[#allocation2 + $0x5d0] sm:$0xff]  ;;  %v412_v47 = vld [vmem:[#allocation2 + $0x628] sm:$0xff]  ;;  %v410_v48 = vld [vmem:[#allocation2 + $0x618] sm:$0xff] }
 0x183   :  { %v414_v49 = vld [vmem:[#allocation2 + $0x638] sm:$0xff]  ;;  %v439_v36 = vld [vmem:[#allocation2 + $0x700] sm:$0xff] }
 0x184   :  { %1929 = vmatpush1.bf16.msra.mxu0 %v1928_v55  ;;  %2057 = vmatpush1.bf16.msra.mxu1 %v2056_v56  ;;  %v367_v55 = vld [vmem:[#allocation2 + $0x4c0] sm:$0xff] }
 0x185   :  { %1931 = vmatprep.subr.bf16.mxu0 %v1930_v59  ;;  %2059 = vmatprep.subr.bf16.mxu1 %v2058_v60  ;;  %v371_v56 = vld [vmem:[#allocation2 + $0x4e0] sm:$0xff]  ;;  %v369_v59 = vld [vmem:[#allocation2 + $0x4d0] sm:$0xff] }
 0x186   :  { %v373_v60 = vld [vmem:[#allocation2 + $0x4f0] sm:$0xff]  ;;  %v1952_v1 = vpack.c.bf16 %v371_v56, %v367_v55  ;;  %v443_v37 = vld [vmem:[#allocation2 + $0x720] sm:$0xff] }
 0x187   :  { %v2080_v2 = vpack.c.bf16 %v373_v60, %v369_v59  ;;  %v409_v55 = vld [vmem:[#allocation2 + $0x610] sm:$0xff]  ;;  %v418_v59 = vld [vmem:[#allocation2 + $0x658] sm:$0xff] }
 0x188   :  { %1933 = vmatpush1.bf16.msra.mxu0 %v1932_v3  ;;  %2061 = vmatpush1.bf16.msra.mxu1 %v2060_v4  ;;  %v375_v3 = vld [vmem:[#allocation2 + $0x500] sm:$0xff]  ;;  %v413_v56 = vld [vmem:[#allocation2 + $0x630] sm:$0xff]  ;;  %v422_v60 = vld [vmem:[#allocation2 + $0x678] sm:$0xff] }
 0x189   :  { %1935 = vmatprep.subr.bf16.mxu0 %v1934_v7  ;;  %2063 = vmatprep.subr.bf16.mxu1 %v2062_v8  ;;  %v379_v4 = vld [vmem:[#allocation2 + $0x520] sm:$0xff]  ;;  %v377_v7 = vld [vmem:[#allocation2 + $0x510] sm:$0xff]  ;;  %v2100_v62 = vpack.c.bf16 %v413_v56, %v409_v55  ;;  %v458_v55 = vld [vmem:[#allocation2 + $0x798] sm:$0xff] }
 0x18a   :  { %v381_v8 = vld [vmem:[#allocation2 + $0x530] sm:$0xff]  ;;  %v1956_v13 = vpack.c.bf16 %v379_v4, %v375_v3  ;;  %v462_v56 = vld [vmem:[#allocation2 + $0x7b8] sm:$0xff] }
 0x18b   :  { %v2084_v14 = vpack.c.bf16 %v381_v8, %v377_v7  ;;  %v417_v3 = vld [vmem:[#allocation2 + $0x650] sm:$0xff]  ;;  %v426_v7 = vld [vmem:[#allocation2 + $0x698] sm:$0xff] }
 0x18c   :  { %1937 = vmatpush1.bf16.msra.mxu0 %v1936_v15  ;;  %2065 = vmatpush1.bf16.msra.mxu1 %v2064_v16  ;;  %v383_v15 = vld [vmem:[#allocation2 + $0x540] sm:$0xff]  ;;  %v421_v4 = vld [vmem:[#allocation2 + $0x670] sm:$0xff]  ;;  %v430_v8 = vld [vmem:[#allocation2 + $0x6b8] sm:$0xff] }
 0x18d   :  { %1939 = vmatprep.subr.bf16.mxu0 %v1938_v19  ;;  %2067 = vmatprep.subr.bf16.mxu1 %v2066_v20  ;;  %v387_v16 = vld [vmem:[#allocation2 + $0x560] sm:$0xff]  ;;  %v385_v19 = vld [vmem:[#allocation2 + $0x550] sm:$0xff]  ;;  %v2104_v10 = vpack.c.bf16 %v421_v4, %v417_v3  ;;  %v466_v3 = vld [vmem:[#allocation2 + $0x7d8] sm:$0xff] }
 0x18e   :  { %v389_v20 = vld [vmem:[#allocation2 + $0x570] sm:$0xff]  ;;  %v1960_v25 = vpack.c.bf16 %v387_v16, %v383_v15  ;;  %v470_v4 = vld [vmem:[#allocation2 + $0x7f8] sm:$0xff] }
 0x18f   :  { %1076 = vmatmul.mubr.f32.vlgmr.msra.gmra.mrb[2].mxu0 %v2215_v40  ;;  %1218 = vmatmul.mubr.f32.vlgmr.msra.gmra.mrb[2].mxu1 %v2215_v40  ;;  %v2088_v26 = vpack.c.bf16 %v389_v20, %v385_v19  ;;  %v399_v40 = vld [vmem:[#allocation2 + $0x5c0] sm:$0xff]  ;;  %v425_v15 = vld [vmem:[#allocation2 + $0x690] sm:$0xff]  ;;  %v434_v19 = vld [vmem:[#allocation2 + $0x6d8] sm:$0xff] }
 0x190   :  { %1941 = vmatpush1.bf16.msra.mxu0 %v1940_v27  ;;  %2069 = vmatpush1.bf16.msra.mxu1 %v2068_v28  ;;  %v391_v27 = vld [vmem:[#allocation2 + $0x580] sm:$0xff]  ;;  %v429_v16 = vld [vmem:[#allocation2 + $0x6b0] sm:$0xff]  ;;  %v438_v20 = vld [vmem:[#allocation2 + $0x6f8] sm:$0xff] }
 0x191   :  { %1943 = vmatprep.subr.bf16.mxu0 %v1942_v32  ;;  %2071 = vmatprep.subr.bf16.mxu1 %v2070_v33  ;;  %v395_v28 = vld [vmem:[#allocation2 + $0x5a0] sm:$0xff]  ;;  %v393_v32 = vld [vmem:[#allocation2 + $0x590] sm:$0xff]  ;;  %v2108_v22 = vpack.c.bf16 %v429_v16, %v425_v15  ;;  %v1378_v16 = vld [vmem:[%s2622_s5 + $0x188] sm:$0xff] }
 0x192   :  { %1146 = vmatprep.mubr.f32.mxu0 %v2216_v52  ;;  %1288 = vmatprep.mubr.f32.mxu1 %v2216_v52  ;;  %v397_v33 = vld [vmem:[#allocation2 + $0x5b0] sm:$0xff]  ;;  %v1964_v38 = vpack.c.bf16 %v395_v28, %v391_v27  ;;  %v411_v52 = vld [vmem:[#allocation2 + $0x620] sm:$0xff] }
 0x193   :  { %v2092_v39 = vpack.c.bf16 %v397_v33, %v393_v32  ;;  %v1972_v61 = vpack.c.bf16 %v411_v52, %v407_v51  ;;  %v433_v27 = vld [vmem:[#allocation2 + $0x6d0] sm:$0xff]  ;;  %v442_v32 = vld [vmem:[#allocation2 + $0x718] sm:$0xff]  ;;  %v1377_v15 = vld [vmem:[%s2622_s5 + $0x180] sm:$0xff] }
 0x194   :  { %1945 = vmatpush1.bf16.msra.mxu0 %v1944_v41  ;;  %2073 = vmatpush1.bf16.msra.mxu1 %v2072_v42  ;;  %v403_v41 = vld [vmem:[#allocation2 + $0x5e0] sm:$0xff]  ;;  %v1966_v42 = vpack.c.bf16 %v404_v35, %v400_v34  ;;  %v437_v28 = vld [vmem:[#allocation2 + $0x6f0] sm:$0xff]  ;;  %v446_v33 = vld [vmem:[#allocation2 + $0x738] sm:$0xff]  ;;  %v1984_v34 = vpack.c.bf16 %v435_v24, %v431_v23 }
 0x195   :  { %1947 = vmatprep.subr.bf16.mxu0 %v1946_v45  ;;  %2075 = vmatprep.subr.bf16.mxu1 %v2074_v46  ;;  %v405_v45 = vld [vmem:[#allocation2 + $0x5f0] sm:$0xff]  ;;  %v408_v46 = vld [vmem:[#allocation2 + $0x608] sm:$0xff]  ;;  %v1968_v50 = vpack.c.bf16 %v403_v41, %v399_v40  ;;  %v2112_v35 = vpack.c.bf16 %v437_v28, %v433_v27  ;;  %v1361_v23 = vld [vmem:[%s2622_s5 + $0x100] sm:$0xff] }
 0x196   :  { %v2096_v31 = vpack.c.bf16 %v405_v45, %v401_v44  ;;  %v441_v40 = vld [vmem:[#allocation2 + $0x710] sm:$0xff]  ;;  %v450_v44 = vld [vmem:[#allocation2 + $0x758] sm:$0xff]  ;;  %v1362_v24 = vld [vmem:[%s2622_s5 + $0x108] sm:$0xff] }
 0x197   :  { %v445_v41 = vld [vmem:[#allocation2 + $0x730] sm:$0xff]  ;;  %v454_v45 = vld [vmem:[#allocation2 + $0x778] sm:$0xff] }
 0x198   :  { %1949 = vmatpush1.bf16.msra.mxu0 %v1948_v53  ;;  %2077 = vmatpush1.bf16.msra.mxu1 %v2076_v54  ;;  %v1970_v53 = vpack.c.bf16 %v412_v47, %v408_v46  ;;  %v2098_v54 = vpack.c.bf16 %v414_v49, %v410_v48  ;;  %v1988_v46 = vpack.c.bf16 %v443_v37, %v439_v36  ;;  %v447_v48 = vld [vmem:[#allocation2 + $0x740] sm:$0xff]  ;;  %v449_v51 = vld [vmem:[#allocation2 + $0x750] sm:$0xff]  ;;  %v1380_v28 = vld [vmem:[%s2622_s5 + $0x198] sm:$0xff] }
 0x199   :  { %1951 = vmatprep.subr.bf16.mxu0 %v1950_v57  ;;  %2079 = vmatprep.subr.bf16.mxu1 %v2078_v58  ;;  %v416_v57 = vld [vmem:[#allocation2 + $0x648] sm:$0xff]  ;;  %v2116_v47 = vpack.c.bf16 %v445_v41, %v441_v40  ;;  %v451_v49 = vld [vmem:[#allocation2 + $0x760] sm:$0xff]  ;;  %v453_v52 = vld [vmem:[#allocation2 + $0x770] sm:$0xff] }
 0x19a   :  { %v420_v58 = vld [vmem:[#allocation2 + $0x668] sm:$0xff]  ;;  %v1379_v27 = vld [vmem:[%s2622_s5 + $0x190] sm:$0xff]  ;;  %v1364_v37 = vld [vmem:[%s2622_s5 + $0x118] sm:$0xff] }
 0x19b   :  { %v1363_v36 = vld [vmem:[%s2622_s5 + $0x110] sm:$0xff]  ;;  %v1381_v40 = vld [vmem:[%s2622_s5 + $0x1a0] sm:$0xff]  ;;  %v1382_v41 = vld [vmem:[%s2622_s5 + $0x1a8] sm:$0xff] }
 0x19c   :  { %1953 = vmatpush1.bf16.msra.mxu0 %v1952_v1  ;;  %2081 = vmatpush1.bf16.msra.mxu1 %v2080_v2  ;;  %v1974_v1 = vpack.c.bf16 %v420_v58, %v416_v57  ;;  %v2102_v2 = vpack.c.bf16 %v422_v60, %v418_v59  ;;  %v1992_v57 = vpack.c.bf16 %v451_v49, %v447_v48  ;;  %v455_v59 = vld [vmem:[#allocation2 + $0x780] sm:$0xff] }
 0x19d   :  { %1955 = vmatprep.subr.bf16.mxu0 %v1954_v5  ;;  %2083 = vmatprep.subr.bf16.mxu1 %v2082_v6  ;;  %v424_v5 = vld [vmem:[#allocation2 + $0x688] sm:$0xff]  ;;  %v2120_v58 = vpack.c.bf16 %v453_v52, %v449_v51  ;;  %v459_v60 = vld [vmem:[#allocation2 + $0x7a0] sm:$0xff]  ;;  %v2170_v48 = vpack.c.bf16 %v1382_v41, %v1381_v40  ;;  %v1352_v51 = vld [vmem:[%s2622_s5 + $0xb8] sm:$0xff] }
 0x19e   :  { %v428_v6 = vld [vmem:[#allocation2 + $0x6a8] sm:$0xff]  ;;  %v1365_v49 = vld [vmem:[%s2622_s5 + $0x120] sm:$0xff]  ;;  %v1383_v52 = vld [vmem:[%s2622_s5 + $0x1b0] sm:$0xff] }
 0x19f   :  { %v1392_v41 = vld [vmem:[%s2622_s5 + $0x1f8] sm:$0xff] }
 0x1a0   :  { %1957 = vmatpush1.bf16.msra.mxu0 %v1956_v13  ;;  %2085 = vmatpush1.bf16.msra.mxu1 %v2084_v14  ;;  %v1978_v13 = vpack.c.bf16 %v428_v6, %v424_v5  ;;  %v2106_v14 = vpack.c.bf16 %v430_v8, %v426_v7  ;;  %v1996_v5 = vpack.c.bf16 %v459_v60, %v455_v59  ;;  %v463_v7 = vld [vmem:[#allocation2 + $0x7c0] sm:$0xff]  ;;  %v1367_v60 = vld [vmem:[%s2622_s5 + $0x130] sm:$0xff] }
 0x1a1   :  { %1959 = vmatprep.subr.bf16.mxu0 %v1958_v17  ;;  %2087 = vmatprep.subr.bf16.mxu1 %v2086_v18  ;;  %v432_v17 = vld [vmem:[#allocation2 + $0x6c8] sm:$0xff]  ;;  %v2124_v6 = vpack.c.bf16 %v461_v0, %v457_v63  ;;  %v467_v8 = vld [vmem:[#allocation2 + $0x7e0] sm:$0xff] }
 0x1a2   :  { %v436_v18 = vld [vmem:[#allocation2 + $0x6e8] sm:$0xff]  ;;  %v1385_v0 = vld [vmem:[%s2622_s5 + $0x1c0] sm:$0xff] }
 0x1a3   :  { %v1354_v63 = vld [vmem:[%s2622_s5 + $0xc8] sm:$0xff] }
 0x1a4   :  { %1961 = vmatpush1.bf16.msra.mxu0 %v1960_v25  ;;  %2089 = vmatpush1.bf16.msra.mxu1 %v2088_v26  ;;  %v1982_v25 = vpack.c.bf16 %v436_v18, %v432_v17  ;;  %v2110_v26 = vpack.c.bf16 %v438_v20, %v434_v19  ;;  %v2000_v17 = vpack.c.bf16 %v467_v8, %v463_v7  ;;  %v1329_v19 = vld [vmem:[%s2622_s5] sm:$0xff]  ;;  %v1330_v20 = vld [vmem:[%s2622_s5 + $0x8] sm:$0xff] }
 0x1a5   :  { %1963 = vmatprep.subr.bf16.mxu0 %v1962_v29  ;;  %2091 = vmatprep.subr.bf16.mxu1 %v2090_v30  ;;  %v440_v29 = vld [vmem:[#allocation2 + $0x708] sm:$0xff]  ;;  %v2128_v18 = vpack.c.bf16 %v469_v12, %v465_v11  ;;  %v1369_v8 = vld [vmem:[%s2622_s5 + $0x140] sm:$0xff]  ;;  %v1356_v11 = vld [vmem:[%s2622_s5 + $0xd8] sm:$0xff] }
 0x1a6   :  { %v444_v30 = vld [vmem:[#allocation2 + $0x728] sm:$0xff]  ;;  %v1387_v12 = vld [vmem:[%s2622_s5 + $0x1d0] sm:$0xff] }
 0x1a8   :  { %1965 = vmatpush1.bf16.msra.mxu0 %v1964_v38  ;;  %2093 = vmatpush1.bf16.msra.mxu1 %v2092_v39  ;;  %v1986_v38 = vpack.c.bf16 %v444_v30, %v440_v29  ;;  %v2114_v39 = vpack.c.bf16 %v446_v33, %v442_v32  ;;  %v2132_v29 = vpack.c.bf16 %v1330_v20, %v1329_v19  ;;  %v1331_v32 = vld [vmem:[%s2622_s5 + $0x10] sm:$0xff]  ;;  %v1332_v33 = vld [vmem:[%s2622_s5 + $0x18] sm:$0xff] }
 0x1a9   :  { %1967 = vmatprep.subr.bf16.mxu0 %v1966_v42  ;;  %2095 = vmatprep.subr.bf16.mxu1 %v2094_v43  ;;  %v448_v42 = vld [vmem:[#allocation2 + $0x748] sm:$0xff]  ;;  %v2164_v30 = vpack.c.bf16 %v1362_v24, %v1361_v23  ;;  %v1371_v20 = vld [vmem:[%s2622_s5 + $0x150] sm:$0xff]  ;;  %v1389_v24 = vld [vmem:[%s2622_s5 + $0x1e0] sm:$0xff] }
 0x1aa   :  { %v452_v43 = vld [vmem:[#allocation2 + $0x768] sm:$0xff] }
 0x1ab   :  { %v1358_v23 = vld [vmem:[%s2622_s5 + $0xe8] sm:$0xff] }
 0x1ac   :  { %1969 = vmatpush1.bf16.msra.mxu0 %v1968_v50  ;;  %2097 = vmatpush1.bf16.msra.mxu1 %v2096_v31  ;;  %v1990_v50 = vpack.c.bf16 %v452_v43, %v448_v42  ;;  %v2118_v31 = vpack.c.bf16 %v454_v45, %v450_v44  ;;  %v2217_v42 = vld [vmem:[%s2617_s0 + $0x10] sm:$0xff]  ;;  %v2136_v43 = vpack.c.bf16 %v1332_v33, %v1331_v32  ;;  %v1333_v45 = vld [vmem:[%s2622_s5 + $0x20] sm:$0xff]  ;;  %v1342_v32 = vld [vmem:[%s2622_s5 + $0x68] sm:$0xff] }
 0x1ad   :  { %1971 = vmatprep.subr.bf16.mxu0 %v1970_v53  ;;  %2099 = vmatprep.subr.bf16.mxu1 %v2098_v54  ;;  %v456_v53 = vld [vmem:[#allocation2 + $0x788] sm:$0xff]  ;;  %v2168_v44 = vpack.c.bf16 %v1364_v37, %v1363_v36  ;;  %v1373_v33 = vld [vmem:[%s2622_s5 + $0x160] sm:$0xff]  ;;  %v1359_v37 = vld [vmem:[%s2622_s5 + $0xf0] sm:$0xff] }
 0x1ae   :  { %v460_v54 = vld [vmem:[#allocation2 + $0x7a8] sm:$0xff] }
 0x1b0   :  { %1973 = vmatpush1.bf16.msra.mxu0 %v1972_v61  ;;  %2101 = vmatpush1.bf16.msra.mxu1 %v2100_v62  ;;  %v1994_v61 = vpack.c.bf16 %v460_v54, %v456_v53  ;;  %v2122_v62 = vpack.c.bf16 %v462_v56, %v458_v55  ;;  %v1384_v53 = vld [vmem:[%s2622_s5 + $0x1b8] sm:$0xff]  ;;  %v1335_v56 = vld [vmem:[%s2622_s5 + $0x30] sm:$0xff] }
 0x1b1   :  { %1975 = vmatprep.subr.bf16.mxu0 %v1974_v1  ;;  %2103 = vmatprep.subr.bf16.mxu1 %v2102_v2  ;;  %v464_v1 = vld [vmem:[#allocation2 + $0x7c8] sm:$0xff]  ;;  %v2174_v59 = vpack.c.bf16 %v1384_v53, %v1383_v52  ;;  %v1295_v52 = vld [vmem:[#allocation6] sm:$0xf] }
 0x1b2   :  { %v468_v2 = vld [vmem:[#allocation2 + $0x7e8] sm:$0xff] }
 0x1b4   :  { %1977 = vmatpush1.bf16.msra.mxu0 %v1976_v9  ;;  %2105 = vmatpush1.bf16.msra.mxu1 %v2104_v10  ;;  %v1998_v9 = vpack.c.bf16 %v468_v2, %v464_v1  ;;  %v2126_v10 = vpack.c.bf16 %v470_v4, %v466_v3  ;;  %v1386_v1 = vld [vmem:[%s2622_s5 + $0x1c8] sm:$0xff]  ;;  %v1337_v4 = vld [vmem:[%s2622_s5 + $0x40] sm:$0xff] }
 0x1b5   :  { %1979 = vmatprep.subr.bf16.mxu0 %v1978_v13  ;;  %2107 = vmatprep.subr.bf16.mxu1 %v2106_v14  ;;  %v1345_v13 = vld [vmem:[%s2622_s5 + $0x80] sm:$0xff]  ;;  %v1346_v14 = vld [vmem:[%s2622_s5 + $0x88] sm:$0xff]  ;;  %v2178_v7 = vpack.c.bf16 %v1386_v1, %v1385_v0 }
 0x1b8   :  { %1981 = vmatpush1.bf16.msra.mxu0 %v1980_v21  ;;  %2109 = vmatpush1.bf16.msra.mxu1 %v2108_v22  ;;  %v2130_v21 = vpack.c.bf16 %v1346_v14, %v1345_v13  ;;  %v2162_v22 = vpack.c.bf16 %v1378_v16, %v1377_v15  ;;  %v1388_v13 = vld [vmem:[%s2622_s5 + $0x1d8] sm:$0xff]  ;;  %v1339_v16 = vld [vmem:[%s2622_s5 + $0x50] sm:$0xff] }
 0x1b9   :  { %1983 = vmatprep.subr.bf16.mxu0 %v1982_v25  ;;  %2111 = vmatprep.subr.bf16.mxu1 %v2110_v26  ;;  %v1347_v25 = vld [vmem:[%s2622_s5 + $0x90] sm:$0xff]  ;;  %v1348_v26 = vld [vmem:[%s2622_s5 + $0x98] sm:$0xff]  ;;  %v2182_v19 = vpack.c.bf16 %v1388_v13, %v1387_v12 }
 0x1bc   :  { %1985 = vmatpush1.bf16.msra.mxu0 %v1984_v34  ;;  %2113 = vmatpush1.bf16.msra.mxu1 %v2112_v35  ;;  %v2134_v34 = vpack.c.bf16 %v1348_v26, %v1347_v25  ;;  %v2166_v35 = vpack.c.bf16 %v1380_v28, %v1379_v27  ;;  %v1390_v25 = vld [vmem:[%s2622_s5 + $0x1e8] sm:$0xff] }
 0x1bd   :  { %1987 = vmatprep.subr.bf16.mxu0 %v1986_v38  ;;  %2115 = vmatprep.subr.bf16.mxu1 %v2114_v39  ;;  %v1349_v38 = vld [vmem:[%s2622_s5 + $0xa0] sm:$0xff]  ;;  %v1350_v39 = vld [vmem:[%s2622_s5 + $0xa8] sm:$0xff] }
 0x1c0   :  { %1989 = vmatpush1.bf16.msra.mxu0 %v1988_v46  ;;  %2117 = vmatpush1.bf16.msra.mxu1 %v2116_v47  ;;  %v1334_v46 = vld [vmem:[%s2622_s5 + $0x28] sm:$0xff]  ;;  %v2138_v47 = vpack.c.bf16 %v1350_v39, %v1349_v38  ;;  %v1360_v38 = vld [vmem:[%s2622_s5 + $0xf8] sm:$0xff]  ;;  %v1391_v39 = vld [vmem:[%s2622_s5 + $0x1f0] sm:$0xff] }
 0x1c1   :  { %1991 = vmatprep.subr.bf16.mxu0 %v1990_v50  ;;  %2119 = vmatprep.subr.bf16.mxu1 %v2118_v31  ;;  %v1366_v50 = vld [vmem:[%s2622_s5 + $0x128] sm:$0xff]  ;;  %v1351_v31 = vld [vmem:[%s2622_s5 + $0xb0] sm:$0xff]  ;;  %v2140_v54 = vpack.c.bf16 %v1334_v46, %v1333_v45  ;;  %v2158_v40 = vpack.c.bf16 %v1360_v38, %v1359_v37 }
 0x1c2   :  { %v2172_v55 = vpack.c.bf16 %v1366_v50, %v1365_v49  ;;  %v1375_v46 = vld [vmem:[%s2622_s5 + $0x170] sm:$0xff]  ;;  %v1297_v49 = vlaneseq }
 0x1c4   :  { %1993 = vmatpush1.bf16.msra.mxu0 %v1992_v57  ;;  %2121 = vmatpush1.bf16.msra.mxu1 %v2120_v58  ;;  %v1336_v57 = vld [vmem:[%s2622_s5 + $0x38] sm:$0xff]  ;;  %v2142_v58 = vpack.c.bf16 %v1352_v51, %v1351_v31  ;;  %v1298_v50 = vshrl.u32 %v1297_v49, 7 }
 0x1c5   :  { %1995 = vmatprep.subr.bf16.mxu0 %v1994_v61  ;;  %2123 = vmatprep.subr.bf16.mxu1 %v2122_v62  ;;  %v1368_v61 = vld [vmem:[%s2622_s5 + $0x138] sm:$0xff]  ;;  %v1353_v62 = vld [vmem:[%s2622_s5 + $0xc0] sm:$0xff]  ;;  %v2144_v2 = vpack.c.bf16 %v1336_v57, %v1335_v56 }
 0x1c6   :  { %v2176_v3 = vpack.c.bf16 %v1368_v61, %v1367_v60  ;;  %v1299_v31 = vsub.s32 0, %v1298_v50  ;;  %v1307_v51 = vsub.s32 2, %v1298_v50  ;;  %v1303_v53 = vsub.s32 1, %v1298_v50 }
 0x1c8   :  { %1997 = vmatpush1.bf16.msra.mxu0 %v1996_v5  ;;  %2125 = vmatpush1.bf16.msra.mxu1 %v2124_v6  ;;  %v1338_v5 = vld [vmem:[%s2622_s5 + $0x48] sm:$0xff]  ;;  %v2146_v6 = vpack.c.bf16 %v1354_v63, %v1353_v62  ;;  %v1308_v56 = vrot.slane %v1295_v52, %v1307_v51  ;;  %v1304_v57 = vrot.slane %v1295_v52, %v1303_v53 }
 0x1c9   :  { %1999 = vmatprep.subr.bf16.mxu0 %v1998_v9  ;;  %2127 = vmatprep.subr.bf16.mxu1 %v2126_v10  ;;  %v1370_v9 = vld [vmem:[%s2622_s5 + $0x148] sm:$0xff]  ;;  %v1355_v10 = vld [vmem:[%s2622_s5 + $0xd0] sm:$0xff]  ;;  %v2148_v14 = vpack.c.bf16 %v1338_v5, %v1337_v4 }
 0x1ca   :  { %v2180_v15 = vpack.c.bf16 %v1370_v9, %v1369_v8 }
 0x1cc   :  { %2001 = vmatpush1.bf16.msra.mxu0 %v2000_v17  ;;  %2129 = vmatpush1.bf16.msra.mxu1 %v2128_v18  ;;  %v1340_v17 = vld [vmem:[%s2622_s5 + $0x58] sm:$0xff]  ;;  %v2150_v18 = vpack.c.bf16 %v1356_v11, %v1355_v10 }
 0x1cd   :  { %2131 = vmatprep.subr.bf16.mxu0 %v2130_v21  ;;  %2163 = vmatprep.subr.bf16.mxu1 %v2162_v22  ;;  %v1372_v21 = vld [vmem:[%s2622_s5 + $0x158] sm:$0xff]  ;;  %v1357_v22 = vld [vmem:[%s2622_s5 + $0xe0] sm:$0xff]  ;;  %v2152_v26 = vpack.c.bf16 %v1340_v17, %v1339_v16 }
 0x1ce   :  { %v2184_v27 = vpack.c.bf16 %v1372_v21, %v1371_v20  ;;  %v2154_v28 = vpack.c.bf16 %v1358_v23, %v1357_v22 }
 0x1cf   :  { %1147 = vmatmul.mubr.f32.vlgmr.msra.gmra.mrb[2].mxu0 %v2217_v42  ;;  %1289 = vmatmul.mubr.f32.vlgmr.msra.gmra.mrb[2].mxu1 %v2217_v42  ;;  %v1343_v42 = vld [vmem:[%s2622_s5 + $0x70] sm:$0xff] }
 0x1d0   :  { %2133 = vmatpush3.bf16.msra.mxu0 %v2132_v29  ;;  %2165 = vmatpush3.bf16.msra.mxu1 %v2164_v30  ;;  %v2186_v29 = vpack.c.bf16 %v1390_v25, %v1389_v24  ;;  %v1341_v30 = vld [vmem:[%s2622_s5 + $0x60] sm:$0xff] }
 0x1d1   :  { %2135 = vmatprep.subr.bf16.mxu0 %v2134_v34  ;;  %2167 = vmatprep.subr.bf16.mxu1 %v2166_v35  ;;  %v2156_v34 = vpack.c.bf16 %v1342_v32, %v1341_v30  ;;  %v1374_v35 = vld [vmem:[%s2622_s5 + $0x168] sm:$0xff] }
 0x1d2   :  { %v2188_v36 = vpack.c.bf16 %v1374_v35, %v1373_v33 }
 0x1d4   :  { %2137 = vmatpush3.bf16.msra.mxu0 %v2136_v43  ;;  %2169 = vmatpush3.bf16.msra.mxu1 %v2168_v44  ;;  %v1344_v43 = vld [vmem:[%s2622_s5 + $0x78] sm:$0xff]  ;;  %v2190_v44 = vpack.c.bf16 %v1392_v41, %v1391_v39 }
 0x1d5   :  { %2139 = vmatprep.subr.bf16.mxu0 %v2138_v47  ;;  %2171 = vmatprep.subr.bf16.mxu1 %v2170_v48  ;;  %v2160_v45 = vpack.c.bf16 %v1344_v43, %v1343_v42  ;;  %v1376_v47 = vld [vmem:[%s2622_s5 + $0x178] sm:$0xff] }
 0x1d6   :  { %v2192_v48 = vpack.c.bf16 %v1376_v47, %v1375_v46 }
 0x1d8   :  { %2141 = vmatpush3.bf16.msra.mxu0 %v2140_v54  ;;  %2173 = vmatpush3.bf16.msra.mxu1 %v2172_v55  ;;  %v1311_v54 = vsub.s32 3, %v1298_v50  ;;  %v1300_v55 = vrot.slane %v1295_v52, %v1299_v31 }
 0x1d9   :  { %2143 = vmatprep.subr.bf16.mxu0 %v2142_v58  ;;  %2175 = vmatprep.subr.bf16.mxu1 %v2174_v59 }
 0x1da   :  { %v1312_v58 = vrot.slane %v1295_v52, %v1311_v54 }
 0x1dc   :  { %2145 = vmatpush3.bf16.msra.mxu0 %v2144_v2  ;;  %2177 = vmatpush3.bf16.msra.mxu1 %v2176_v3 }
 0x1dd   :  { %2147 = vmatprep.subr.bf16.mxu0 %v2146_v6  ;;  %2179 = vmatprep.subr.bf16.mxu1 %v2178_v7 }
 0x1e0   :  { %2149 = vmatpush3.bf16.msra.mxu0 %v2148_v14  ;;  %2181 = vmatpush3.bf16.msra.mxu1 %v2180_v15 }
 0x1e1   :  { %2151 = vmatprep.subr.bf16.mxu0 %v2150_v18  ;;  %2183 = vmatprep.subr.bf16.mxu1 %v2182_v19 }
 0x1e4   :  { %2153 = vmatpush3.bf16.msra.mxu0 %v2152_v26  ;;  %2185 = vmatpush3.bf16.msra.mxu1 %v2184_v27 }
 0x1e5   :  { %2155 = vmatprep.subr.bf16.mxu0 %v2154_v28  ;;  %2187 = vmatprep.subr.bf16.mxu1 %v2186_v29 }
 0x1e8   :  { %2157 = vmatpush3.bf16.msra.mxu0 %v2156_v34  ;;  %2189 = vmatpush3.bf16.msra.mxu1 %v2188_v36 }
 0x1e9   :  { %2159 = vmatprep.subr.bf16.mxu0 %v2158_v40  ;;  %2191 = vmatprep.subr.bf16.mxu1 %v2190_v44 }
 0x1ec   :  { %2161 = vmatpush3.bf16.msra.mxu0 %v2160_v45  ;;  %2193 = vmatpush3.bf16.msra.mxu1 %v2192_v48 }
 0x2a2   :  { %v1148_v59 = vpop.f32.mrb[2].mxu0  ;;  %v1290_v60 = vpop.f32.mrb[2].mxu1 }
 0x2a3   :  { %v1317_v61 = vadd.f32 %v1300_v55, %v1148_v59  ;;  %v1319_v62 = vadd.f32 %v1308_v56, %v1290_v60  ;;  %v1150_v63 = vpop.f32.mrb[3].mxu0  ;;  %v1292_v0 = vpop.f32.mrb[3].mxu1 }
 0x2a4   :  { %v1318_v1 = vadd.f32 %v1304_v57, %v1150_v63  ;;  %v1320_v2 = vadd.f32 %v1312_v58, %v1292_v0 }
 0x2a5   :  { %v1321_v3 = vmax.f32 %v1317_v61, 0.0  ;;  %v1323_v4 = vmax.f32 %v1319_v62, 0.0 }
 0x2a6   :  { %v1322_v5 = vmax.f32 %v1318_v1, 0.0  ;;  %v1324_v6 = vmax.f32 %v1320_v2, 0.0 }
 0x2a7   :  { %1325 = vst [vmem:[%s2623_s6] sm:$0xff] %v1321_v3  ;;  %1327 = vst [vmem:[%s2623_s6 + $0x10] sm:$0xff] %v1323_v4 }
 0x2a8   :  { %1326 = vst [vmem:[%s2623_s6 + $0x8] sm:$0xff] %v1322_v5  ;;  %1328 = vst [vmem:[%s2623_s6 + $0x18] sm:$0xff] %v1324_v6  ;;  %1457 = vmatprep.mubr.f32.mxu0 %v1322_v5  ;;  %1527 = vmatprep.mubr.f32.mxu1 %v1324_v6 }
 0x2a9   :  { %1458 = vmatmul.mubr.f32.vlgmr.msra.gmra.mrb[4].mxu0 %v1321_v3  ;;  %1528 = vmatmul.mubr.f32.vlgmr.msra.gmra.mrb[4].mxu1 %v1323_v4 }
 0x37c   :  { %v1580_v7 = vpop.f32.mrb[4].mxu0  ;;  %v1615_v8 = vpop.f32.mrb[4].mxu1 }
 0x37d   :  { %v1581_v9 = vpop.f32.mrb[5].mxu0  ;;  %v1616_v10 = vpop.f32.mrb[5].mxu1 }
 0x37e   :  { %v1582_v11 = vadd.f32 %v1581_v9, %v1580_v7  ;;  %v1617_v12 = vadd.f32 %v1616_v10, %v1615_v8 }
 0x380   :  { %v1530_v13 = vadd.f32 %v1617_v12, %v1582_v11 }
 0x382   :  { %2212 = vtanh.f32 %v1530_v13 }
 0x38c   :  { %v2213_v14 = vpop.eup %2212 }
 0x38d   :  { %1535 = vst.msk [vmem:[%s2624_s7] sm:$0xff] %vm1534_vm1, %v2213_v14 }
 0x38e   :  { %1544 = vsyncpa [#allocation3], 1 }
 0x38f   :  { %1545 = vsyncpa [#allocation5], 1 }

// kernel: net_forward.10
= control target key start
LH: loop header
LB: loop body
LE: loop exit
PB: predicated region body
PF: predicated region fallthrough
CT: control target
= control target key end

     0   :  { %8 = vsyncpa [#allocation3], 0  ;;  %s5754_s0 = inlined_call_operand.vmem [shape: f32[1,1024], index: 0, kind: input, shape index: {}]   ;;  %s5755_s1 = inlined_call_operand.hbm [shape: bf16[1024,2048], index: 1, kind: input, shape index: {}]   ;;  %s5756_s2 = inlined_call_operand.hbm [shape: f32[1,2048], index: 2, kind: input, shape index: {}]   ;;  %s5757_s3 = inlined_call_operand.vmem [shape: f32[1,2048], index: 3, kind: output, shape index: {}]  }
   0x1   :  { %10 = vsyncpa [#allocation3 + $0x1], 0 }
   0x2   :  { %11 = vsyncpa [#allocation5], 0 }
   0x3   :  { %13 = vsyncpa [#allocation5 + $0x1], 0  ;;  %s4962_s12 = smov 0   ;;  %s4964_s13 = smov 0  }
   0x4   :  { %s4966_s14 = smov 0   ;;  %s4968_s15 = smov 0  }
   0x5 LB: > { %s4201_s16 = sadd.s32 4294967295, %s4934_s15   ;;  %s4982_s17 = sadd.s32 1, %s4934_s15   ;;  %s4934_s15 = sphi %s4968_s15, %s5767_s15   ;;  %s4930_s14 = sphi %s4966_s14, %s5766_s14   ;;  %s4926_s13 = sphi %s4964_s13, %s5765_s13   ;;  %s4922_s12 = sphi %s4962_s12, %s5764_s12  }
   0x6   : > { %s44_s18 = ssub.s32 %s4934_s15, %s4982_s17  ;;  %s47_s19 = sadd.s32 1, %s4930_s14 }
   0x7   : > { %p45_p0 = scmp.eq.s32.totalorder %s44_s18, 0  ;;  %p54_p1 = scmp.ne.s32.totalorder %s4930_s14, %s4926_s13 }
   0x8   : > { %p55_p2 = scmp.eq.s32.totalorder %s4934_s15, 0  ;;  %p60_p3 = scmp.ne.s32.totalorder %s4926_s13, %s4922_s12 }
   0x9   : > { %s4992_s20 = scalar_select %p45_p0, %s4930_s14, %s47_s19  }
   0xa   : > { %p56_p4 = por %p55_p2, %p54_p1  ;;  %p61_p5 = scmp.eq.s32.totalorder %s4201_s16, 0 }
   0xb   : > { %p4798_p6 = scmp.lt.s32.totalorder %s4934_s15, 2  ;;  %s5002_s22 = sand.u32 1, %s4930_s14  }
   0xc   : > { %p4997_p7 = por %p61_p5, %p60_p3  ;;  %s4205_s23 = sshll.u32 %s5002_s22, 12 }
   0xd   : > { %s4729_s24 = sshll.u32 %s4934_s15, 9  ;;  %s143_s28 = scalar_lea.vmem [#allocation2], %s4205_s23 }
   0xe   : > { %s5759_s21 = scalar_select %p4997_p7, 1, 0 }
   0xf   : > { %s5009_s27 = scalar_lea.hbm %s5755_s1, %s4729_s24  ;;  %s150_s29 = sshll.u32 %s143_s28, 4  ;;  %s5011_s29 = int_to_ptr.vmem [resolvable:$true] %s150_s29 }
  0x10   : > { %p5013_p8 = pnand %p4798_p6, %p56_p4  ;;  %s140_s4 = scalar_lea.sflag [#allocation3], %s5002_s22 }
  0x11   : > { %s4836_s5 = scalar_lea.hbm %s5009_s27, 65536  ;;  %s4841_s8 = scalar_lea.hbm %s5755_s1, 131072 }
  0x12   : > { %p4837_p9 = scmp.ne.s32.totalorder %s5009_s27, %s4836_s5  ;;  %p4838_p10 = pneg %p5013_p8 }
  0x13   : > { %p4842_p13 = scmp.lt.u32.totalorder %s5009_s27, %s5755_s1  ;;  %p4843_p0 = scmp.lt.u32.totalorder %s4841_s8, %s4836_s5 }
  0x14   : > { %p4839_p11 = pnand %p4838_p10, %p4837_p9  ;;  %p4845_p2 = scmp.lt.u32.totalorder %s4836_s5, %s5009_s27 }
  0x15   : > { %p4844_p1 = por %p4843_p0, %p4842_p13 }
  0x16   : > { %p4840_p12 = pneg %p4839_p11 }
  0x17   : > { %p4846_p3 = por %p4845_p2, %p4844_p1 }
  0x19   : > { %p4847_p4 = pnand %p4846_p3, %p4840_p12 }
  0x1b   : > { %4850 = shalt.err (!%p4847_p4)
}
  0x1c   : > { %s4851_s11 = scalar_lea.vmem %s5011_s29, 65536  ;;  %s4936_s12 = smov [#allocation2]  }
  0x1d   : > { %p4852_p5 = scmp.ne.s32.totalorder %s5011_s29, %s4851_s11  ;;  %s4856_s18 = sshll.u32 %s4936_s12, 4  ;;  %s4857_s18 = int_to_ptr.vmem [resolvable:$false] %s4856_s18 }
  0x1e   : > { %s4858_s19 = scalar_lea.vmem %s4857_s18, 131072  ;;  %p4859_p11 = scmp.lt.s32.totalorder %s5011_s29, %s4857_s18 }
  0x1f   : > { %p4854_p6 = pnand %p4852_p5, %p4838_p10  ;;  %p4860_p13 = scmp.lt.s32.totalorder %s4858_s19, %s4851_s11 }
  0x21   : > { %p4855_p9 = pneg %p4854_p6  ;;  %p4861_p0 = por %p4860_p13, %p4859_p11 }
  0x23   : > { %p4862_p1 = pnand %p4861_p0, %p4855_p9 }
  0x25   : > { %4865 = shalt.err (!%p4862_p1)
}
  0x26   : > { %s4937_s23 = smov 1024   ;;  %s4938_s24 = smov 512  }
  0x27   : > { %s4939_s25 = smov 32   ;;  %p4211_p12 = scmp.ge.s32.totalorder %s4934_s15, 1 }
  0x28   : > { %4794 = dma.hbm_to_vmem [thread:$0]  (!%p5013_p8), %s5009_s27, 65536, %s5011_s29, %s140_s4, %s4937_s23, %s4938_s24, %s4939_s25  }
  0x29   : > { %p177_p2 = scmp.lt.s32.totalorder %s4934_s15, 3  ;;  %s4208_s26 = sshll.u32 %s5002_s22, 3 }
  0x2a   : > { %s4730_s5 = sshll.u32 %s4934_s15, 7  ;;  %s164_s6 = scalar_lea.vmem [#allocation4], %s4208_s26 }
  0x2b   : > { %p5048_p3 = pnand %p4211_p12, %p177_p2  ;;  %s172_s7 = sshll.u32 %s164_s6, 4  ;;  %s173_s7 = int_to_ptr.vmem [resolvable:$true] %s172_s7 }
  0x2c   : > { %s5056_s10 = scalar_lea.hbm %s5756_s2, %s4730_s5  ;;  %s161_s27 = scalar_lea.sflag [#allocation5], %s5002_s22 }
  0x2d   : > { %s5761_s28 = scalar_select %p5048_p3, 1, 0 }
  0x2e   : > { %s4866_s29 = scalar_lea.hbm %s5056_s10, 128  ;;  %s4871_s12 = scalar_lea.hbm %s5756_s2, 256 }
  0x2f   : > { %p4867_p4 = scmp.ne.s32.totalorder %s5056_s10, %s4866_s29  ;;  %p4872_p9 = scmp.lt.u32.totalorder %s5056_s10, %s5756_s2 }
  0x30   : > { %p4873_p11 = scmp.lt.u32.totalorder %s4871_s12, %s4866_s29  ;;  %p4875_p0 = scmp.lt.u32.totalorder %s4866_s29, %s5056_s10 }
  0x31   : > { %p4869_p5 = pnand %p4867_p4, %p4838_p10 }
  0x32   : > { %p4874_p13 = por %p4873_p11, %p4872_p9 }
  0x33   : > { %p4870_p6 = pneg %p4869_p5 }
  0x34   : > { %p4876_p1 = por %p4875_p0, %p4874_p13 }
  0x36   : > { %p4877_p12 = pnand %p4876_p1, %p4870_p6 }
  0x38   : > { %4880 = shalt.err (!%p4877_p12)
}
  0x39   : > { %s4881_s22 = scalar_lea.vmem %s173_s7, 128  ;;  %s4940_s23 = smov [#allocation4]  }
  0x3a   : > { %p4882_p2 = scmp.ne.s32.totalorder %s173_s7, %s4881_s22  ;;  %s4886_s24 = sshll.u32 %s4940_s23, 4  ;;  %s4887_s24 = int_to_ptr.vmem [resolvable:$false] %s4886_s24 }
  0x3b   : > { %s4888_s25 = scalar_lea.vmem %s4887_s24, 256  ;;  %p4889_p7 = scmp.lt.s32.totalorder %s173_s7, %s4887_s24 }
  0x3c   : > { %p4884_p4 = pnand %p4882_p2, %p4838_p10  ;;  %p4890_p3 = scmp.lt.s32.totalorder %s4888_s25, %s4881_s22 }
  0x3e   : > { %p4885_p5 = pneg %p4884_p4  ;;  %p4891_p9 = por %p4890_p3, %p4889_p7 }
  0x40   : > { %p4892_p11 = pnand %p4891_p9, %p4885_p5 }
  0x42   : > { %4895 = shalt.err (!%p4892_p11)
}
  0x43   : > { %4797 = dma.hbm_to_vmem [thread:$0]  (!%p5013_p8), %s5056_s10, 128, %s173_s7, %s161_s27  }
  0x44   : > { %p5762_p6 = scmp.ne.s32.totalorder %s5761_s28, 0 }
  0x45   : > { %s183_s26 = sand.u32 (!%p5762_p6), 1, %s4926_s13   ;;  %p5763_p10 = scmp.ne.s32.totalorder (!%p5762_p6), %s5759_s21, 0 }
  0x46   : > { %181 = sbr.rel (%p5762_p6) target bundleno = 825 (0x339), region = 32  ;;  %s4212_s5 = sshll.u32 (!%p5762_p6), %s183_s26, 12 }
  0x47   : > { %s184_s6 = scalar_lea.sflag (!%p5762_p6), [#allocation3], %s183_s26  ;;  %s5081_s8 = scalar_lea.vmem (!%p5762_p6), [#allocation2], %s4212_s5 }
  0x4d   : > { %4913 = dma.done.wait (%p5763_p10), %s184_s6, 65536  }
  0x4e   : > { %4915 = vsyncadd (%p5763_p10), %s184_s6, 4294901760  ;;  %s4213_s9 = sshll.u32 %s183_s26, 3  ;;  %s193_s30 = scalar_lea.sflag [#allocation5], %s183_s26 }
  0x4f   : > { %s5087_s29 = scalar_lea.vmem [#allocation4], %s4213_s9 }
  0x50   : > { %4917 = dma.done.wait (%p5763_p10), %s193_s30, 128  }
  0x51   : > { %4919 = vsyncadd (%p5763_p10), %s193_s30, 4294967168  ;;  %v280_v0 = vld [vmem:[%s5081_s8] sm:$0xff]  ;;  %v281_v2 = vld [vmem:[%s5081_s8 + $0x8] sm:$0xff]  ;;  %v232_v32 = vlaneseq  ;;  %s4214_s27 = sshll.u32 %s4201_s16, 3 }
  0x52   : > { %v284_v1 = vld [vmem:[%s5081_s8 + $0x20] sm:$0xff]  ;;  %v285_v4 = vld [vmem:[%s5081_s8 + $0x28] sm:$0xff]  ;;  %p226_p7 = scmp.lt.s32.totalorder %s4214_s27, 15 }
  0x53   : > { %v4216_v3 = vcombine.high %v280_v0, %v284_v1  ;;  %v4215_v5 = vcombine.low %v280_v0, %v284_v1  ;;  %v288_v6 = vld [vmem:[%s5081_s8 + $0x40] sm:$0xff]  ;;  %v4218_v8 = vcombine.high %v281_v2, %v285_v4  ;;  %v4217_v9 = vcombine.low %v281_v2, %v285_v4  ;;  %v289_v11 = vld [vmem:[%s5081_s8 + $0x48] sm:$0xff] }
  0x54   : > { %v292_v7 = vld [vmem:[%s5081_s8 + $0x60] sm:$0xff]  ;;  %v293_v12 = vld [vmem:[%s5081_s8 + $0x68] sm:$0xff]  ;;  %v5115_v41 = vshrl.u32 %v232_v32, 7  ;;  %s5769_s27 = smov (!%p226_p7, %s4214_s27), 15 }
  0x55   : > { %v4224_v10 = vcombine.high %v288_v6, %v292_v7  ;;  %v296_v13 = vld [vmem:[%s5081_s8 + $0x80] sm:$0xff]  ;;  %3394 = vmatprep.subr.bf16.mxu0 %v4216_v3  ;;  %v4226_v14 = vcombine.high %v289_v11, %v293_v12  ;;  %v297_v16 = vld [vmem:[%s5081_s8 + $0x88] sm:$0xff]  ;;  %3558 = vmatprep.subr.bf16.mxu1 %v4218_v8  ;;  %v4223_v18 = vcombine.low %v288_v6, %v292_v7  ;;  %s228_s4 = scalar_lea.vmem %s5757_s3, %s5769_s27 }
  0x56   : > { %v300_v15 = vld [vmem:[%s5081_s8 + $0xa0] sm:$0xff]  ;;  %v301_v17 = vld [vmem:[%s5081_s8 + $0xa8] sm:$0xff]  ;;  %3395 = vmatpush1.bf16.msra.mxu0 %v4215_v5  ;;  %3559 = vmatpush1.bf16.msra.mxu1 %v4217_v9  ;;  %v4225_v19 = vcombine.low %v289_v11, %v293_v12  ;;  %v238_v50 = vsub.s32 1, %v5115_v41 }
  0x57   : > { %3396 = vmatprep.subr.bf16.mxu0 %v4224_v10  ;;  %v4232_v20 = vcombine.high %v296_v13, %v300_v15  ;;  %3560 = vmatprep.subr.bf16.mxu1 %v4226_v14  ;;  %v4234_v21 = vcombine.high %v297_v16, %v301_v17  ;;  %v304_v22 = vld [vmem:[%s5081_s8 + $0xc0] sm:$0xff]  ;;  %v305_v24 = vld [vmem:[%s5081_s8 + $0xc8] sm:$0xff]  ;;  %v4231_v26 = vcombine.low %v296_v13, %v300_v15 }
  0x58   : > { %v308_v23 = vld [vmem:[%s5081_s8 + $0xe0] sm:$0xff]  ;;  %v309_v25 = vld [vmem:[%s5081_s8 + $0xe8] sm:$0xff]  ;;  %v4233_v27 = vcombine.low %v297_v16, %v301_v17 }
  0x59   : > { %v4240_v28 = vcombine.high %v304_v22, %v308_v23  ;;  %v4242_v29 = vcombine.high %v305_v24, %v309_v25  ;;  %v312_v30 = vld [vmem:[%s5081_s8 + $0x100] sm:$0xff]  ;;  %v313_v33 = vld [vmem:[%s5081_s8 + $0x108] sm:$0xff]  ;;  %v4239_v35 = vcombine.low %v304_v22, %v308_v23  ;;  %v4241_v36 = vcombine.low %v305_v24, %v309_v25 }
  0x5a   : > { %3397 = vmatpush1.bf16.msra.mxu0 %v4223_v18  ;;  %3561 = vmatpush1.bf16.msra.mxu1 %v4225_v19  ;;  %v316_v31 = vld [vmem:[%s5081_s8 + $0x120] sm:$0xff]  ;;  %v317_v34 = vld [vmem:[%s5081_s8 + $0x128] sm:$0xff] }
  0x5b   : > { %3398 = vmatprep.subr.bf16.mxu0 %v4232_v20  ;;  %3562 = vmatprep.subr.bf16.mxu1 %v4234_v21  ;;  %v4248_v37 = vcombine.high %v312_v30, %v316_v31  ;;  %v4250_v38 = vcombine.high %v313_v33, %v317_v34  ;;  %v320_v39 = vld [vmem:[%s5081_s8 + $0x140] sm:$0xff]  ;;  %v321_v42 = vld [vmem:[%s5081_s8 + $0x148] sm:$0xff]  ;;  %v4247_v44 = vcombine.low %v312_v30, %v316_v31 }
  0x5c   : > { %v324_v40 = vld [vmem:[%s5081_s8 + $0x160] sm:$0xff]  ;;  %v325_v43 = vld [vmem:[%s5081_s8 + $0x168] sm:$0xff]  ;;  %v4249_v45 = vcombine.low %v313_v33, %v317_v34 }
  0x5d   : > { %v4256_v46 = vcombine.high %v320_v39, %v324_v40  ;;  %v4258_v47 = vcombine.high %v321_v42, %v325_v43  ;;  %v328_v48 = vld [vmem:[%s5081_s8 + $0x180] sm:$0xff]  ;;  %v329_v51 = vld [vmem:[%s5081_s8 + $0x188] sm:$0xff]  ;;  %v4255_v53 = vcombine.low %v320_v39, %v324_v40  ;;  %v4257_v54 = vcombine.low %v321_v42, %v325_v43 }
  0x5e   : > { %3399 = vmatpush1.bf16.msra.mxu0 %v4231_v26  ;;  %3563 = vmatpush1.bf16.msra.mxu1 %v4233_v27  ;;  %v332_v49 = vld [vmem:[%s5081_s8 + $0x1a0] sm:$0xff]  ;;  %v333_v52 = vld [vmem:[%s5081_s8 + $0x1a8] sm:$0xff] }
  0x5f   : > { %3400 = vmatprep.subr.bf16.mxu0 %v4240_v28  ;;  %3564 = vmatprep.subr.bf16.mxu1 %v4242_v29  ;;  %v4264_v55 = vcombine.high %v328_v48, %v332_v49  ;;  %v5127_v56 = vld [vmem:[%s5754_s0] sm:$0xff]  ;;  %v4266_v57 = vcombine.high %v329_v51, %v333_v52  ;;  %v337_v61 = vld [vmem:[%s5081_s8 + $0x1c8] sm:$0xff]  ;;  %v4263_v63 = vcombine.low %v328_v48, %v332_v49 }
  0x60   : > { %v336_v58 = vld [vmem:[%s5081_s8 + $0x1c0] sm:$0xff]  ;;  %v239_v60 = vrot.slane %v5127_v56, %v238_v50  ;;  %v341_v62 = vld [vmem:[%s5081_s8 + $0x1e8] sm:$0xff]  ;;  %v4265_v1 = vcombine.low %v329_v51, %v333_v52 }
  0x61   : > { %v340_v59 = vld [vmem:[%s5081_s8 + $0x1e0] sm:$0xff]  ;;  %v4274_v3 = vcombine.high %v337_v61, %v341_v62  ;;  %v345_v6 = vld [vmem:[%s5081_s8 + $0x208] sm:$0xff]  ;;  %v4273_v9 = vcombine.low %v337_v61, %v341_v62 }
  0x62   : > { %3401 = vmatpush1.bf16.msra.mxu0 %v4239_v35  ;;  %3565 = vmatpush1.bf16.msra.mxu1 %v4241_v36  ;;  %v5136_v0 = vpack.c.bf16 %v239_v60, %v239_v60  ;;  %v4272_v2 = vcombine.high %v336_v58, %v340_v59  ;;  %v344_v4 = vld [vmem:[%s5081_s8 + $0x200] sm:$0xff]  ;;  %v349_v7 = vld [vmem:[%s5081_s8 + $0x228] sm:$0xff]  ;;  %v4271_v8 = vcombine.low %v336_v58, %v340_v59 }
  0x63   : > { %3402 = vmatprep.subr.bf16.mxu0 %v4248_v37  ;;  %3566 = vmatprep.subr.bf16.mxu1 %v4250_v38  ;;  %v348_v5 = vld [vmem:[%s5081_s8 + $0x220] sm:$0xff]  ;;  %v4282_v11 = vcombine.high %v345_v6, %v349_v7  ;;  %v353_v14 = vld [vmem:[%s5081_s8 + $0x248] sm:$0xff]  ;;  %v4281_v17 = vcombine.low %v345_v6, %v349_v7 }
  0x64   : > { %3426 = vmatprep.mubr.bf16.mxu0 %v5136_v0  ;;  %3590 = vmatprep.mubr.bf16.mxu1 %v5136_v0  ;;  %v4280_v10 = vcombine.high %v344_v4, %v348_v5  ;;  %v352_v12 = vld [vmem:[%s5081_s8 + $0x240] sm:$0xff]  ;;  %v357_v15 = vld [vmem:[%s5081_s8 + $0x268] sm:$0xff]  ;;  %v4279_v16 = vcombine.low %v344_v4, %v348_v5  ;;  %v234_v4 = vsub.s32 0, %v5115_v41 }
  0x65   : > { %v356_v13 = vld [vmem:[%s5081_s8 + $0x260] sm:$0xff]  ;;  %v4290_v19 = vcombine.high %v353_v14, %v357_v15  ;;  %v361_v22 = vld [vmem:[%s5081_s8 + $0x288] sm:$0xff]  ;;  %v4289_v25 = vcombine.low %v353_v14, %v357_v15 }
  0x66   : > { %3403 = vmatpush1.bf16.msra.mxu0 %v4247_v44  ;;  %3567 = vmatpush1.bf16.msra.mxu1 %v4249_v45  ;;  %v4288_v18 = vcombine.high %v352_v12, %v356_v13  ;;  %v360_v20 = vld [vmem:[%s5081_s8 + $0x280] sm:$0xff]  ;;  %v365_v23 = vld [vmem:[%s5081_s8 + $0x2a8] sm:$0xff]  ;;  %v4287_v24 = vcombine.low %v352_v12, %v356_v13  ;;  %v235_v14 = vrot.slane %v5127_v56, %v234_v4 }
  0x67   : > { %3404 = vmatprep.subr.bf16.mxu0 %v4256_v46  ;;  %3568 = vmatprep.subr.bf16.mxu1 %v4258_v47  ;;  %v364_v21 = vld [vmem:[%s5081_s8 + $0x2a0] sm:$0xff]  ;;  %v4298_v27 = vcombine.high %v361_v22, %v365_v23  ;;  %v369_v30 = vld [vmem:[%s5081_s8 + $0x2c8] sm:$0xff]  ;;  %v4297_v33 = vcombine.low %v361_v22, %v365_v23 }
  0x68   : > { %v4296_v26 = vcombine.high %v360_v20, %v364_v21  ;;  %v368_v28 = vld [vmem:[%s5081_s8 + $0x2c0] sm:$0xff]  ;;  %v373_v31 = vld [vmem:[%s5081_s8 + $0x2e8] sm:$0xff]  ;;  %v4295_v32 = vcombine.low %v360_v20, %v364_v21  ;;  %v5186_v22 = vpack.c.bf16 %v235_v14, %v235_v14 }
  0x69   : > { %v372_v29 = vld [vmem:[%s5081_s8 + $0x2e0] sm:$0xff]  ;;  %v4306_v35 = vcombine.high %v369_v30, %v373_v31  ;;  %v377_v38 = vld [vmem:[%s5081_s8 + $0x308] sm:$0xff]  ;;  %v4305_v42 = vcombine.low %v369_v30, %v373_v31 }
  0x6a   : > { %3405 = vmatpush1.bf16.msra.mxu0 %v4255_v53  ;;  %3569 = vmatpush1.bf16.msra.mxu1 %v4257_v54  ;;  %v4304_v34 = vcombine.high %v368_v28, %v372_v29  ;;  %v376_v36 = vld [vmem:[%s5081_s8 + $0x300] sm:$0xff]  ;;  %v381_v39 = vld [vmem:[%s5081_s8 + $0x328] sm:$0xff]  ;;  %v4303_v40 = vcombine.low %v368_v28, %v372_v29 }
  0x6b   : > { %3406 = vmatprep.subr.bf16.mxu0 %v4264_v55  ;;  %3570 = vmatprep.subr.bf16.mxu1 %v4266_v57  ;;  %v380_v37 = vld [vmem:[%s5081_s8 + $0x320] sm:$0xff]  ;;  %v4314_v44 = vcombine.high %v377_v38, %v381_v39  ;;  %v385_v47 = vld [vmem:[%s5081_s8 + $0x348] sm:$0xff]  ;;  %v4313_v51 = vcombine.low %v377_v38, %v381_v39 }
  0x6c   : > { %v4312_v43 = vcombine.high %v376_v36, %v380_v37  ;;  %v384_v45 = vld [vmem:[%s5081_s8 + $0x340] sm:$0xff]  ;;  %v389_v48 = vld [vmem:[%s5081_s8 + $0x368] sm:$0xff]  ;;  %v4311_v49 = vcombine.low %v376_v36, %v380_v37 }
  0x6d   : > { %v388_v46 = vld [vmem:[%s5081_s8 + $0x360] sm:$0xff]  ;;  %v4322_v53 = vcombine.high %v385_v47, %v389_v48  ;;  %v393_v57 = vld [vmem:[%s5081_s8 + $0x388] sm:$0xff]  ;;  %v4321_v60 = vcombine.low %v385_v47, %v389_v48 }
  0x6e   : > { %3407 = vmatpush1.bf16.msra.mxu0 %v4263_v63  ;;  %3571 = vmatpush1.bf16.msra.mxu1 %v4265_v1  ;;  %v4320_v52 = vcombine.high %v384_v45, %v388_v46  ;;  %v392_v54 = vld [vmem:[%s5081_s8 + $0x380] sm:$0xff]  ;;  %v397_v58 = vld [vmem:[%s5081_s8 + $0x3a8] sm:$0xff]  ;;  %v4319_v59 = vcombine.low %v384_v45, %v388_v46 }
  0x6f   : > { %3408 = vmatprep.subr.bf16.mxu0 %v4272_v2  ;;  %3572 = vmatprep.subr.bf16.mxu1 %v4274_v3  ;;  %v396_v55 = vld [vmem:[%s5081_s8 + $0x3a0] sm:$0xff]  ;;  %v4330_v62 = vcombine.high %v393_v57, %v397_v58  ;;  %v401_v2 = vld [vmem:[%s5081_s8 + $0x3c8] sm:$0xff]  ;;  %v4329_v6 = vcombine.low %v393_v57, %v397_v58 }
  0x70   : > { %v4328_v61 = vcombine.high %v392_v54, %v396_v55  ;;  %v400_v63 = vld [vmem:[%s5081_s8 + $0x3c0] sm:$0xff]  ;;  %v405_v3 = vld [vmem:[%s5081_s8 + $0x3e8] sm:$0xff]  ;;  %v4327_v5 = vcombine.low %v392_v54, %v396_v55 }
  0x71   : > { %v404_v1 = vld [vmem:[%s5081_s8 + $0x3e0] sm:$0xff]  ;;  %v409_v12 = vld [vmem:[%s5081_s8 + $0x408] sm:$0xff] }
  0x72   : > { %3409 = vmatpush1.bf16.msra.mxu0 %v4271_v8  ;;  %3573 = vmatpush1.bf16.msra.mxu1 %v4273_v9  ;;  %v4336_v7 = vcombine.high %v400_v63, %v404_v1  ;;  %v4338_v8 = vcombine.high %v401_v2, %v405_v3  ;;  %v408_v9 = vld [vmem:[%s5081_s8 + $0x400] sm:$0xff]  ;;  %v413_v13 = vld [vmem:[%s5081_s8 + $0x428] sm:$0xff]  ;;  %v4335_v15 = vcombine.low %v400_v63, %v404_v1 }
  0x73   : > { %3410 = vmatprep.subr.bf16.mxu0 %v4280_v10  ;;  %3574 = vmatprep.subr.bf16.mxu1 %v4282_v11  ;;  %v412_v10 = vld [vmem:[%s5081_s8 + $0x420] sm:$0xff]  ;;  %v246_v11 = vsub.s32 3, %v5115_v41  ;;  %v417_v23 = vld [vmem:[%s5081_s8 + $0x448] sm:$0xff] }
  0x74   : > { %v420_v20 = vld [vmem:[%s5081_s8 + $0x460] sm:$0xff]  ;;  %v465_v14 = vld [vmem:[%s5081_s8 + $0x5c8] sm:$0xff] }
  0x75   : > { %v247_v21 = vrot.slane %v5127_v56, %v246_v11  ;;  %v424_v29 = vld [vmem:[%s5081_s8 + $0x480] sm:$0xff] }
  0x76   : > { %3411 = vmatpush1.bf16.msra.mxu0 %v4279_v16  ;;  %3575 = vmatpush1.bf16.msra.mxu1 %v4281_v17  ;;  %v4337_v16 = vcombine.low %v401_v2, %v405_v3  ;;  %v4344_v17 = vcombine.high %v408_v9, %v412_v10  ;;  %v428_v30 = vld [vmem:[%s5081_s8 + $0x4a0] sm:$0xff] }
  0x77   : > { %3412 = vmatprep.subr.bf16.mxu0 %v4288_v18  ;;  %3576 = vmatprep.subr.bf16.mxu1 %v4290_v19  ;;  %v4346_v18 = vcombine.high %v409_v12, %v413_v13  ;;  %v416_v19 = vld [vmem:[%s5081_s8 + $0x440] sm:$0xff]  ;;  %v5192_v31 = vpack.c.bf16 %v247_v21, %v247_v21  ;;  %v4360_v36 = vcombine.high %v424_v29, %v428_v30 }
  0x78   : > { %v432_v38 = vld [vmem:[%s5081_s8 + $0x4c0] sm:$0xff] }
  0x79   : > { %v436_v39 = vld [vmem:[%s5081_s8 + $0x4e0] sm:$0xff] }
  0x7a   : > { %3413 = vmatpush1.bf16.msra.mxu0 %v4287_v24  ;;  %3577 = vmatpush1.bf16.msra.mxu1 %v4289_v25  ;;  %v421_v24 = vld [vmem:[%s5081_s8 + $0x468] sm:$0xff]  ;;  %v4343_v25 = vcombine.low %v408_v9, %v412_v10  ;;  %v4368_v45 = vcombine.high %v432_v38, %v436_v39  ;;  %v440_v47 = vld [vmem:[%s5081_s8 + $0x500] sm:$0xff] }
  0x7b   : > { %3414 = vmatprep.subr.bf16.mxu0 %v4296_v26  ;;  %3578 = vmatprep.subr.bf16.mxu1 %v4298_v27  ;;  %v4345_v26 = vcombine.low %v409_v12, %v413_v13  ;;  %v4352_v27 = vcombine.high %v416_v19, %v420_v20  ;;  %v4354_v28 = vcombine.high %v417_v23, %v421_v24  ;;  %v444_v48 = vld [vmem:[%s5081_s8 + $0x520] sm:$0xff] }
  0x7c   : > { %v4376_v54 = vcombine.high %v440_v47, %v444_v48  ;;  %v448_v57 = vld [vmem:[%s5081_s8 + $0x540] sm:$0xff] }
  0x7d   : > { %v452_v58 = vld [vmem:[%s5081_s8 + $0x560] sm:$0xff] }
  0x7e   : > { %3415 = vmatpush1.bf16.msra.mxu0 %v4295_v32  ;;  %3579 = vmatpush1.bf16.msra.mxu1 %v4297_v33  ;;  %v425_v32 = vld [vmem:[%s5081_s8 + $0x488] sm:$0xff]  ;;  %v4384_v63 = vcombine.high %v448_v57, %v452_v58  ;;  %v456_v2 = vld [vmem:[%s5081_s8 + $0x580] sm:$0xff] }
  0x7f   : > { %3416 = vmatprep.subr.bf16.mxu0 %v4304_v34  ;;  %3580 = vmatprep.subr.bf16.mxu1 %v4306_v35  ;;  %v429_v33 = vld [vmem:[%s5081_s8 + $0x4a8] sm:$0xff]  ;;  %v4351_v34 = vcombine.low %v416_v19, %v420_v20  ;;  %v4353_v35 = vcombine.low %v417_v23, %v421_v24  ;;  %v460_v3 = vld [vmem:[%s5081_s8 + $0x5a0] sm:$0xff] }
  0x80   : > { %v4362_v37 = vcombine.high %v425_v32, %v429_v33  ;;  %v4392_v9 = vcombine.high %v456_v2, %v460_v3  ;;  %v464_v12 = vld [vmem:[%s5081_s8 + $0x5c0] sm:$0xff]  ;;  %v473_v23 = vld [vmem:[%s5081_s8 + $0x608] sm:$0xff] }
  0x81   : > { %v468_v13 = vld [vmem:[%s5081_s8 + $0x5e0] sm:$0xff]  ;;  %v477_v24 = vld [vmem:[%s5081_s8 + $0x628] sm:$0xff] }
  0x82   : > { %3417 = vmatpush1.bf16.msra.mxu0 %v4303_v40  ;;  %3581 = vmatpush1.bf16.msra.mxu1 %v4305_v42  ;;  %v433_v40 = vld [vmem:[%s5081_s8 + $0x4c8] sm:$0xff]  ;;  %v472_v20 = vld [vmem:[%s5081_s8 + $0x600] sm:$0xff] }
  0x83   : > { %3418 = vmatprep.subr.bf16.mxu0 %v4312_v43  ;;  %3582 = vmatprep.subr.bf16.mxu1 %v4314_v44  ;;  %v437_v42 = vld [vmem:[%s5081_s8 + $0x4e8] sm:$0xff]  ;;  %v4359_v43 = vcombine.low %v424_v29, %v428_v30  ;;  %v4361_v44 = vcombine.low %v425_v32, %v429_v33  ;;  %v476_v21 = vld [vmem:[%s5081_s8 + $0x620] sm:$0xff] }
  0x84   : > { %v4370_v46 = vcombine.high %v433_v40, %v437_v42  ;;  %v480_v29 = vld [vmem:[%s5081_s8 + $0x640] sm:$0xff]  ;;  %v481_v32 = vld [vmem:[%s5081_s8 + $0x648] sm:$0xff] }
  0x85   : > { %v484_v30 = vld [vmem:[%s5081_s8 + $0x660] sm:$0xff]  ;;  %v485_v33 = vld [vmem:[%s5081_s8 + $0x668] sm:$0xff] }
  0x86   : > { %3419 = vmatpush1.bf16.msra.mxu0 %v4311_v49  ;;  %3583 = vmatpush1.bf16.msra.mxu1 %v4313_v51  ;;  %v441_v49 = vld [vmem:[%s5081_s8 + $0x508] sm:$0xff] }
  0x87   : > { %3420 = vmatprep.subr.bf16.mxu0 %v4320_v52  ;;  %3584 = vmatprep.subr.bf16.mxu1 %v4322_v53  ;;  %v445_v51 = vld [vmem:[%s5081_s8 + $0x528] sm:$0xff]  ;;  %v4367_v52 = vcombine.low %v432_v38, %v436_v39  ;;  %v4369_v53 = vcombine.low %v433_v40, %v437_v42  ;;  %v488_v38 = vld [vmem:[%s5081_s8 + $0x680] sm:$0xff] }
  0x88   : > { %v4378_v55 = vcombine.high %v441_v49, %v445_v51  ;;  %v492_v39 = vld [vmem:[%s5081_s8 + $0x6a0] sm:$0xff]  ;;  %v489_v40 = vld [vmem:[%s5081_s8 + $0x688] sm:$0xff] }
  0x89   : > { %v493_v42 = vld [vmem:[%s5081_s8 + $0x6a8] sm:$0xff] }
  0x8a   : > { %3421 = vmatpush1.bf16.msra.mxu0 %v4319_v59  ;;  %3585 = vmatpush1.bf16.msra.mxu1 %v4321_v60  ;;  %v449_v59 = vld [vmem:[%s5081_s8 + $0x548] sm:$0xff] }
  0x8b   : > { %3422 = vmatprep.subr.bf16.mxu0 %v4328_v61  ;;  %3586 = vmatprep.subr.bf16.mxu1 %v4330_v62  ;;  %v453_v60 = vld [vmem:[%s5081_s8 + $0x568] sm:$0xff]  ;;  %v4375_v61 = vcombine.low %v440_v47, %v444_v48  ;;  %v4377_v62 = vcombine.low %v441_v49, %v445_v51  ;;  %v496_v47 = vld [vmem:[%s5081_s8 + $0x6c0] sm:$0xff] }
  0x8c   : > { %v4386_v1 = vcombine.high %v449_v59, %v453_v60  ;;  %v500_v48 = vld [vmem:[%s5081_s8 + $0x6e0] sm:$0xff]  ;;  %v497_v49 = vld [vmem:[%s5081_s8 + $0x6c8] sm:$0xff] }
  0x8d   : > { %v501_v51 = vld [vmem:[%s5081_s8 + $0x6e8] sm:$0xff] }
  0x8e   : > { %3423 = vmatpush1.bf16.msra.mxu0 %v4327_v5  ;;  %3587 = vmatpush1.bf16.msra.mxu1 %v4329_v6  ;;  %v457_v5 = vld [vmem:[%s5081_s8 + $0x588] sm:$0xff] }
  0x8f   : > { %3424 = vmatprep.subr.bf16.mxu0 %v4336_v7  ;;  %3588 = vmatprep.subr.bf16.mxu1 %v4338_v8  ;;  %v461_v6 = vld [vmem:[%s5081_s8 + $0x5a8] sm:$0xff]  ;;  %v4383_v7 = vcombine.low %v448_v57, %v452_v58  ;;  %v4385_v8 = vcombine.low %v449_v59, %v453_v60  ;;  %v504_v57 = vld [vmem:[%s5081_s8 + $0x700] sm:$0xff] }
  0x90   : > { %v4394_v10 = vcombine.high %v457_v5, %v461_v6  ;;  %v508_v58 = vld [vmem:[%s5081_s8 + $0x720] sm:$0xff]  ;;  %v505_v59 = vld [vmem:[%s5081_s8 + $0x708] sm:$0xff] }
  0x91   : > { %v509_v60 = vld [vmem:[%s5081_s8 + $0x728] sm:$0xff] }
  0x92   : > { %3425 = vmatpush1.bf16.msra.mxu0 %v4335_v15  ;;  %3589 = vmatpush1.bf16.msra.mxu1 %v4337_v16  ;;  %v469_v15 = vld [vmem:[%s5081_s8 + $0x5e8] sm:$0xff]  ;;  %v4391_v16 = vcombine.low %v456_v2, %v460_v3  ;;  %v512_v2 = vld [vmem:[%s5081_s8 + $0x740] sm:$0xff] }
  0x93   : > { %3435 = vmatprep.subr.bf16.mxu0 %v4344_v17  ;;  %3599 = vmatprep.subr.bf16.mxu1 %v4346_v18  ;;  %v4393_v17 = vcombine.low %v457_v5, %v461_v6  ;;  %v4400_v18 = vcombine.high %v464_v12, %v468_v13  ;;  %v4402_v19 = vcombine.high %v465_v14, %v469_v15  ;;  %v516_v3 = vld [vmem:[%s5081_s8 + $0x760] sm:$0xff]  ;;  %v513_v5 = vld [vmem:[%s5081_s8 + $0x748] sm:$0xff] }
  0x94   : > { %v517_v6 = vld [vmem:[%s5081_s8 + $0x768] sm:$0xff] }
  0x95   : > { %3427 = vmatmul.mubr.bf16.vlgmr.msra.gmra.mrb[0].mxu0 %v5186_v22  ;;  %3591 = vmatmul.mubr.bf16.vlgmr.msra.gmra.mrb[0].mxu1 %v5186_v22 }
  0x96   : > { %3436 = vmatpush1.bf16.msra.mxu0 %v4343_v25  ;;  %3600 = vmatpush1.bf16.msra.mxu1 %v4345_v26  ;;  %v4399_v25 = vcombine.low %v464_v12, %v468_v13  ;;  %v4401_v26 = vcombine.low %v465_v14, %v469_v15  ;;  %v520_v12 = vld [vmem:[%s5081_s8 + $0x780] sm:$0xff]  ;;  %v521_v14 = vld [vmem:[%s5081_s8 + $0x788] sm:$0xff] }
  0x97   : > { %3437 = vmatprep.subr.bf16.mxu0 %v4352_v27  ;;  %3601 = vmatprep.subr.bf16.mxu1 %v4354_v28  ;;  %v4408_v27 = vcombine.high %v472_v20, %v476_v21  ;;  %v4410_v28 = vcombine.high %v473_v23, %v477_v24  ;;  %v524_v13 = vld [vmem:[%s5081_s8 + $0x7a0] sm:$0xff]  ;;  %v525_v15 = vld [vmem:[%s5081_s8 + $0x7a8] sm:$0xff] }
  0x98   : > { %3467 = vmatprep.mubr.bf16.mxu0 %v5192_v31  ;;  %3631 = vmatprep.mubr.bf16.mxu1 %v5192_v31 }
  0x9a   : > { %3438 = vmatpush1.bf16.msra.mxu0 %v4351_v34  ;;  %3602 = vmatpush1.bf16.msra.mxu1 %v4353_v35  ;;  %v4407_v34 = vcombine.low %v472_v20, %v476_v21  ;;  %v4409_v35 = vcombine.low %v473_v23, %v477_v24  ;;  %v528_v20 = vld [vmem:[%s5081_s8 + $0x7c0] sm:$0xff]  ;;  %v529_v23 = vld [vmem:[%s5081_s8 + $0x7c8] sm:$0xff] }
  0x9b   : > { %3439 = vmatprep.subr.bf16.mxu0 %v4360_v36  ;;  %3603 = vmatprep.subr.bf16.mxu1 %v4362_v37  ;;  %v4416_v36 = vcombine.high %v480_v29, %v484_v30  ;;  %v4418_v37 = vcombine.high %v481_v32, %v485_v33  ;;  %v532_v21 = vld [vmem:[%s5081_s8 + $0x7e0] sm:$0xff]  ;;  %v533_v24 = vld [vmem:[%s5081_s8 + $0x7e8] sm:$0xff] }
  0x9e   : > { %3440 = vmatpush1.bf16.msra.mxu0 %v4359_v43  ;;  %3604 = vmatpush1.bf16.msra.mxu1 %v4361_v44  ;;  %v4415_v43 = vcombine.low %v480_v29, %v484_v30  ;;  %v4417_v44 = vcombine.low %v481_v32, %v485_v33  ;;  %v4466_v29 = vcombine.high %v529_v23, %v533_v24  ;;  %v536_v30 = vld [vmem:[%s5081_s8 + $0x800] sm:$0xff]  ;;  %v254_v33 = vsub.s32 5, %v5115_v41 }
  0x9f   : > { %3441 = vmatprep.subr.bf16.mxu0 %v4368_v45  ;;  %3605 = vmatprep.subr.bf16.mxu1 %v4370_v46  ;;  %v4424_v45 = vcombine.high %v488_v38, %v492_v39  ;;  %v4426_v46 = vcombine.high %v489_v40, %v493_v42  ;;  %v540_v32 = vld [vmem:[%s5081_s8 + $0x820] sm:$0xff] }
  0xa2   : > { %3442 = vmatpush1.bf16.msra.mxu0 %v4367_v52  ;;  %3606 = vmatpush1.bf16.msra.mxu1 %v4369_v53  ;;  %v4423_v52 = vcombine.low %v488_v38, %v492_v39  ;;  %v4425_v53 = vcombine.low %v489_v40, %v493_v42  ;;  %v4465_v38 = vcombine.low %v529_v23, %v533_v24  ;;  %v544_v42 = vld [vmem:[%s5081_s8 + $0x840] sm:$0xff] }
  0xa3   : > { %3443 = vmatprep.subr.bf16.mxu0 %v4376_v54  ;;  %3607 = vmatprep.subr.bf16.mxu1 %v4378_v55  ;;  %v4432_v54 = vcombine.high %v496_v47, %v500_v48  ;;  %v4434_v55 = vcombine.high %v497_v49, %v501_v51  ;;  %v4472_v39 = vcombine.high %v536_v30, %v540_v32 }
  0xa6   : > { %3444 = vmatpush1.bf16.msra.mxu0 %v4375_v61  ;;  %3608 = vmatpush1.bf16.msra.mxu1 %v4377_v62  ;;  %v4431_v61 = vcombine.low %v496_v47, %v500_v48  ;;  %v4433_v62 = vcombine.low %v497_v49, %v501_v51  ;;  %v549_v47 = vld [vmem:[%s5081_s8 + $0x868] sm:$0xff]  ;;  %v4471_v48 = vcombine.low %v536_v30, %v540_v32 }
  0xa7   : > { %3445 = vmatprep.subr.bf16.mxu0 %v4384_v63  ;;  %3609 = vmatprep.subr.bf16.mxu1 %v4386_v1  ;;  %v4440_v63 = vcombine.high %v504_v57, %v508_v58  ;;  %v4442_v1 = vcombine.high %v505_v59, %v509_v60  ;;  %v589_v30 = vld [vmem:[%s5081_s8 + $0x9a8] sm:$0xff] }
  0xaa   : > { %3446 = vmatpush1.bf16.msra.mxu0 %v4383_v7  ;;  %3610 = vmatpush1.bf16.msra.mxu1 %v4385_v8  ;;  %v4439_v7 = vcombine.low %v504_v57, %v508_v58  ;;  %v4441_v8 = vcombine.low %v505_v59, %v509_v60  ;;  %v557_v57 = vld [vmem:[%s5081_s8 + $0x8a8] sm:$0xff] }
  0xab   : > { %3447 = vmatprep.subr.bf16.mxu0 %v4392_v9  ;;  %3611 = vmatprep.subr.bf16.mxu1 %v4394_v10  ;;  %v4448_v9 = vcombine.high %v512_v2, %v516_v3  ;;  %v4450_v10 = vcombine.high %v513_v5, %v517_v6 }
  0xae   : > { %3448 = vmatpush1.bf16.msra.mxu0 %v4391_v16  ;;  %3612 = vmatpush1.bf16.msra.mxu1 %v4393_v17  ;;  %v4447_v16 = vcombine.low %v512_v2, %v516_v3  ;;  %v4449_v17 = vcombine.low %v513_v5, %v517_v6  ;;  %v565_v2 = vld [vmem:[%s5081_s8 + $0x8e8] sm:$0xff] }
  0xaf   : > { %3449 = vmatprep.subr.bf16.mxu0 %v4400_v18  ;;  %3613 = vmatprep.subr.bf16.mxu1 %v4402_v19  ;;  %v4456_v18 = vcombine.high %v520_v12, %v524_v13  ;;  %v4458_v19 = vcombine.high %v521_v14, %v525_v15 }
  0xb2   : > { %3450 = vmatpush1.bf16.msra.mxu0 %v4399_v25  ;;  %3614 = vmatpush1.bf16.msra.mxu1 %v4401_v26  ;;  %v242_v25 = vsub.s32 2, %v5115_v41  ;;  %v4455_v26 = vcombine.low %v520_v12, %v524_v13  ;;  %v573_v12 = vld [vmem:[%s5081_s8 + $0x928] sm:$0xff] }
  0xb3   : > { %3451 = vmatprep.subr.bf16.mxu0 %v4408_v27  ;;  %3615 = vmatprep.subr.bf16.mxu1 %v4410_v28  ;;  %v4457_v27 = vcombine.low %v521_v14, %v525_v15  ;;  %v4464_v28 = vcombine.high %v528_v20, %v532_v21 }
  0xb6   : > { %3452 = vmatpush1.bf16.msra.mxu0 %v4407_v34  ;;  %3616 = vmatpush1.bf16.msra.mxu1 %v4409_v35  ;;  %v537_v34 = vld [vmem:[%s5081_s8 + $0x808] sm:$0xff] }
  0xb7   : > { %3453 = vmatprep.subr.bf16.mxu0 %v4416_v36  ;;  %3617 = vmatprep.subr.bf16.mxu1 %v4418_v37  ;;  %v541_v35 = vld [vmem:[%s5081_s8 + $0x828] sm:$0xff]  ;;  %v243_v36 = vrot.slane %v5127_v56, %v242_v25  ;;  %v4463_v37 = vcombine.low %v528_v20, %v532_v21 }
  0xb8   : > { %v4474_v40 = vcombine.high %v537_v34, %v541_v35  ;;  %v4473_v49 = vcombine.low %v537_v34, %v541_v35  ;;  %v581_v20 = vld [vmem:[%s5081_s8 + $0x968] sm:$0xff] }
  0xba   : > { %3454 = vmatpush1.bf16.msra.mxu0 %v4415_v43  ;;  %3618 = vmatpush1.bf16.msra.mxu1 %v4417_v44  ;;  %v548_v43 = vld [vmem:[%s5081_s8 + $0x860] sm:$0xff]  ;;  %v255_v44 = vrot.slane %v5127_v56, %v254_v33  ;;  %v553_v56 = vld [vmem:[%s5081_s8 + $0x888] sm:$0xff] }
  0xbb   : > { %3455 = vmatprep.subr.bf16.mxu0 %v4424_v45  ;;  %3619 = vmatprep.subr.bf16.mxu1 %v4426_v46  ;;  %v5266_v45 = vpack.c.bf16 %v243_v36, %v243_v36  ;;  %v545_v46 = vld [vmem:[%s5081_s8 + $0x848] sm:$0xff]  ;;  %v4480_v51 = vcombine.high %v544_v42, %v548_v43  ;;  %v4479_v58 = vcombine.low %v544_v42, %v548_v43 }
  0xbc   : > { %v4481_v59 = vcombine.low %v545_v46, %v549_v47  ;;  %v4489_v5 = vcombine.low %v553_v56, %v557_v57 }
  0xbe   : > { %3456 = vmatpush1.bf16.msra.mxu0 %v4423_v52  ;;  %3620 = vmatpush1.bf16.msra.mxu1 %v4425_v53  ;;  %v4482_v52 = vcombine.high %v545_v46, %v549_v47  ;;  %v552_v53 = vld [vmem:[%s5081_s8 + $0x880] sm:$0xff] }
  0xbf   : > { %3457 = vmatprep.subr.bf16.mxu0 %v4432_v54  ;;  %3621 = vmatprep.subr.bf16.mxu1 %v4434_v55  ;;  %v556_v54 = vld [vmem:[%s5081_s8 + $0x8a0] sm:$0xff]  ;;  %v5272_v55 = vpack.c.bf16 %v255_v44, %v255_v44 }
  0xc0   : > { %v4488_v60 = vcombine.high %v552_v53, %v556_v54  ;;  %v4487_v3 = vcombine.low %v552_v53, %v556_v54  ;;  %v600_v47 = vld [vmem:[%s5081_s8 + $0xa00] sm:$0xff] }
  0xc2   : > { %3458 = vmatpush1.bf16.msra.mxu0 %v4431_v61  ;;  %3622 = vmatpush1.bf16.msra.mxu1 %v4433_v62  ;;  %v4490_v61 = vcombine.high %v553_v56, %v557_v57  ;;  %v560_v62 = vld [vmem:[%s5081_s8 + $0x8c0] sm:$0xff] }
  0xc3   : > { %3459 = vmatprep.subr.bf16.mxu0 %v4440_v63  ;;  %3623 = vmatprep.subr.bf16.mxu1 %v4442_v1  ;;  %v564_v63 = vld [vmem:[%s5081_s8 + $0x8e0] sm:$0xff]  ;;  %v561_v1 = vld [vmem:[%s5081_s8 + $0x8c8] sm:$0xff] }
  0xc4   : > { %v4496_v6 = vcombine.high %v560_v62, %v564_v63  ;;  %v4495_v13 = vcombine.low %v560_v62, %v564_v63  ;;  %v4497_v14 = vcombine.low %v561_v1, %v565_v2  ;;  %v608_v57 = vld [vmem:[%s5081_s8 + $0xa40] sm:$0xff] }
  0xc6   : > { %3460 = vmatpush1.bf16.msra.mxu0 %v4439_v7  ;;  %3624 = vmatpush1.bf16.msra.mxu1 %v4441_v8  ;;  %v4498_v7 = vcombine.high %v561_v1, %v565_v2  ;;  %v568_v8 = vld [vmem:[%s5081_s8 + $0x900] sm:$0xff] }
  0xc7   : > { %3461 = vmatprep.subr.bf16.mxu0 %v4448_v9  ;;  %3625 = vmatprep.subr.bf16.mxu1 %v4450_v10  ;;  %v572_v9 = vld [vmem:[%s5081_s8 + $0x920] sm:$0xff]  ;;  %v569_v10 = vld [vmem:[%s5081_s8 + $0x908] sm:$0xff] }
  0xc8   : > { %v4504_v15 = vcombine.high %v568_v8, %v572_v9  ;;  %v4503_v21 = vcombine.low %v568_v8, %v572_v9  ;;  %v4505_v23 = vcombine.low %v569_v10, %v573_v12  ;;  %v616_v2 = vld [vmem:[%s5081_s8 + $0xa80] sm:$0xff] }
  0xca   : > { %3462 = vmatpush1.bf16.msra.mxu0 %v4447_v16  ;;  %3626 = vmatpush1.bf16.msra.mxu1 %v4449_v17  ;;  %v4506_v16 = vcombine.high %v569_v10, %v573_v12  ;;  %v576_v17 = vld [vmem:[%s5081_s8 + $0x940] sm:$0xff] }
  0xcb   : > { %3463 = vmatprep.subr.bf16.mxu0 %v4456_v18  ;;  %3627 = vmatprep.subr.bf16.mxu1 %v4458_v19  ;;  %v580_v18 = vld [vmem:[%s5081_s8 + $0x960] sm:$0xff]  ;;  %v577_v19 = vld [vmem:[%s5081_s8 + $0x948] sm:$0xff] }
  0xcc   : > { %v4512_v24 = vcombine.high %v576_v17, %v580_v18  ;;  %v4511_v32 = vcombine.low %v576_v17, %v580_v18  ;;  %v4513_v34 = vcombine.low %v577_v19, %v581_v20  ;;  %v624_v12 = vld [vmem:[%s5081_s8 + $0xac0] sm:$0xff] }
  0xce   : > { %3464 = vmatpush1.bf16.msra.mxu0 %v4455_v26  ;;  %3628 = vmatpush1.bf16.msra.mxu1 %v4457_v27  ;;  %v4514_v26 = vcombine.high %v577_v19, %v581_v20  ;;  %v584_v27 = vld [vmem:[%s5081_s8 + $0x980] sm:$0xff] }
  0xcf   : > { %3465 = vmatprep.subr.bf16.mxu0 %v4464_v28  ;;  %3629 = vmatprep.subr.bf16.mxu1 %v4466_v29  ;;  %v588_v28 = vld [vmem:[%s5081_s8 + $0x9a0] sm:$0xff]  ;;  %v585_v29 = vld [vmem:[%s5081_s8 + $0x988] sm:$0xff] }
  0xd0   : > { %v4520_v35 = vcombine.high %v584_v27, %v588_v28  ;;  %v4522_v36 = vcombine.high %v585_v29, %v589_v30  ;;  %v4519_v42 = vcombine.low %v584_v27, %v588_v28  ;;  %v4521_v43 = vcombine.low %v585_v29, %v589_v30  ;;  %v632_v20 = vld [vmem:[%s5081_s8 + $0xb00] sm:$0xff] }
  0xd1   : > { %v640_v30 = vld [vmem:[%s5081_s8 + $0xb40] sm:$0xff] }
  0xd2   : > { %3466 = vmatpush1.bf16.msra.mxu0 %v4463_v37  ;;  %3630 = vmatpush1.bf16.msra.mxu1 %v4465_v38  ;;  %v592_v37 = vld [vmem:[%s5081_s8 + $0x9c0] sm:$0xff] }
  0xd3   : > { %3476 = vmatprep.subr.bf16.mxu0 %v4472_v39  ;;  %3640 = vmatprep.subr.bf16.mxu1 %v4474_v40  ;;  %v596_v38 = vld [vmem:[%s5081_s8 + $0x9e0] sm:$0xff]  ;;  %v593_v39 = vld [vmem:[%s5081_s8 + $0x9c8] sm:$0xff] }
  0xd4   : > { %v597_v40 = vld [vmem:[%s5081_s8 + $0x9e8] sm:$0xff]  ;;  %v4528_v44 = vcombine.high %v592_v37, %v596_v38 }
  0xd5   : > { %3468 = vmatmul.mubr.bf16.vlgmr.msra.gmra.mrb[0].mxu0 %v5266_v45  ;;  %3632 = vmatmul.mubr.bf16.vlgmr.msra.gmra.mrb[0].mxu1 %v5266_v45  ;;  %v4530_v46 = vcombine.high %v593_v39, %v597_v40  ;;  %v4529_v53 = vcombine.low %v593_v39, %v597_v40  ;;  %v648_v40 = vld [vmem:[%s5081_s8 + $0xb80] sm:$0xff] }
  0xd6   : > { %3477 = vmatpush1.bf16.msra.mxu0 %v4471_v48  ;;  %3641 = vmatpush1.bf16.msra.mxu1 %v4473_v49  ;;  %v604_v48 = vld [vmem:[%s5081_s8 + $0xa20] sm:$0xff]  ;;  %v601_v49 = vld [vmem:[%s5081_s8 + $0xa08] sm:$0xff] }
  0xd7   : > { %3478 = vmatprep.subr.bf16.mxu0 %v4480_v51  ;;  %3642 = vmatprep.subr.bf16.mxu1 %v4482_v52  ;;  %v605_v51 = vld [vmem:[%s5081_s8 + $0xa28] sm:$0xff]  ;;  %v4527_v52 = vcombine.low %v592_v37, %v596_v38  ;;  %v4536_v54 = vcombine.high %v600_v47, %v604_v48 }
  0xd8   : > { %3508 = vmatprep.mubr.bf16.mxu0 %v5272_v55  ;;  %3672 = vmatprep.mubr.bf16.mxu1 %v5272_v55  ;;  %v4538_v56 = vcombine.high %v601_v49, %v605_v51  ;;  %v4537_v62 = vcombine.low %v601_v49, %v605_v51  ;;  %v656_v51 = vld [vmem:[%s5081_s8 + $0xbc0] sm:$0xff] }
  0xda   : > { %3479 = vmatpush1.bf16.msra.mxu0 %v4479_v58  ;;  %3643 = vmatpush1.bf16.msra.mxu1 %v4481_v59  ;;  %v612_v58 = vld [vmem:[%s5081_s8 + $0xa60] sm:$0xff]  ;;  %v609_v59 = vld [vmem:[%s5081_s8 + $0xa48] sm:$0xff] }
  0xdb   : > { %3480 = vmatprep.subr.bf16.mxu0 %v4488_v60  ;;  %3644 = vmatprep.subr.bf16.mxu1 %v4490_v61  ;;  %v613_v60 = vld [vmem:[%s5081_s8 + $0xa68] sm:$0xff]  ;;  %v4535_v61 = vcombine.low %v600_v47, %v604_v48  ;;  %v4544_v63 = vcombine.high %v608_v57, %v612_v58 }
  0xdc   : > { %v4546_v1 = vcombine.high %v609_v59, %v613_v60  ;;  %v4545_v8 = vcombine.low %v609_v59, %v613_v60 }
  0xde   : > { %3481 = vmatpush1.bf16.msra.mxu0 %v4487_v3  ;;  %3645 = vmatpush1.bf16.msra.mxu1 %v4489_v5  ;;  %v620_v3 = vld [vmem:[%s5081_s8 + $0xaa0] sm:$0xff]  ;;  %v617_v5 = vld [vmem:[%s5081_s8 + $0xa88] sm:$0xff] }
  0xdf   : > { %3482 = vmatprep.subr.bf16.mxu0 %v4496_v6  ;;  %3646 = vmatprep.subr.bf16.mxu1 %v4498_v7  ;;  %v621_v6 = vld [vmem:[%s5081_s8 + $0xaa8] sm:$0xff]  ;;  %v4543_v7 = vcombine.low %v608_v57, %v612_v58  ;;  %v4552_v9 = vcombine.high %v616_v2, %v620_v3 }
  0xe0   : > { %v4554_v10 = vcombine.high %v617_v5, %v621_v6  ;;  %v4553_v17 = vcombine.low %v617_v5, %v621_v6 }
  0xe2   : > { %3483 = vmatpush1.bf16.msra.mxu0 %v4495_v13  ;;  %3647 = vmatpush1.bf16.msra.mxu1 %v4497_v14  ;;  %v628_v13 = vld [vmem:[%s5081_s8 + $0xae0] sm:$0xff]  ;;  %v625_v14 = vld [vmem:[%s5081_s8 + $0xac8] sm:$0xff] }
  0xe3   : > { %3484 = vmatprep.subr.bf16.mxu0 %v4504_v15  ;;  %3648 = vmatprep.subr.bf16.mxu1 %v4506_v16  ;;  %v629_v15 = vld [vmem:[%s5081_s8 + $0xae8] sm:$0xff]  ;;  %v4551_v16 = vcombine.low %v616_v2, %v620_v3  ;;  %v4560_v18 = vcombine.high %v624_v12, %v628_v13  ;;  %v5341_v3 = vld [vmem:[%s5754_s0] sm:$0xff] }
  0xe4   : > { %v4562_v19 = vcombine.high %v625_v14, %v629_v15  ;;  %v4561_v27 = vcombine.low %v625_v14, %v629_v15  ;;  %v669_v2 = vld [vmem:[%s5081_s8 + $0xc28] sm:$0xff] }
  0xe5   : > { %v673_v15 = vld [vmem:[%s5081_s8 + $0xc48] sm:$0xff] }
  0xe6   : > { %3485 = vmatpush1.bf16.msra.mxu0 %v4503_v21  ;;  %3649 = vmatpush1.bf16.msra.mxu1 %v4505_v23  ;;  %v636_v21 = vld [vmem:[%s5081_s8 + $0xb20] sm:$0xff]  ;;  %v633_v23 = vld [vmem:[%s5081_s8 + $0xb08] sm:$0xff] }
  0xe7   : > { %3486 = vmatprep.subr.bf16.mxu0 %v4512_v24  ;;  %3650 = vmatprep.subr.bf16.mxu1 %v4514_v26  ;;  %v637_v24 = vld [vmem:[%s5081_s8 + $0xb28] sm:$0xff]  ;;  %v4559_v26 = vcombine.low %v624_v12, %v628_v13  ;;  %v4568_v28 = vcombine.high %v632_v20, %v636_v21  ;;  %v676_v12 = vld [vmem:[%s5081_s8 + $0xc60] sm:$0xff] }
  0xe8   : > { %v4570_v29 = vcombine.high %v633_v23, %v637_v24  ;;  %v4569_v37 = vcombine.low %v633_v23, %v637_v24  ;;  %v684_v23 = vld [vmem:[%s5081_s8 + $0xca0] sm:$0xff] }
  0xea   : > { %3487 = vmatpush1.bf16.msra.mxu0 %v4511_v32  ;;  %3651 = vmatpush1.bf16.msra.mxu1 %v4513_v34  ;;  %v644_v32 = vld [vmem:[%s5081_s8 + $0xb60] sm:$0xff]  ;;  %v641_v34 = vld [vmem:[%s5081_s8 + $0xb48] sm:$0xff] }
  0xeb   : > { %3488 = vmatprep.subr.bf16.mxu0 %v4520_v35  ;;  %3652 = vmatprep.subr.bf16.mxu1 %v4522_v36  ;;  %v645_v35 = vld [vmem:[%s5081_s8 + $0xb68] sm:$0xff]  ;;  %v4567_v36 = vcombine.low %v632_v20, %v636_v21  ;;  %v4576_v38 = vcombine.high %v640_v30, %v644_v32  ;;  %v680_v21 = vld [vmem:[%s5081_s8 + $0xc80] sm:$0xff] }
  0xec   : > { %v4578_v39 = vcombine.high %v641_v34, %v645_v35  ;;  %v4577_v47 = vcombine.low %v641_v34, %v645_v35  ;;  %v688_v34 = vld [vmem:[%s5081_s8 + $0xcc0] sm:$0xff] }
  0xed   : > { %v692_v35 = vld [vmem:[%s5081_s8 + $0xce0] sm:$0xff] }
  0xee   : > { %3489 = vmatpush1.bf16.msra.mxu0 %v4519_v42  ;;  %3653 = vmatpush1.bf16.msra.mxu1 %v4521_v43  ;;  %v652_v42 = vld [vmem:[%s5081_s8 + $0xba0] sm:$0xff]  ;;  %v649_v43 = vld [vmem:[%s5081_s8 + $0xb88] sm:$0xff] }
  0xef   : > { %3490 = vmatprep.subr.bf16.mxu0 %v4528_v44  ;;  %3654 = vmatprep.subr.bf16.mxu1 %v4530_v46  ;;  %v653_v44 = vld [vmem:[%s5081_s8 + $0xba8] sm:$0xff]  ;;  %v4575_v46 = vcombine.low %v640_v30, %v644_v32  ;;  %v4584_v48 = vcombine.high %v648_v40, %v652_v42  ;;  %v4583_v57 = vcombine.low %v648_v40, %v652_v42 }
  0xf0   : > { %v4586_v49 = vcombine.high %v649_v43, %v653_v44  ;;  %v4585_v58 = vcombine.low %v649_v43, %v653_v44  ;;  %v4616_v30 = vcombine.high %v680_v21, %v684_v23  ;;  %v4624_v40 = vcombine.high %v688_v34, %v692_v35  ;;  %v696_v43 = vld [vmem:[%s5081_s8 + $0xd00] sm:$0xff] }
  0xf1   : > { %v700_v44 = vld [vmem:[%s5081_s8 + $0xd20] sm:$0xff] }
  0xf2   : > { %3491 = vmatpush1.bf16.msra.mxu0 %v4527_v52  ;;  %3655 = vmatpush1.bf16.msra.mxu1 %v4529_v53  ;;  %v660_v52 = vld [vmem:[%s5081_s8 + $0xbe0] sm:$0xff]  ;;  %v657_v53 = vld [vmem:[%s5081_s8 + $0xbc8] sm:$0xff] }
  0xf3   : > { %3492 = vmatprep.subr.bf16.mxu0 %v4536_v54  ;;  %3656 = vmatprep.subr.bf16.mxu1 %v4538_v56  ;;  %v661_v54 = vld [vmem:[%s5081_s8 + $0xbe8] sm:$0xff]  ;;  %v250_v56 = vsub.s32 4, %v5115_v41  ;;  %v4592_v59 = vcombine.high %v656_v51, %v660_v52  ;;  %v4591_v6 = vcombine.low %v656_v51, %v660_v52  ;;  %v4632_v51 = vcombine.high %v696_v43, %v700_v44 }
  0xf4   : > { %v4594_v60 = vcombine.high %v657_v53, %v661_v54 }
  0xf5   : > { %v251_v5 = vrot.slane %v5341_v3, %v250_v56 }
  0xf6   : > { %3493 = vmatpush1.bf16.msra.mxu0 %v4535_v61  ;;  %3657 = vmatpush1.bf16.msra.mxu1 %v4537_v62  ;;  %v664_v61 = vld [vmem:[%s5081_s8 + $0xc00] sm:$0xff] }
  0xf7   : > { %3494 = vmatprep.subr.bf16.mxu0 %v4544_v63  ;;  %3658 = vmatprep.subr.bf16.mxu1 %v4546_v1  ;;  %v668_v62 = vld [vmem:[%s5081_s8 + $0xc20] sm:$0xff]  ;;  %v262_v63 = vsub.s32 7, %v5115_v41  ;;  %v665_v1 = vld [vmem:[%s5081_s8 + $0xc08] sm:$0xff]  ;;  %v5351_v14 = vpack.c.bf16 %v251_v5, %v251_v5 }
  0xf8   : > { %v713_v5 = vld [vmem:[%s5081_s8 + $0xd88] sm:$0xff] }
  0xf9   : > { %v263_v13 = vrot.slane %v5341_v3, %v262_v63 }
  0xfa   : > { %3495 = vmatpush1.bf16.msra.mxu0 %v4543_v7  ;;  %3659 = vmatpush1.bf16.msra.mxu1 %v4545_v8  ;;  %v4593_v7 = vcombine.low %v657_v53, %v661_v54  ;;  %v4600_v8 = vcombine.high %v664_v61, %v668_v62  ;;  %v704_v53 = vld [vmem:[%s5081_s8 + $0xd40] sm:$0xff] }
  0xfb   : > { %3496 = vmatprep.subr.bf16.mxu0 %v4552_v9  ;;  %3660 = vmatprep.subr.bf16.mxu1 %v4554_v10  ;;  %v4602_v9 = vcombine.high %v665_v1, %v669_v2  ;;  %v672_v10 = vld [vmem:[%s5081_s8 + $0xc40] sm:$0xff]  ;;  %v5357_v24 = vpack.c.bf16 %v263_v13, %v263_v13 }
  0xfc   : > { %v708_v54 = vld [vmem:[%s5081_s8 + $0xd60] sm:$0xff] }
  0xfd   : > { %v724_v13 = vld [vmem:[%s5081_s8 + $0xde0] sm:$0xff] }
  0xfe   : > { %3497 = vmatpush1.bf16.msra.mxu0 %v4551_v16  ;;  %3661 = vmatpush1.bf16.msra.mxu1 %v4553_v17  ;;  %v677_v16 = vld [vmem:[%s5081_s8 + $0xc68] sm:$0xff]  ;;  %v4599_v17 = vcombine.low %v664_v61, %v668_v62  ;;  %v4640_v61 = vcombine.high %v704_v53, %v708_v54 }
  0xff   : > { %3498 = vmatprep.subr.bf16.mxu0 %v4560_v18  ;;  %3662 = vmatprep.subr.bf16.mxu1 %v4562_v19  ;;  %v4601_v18 = vcombine.low %v665_v1, %v669_v2  ;;  %v4608_v19 = vcombine.high %v672_v10, %v676_v12  ;;  %v4610_v20 = vcombine.high %v673_v15, %v677_v16  ;;  %v712_v1 = vld [vmem:[%s5081_s8 + $0xd80] sm:$0xff] }
 0x100   : > { %v716_v2 = vld [vmem:[%s5081_s8 + $0xda0] sm:$0xff] }
 0x102   : > { %3499 = vmatpush1.bf16.msra.mxu0 %v4559_v26  ;;  %3663 = vmatpush1.bf16.msra.mxu1 %v4561_v27  ;;  %v681_v26 = vld [vmem:[%s5081_s8 + $0xc88] sm:$0xff] }
 0x103   : > { %3500 = vmatprep.subr.bf16.mxu0 %v4568_v28  ;;  %3664 = vmatprep.subr.bf16.mxu1 %v4570_v29  ;;  %v685_v27 = vld [vmem:[%s5081_s8 + $0xca8] sm:$0xff]  ;;  %v4607_v28 = vcombine.low %v672_v10, %v676_v12  ;;  %v4609_v29 = vcombine.low %v673_v15, %v677_v16  ;;  %v720_v12 = vld [vmem:[%s5081_s8 + $0xdc0] sm:$0xff] }
 0x104   : > { %v4618_v32 = vcombine.high %v681_v26, %v685_v27  ;;  %v721_v15 = vld [vmem:[%s5081_s8 + $0xdc8] sm:$0xff] }
 0x105   : > { %v725_v16 = vld [vmem:[%s5081_s8 + $0xde8] sm:$0xff] }
 0x106   : > { %3501 = vmatpush1.bf16.msra.mxu0 %v4567_v36  ;;  %3665 = vmatpush1.bf16.msra.mxu1 %v4569_v37  ;;  %v689_v36 = vld [vmem:[%s5081_s8 + $0xcc8] sm:$0xff] }
 0x107   : > { %3502 = vmatprep.subr.bf16.mxu0 %v4576_v38  ;;  %3666 = vmatprep.subr.bf16.mxu1 %v4578_v39  ;;  %v693_v37 = vld [vmem:[%s5081_s8 + $0xce8] sm:$0xff]  ;;  %v4615_v38 = vcombine.low %v680_v21, %v684_v23  ;;  %v4617_v39 = vcombine.low %v681_v26, %v685_v27  ;;  %v728_v21 = vld [vmem:[%s5081_s8 + $0xe00] sm:$0xff] }
 0x108   : > { %v4626_v42 = vcombine.high %v689_v36, %v693_v37  ;;  %v732_v23 = vld [vmem:[%s5081_s8 + $0xe20] sm:$0xff]  ;;  %v729_v26 = vld [vmem:[%s5081_s8 + $0xe08] sm:$0xff] }
 0x109   : > { %v733_v27 = vld [vmem:[%s5081_s8 + $0xe28] sm:$0xff] }
 0x10a   : > { %3503 = vmatpush1.bf16.msra.mxu0 %v4575_v46  ;;  %3667 = vmatpush1.bf16.msra.mxu1 %v4577_v47  ;;  %v697_v46 = vld [vmem:[%s5081_s8 + $0xd08] sm:$0xff] }
 0x10b   : > { %3504 = vmatprep.subr.bf16.mxu0 %v4584_v48  ;;  %3668 = vmatprep.subr.bf16.mxu1 %v4586_v49  ;;  %v701_v47 = vld [vmem:[%s5081_s8 + $0xd28] sm:$0xff]  ;;  %v4623_v48 = vcombine.low %v688_v34, %v692_v35  ;;  %v4625_v49 = vcombine.low %v689_v36, %v693_v37  ;;  %v736_v34 = vld [vmem:[%s5081_s8 + $0xe40] sm:$0xff] }
 0x10c   : > { %v4634_v52 = vcombine.high %v697_v46, %v701_v47  ;;  %v740_v35 = vld [vmem:[%s5081_s8 + $0xe60] sm:$0xff]  ;;  %v737_v36 = vld [vmem:[%s5081_s8 + $0xe48] sm:$0xff] }
 0x10d   : > { %v741_v37 = vld [vmem:[%s5081_s8 + $0xe68] sm:$0xff] }
 0x10e   : > { %3505 = vmatpush1.bf16.msra.mxu0 %v4583_v57  ;;  %3669 = vmatpush1.bf16.msra.mxu1 %v4585_v58  ;;  %v705_v57 = vld [vmem:[%s5081_s8 + $0xd48] sm:$0xff] }
 0x10f   : > { %3506 = vmatprep.subr.bf16.mxu0 %v4592_v59  ;;  %3670 = vmatprep.subr.bf16.mxu1 %v4594_v60  ;;  %v709_v58 = vld [vmem:[%s5081_s8 + $0xd68] sm:$0xff]  ;;  %v4631_v59 = vcombine.low %v696_v43, %v700_v44  ;;  %v4633_v60 = vcombine.low %v697_v46, %v701_v47  ;;  %v744_v43 = vld [vmem:[%s5081_s8 + $0xe80] sm:$0xff] }
 0x110   : > { %v4642_v62 = vcombine.high %v705_v57, %v709_v58  ;;  %v748_v44 = vld [vmem:[%s5081_s8 + $0xea0] sm:$0xff]  ;;  %v745_v46 = vld [vmem:[%s5081_s8 + $0xe88] sm:$0xff] }
 0x111   : > { %v749_v47 = vld [vmem:[%s5081_s8 + $0xea8] sm:$0xff] }
 0x112   : > { %3507 = vmatpush1.bf16.msra.mxu0 %v4591_v6  ;;  %3671 = vmatpush1.bf16.msra.mxu1 %v4593_v7  ;;  %v717_v6 = vld [vmem:[%s5081_s8 + $0xda8] sm:$0xff]  ;;  %v4639_v7 = vcombine.low %v704_v53, %v708_v54  ;;  %v752_v53 = vld [vmem:[%s5081_s8 + $0xec0] sm:$0xff] }
 0x113   : > { %3517 = vmatprep.subr.bf16.mxu0 %v4600_v8  ;;  %3681 = vmatprep.subr.bf16.mxu1 %v4602_v9  ;;  %v4641_v8 = vcombine.low %v705_v57, %v709_v58  ;;  %v4648_v9 = vcombine.high %v712_v1, %v716_v2  ;;  %v4650_v10 = vcombine.high %v713_v5, %v717_v6  ;;  %v756_v54 = vld [vmem:[%s5081_s8 + $0xee0] sm:$0xff]  ;;  %v753_v57 = vld [vmem:[%s5081_s8 + $0xec8] sm:$0xff] }
 0x114   : > { %v757_v58 = vld [vmem:[%s5081_s8 + $0xee8] sm:$0xff] }
 0x115   : > { %3509 = vmatmul.mubr.bf16.vlgmr.msra.gmra.mrb[0].mxu0 %v5351_v14  ;;  %3673 = vmatmul.mubr.bf16.vlgmr.msra.gmra.mrb[0].mxu1 %v5351_v14 }
 0x116   : > { %3518 = vmatpush1.bf16.msra.mxu0 %v4599_v17  ;;  %3682 = vmatpush1.bf16.msra.mxu1 %v4601_v18  ;;  %v4647_v17 = vcombine.low %v712_v1, %v716_v2  ;;  %v4649_v18 = vcombine.low %v713_v5, %v717_v6  ;;  %v760_v1 = vld [vmem:[%s5081_s8 + $0xf00] sm:$0xff]  ;;  %v761_v5 = vld [vmem:[%s5081_s8 + $0xf08] sm:$0xff] }
 0x117   : > { %3519 = vmatprep.subr.bf16.mxu0 %v4608_v19  ;;  %3683 = vmatprep.subr.bf16.mxu1 %v4610_v20  ;;  %v4656_v19 = vcombine.high %v720_v12, %v724_v13  ;;  %v4658_v20 = vcombine.high %v721_v15, %v725_v16  ;;  %v764_v2 = vld [vmem:[%s5081_s8 + $0xf20] sm:$0xff]  ;;  %v765_v6 = vld [vmem:[%s5081_s8 + $0xf28] sm:$0xff] }
 0x118   : > { %3549 = vmatprep.mubr.bf16.mxu0 %v5357_v24  ;;  %3713 = vmatprep.mubr.bf16.mxu1 %v5357_v24 }
 0x11a   : > { %3520 = vmatpush1.bf16.msra.mxu0 %v4607_v28  ;;  %3684 = vmatpush1.bf16.msra.mxu1 %v4609_v29  ;;  %v4655_v28 = vcombine.low %v720_v12, %v724_v13  ;;  %v4657_v29 = vcombine.low %v721_v15, %v725_v16  ;;  %v768_v12 = vld [vmem:[%s5081_s8 + $0xf40] sm:$0xff]  ;;  %v769_v15 = vld [vmem:[%s5081_s8 + $0xf48] sm:$0xff] }
 0x11b   : > { %3521 = vmatprep.subr.bf16.mxu0 %v4616_v30  ;;  %3685 = vmatprep.subr.bf16.mxu1 %v4618_v32  ;;  %v4664_v30 = vcombine.high %v728_v21, %v732_v23  ;;  %v4666_v32 = vcombine.high %v729_v26, %v733_v27  ;;  %v772_v13 = vld [vmem:[%s5081_s8 + $0xf60] sm:$0xff]  ;;  %v773_v16 = vld [vmem:[%s5081_s8 + $0xf68] sm:$0xff] }
 0x11e   : > { %3522 = vmatpush1.bf16.msra.mxu0 %v4615_v38  ;;  %3686 = vmatpush1.bf16.msra.mxu1 %v4617_v39  ;;  %v4663_v38 = vcombine.low %v728_v21, %v732_v23  ;;  %v4665_v39 = vcombine.low %v729_v26, %v733_v27  ;;  %v776_v21 = vld [vmem:[%s5081_s8 + $0xf80] sm:$0xff]  ;;  %v777_v26 = vld [vmem:[%s5081_s8 + $0xf88] sm:$0xff] }
 0x11f   : > { %3523 = vmatprep.subr.bf16.mxu0 %v4624_v40  ;;  %3687 = vmatprep.subr.bf16.mxu1 %v4626_v42  ;;  %v4672_v40 = vcombine.high %v736_v34, %v740_v35  ;;  %v4674_v42 = vcombine.high %v737_v36, %v741_v37  ;;  %v780_v23 = vld [vmem:[%s5081_s8 + $0xfa0] sm:$0xff]  ;;  %v781_v27 = vld [vmem:[%s5081_s8 + $0xfa8] sm:$0xff] }
 0x122   : > { %3524 = vmatpush1.bf16.msra.mxu0 %v4623_v48  ;;  %3688 = vmatpush1.bf16.msra.mxu1 %v4625_v49  ;;  %v4671_v48 = vcombine.low %v736_v34, %v740_v35  ;;  %v4673_v49 = vcombine.low %v737_v36, %v741_v37  ;;  %v784_v34 = vld [vmem:[%s5081_s8 + $0xfc0] sm:$0xff]  ;;  %v785_v36 = vld [vmem:[%s5081_s8 + $0xfc8] sm:$0xff] }
 0x123   : > { %3525 = vmatprep.subr.bf16.mxu0 %v4632_v51  ;;  %3689 = vmatprep.subr.bf16.mxu1 %v4634_v52  ;;  %v4680_v51 = vcombine.high %v744_v43, %v748_v44  ;;  %v4682_v52 = vcombine.high %v745_v46, %v749_v47  ;;  %v788_v35 = vld [vmem:[%s5081_s8 + $0xfe0] sm:$0xff]  ;;  %v789_v37 = vld [vmem:[%s5081_s8 + $0xfe8] sm:$0xff] }
 0x126   : > { %3526 = vmatpush1.bf16.msra.mxu0 %v4631_v59  ;;  %3690 = vmatpush1.bf16.msra.mxu1 %v4633_v60  ;;  %v4679_v59 = vcombine.low %v744_v43, %v748_v44  ;;  %v4681_v60 = vcombine.low %v745_v46, %v749_v47  ;;  %v4722_v43 = vcombine.high %v785_v36, %v789_v37  ;;  %v282_v44 = vld [vmem:[%s5081_s8 + $0x10] sm:$0xff] }
 0x127   : > { %3527 = vmatprep.subr.bf16.mxu0 %v4640_v61  ;;  %3691 = vmatprep.subr.bf16.mxu1 %v4642_v62  ;;  %v4688_v61 = vcombine.high %v752_v53, %v756_v54  ;;  %v4690_v62 = vcombine.high %v753_v57, %v757_v58  ;;  %v286_v46 = vld [vmem:[%s5081_s8 + $0x30] sm:$0xff] }
 0x12a   : > { %3528 = vmatpush1.bf16.msra.mxu0 %v4639_v7  ;;  %3692 = vmatpush1.bf16.msra.mxu1 %v4641_v8  ;;  %v4687_v7 = vcombine.low %v752_v53, %v756_v54  ;;  %v4689_v8 = vcombine.low %v753_v57, %v757_v58  ;;  %v4220_v53 = vcombine.high %v282_v44, %v286_v46  ;;  %v290_v57 = vld [vmem:[%s5081_s8 + $0x50] sm:$0xff] }
 0x12b   : > { %3529 = vmatprep.subr.bf16.mxu0 %v4648_v9  ;;  %3693 = vmatprep.subr.bf16.mxu1 %v4650_v10  ;;  %v4696_v9 = vcombine.high %v760_v1, %v764_v2  ;;  %v4698_v10 = vcombine.high %v761_v5, %v765_v6  ;;  %v294_v58 = vld [vmem:[%s5081_s8 + $0x70] sm:$0xff] }
 0x12e   : > { %3530 = vmatpush1.bf16.msra.mxu0 %v4647_v17  ;;  %3694 = vmatpush1.bf16.msra.mxu1 %v4649_v18  ;;  %v4695_v17 = vcombine.low %v760_v1, %v764_v2  ;;  %v4697_v18 = vcombine.low %v761_v5, %v765_v6  ;;  %v4228_v1 = vcombine.high %v290_v57, %v294_v58  ;;  %v298_v5 = vld [vmem:[%s5081_s8 + $0x90] sm:$0xff] }
 0x12f   : > { %3531 = vmatprep.subr.bf16.mxu0 %v4656_v19  ;;  %3695 = vmatprep.subr.bf16.mxu1 %v4658_v20  ;;  %v4704_v19 = vcombine.high %v768_v12, %v772_v13  ;;  %v4706_v20 = vcombine.high %v769_v15, %v773_v16  ;;  %v302_v6 = vld [vmem:[%s5081_s8 + $0xb0] sm:$0xff] }
 0x132   : > { %3532 = vmatpush1.bf16.msra.mxu0 %v4655_v28  ;;  %3696 = vmatpush1.bf16.msra.mxu1 %v4657_v29  ;;  %v4703_v28 = vcombine.low %v768_v12, %v772_v13  ;;  %v4705_v29 = vcombine.low %v769_v15, %v773_v16  ;;  %v4236_v12 = vcombine.high %v298_v5, %v302_v6  ;;  %v306_v15 = vld [vmem:[%s5081_s8 + $0xd0] sm:$0xff] }
 0x133   : > { %3533 = vmatprep.subr.bf16.mxu0 %v4664_v30  ;;  %3697 = vmatprep.subr.bf16.mxu1 %v4666_v32  ;;  %v4712_v30 = vcombine.high %v776_v21, %v780_v23  ;;  %v4714_v32 = vcombine.high %v777_v26, %v781_v27  ;;  %v310_v16 = vld [vmem:[%s5081_s8 + $0xf0] sm:$0xff] }
 0x136   : > { %3534 = vmatpush1.bf16.msra.mxu0 %v4663_v38  ;;  %3698 = vmatpush1.bf16.msra.mxu1 %v4665_v39  ;;  %v258_v38 = vsub.s32 6, %v5115_v41  ;;  %v4711_v39 = vcombine.low %v776_v21, %v780_v23  ;;  %v4244_v21 = vcombine.high %v306_v15, %v310_v16 }
 0x137   : > { %3535 = vmatprep.subr.bf16.mxu0 %v4672_v40  ;;  %3699 = vmatprep.subr.bf16.mxu1 %v4674_v42  ;;  %v4713_v40 = vcombine.low %v777_v26, %v781_v27  ;;  %v4720_v42 = vcombine.high %v784_v34, %v788_v35  ;;  %v314_v26 = vld [vmem:[%s5081_s8 + $0x110] sm:$0xff] }
 0x138   : > { %v259_v47 = vrot.slane %v5341_v3, %v258_v38  ;;  %v295_v3 = vld [vmem:[%s5081_s8 + $0x78] sm:$0xff]  ;;  %v318_v27 = vld [vmem:[%s5081_s8 + $0x130] sm:$0xff] }
 0x13a   : > { %3536 = vmatpush1.bf16.msra.mxu0 %v4671_v48  ;;  %3700 = vmatpush1.bf16.msra.mxu1 %v4673_v49  ;;  %v283_v48 = vld [vmem:[%s5081_s8 + $0x18] sm:$0xff] }
 0x13b   : > { %3537 = vmatprep.subr.bf16.mxu0 %v4680_v51  ;;  %3701 = vmatprep.subr.bf16.mxu1 %v4682_v52  ;;  %v287_v49 = vld [vmem:[%s5081_s8 + $0x38] sm:$0xff]  ;;  %v4719_v51 = vcombine.low %v784_v34, %v788_v35  ;;  %v4721_v52 = vcombine.low %v785_v36, %v789_v37  ;;  %v322_v35 = vld [vmem:[%s5081_s8 + $0x150] sm:$0xff] }
 0x13c   : > { %v4222_v54 = vcombine.high %v283_v48, %v287_v49  ;;  %v326_v36 = vld [vmem:[%s5081_s8 + $0x170] sm:$0xff]  ;;  %v323_v37 = vld [vmem:[%s5081_s8 + $0x158] sm:$0xff] }
 0x13e   : > { %3538 = vmatpush1.bf16.msra.mxu0 %v4679_v59  ;;  %3702 = vmatpush1.bf16.msra.mxu1 %v4681_v60  ;;  %v5427_v59 = vpack.c.bf16 %v259_v47, %v259_v47  ;;  %v291_v60 = vld [vmem:[%s5081_s8 + $0x58] sm:$0xff]  ;;  %v334_v47 = vld [vmem:[%s5081_s8 + $0x1b0] sm:$0xff] }
 0x13f   : > { %3539 = vmatprep.subr.bf16.mxu0 %v4688_v61  ;;  %3703 = vmatprep.subr.bf16.mxu1 %v4690_v62  ;;  %v4219_v61 = vcombine.low %v282_v44, %v286_v46  ;;  %v4221_v62 = vcombine.low %v283_v48, %v287_v49  ;;  %v4230_v2 = vcombine.high %v291_v60, %v295_v3  ;;  %v330_v46 = vld [vmem:[%s5081_s8 + $0x190] sm:$0xff]  ;;  %v331_v48 = vld [vmem:[%s5081_s8 + $0x198] sm:$0xff] }
 0x140   : > { %v335_v49 = vld [vmem:[%s5081_s8 + $0x1b8] sm:$0xff] }
 0x142   : > { %3540 = vmatpush1.bf16.msra.mxu0 %v4687_v7  ;;  %3704 = vmatpush1.bf16.msra.mxu1 %v4689_v8  ;;  %v299_v7 = vld [vmem:[%s5081_s8 + $0x98] sm:$0xff] }
 0x143   : > { %3541 = vmatprep.subr.bf16.mxu0 %v4696_v9  ;;  %3705 = vmatprep.subr.bf16.mxu1 %v4698_v10  ;;  %v303_v8 = vld [vmem:[%s5081_s8 + $0xb8] sm:$0xff]  ;;  %v4227_v9 = vcombine.low %v290_v57, %v294_v58  ;;  %v4229_v10 = vcombine.low %v291_v60, %v295_v3  ;;  %v338_v57 = vld [vmem:[%s5081_s8 + $0x1d0] sm:$0xff] }
 0x144   : > { %v4238_v13 = vcombine.high %v299_v7, %v303_v8  ;;  %v342_v58 = vld [vmem:[%s5081_s8 + $0x1f0] sm:$0xff]  ;;  %v339_v60 = vld [vmem:[%s5081_s8 + $0x1d8] sm:$0xff] }
 0x145   : > { %v343_v3 = vld [vmem:[%s5081_s8 + $0x1f8] sm:$0xff] }
 0x146   : > { %3542 = vmatpush1.bf16.msra.mxu0 %v4695_v17  ;;  %3706 = vmatpush1.bf16.msra.mxu1 %v4697_v18  ;;  %v307_v17 = vld [vmem:[%s5081_s8 + $0xd8] sm:$0xff] }
 0x147   : > { %3543 = vmatprep.subr.bf16.mxu0 %v4704_v19  ;;  %3707 = vmatprep.subr.bf16.mxu1 %v4706_v20  ;;  %v311_v18 = vld [vmem:[%s5081_s8 + $0xf8] sm:$0xff]  ;;  %v4235_v19 = vcombine.low %v298_v5, %v302_v6  ;;  %v4237_v20 = vcombine.low %v299_v7, %v303_v8  ;;  %v346_v5 = vld [vmem:[%s5081_s8 + $0x210] sm:$0xff] }
 0x148   : > { %v4246_v23 = vcombine.high %v307_v17, %v311_v18  ;;  %v350_v6 = vld [vmem:[%s5081_s8 + $0x230] sm:$0xff]  ;;  %v347_v7 = vld [vmem:[%s5081_s8 + $0x218] sm:$0xff] }
 0x149   : > { %v351_v8 = vld [vmem:[%s5081_s8 + $0x238] sm:$0xff] }
 0x14a   : > { %3544 = vmatpush1.bf16.msra.mxu0 %v4703_v28  ;;  %3708 = vmatpush1.bf16.msra.mxu1 %v4705_v29  ;;  %v315_v28 = vld [vmem:[%s5081_s8 + $0x118] sm:$0xff] }
 0x14b   : > { %3545 = vmatprep.subr.bf16.mxu0 %v4712_v30  ;;  %3709 = vmatprep.subr.bf16.mxu1 %v4714_v32  ;;  %v319_v29 = vld [vmem:[%s5081_s8 + $0x138] sm:$0xff]  ;;  %v4243_v30 = vcombine.low %v306_v15, %v310_v16  ;;  %v4252_v32 = vcombine.high %v314_v26, %v318_v27  ;;  %v354_v15 = vld [vmem:[%s5081_s8 + $0x250] sm:$0xff] }
 0x14c   : > { %v4254_v34 = vcombine.high %v315_v28, %v319_v29  ;;  %v358_v16 = vld [vmem:[%s5081_s8 + $0x270] sm:$0xff] }
 0x14e   : > { %3546 = vmatpush1.bf16.msra.mxu0 %v4711_v39  ;;  %3710 = vmatpush1.bf16.msra.mxu1 %v4713_v40  ;;  %v327_v39 = vld [vmem:[%s5081_s8 + $0x178] sm:$0xff]  ;;  %v4251_v40 = vcombine.low %v314_v26, %v318_v27  ;;  %v362_v26 = vld [vmem:[%s5081_s8 + $0x290] sm:$0xff] }
 0x14f   : > { %3547 = vmatprep.subr.bf16.mxu0 %v4720_v42  ;;  %3711 = vmatprep.subr.bf16.mxu1 %v4722_v43  ;;  %v4253_v42 = vcombine.low %v315_v28, %v319_v29  ;;  %v4260_v43 = vcombine.high %v322_v35, %v326_v36  ;;  %v4262_v44 = vcombine.high %v323_v37, %v327_v39  ;;  %v366_v27 = vld [vmem:[%s5081_s8 + $0x2b0] sm:$0xff]  ;;  %v363_v28 = vld [vmem:[%s5081_s8 + $0x298] sm:$0xff] }
 0x150   : > { %v367_v29 = vld [vmem:[%s5081_s8 + $0x2b8] sm:$0xff] }
 0x152   : > { %3548 = vmatpush1.bf16.msra.mxu0 %v4719_v51  ;;  %3712 = vmatpush1.bf16.msra.mxu1 %v4721_v52  ;;  %v4259_v51 = vcombine.low %v322_v35, %v326_v36  ;;  %v4261_v52 = vcombine.low %v323_v37, %v327_v39  ;;  %v370_v35 = vld [vmem:[%s5081_s8 + $0x2d0] sm:$0xff]  ;;  %v371_v37 = vld [vmem:[%s5081_s8 + $0x2d8] sm:$0xff] }
 0x153   : > { %3722 = vmatprep.subr.bf16.mxu0 %v4220_v53  ;;  %3886 = vmatprep.subr.bf16.mxu1 %v4222_v54  ;;  %v4268_v53 = vcombine.high %v330_v46, %v334_v47  ;;  %v4270_v54 = vcombine.high %v331_v48, %v335_v49  ;;  %v374_v36 = vld [vmem:[%s5081_s8 + $0x2f0] sm:$0xff]  ;;  %v375_v39 = vld [vmem:[%s5081_s8 + $0x2f8] sm:$0xff] }
 0x155   : > { %3550 = vmatmul.mubr.bf16.vlgmr.msra.gmra.mrb[0].mxu0 %v5427_v59  ;;  %3714 = vmatmul.mubr.bf16.vlgmr.msra.gmra.mrb[0].mxu1 %v5427_v59 }
 0x156   : > { %3723 = vmatpush1.bf16.msra.mxu0 %v4219_v61  ;;  %3887 = vmatpush1.bf16.msra.mxu1 %v4221_v62  ;;  %v4267_v61 = vcombine.low %v330_v46, %v334_v47  ;;  %v4269_v62 = vcombine.low %v331_v48, %v335_v49  ;;  %v378_v46 = vld [vmem:[%s5081_s8 + $0x310] sm:$0xff]  ;;  %v379_v48 = vld [vmem:[%s5081_s8 + $0x318] sm:$0xff] }
 0x157   : > { %3724 = vmatprep.subr.bf16.mxu0 %v4228_v1  ;;  %3888 = vmatprep.subr.bf16.mxu1 %v4230_v2  ;;  %v4276_v1 = vcombine.high %v338_v57, %v342_v58  ;;  %v4278_v2 = vcombine.high %v339_v60, %v343_v3  ;;  %v382_v47 = vld [vmem:[%s5081_s8 + $0x330] sm:$0xff]  ;;  %v383_v49 = vld [vmem:[%s5081_s8 + $0x338] sm:$0xff] }
 0x158   : > { %3754 = vmatprep.mubr.bf16.mxu0 %v5136_v0  ;;  %3918 = vmatprep.mubr.bf16.mxu1 %v5136_v0  ;;  %v4245_v0 = vcombine.low %v307_v17, %v311_v18  ;;  %v355_v17 = vld [vmem:[%s5081_s8 + $0x258] sm:$0xff] }
 0x159   : > { %v359_v18 = vld [vmem:[%s5081_s8 + $0x278] sm:$0xff] }
 0x15a   : > { %3725 = vmatpush1.bf16.msra.mxu0 %v4227_v9  ;;  %3889 = vmatpush1.bf16.msra.mxu1 %v4229_v10  ;;  %v4275_v9 = vcombine.low %v338_v57, %v342_v58  ;;  %v4277_v10 = vcombine.low %v339_v60, %v343_v3  ;;  %v386_v57 = vld [vmem:[%s5081_s8 + $0x350] sm:$0xff]  ;;  %v387_v60 = vld [vmem:[%s5081_s8 + $0x358] sm:$0xff] }
 0x15b   : > { %3726 = vmatprep.subr.bf16.mxu0 %v4236_v12  ;;  %3890 = vmatprep.subr.bf16.mxu1 %v4238_v13  ;;  %v4284_v12 = vcombine.high %v346_v5, %v350_v6  ;;  %v4286_v13 = vcombine.high %v347_v7, %v351_v8  ;;  %v390_v58 = vld [vmem:[%s5081_s8 + $0x370] sm:$0xff]  ;;  %v391_v3 = vld [vmem:[%s5081_s8 + $0x378] sm:$0xff] }
 0x15e   : > { %3727 = vmatpush1.bf16.msra.mxu0 %v4235_v19  ;;  %3891 = vmatpush1.bf16.msra.mxu1 %v4237_v20  ;;  %v4283_v19 = vcombine.low %v346_v5, %v350_v6  ;;  %v4285_v20 = vcombine.low %v347_v7, %v351_v8  ;;  %v394_v5 = vld [vmem:[%s5081_s8 + $0x390] sm:$0xff]  ;;  %v395_v7 = vld [vmem:[%s5081_s8 + $0x398] sm:$0xff] }
 0x15f   : > { %3728 = vmatprep.subr.bf16.mxu0 %v4244_v21  ;;  %3892 = vmatprep.subr.bf16.mxu1 %v4246_v23  ;;  %v4292_v21 = vcombine.high %v354_v15, %v358_v16  ;;  %v4294_v23 = vcombine.high %v355_v17, %v359_v18  ;;  %v398_v6 = vld [vmem:[%s5081_s8 + $0x3b0] sm:$0xff]  ;;  %v399_v8 = vld [vmem:[%s5081_s8 + $0x3b8] sm:$0xff] }
 0x162   : > { %3729 = vmatpush1.bf16.msra.mxu0 %v4243_v30  ;;  %3893 = vmatpush1.bf16.msra.mxu1 %v4245_v0  ;;  %v4291_v30 = vcombine.low %v354_v15, %v358_v16  ;;  %v4293_v0 = vcombine.low %v355_v17, %v359_v18  ;;  %v402_v15 = vld [vmem:[%s5081_s8 + $0x3d0] sm:$0xff]  ;;  %v403_v17 = vld [vmem:[%s5081_s8 + $0x3d8] sm:$0xff] }
 0x163   : > { %3730 = vmatprep.subr.bf16.mxu0 %v4252_v32  ;;  %3894 = vmatprep.subr.bf16.mxu1 %v4254_v34  ;;  %v4300_v32 = vcombine.high %v362_v26, %v366_v27  ;;  %v4302_v34 = vcombine.high %v363_v28, %v367_v29  ;;  %v406_v16 = vld [vmem:[%s5081_s8 + $0x3f0] sm:$0xff]  ;;  %v407_v18 = vld [vmem:[%s5081_s8 + $0x3f8] sm:$0xff] }
 0x166   : > { %3731 = vmatpush1.bf16.msra.mxu0 %v4251_v40  ;;  %3895 = vmatpush1.bf16.msra.mxu1 %v4253_v42  ;;  %v4299_v40 = vcombine.low %v362_v26, %v366_v27  ;;  %v4301_v42 = vcombine.low %v363_v28, %v367_v29  ;;  %v410_v26 = vld [vmem:[%s5081_s8 + $0x410] sm:$0xff]  ;;  %v411_v28 = vld [vmem:[%s5081_s8 + $0x418] sm:$0xff] }
 0x167   : > { %3732 = vmatprep.subr.bf16.mxu0 %v4260_v43  ;;  %3896 = vmatprep.subr.bf16.mxu1 %v4262_v44  ;;  %v4308_v43 = vcombine.high %v370_v35, %v374_v36  ;;  %v4310_v44 = vcombine.high %v371_v37, %v375_v39  ;;  %v414_v27 = vld [vmem:[%s5081_s8 + $0x430] sm:$0xff]  ;;  %v415_v29 = vld [vmem:[%s5081_s8 + $0x438] sm:$0xff] }
 0x16a   : > { %3733 = vmatpush1.bf16.msra.mxu0 %v4259_v51  ;;  %3897 = vmatpush1.bf16.msra.mxu1 %v4261_v52  ;;  %v4307_v51 = vcombine.low %v370_v35, %v374_v36  ;;  %v4309_v52 = vcombine.low %v371_v37, %v375_v39  ;;  %v418_v35 = vld [vmem:[%s5081_s8 + $0x450] sm:$0xff]  ;;  %v419_v37 = vld [vmem:[%s5081_s8 + $0x458] sm:$0xff] }
 0x16b   : > { %3734 = vmatprep.subr.bf16.mxu0 %v4268_v53  ;;  %3898 = vmatprep.subr.bf16.mxu1 %v4270_v54  ;;  %v4316_v53 = vcombine.high %v378_v46, %v382_v47  ;;  %v4318_v54 = vcombine.high %v379_v48, %v383_v49  ;;  %v422_v36 = vld [vmem:[%s5081_s8 + $0x470] sm:$0xff]  ;;  %v423_v39 = vld [vmem:[%s5081_s8 + $0x478] sm:$0xff] }
 0x16e   : > { %3735 = vmatpush1.bf16.msra.mxu0 %v4267_v61  ;;  %3899 = vmatpush1.bf16.msra.mxu1 %v4269_v62  ;;  %v4315_v61 = vcombine.low %v378_v46, %v382_v47  ;;  %v4317_v62 = vcombine.low %v379_v48, %v383_v49  ;;  %v426_v46 = vld [vmem:[%s5081_s8 + $0x490] sm:$0xff]  ;;  %v427_v48 = vld [vmem:[%s5081_s8 + $0x498] sm:$0xff] }
 0x16f   : > { %3736 = vmatprep.subr.bf16.mxu0 %v4276_v1  ;;  %3900 = vmatprep.subr.bf16.mxu1 %v4278_v2  ;;  %v4324_v1 = vcombine.high %v386_v57, %v390_v58  ;;  %v4326_v2 = vcombine.high %v387_v60, %v391_v3  ;;  %v430_v47 = vld [vmem:[%s5081_s8 + $0x4b0] sm:$0xff]  ;;  %v431_v49 = vld [vmem:[%s5081_s8 + $0x4b8] sm:$0xff] }
 0x172   : > { %3737 = vmatpush1.bf16.msra.mxu0 %v4275_v9  ;;  %3901 = vmatpush1.bf16.msra.mxu1 %v4277_v10  ;;  %v4323_v9 = vcombine.low %v386_v57, %v390_v58  ;;  %v4325_v10 = vcombine.low %v387_v60, %v391_v3  ;;  %v434_v57 = vld [vmem:[%s5081_s8 + $0x4d0] sm:$0xff]  ;;  %v435_v60 = vld [vmem:[%s5081_s8 + $0x4d8] sm:$0xff] }
 0x173   : > { %3738 = vmatprep.subr.bf16.mxu0 %v4284_v12  ;;  %3902 = vmatprep.subr.bf16.mxu1 %v4286_v13  ;;  %v4332_v12 = vcombine.high %v394_v5, %v398_v6  ;;  %v4334_v13 = vcombine.high %v395_v7, %v399_v8  ;;  %v438_v58 = vld [vmem:[%s5081_s8 + $0x4f0] sm:$0xff]  ;;  %v439_v3 = vld [vmem:[%s5081_s8 + $0x4f8] sm:$0xff] }
 0x176   : > { %3739 = vmatpush1.bf16.msra.mxu0 %v4283_v19  ;;  %3903 = vmatpush1.bf16.msra.mxu1 %v4285_v20  ;;  %v4331_v19 = vcombine.low %v394_v5, %v398_v6  ;;  %v4333_v20 = vcombine.low %v395_v7, %v399_v8  ;;  %v446_v5 = vld [vmem:[%s5081_s8 + $0x530] sm:$0xff]  ;;  %v443_v6 = vld [vmem:[%s5081_s8 + $0x518] sm:$0xff]  ;;  %v4371_v8 = vcombine.low %v434_v57, %v438_v58 }
 0x177   : > { %3740 = vmatprep.subr.bf16.mxu0 %v4292_v21  ;;  %3904 = vmatprep.subr.bf16.mxu1 %v4294_v23  ;;  %v4340_v21 = vcombine.high %v402_v15, %v406_v16  ;;  %v4342_v23 = vcombine.high %v403_v17, %v407_v18  ;;  %v447_v7 = vld [vmem:[%s5081_s8 + $0x538] sm:$0xff] }
 0x17a   : > { %3741 = vmatpush1.bf16.msra.mxu0 %v4291_v30  ;;  %3905 = vmatpush1.bf16.msra.mxu1 %v4293_v0  ;;  %v4339_v30 = vcombine.low %v402_v15, %v406_v16  ;;  %v4341_v0 = vcombine.low %v403_v17, %v407_v18  ;;  %v451_v15 = vld [vmem:[%s5081_s8 + $0x558] sm:$0xff]  ;;  %v4381_v18 = vcombine.low %v443_v6, %v447_v7 }
 0x17b   : > { %3742 = vmatprep.subr.bf16.mxu0 %v4300_v32  ;;  %3906 = vmatprep.subr.bf16.mxu1 %v4302_v34  ;;  %v4348_v32 = vcombine.high %v410_v26, %v414_v27  ;;  %v4350_v34 = vcombine.high %v411_v28, %v415_v29  ;;  %v455_v16 = vld [vmem:[%s5081_s8 + $0x578] sm:$0xff] }
 0x17e   : > { %3743 = vmatpush1.bf16.msra.mxu0 %v4299_v40  ;;  %3907 = vmatpush1.bf16.msra.mxu1 %v4301_v42  ;;  %v4347_v40 = vcombine.low %v410_v26, %v414_v27  ;;  %v4349_v42 = vcombine.low %v411_v28, %v415_v29  ;;  %v459_v26 = vld [vmem:[%s5081_s8 + $0x598] sm:$0xff]  ;;  %v4389_v29 = vcombine.low %v451_v15, %v455_v16 }
 0x17f   : > { %3744 = vmatprep.subr.bf16.mxu0 %v4308_v43  ;;  %3908 = vmatprep.subr.bf16.mxu1 %v4310_v44  ;;  %v4356_v43 = vcombine.high %v418_v35, %v422_v36  ;;  %v4358_v44 = vcombine.high %v419_v37, %v423_v39  ;;  %v463_v27 = vld [vmem:[%s5081_s8 + $0x5b8] sm:$0xff] }
 0x182   : > { %3745 = vmatpush1.bf16.msra.mxu0 %v4307_v51  ;;  %3909 = vmatpush1.bf16.msra.mxu1 %v4309_v52  ;;  %v4355_v51 = vcombine.low %v418_v35, %v422_v36  ;;  %v4357_v52 = vcombine.low %v419_v37, %v423_v39  ;;  %v467_v35 = vld [vmem:[%s5081_s8 + $0x5d8] sm:$0xff]  ;;  %v4397_v39 = vcombine.low %v459_v26, %v463_v27 }
 0x183   : > { %3746 = vmatprep.subr.bf16.mxu0 %v4316_v53  ;;  %3910 = vmatprep.subr.bf16.mxu1 %v4318_v54  ;;  %v4364_v53 = vcombine.high %v426_v46, %v430_v47  ;;  %v4366_v54 = vcombine.high %v427_v48, %v431_v49  ;;  %v471_v36 = vld [vmem:[%s5081_s8 + $0x5f8] sm:$0xff] }
 0x186   : > { %3747 = vmatpush1.bf16.msra.mxu0 %v4315_v61  ;;  %3911 = vmatpush1.bf16.msra.mxu1 %v4317_v62  ;;  %v4365_v61 = vcombine.low %v427_v48, %v431_v49  ;;  %v4372_v62 = vcombine.high %v434_v57, %v438_v58  ;;  %v4405_v49 = vcombine.low %v467_v35, %v471_v36  ;;  %v483_v57 = vld [vmem:[%s5081_s8 + $0x658] sm:$0xff] }
 0x187   : > { %3748 = vmatprep.subr.bf16.mxu0 %v4324_v1  ;;  %3912 = vmatprep.subr.bf16.mxu1 %v4326_v2  ;;  %v4374_v1 = vcombine.high %v435_v60, %v439_v3  ;;  %v442_v2 = vld [vmem:[%s5081_s8 + $0x510] sm:$0xff]  ;;  %v487_v58 = vld [vmem:[%s5081_s8 + $0x678] sm:$0xff] }
 0x188   : > { %v4379_v17 = vcombine.low %v442_v2, %v446_v5 }
 0x18a   : > { %3749 = vmatpush1.bf16.msra.mxu0 %v4323_v9  ;;  %3913 = vmatpush1.bf16.msra.mxu1 %v4325_v10  ;;  %v4380_v9 = vcombine.high %v442_v2, %v446_v5  ;;  %v4382_v10 = vcombine.high %v443_v6, %v447_v7  ;;  %v491_v2 = vld [vmem:[%s5081_s8 + $0x698] sm:$0xff]  ;;  %v4421_v7 = vcombine.low %v483_v57, %v487_v58 }
 0x18b   : > { %3750 = vmatprep.subr.bf16.mxu0 %v4332_v12  ;;  %3914 = vmatprep.subr.bf16.mxu1 %v4334_v13  ;;  %v450_v12 = vld [vmem:[%s5081_s8 + $0x550] sm:$0xff]  ;;  %v495_v5 = vld [vmem:[%s5081_s8 + $0x6b8] sm:$0xff] }
 0x18c   : > { %v454_v13 = vld [vmem:[%s5081_s8 + $0x570] sm:$0xff] }
 0x18d   : > { %v4387_v28 = vcombine.low %v450_v12, %v454_v13 }
 0x18e   : > { %3751 = vmatpush1.bf16.msra.mxu0 %v4331_v19  ;;  %3915 = vmatpush1.bf16.msra.mxu1 %v4333_v20  ;;  %v4388_v19 = vcombine.high %v450_v12, %v454_v13  ;;  %v4390_v20 = vcombine.high %v451_v15, %v455_v16  ;;  %v499_v12 = vld [vmem:[%s5081_s8 + $0x6d8] sm:$0xff]  ;;  %v4429_v16 = vcombine.low %v491_v2, %v495_v5 }
 0x18f   : > { %3752 = vmatprep.subr.bf16.mxu0 %v4340_v21  ;;  %3916 = vmatprep.subr.bf16.mxu1 %v4342_v23  ;;  %v458_v21 = vld [vmem:[%s5081_s8 + $0x590] sm:$0xff]  ;;  %v503_v13 = vld [vmem:[%s5081_s8 + $0x6f8] sm:$0xff] }
 0x190   : > { %v462_v23 = vld [vmem:[%s5081_s8 + $0x5b0] sm:$0xff] }
 0x191   : > { %v4395_v37 = vcombine.low %v458_v21, %v462_v23 }
 0x192   : > { %3753 = vmatpush1.bf16.msra.mxu0 %v4339_v30  ;;  %3917 = vmatpush1.bf16.msra.mxu1 %v4341_v0  ;;  %v4396_v30 = vcombine.high %v458_v21, %v462_v23  ;;  %v4398_v0 = vcombine.high %v459_v26, %v463_v27  ;;  %v507_v21 = vld [vmem:[%s5081_s8 + $0x718] sm:$0xff]  ;;  %v4437_v27 = vcombine.low %v499_v12, %v503_v13 }
 0x193   : > { %3763 = vmatprep.subr.bf16.mxu0 %v4348_v32  ;;  %3927 = vmatprep.subr.bf16.mxu1 %v4350_v34  ;;  %v466_v32 = vld [vmem:[%s5081_s8 + $0x5d0] sm:$0xff]  ;;  %v511_v23 = vld [vmem:[%s5081_s8 + $0x738] sm:$0xff] }
 0x194   : > { %v470_v34 = vld [vmem:[%s5081_s8 + $0x5f0] sm:$0xff] }
 0x195   : > { %3755 = vmatmul.mubr.bf16.vlgmr.msra.gmra.mrb[4].mxu0 %v5186_v22  ;;  %3919 = vmatmul.mubr.bf16.vlgmr.msra.gmra.mrb[4].mxu1 %v5186_v22  ;;  %v4363_v22 = vcombine.low %v426_v46, %v430_v47  ;;  %v475_v46 = vld [vmem:[%s5081_s8 + $0x618] sm:$0xff]  ;;  %v4403_v48 = vcombine.low %v466_v32, %v470_v34 }
 0x196   : > { %3764 = vmatpush1.bf16.msra.mxu0 %v4347_v40  ;;  %3928 = vmatpush1.bf16.msra.mxu1 %v4349_v42  ;;  %v4404_v40 = vcombine.high %v466_v32, %v470_v34  ;;  %v4406_v42 = vcombine.high %v467_v35, %v471_v36  ;;  %v479_v47 = vld [vmem:[%s5081_s8 + $0x638] sm:$0xff]  ;;  %v4445_v36 = vcombine.low %v507_v21, %v511_v23 }
 0x197   : > { %3765 = vmatprep.subr.bf16.mxu0 %v4356_v43  ;;  %3929 = vmatprep.subr.bf16.mxu1 %v4358_v44  ;;  %v474_v43 = vld [vmem:[%s5081_s8 + $0x610] sm:$0xff]  ;;  %v515_v32 = vld [vmem:[%s5081_s8 + $0x758] sm:$0xff] }
 0x198   : > { %3795 = vmatprep.mubr.bf16.mxu0 %v5192_v31  ;;  %3959 = vmatprep.mubr.bf16.mxu1 %v5192_v31  ;;  %v4373_v31 = vcombine.low %v435_v60, %v439_v3  ;;  %v478_v44 = vld [vmem:[%s5081_s8 + $0x630] sm:$0xff]  ;;  %v4413_v3 = vcombine.low %v475_v46, %v479_v47  ;;  %v519_v34 = vld [vmem:[%s5081_s8 + $0x778] sm:$0xff] }
 0x199   : > { %v4411_v60 = vcombine.low %v474_v43, %v478_v44 }
 0x19a   : > { %3766 = vmatpush1.bf16.msra.mxu0 %v4355_v51  ;;  %3930 = vmatpush1.bf16.msra.mxu1 %v4357_v52  ;;  %v4412_v51 = vcombine.high %v474_v43, %v478_v44  ;;  %v4414_v52 = vcombine.high %v475_v46, %v479_v47  ;;  %v523_v43 = vld [vmem:[%s5081_s8 + $0x798] sm:$0xff]  ;;  %v4453_v47 = vcombine.low %v515_v32, %v519_v34 }
 0x19b   : > { %3767 = vmatprep.subr.bf16.mxu0 %v4364_v53  ;;  %3931 = vmatprep.subr.bf16.mxu1 %v4366_v54  ;;  %v482_v53 = vld [vmem:[%s5081_s8 + $0x650] sm:$0xff]  ;;  %v527_v44 = vld [vmem:[%s5081_s8 + $0x7b8] sm:$0xff] }
 0x19c   : > { %v486_v54 = vld [vmem:[%s5081_s8 + $0x670] sm:$0xff] }
 0x19d   : > { %v4419_v6 = vcombine.low %v482_v53, %v486_v54 }
 0x19e   : > { %3768 = vmatpush1.bf16.msra.mxu0 %v4363_v22  ;;  %3932 = vmatpush1.bf16.msra.mxu1 %v4365_v61  ;;  %v4420_v22 = vcombine.high %v482_v53, %v486_v54  ;;  %v4422_v61 = vcombine.high %v483_v57, %v487_v58  ;;  %v531_v53 = vld [vmem:[%s5081_s8 + $0x7d8] sm:$0xff]  ;;  %v4461_v58 = vcombine.low %v523_v43, %v527_v44 }
 0x19f   : > { %3769 = vmatprep.subr.bf16.mxu0 %v4372_v62  ;;  %3933 = vmatprep.subr.bf16.mxu1 %v4374_v1  ;;  %v490_v62 = vld [vmem:[%s5081_s8 + $0x690] sm:$0xff]  ;;  %v535_v54 = vld [vmem:[%s5081_s8 + $0x7f8] sm:$0xff] }
 0x1a0   : > { %v494_v1 = vld [vmem:[%s5081_s8 + $0x6b0] sm:$0xff] }
 0x1a1   : > { %v4427_v15 = vcombine.low %v490_v62, %v494_v1 }
 0x1a2   : > { %3770 = vmatpush1.bf16.msra.mxu0 %v4371_v8  ;;  %3934 = vmatpush1.bf16.msra.mxu1 %v4373_v31  ;;  %v4428_v8 = vcombine.high %v490_v62, %v494_v1  ;;  %v4430_v31 = vcombine.high %v491_v2, %v495_v5  ;;  %v539_v62 = vld [vmem:[%s5081_s8 + $0x818] sm:$0xff]  ;;  %v4469_v5 = vcombine.low %v531_v53, %v535_v54 }
 0x1a3   : > { %3771 = vmatprep.subr.bf16.mxu0 %v4380_v9  ;;  %3935 = vmatprep.subr.bf16.mxu1 %v4382_v10  ;;  %v498_v9 = vld [vmem:[%s5081_s8 + $0x6d0] sm:$0xff]  ;;  %v543_v1 = vld [vmem:[%s5081_s8 + $0x838] sm:$0xff] }
 0x1a4   : > { %v502_v10 = vld [vmem:[%s5081_s8 + $0x6f0] sm:$0xff] }
 0x1a5   : > { %v4435_v26 = vcombine.low %v498_v9, %v502_v10 }
 0x1a6   : > { %3772 = vmatpush1.bf16.msra.mxu0 %v4379_v17  ;;  %3936 = vmatpush1.bf16.msra.mxu1 %v4381_v18  ;;  %v4436_v17 = vcombine.high %v498_v9, %v502_v10  ;;  %v4438_v18 = vcombine.high %v499_v12, %v503_v13  ;;  %v547_v9 = vld [vmem:[%s5081_s8 + $0x858] sm:$0xff]  ;;  %v4477_v13 = vcombine.low %v539_v62, %v543_v1 }
 0x1a7   : > { %3773 = vmatprep.subr.bf16.mxu0 %v4388_v19  ;;  %3937 = vmatprep.subr.bf16.mxu1 %v4390_v20  ;;  %v506_v19 = vld [vmem:[%s5081_s8 + $0x710] sm:$0xff]  ;;  %v551_v10 = vld [vmem:[%s5081_s8 + $0x878] sm:$0xff] }
 0x1a8   : > { %v510_v20 = vld [vmem:[%s5081_s8 + $0x730] sm:$0xff] }
 0x1a9   : > { %v4443_v35 = vcombine.low %v506_v19, %v510_v20 }
 0x1aa   : > { %3774 = vmatpush1.bf16.msra.mxu0 %v4387_v28  ;;  %3938 = vmatpush1.bf16.msra.mxu1 %v4389_v29  ;;  %v4444_v28 = vcombine.high %v506_v19, %v510_v20  ;;  %v4446_v29 = vcombine.high %v507_v21, %v511_v23  ;;  %v555_v19 = vld [vmem:[%s5081_s8 + $0x898] sm:$0xff]  ;;  %v4485_v23 = vcombine.low %v547_v9, %v551_v10 }
 0x1ab   : > { %3775 = vmatprep.subr.bf16.mxu0 %v4396_v30  ;;  %3939 = vmatprep.subr.bf16.mxu1 %v4398_v0  ;;  %v514_v30 = vld [vmem:[%s5081_s8 + $0x750] sm:$0xff]  ;;  %v559_v20 = vld [vmem:[%s5081_s8 + $0x8b8] sm:$0xff] }
 0x1ac   : > { %v518_v0 = vld [vmem:[%s5081_s8 + $0x770] sm:$0xff] }
 0x1ad   : > { %v4451_v46 = vcombine.low %v514_v30, %v518_v0 }
 0x1ae   : > { %3776 = vmatpush1.bf16.msra.mxu0 %v4395_v37  ;;  %3940 = vmatpush1.bf16.msra.mxu1 %v4397_v39  ;;  %v4452_v37 = vcombine.high %v514_v30, %v518_v0  ;;  %v4454_v39 = vcombine.high %v515_v32, %v519_v34  ;;  %v563_v30 = vld [vmem:[%s5081_s8 + $0x8d8] sm:$0xff]  ;;  %v4493_v32 = vcombine.low %v555_v19, %v559_v20 }
 0x1af   : > { %3777 = vmatprep.subr.bf16.mxu0 %v4404_v40  ;;  %3941 = vmatprep.subr.bf16.mxu1 %v4406_v42  ;;  %v522_v40 = vld [vmem:[%s5081_s8 + $0x790] sm:$0xff]  ;;  %v567_v0 = vld [vmem:[%s5081_s8 + $0x8f8] sm:$0xff] }
 0x1b0   : > { %v526_v42 = vld [vmem:[%s5081_s8 + $0x7b0] sm:$0xff] }
 0x1b1   : > { %v4459_v57 = vcombine.low %v522_v40, %v526_v42 }
 0x1b2   : > { %3778 = vmatpush1.bf16.msra.mxu0 %v4403_v48  ;;  %3942 = vmatpush1.bf16.msra.mxu1 %v4405_v49  ;;  %v4460_v48 = vcombine.high %v522_v40, %v526_v42  ;;  %v4462_v49 = vcombine.high %v523_v43, %v527_v44  ;;  %v575_v40 = vld [vmem:[%s5081_s8 + $0x938] sm:$0xff] }
 0x1b3   : > { %3779 = vmatprep.subr.bf16.mxu0 %v4412_v51  ;;  %3943 = vmatprep.subr.bf16.mxu1 %v4414_v52  ;;  %v530_v51 = vld [vmem:[%s5081_s8 + $0x7d0] sm:$0xff] }
 0x1b4   : > { %v534_v52 = vld [vmem:[%s5081_s8 + $0x7f0] sm:$0xff] }
 0x1b5   : > { %v4467_v2 = vcombine.low %v530_v51, %v534_v52 }
 0x1b6   : > { %3780 = vmatpush1.bf16.msra.mxu0 %v4411_v60  ;;  %3944 = vmatpush1.bf16.msra.mxu1 %v4413_v3  ;;  %v4468_v60 = vcombine.high %v530_v51, %v534_v52  ;;  %v4470_v3 = vcombine.high %v531_v53, %v535_v54 }
 0x1b7   : > { %3781 = vmatprep.subr.bf16.mxu0 %v4420_v22  ;;  %3945 = vmatprep.subr.bf16.mxu1 %v4422_v61  ;;  %v538_v22 = vld [vmem:[%s5081_s8 + $0x810] sm:$0xff] }
 0x1b8   : > { %v542_v61 = vld [vmem:[%s5081_s8 + $0x830] sm:$0xff] }
 0x1b9   : > { %v4475_v12 = vcombine.low %v538_v22, %v542_v61 }
 0x1ba   : > { %3782 = vmatpush1.bf16.msra.mxu0 %v4419_v6  ;;  %3946 = vmatpush1.bf16.msra.mxu1 %v4421_v7  ;;  %v4476_v6 = vcombine.high %v538_v22, %v542_v61  ;;  %v4478_v7 = vcombine.high %v539_v62, %v543_v1 }
 0x1bb   : > { %3783 = vmatprep.subr.bf16.mxu0 %v4428_v8  ;;  %3947 = vmatprep.subr.bf16.mxu1 %v4430_v31  ;;  %v546_v8 = vld [vmem:[%s5081_s8 + $0x850] sm:$0xff] }
 0x1bc   : > { %v550_v31 = vld [vmem:[%s5081_s8 + $0x870] sm:$0xff] }
 0x1bd   : > { %v4483_v21 = vcombine.low %v546_v8, %v550_v31 }
 0x1be   : > { %3784 = vmatpush1.bf16.msra.mxu0 %v4427_v15  ;;  %3948 = vmatpush1.bf16.msra.mxu1 %v4429_v16  ;;  %v4484_v15 = vcombine.high %v546_v8, %v550_v31  ;;  %v4486_v16 = vcombine.high %v547_v9, %v551_v10 }
 0x1bf   : > { %3785 = vmatprep.subr.bf16.mxu0 %v4436_v17  ;;  %3949 = vmatprep.subr.bf16.mxu1 %v4438_v18  ;;  %v554_v17 = vld [vmem:[%s5081_s8 + $0x890] sm:$0xff] }
 0x1c0   : > { %v558_v18 = vld [vmem:[%s5081_s8 + $0x8b0] sm:$0xff] }
 0x1c2   : > { %3786 = vmatpush1.bf16.msra.mxu0 %v4435_v26  ;;  %3950 = vmatpush1.bf16.msra.mxu1 %v4437_v27  ;;  %v4492_v26 = vcombine.high %v554_v17, %v558_v18  ;;  %v4494_v27 = vcombine.high %v555_v19, %v559_v20 }
 0x1c3   : > { %3787 = vmatprep.subr.bf16.mxu0 %v4444_v28  ;;  %3951 = vmatprep.subr.bf16.mxu1 %v4446_v29  ;;  %v562_v28 = vld [vmem:[%s5081_s8 + $0x8d0] sm:$0xff] }
 0x1c4   : > { %v566_v29 = vld [vmem:[%s5081_s8 + $0x8f0] sm:$0xff] }
 0x1c5   : > { %v4500_v34 = vcombine.high %v562_v28, %v566_v29  ;;  %v4499_v42 = vcombine.low %v562_v28, %v566_v29 }
 0x1c6   : > { %3788 = vmatpush1.bf16.msra.mxu0 %v4443_v35  ;;  %3952 = vmatpush1.bf16.msra.mxu1 %v4445_v36  ;;  %v4502_v35 = vcombine.high %v563_v30, %v567_v0  ;;  %v570_v36 = vld [vmem:[%s5081_s8 + $0x910] sm:$0xff] }
 0x1c7   : > { %3789 = vmatprep.subr.bf16.mxu0 %v4452_v37  ;;  %3953 = vmatprep.subr.bf16.mxu1 %v4454_v39  ;;  %v574_v37 = vld [vmem:[%s5081_s8 + $0x930] sm:$0xff]  ;;  %v571_v39 = vld [vmem:[%s5081_s8 + $0x918] sm:$0xff] }
 0x1c8   : > { %v4508_v43 = vcombine.high %v570_v36, %v574_v37  ;;  %v4510_v44 = vcombine.high %v571_v39, %v575_v40  ;;  %v4507_v51 = vcombine.low %v570_v36, %v574_v37  ;;  %v4509_v52 = vcombine.low %v571_v39, %v575_v40 }
 0x1ca   : > { %3790 = vmatpush1.bf16.msra.mxu0 %v4451_v46  ;;  %3954 = vmatpush1.bf16.msra.mxu1 %v4453_v47  ;;  %v578_v46 = vld [vmem:[%s5081_s8 + $0x950] sm:$0xff] }
 0x1cb   : > { %3791 = vmatprep.subr.bf16.mxu0 %v4460_v48  ;;  %3955 = vmatprep.subr.bf16.mxu1 %v4462_v49  ;;  %v582_v47 = vld [vmem:[%s5081_s8 + $0x970] sm:$0xff]  ;;  %v579_v48 = vld [vmem:[%s5081_s8 + $0x958] sm:$0xff] }
 0x1cc   : > { %v583_v49 = vld [vmem:[%s5081_s8 + $0x978] sm:$0xff]  ;;  %v4516_v53 = vcombine.high %v578_v46, %v582_v47  ;;  %v4515_v22 = vcombine.low %v578_v46, %v582_v47 }
 0x1cd   : > { %v4518_v54 = vcombine.high %v579_v48, %v583_v49  ;;  %v4517_v61 = vcombine.low %v579_v48, %v583_v49 }
 0x1ce   : > { %3792 = vmatpush1.bf16.msra.mxu0 %v4459_v57  ;;  %3956 = vmatpush1.bf16.msra.mxu1 %v4461_v58  ;;  %v586_v57 = vld [vmem:[%s5081_s8 + $0x990] sm:$0xff] }
 0x1cf   : > { %3793 = vmatprep.subr.bf16.mxu0 %v4468_v60  ;;  %3957 = vmatprep.subr.bf16.mxu1 %v4470_v3  ;;  %v590_v58 = vld [vmem:[%s5081_s8 + $0x9b0] sm:$0xff]  ;;  %v587_v60 = vld [vmem:[%s5081_s8 + $0x998] sm:$0xff] }
 0x1d0   : > { %v591_v3 = vld [vmem:[%s5081_s8 + $0x9b8] sm:$0xff]  ;;  %v4524_v62 = vcombine.high %v586_v57, %v590_v58  ;;  %v4523_v8 = vcombine.low %v586_v57, %v590_v58 }
 0x1d1   : > { %v4526_v1 = vcombine.high %v587_v60, %v591_v3  ;;  %v4525_v31 = vcombine.low %v587_v60, %v591_v3 }
 0x1d2   : > { %3794 = vmatpush1.bf16.msra.mxu0 %v4467_v2  ;;  %3958 = vmatpush1.bf16.msra.mxu1 %v4469_v5  ;;  %v594_v2 = vld [vmem:[%s5081_s8 + $0x9d0] sm:$0xff] }
 0x1d3   : > { %3804 = vmatprep.subr.bf16.mxu0 %v4476_v6  ;;  %3968 = vmatprep.subr.bf16.mxu1 %v4478_v7  ;;  %v598_v5 = vld [vmem:[%s5081_s8 + $0x9f0] sm:$0xff]  ;;  %v595_v6 = vld [vmem:[%s5081_s8 + $0x9d8] sm:$0xff] }
 0x1d4   : > { %v599_v7 = vld [vmem:[%s5081_s8 + $0x9f8] sm:$0xff]  ;;  %v4532_v9 = vcombine.high %v594_v2, %v598_v5 }
 0x1d5   : > { %3796 = vmatmul.mubr.bf16.vlgmr.msra.gmra.mrb[4].mxu0 %v5266_v45  ;;  %3960 = vmatmul.mubr.bf16.vlgmr.msra.gmra.mrb[4].mxu1 %v5266_v45  ;;  %v4491_v45 = vcombine.low %v554_v17, %v558_v18  ;;  %v4534_v10 = vcombine.high %v595_v6, %v599_v7  ;;  %v4531_v17 = vcombine.low %v594_v2, %v598_v5 }
 0x1d6   : > { %3805 = vmatpush1.bf16.msra.mxu0 %v4475_v12  ;;  %3969 = vmatpush1.bf16.msra.mxu1 %v4477_v13  ;;  %v602_v12 = vld [vmem:[%s5081_s8 + $0xa10] sm:$0xff]  ;;  %v4533_v18 = vcombine.low %v595_v6, %v599_v7 }
 0x1d7   : > { %3806 = vmatprep.subr.bf16.mxu0 %v4484_v15  ;;  %3970 = vmatprep.subr.bf16.mxu1 %v4486_v16  ;;  %v606_v13 = vld [vmem:[%s5081_s8 + $0xa30] sm:$0xff]  ;;  %v603_v15 = vld [vmem:[%s5081_s8 + $0xa18] sm:$0xff] }
 0x1d8   : > { %3836 = vmatprep.mubr.bf16.mxu0 %v5272_v55  ;;  %4000 = vmatprep.mubr.bf16.mxu1 %v5272_v55  ;;  %v4501_v55 = vcombine.low %v563_v30, %v567_v0  ;;  %v607_v16 = vld [vmem:[%s5081_s8 + $0xa38] sm:$0xff]  ;;  %v4540_v19 = vcombine.high %v602_v12, %v606_v13  ;;  %v4539_v28 = vcombine.low %v602_v12, %v606_v13 }
 0x1d9   : > { %v4542_v20 = vcombine.high %v603_v15, %v607_v16  ;;  %v4541_v29 = vcombine.low %v603_v15, %v607_v16 }
 0x1da   : > { %3807 = vmatpush1.bf16.msra.mxu0 %v4483_v21  ;;  %3971 = vmatpush1.bf16.msra.mxu1 %v4485_v23  ;;  %v610_v21 = vld [vmem:[%s5081_s8 + $0xa50] sm:$0xff] }
 0x1db   : > { %3808 = vmatprep.subr.bf16.mxu0 %v4492_v26  ;;  %3972 = vmatprep.subr.bf16.mxu1 %v4494_v27  ;;  %v614_v23 = vld [vmem:[%s5081_s8 + $0xa70] sm:$0xff]  ;;  %v611_v26 = vld [vmem:[%s5081_s8 + $0xa58] sm:$0xff] }
 0x1dc   : > { %v615_v27 = vld [vmem:[%s5081_s8 + $0xa78] sm:$0xff]  ;;  %v4548_v30 = vcombine.high %v610_v21, %v614_v23  ;;  %v4547_v36 = vcombine.low %v610_v21, %v614_v23 }
 0x1dd   : > { %v4550_v0 = vcombine.high %v611_v26, %v615_v27  ;;  %v4549_v37 = vcombine.low %v611_v26, %v615_v27 }
 0x1de   : > { %3809 = vmatpush1.bf16.msra.mxu0 %v4491_v45  ;;  %3973 = vmatpush1.bf16.msra.mxu1 %v4493_v32  ;;  %v618_v45 = vld [vmem:[%s5081_s8 + $0xa90] sm:$0xff] }
 0x1df   : > { %3810 = vmatprep.subr.bf16.mxu0 %v4500_v34  ;;  %3974 = vmatprep.subr.bf16.mxu1 %v4502_v35  ;;  %v622_v32 = vld [vmem:[%s5081_s8 + $0xab0] sm:$0xff]  ;;  %v619_v34 = vld [vmem:[%s5081_s8 + $0xa98] sm:$0xff] }
 0x1e0   : > { %v623_v35 = vld [vmem:[%s5081_s8 + $0xab8] sm:$0xff]  ;;  %v4556_v39 = vcombine.high %v618_v45, %v622_v32  ;;  %v4555_v46 = vcombine.low %v618_v45, %v622_v32 }
 0x1e1   : > { %v4558_v40 = vcombine.high %v619_v34, %v623_v35  ;;  %v4557_v47 = vcombine.low %v619_v34, %v623_v35 }
 0x1e2   : > { %3811 = vmatpush1.bf16.msra.mxu0 %v4499_v42  ;;  %3975 = vmatpush1.bf16.msra.mxu1 %v4501_v55  ;;  %v626_v42 = vld [vmem:[%s5081_s8 + $0xad0] sm:$0xff] }
 0x1e3   : > { %3812 = vmatprep.subr.bf16.mxu0 %v4508_v43  ;;  %3976 = vmatprep.subr.bf16.mxu1 %v4510_v44  ;;  %v630_v55 = vld [vmem:[%s5081_s8 + $0xaf0] sm:$0xff]  ;;  %v627_v43 = vld [vmem:[%s5081_s8 + $0xad8] sm:$0xff] }
 0x1e4   : > { %v631_v44 = vld [vmem:[%s5081_s8 + $0xaf8] sm:$0xff]  ;;  %v4564_v48 = vcombine.high %v626_v42, %v630_v55  ;;  %v4563_v57 = vcombine.low %v626_v42, %v630_v55 }
 0x1e5   : > { %v4566_v49 = vcombine.high %v627_v43, %v631_v44  ;;  %v4565_v58 = vcombine.low %v627_v43, %v631_v44 }
 0x1e6   : > { %3813 = vmatpush1.bf16.msra.mxu0 %v4507_v51  ;;  %3977 = vmatpush1.bf16.msra.mxu1 %v4509_v52  ;;  %v634_v51 = vld [vmem:[%s5081_s8 + $0xb10] sm:$0xff] }
 0x1e7   : > { %3814 = vmatprep.subr.bf16.mxu0 %v4516_v53  ;;  %3978 = vmatprep.subr.bf16.mxu1 %v4518_v54  ;;  %v638_v52 = vld [vmem:[%s5081_s8 + $0xb30] sm:$0xff]  ;;  %v635_v53 = vld [vmem:[%s5081_s8 + $0xb18] sm:$0xff] }
 0x1e8   : > { %v639_v54 = vld [vmem:[%s5081_s8 + $0xb38] sm:$0xff]  ;;  %v4572_v60 = vcombine.high %v634_v51, %v638_v52  ;;  %v4571_v2 = vcombine.low %v634_v51, %v638_v52 }
 0x1e9   : > { %v4574_v3 = vcombine.high %v635_v53, %v639_v54  ;;  %v4573_v5 = vcombine.low %v635_v53, %v639_v54 }
 0x1ea   : > { %3815 = vmatpush1.bf16.msra.mxu0 %v4515_v22  ;;  %3979 = vmatpush1.bf16.msra.mxu1 %v4517_v61  ;;  %v642_v22 = vld [vmem:[%s5081_s8 + $0xb50] sm:$0xff] }
 0x1eb   : > { %3816 = vmatprep.subr.bf16.mxu0 %v4524_v62  ;;  %3980 = vmatprep.subr.bf16.mxu1 %v4526_v1  ;;  %v646_v61 = vld [vmem:[%s5081_s8 + $0xb70] sm:$0xff]  ;;  %v643_v62 = vld [vmem:[%s5081_s8 + $0xb58] sm:$0xff] }
 0x1ec   : > { %v647_v1 = vld [vmem:[%s5081_s8 + $0xb78] sm:$0xff]  ;;  %v4580_v6 = vcombine.high %v642_v22, %v646_v61  ;;  %v4579_v12 = vcombine.low %v642_v22, %v646_v61 }
 0x1ed   : > { %v4582_v7 = vcombine.high %v643_v62, %v647_v1  ;;  %v4581_v13 = vcombine.low %v643_v62, %v647_v1  ;;  %v698_v1 = vld [vmem:[%s5081_s8 + $0xd10] sm:$0xff] }
 0x1ee   : > { %3817 = vmatpush1.bf16.msra.mxu0 %v4523_v8  ;;  %3981 = vmatpush1.bf16.msra.mxu1 %v4525_v31  ;;  %v650_v8 = vld [vmem:[%s5081_s8 + $0xb90] sm:$0xff] }
 0x1ef   : > { %3818 = vmatprep.subr.bf16.mxu0 %v4532_v9  ;;  %3982 = vmatprep.subr.bf16.mxu1 %v4534_v10  ;;  %v654_v31 = vld [vmem:[%s5081_s8 + $0xbb0] sm:$0xff]  ;;  %v651_v9 = vld [vmem:[%s5081_s8 + $0xb98] sm:$0xff] }
 0x1f0   : > { %v655_v10 = vld [vmem:[%s5081_s8 + $0xbb8] sm:$0xff]  ;;  %v4588_v15 = vcombine.high %v650_v8, %v654_v31  ;;  %v4587_v21 = vcombine.low %v650_v8, %v654_v31 }
 0x1f1   : > { %v4590_v16 = vcombine.high %v651_v9, %v655_v10  ;;  %v4589_v23 = vcombine.low %v651_v9, %v655_v10  ;;  %v706_v9 = vld [vmem:[%s5081_s8 + $0xd50] sm:$0xff] }
 0x1f2   : > { %3819 = vmatpush1.bf16.msra.mxu0 %v4531_v17  ;;  %3983 = vmatpush1.bf16.msra.mxu1 %v4533_v18  ;;  %v658_v17 = vld [vmem:[%s5081_s8 + $0xbd0] sm:$0xff] }
 0x1f3   : > { %3820 = vmatprep.subr.bf16.mxu0 %v4540_v19  ;;  %3984 = vmatprep.subr.bf16.mxu1 %v4542_v20  ;;  %v662_v18 = vld [vmem:[%s5081_s8 + $0xbf0] sm:$0xff]  ;;  %v659_v19 = vld [vmem:[%s5081_s8 + $0xbd8] sm:$0xff] }
 0x1f4   : > { %v663_v20 = vld [vmem:[%s5081_s8 + $0xbf8] sm:$0xff]  ;;  %v4596_v26 = vcombine.high %v658_v17, %v662_v18  ;;  %v4595_v45 = vcombine.low %v658_v17, %v662_v18  ;;  %v710_v10 = vld [vmem:[%s5081_s8 + $0xd70] sm:$0xff] }
 0x1f5   : > { %v4598_v27 = vcombine.high %v659_v19, %v663_v20  ;;  %v4597_v32 = vcombine.low %v659_v19, %v663_v20  ;;  %v4644_v18 = vcombine.high %v706_v9, %v710_v10  ;;  %v4941_v19 = vmov 1966171168  }
 0x1f6   : > { %3821 = vmatpush1.bf16.msra.mxu0 %v4539_v28  ;;  %3985 = vmatpush1.bf16.msra.mxu1 %v4541_v29  ;;  %v666_v28 = vld [vmem:[%s5081_s8 + $0xc10] sm:$0xff]  ;;  %v4071_v20 = vunpack.c.l.s4 %v4941_v19 }
 0x1f7   : > { %3822 = vmatprep.subr.bf16.mxu0 %v4548_v30  ;;  %3986 = vmatprep.subr.bf16.mxu1 %v4550_v0  ;;  %v670_v29 = vld [vmem:[%s5081_s8 + $0xc30] sm:$0xff]  ;;  %v667_v30 = vld [vmem:[%s5081_s8 + $0xc18] sm:$0xff] }
 0x1f8   : > { %v671_v0 = vld [vmem:[%s5081_s8 + $0xc38] sm:$0xff]  ;;  %v4604_v34 = vcombine.high %v666_v28, %v670_v29  ;;  %v4603_v42 = vcombine.low %v666_v28, %v670_v29 }
 0x1f9   : > { %v4606_v35 = vcombine.high %v667_v30, %v671_v0  ;;  %v4605_v55 = vcombine.low %v667_v30, %v671_v0  ;;  %v715_v28 = vld [vmem:[%s5081_s8 + $0xd98] sm:$0xff] }
 0x1fa   : > { %3823 = vmatpush1.bf16.msra.mxu0 %v4547_v36  ;;  %3987 = vmatpush1.bf16.msra.mxu1 %v4549_v37  ;;  %v674_v36 = vld [vmem:[%s5081_s8 + $0xc50] sm:$0xff]  ;;  %v719_v29 = vld [vmem:[%s5081_s8 + $0xdb8] sm:$0xff] }
 0x1fb   : > { %3824 = vmatprep.subr.bf16.mxu0 %v4556_v39  ;;  %3988 = vmatprep.subr.bf16.mxu1 %v4558_v40  ;;  %v678_v37 = vld [vmem:[%s5081_s8 + $0xc70] sm:$0xff]  ;;  %v675_v39 = vld [vmem:[%s5081_s8 + $0xc58] sm:$0xff] }
 0x1fc   : > { %v679_v40 = vld [vmem:[%s5081_s8 + $0xc78] sm:$0xff]  ;;  %v4612_v43 = vcombine.high %v674_v36, %v678_v37  ;;  %v4611_v51 = vcombine.low %v674_v36, %v678_v37  ;;  %v4072_v36 = vunpack.c.0.s8 %v4071_v20  ;;  %v4654_v37 = vcombine.high %v715_v28, %v719_v29 }
 0x1fd   : > { %v4614_v44 = vcombine.high %v675_v39, %v679_v40  ;;  %v4613_v52 = vcombine.low %v675_v39, %v679_v40  ;;  %v726_v39 = vld [vmem:[%s5081_s8 + $0xdf0] sm:$0xff] }
 0x1fe   : > { %3825 = vmatpush1.bf16.msra.mxu0 %v4555_v46  ;;  %3989 = vmatpush1.bf16.msra.mxu1 %v4557_v47  ;;  %v682_v46 = vld [vmem:[%s5081_s8 + $0xc90] sm:$0xff] }
 0x1ff   : > { %3826 = vmatprep.subr.bf16.mxu0 %v4564_v48  ;;  %3990 = vmatprep.subr.bf16.mxu1 %v4566_v49  ;;  %v686_v47 = vld [vmem:[%s5081_s8 + $0xcb0] sm:$0xff]  ;;  %v683_v48 = vld [vmem:[%s5081_s8 + $0xc98] sm:$0xff] }
 0x200   : > { %v687_v49 = vld [vmem:[%s5081_s8 + $0xcb8] sm:$0xff]  ;;  %v4620_v53 = vcombine.high %v682_v46, %v686_v47 }
 0x201   : > { %v4622_v54 = vcombine.high %v683_v48, %v687_v49  ;;  %v4621_v22 = vcombine.low %v683_v48, %v687_v49 }
 0x202   : > { %3827 = vmatpush1.bf16.msra.mxu0 %v4563_v57  ;;  %3991 = vmatpush1.bf16.msra.mxu1 %v4565_v58  ;;  %v690_v57 = vld [vmem:[%s5081_s8 + $0xcd0] sm:$0xff] }
 0x203   : > { %3828 = vmatprep.subr.bf16.mxu0 %v4572_v60  ;;  %3992 = vmatprep.subr.bf16.mxu1 %v4574_v3  ;;  %v694_v58 = vld [vmem:[%s5081_s8 + $0xcf0] sm:$0xff]  ;;  %v691_v60 = vld [vmem:[%s5081_s8 + $0xcd8] sm:$0xff] }
 0x204   : > { %v695_v3 = vld [vmem:[%s5081_s8 + $0xcf8] sm:$0xff]  ;;  %v4628_v61 = vcombine.high %v690_v57, %v694_v58 }
 0x205   : > { %v4630_v62 = vcombine.high %v691_v60, %v695_v3 }
 0x206   : > { %3829 = vmatpush1.bf16.msra.mxu0 %v4571_v2  ;;  %3993 = vmatpush1.bf16.msra.mxu1 %v4573_v5  ;;  %v702_v2 = vld [vmem:[%s5081_s8 + $0xd30] sm:$0xff]  ;;  %v699_v5 = vld [vmem:[%s5081_s8 + $0xd18] sm:$0xff] }
 0x207   : > { %3830 = vmatprep.subr.bf16.mxu0 %v4580_v6  ;;  %3994 = vmatprep.subr.bf16.mxu1 %v4582_v7  ;;  %v703_v6 = vld [vmem:[%s5081_s8 + $0xd38] sm:$0xff]  ;;  %v4627_v7 = vcombine.low %v690_v57, %v694_v58  ;;  %v4636_v8 = vcombine.high %v698_v1, %v702_v2 }
 0x208   : > { %v4638_v31 = vcombine.high %v699_v5, %v703_v6  ;;  %v4637_v17 = vcombine.low %v699_v5, %v703_v6  ;;  %v735_v5 = vld [vmem:[%s5081_s8 + $0xe38] sm:$0xff] }
 0x20a   : > { %3831 = vmatpush1.bf16.msra.mxu0 %v4579_v12  ;;  %3995 = vmatpush1.bf16.msra.mxu1 %v4581_v13  ;;  %v707_v12 = vld [vmem:[%s5081_s8 + $0xd58] sm:$0xff] }
 0x20b   : > { %3832 = vmatprep.subr.bf16.mxu0 %v4588_v15  ;;  %3996 = vmatprep.subr.bf16.mxu1 %v4590_v16  ;;  %v711_v13 = vld [vmem:[%s5081_s8 + $0xd78] sm:$0xff]  ;;  %v4635_v15 = vcombine.low %v698_v1, %v702_v2  ;;  %v5656_v16 = vld [vmem:[%s5087_s29] sm:$0xff] }
 0x20c   : > { %v3365_v30 = vrot.slane %v5656_v16, %v242_v25  ;;  %v3361_v0 = vrot.slane %v5656_v16, %v238_v50  ;;  %v722_v25 = vld [vmem:[%s5081_s8 + $0xdd0] sm:$0xff]  ;;  %v731_v2 = vld [vmem:[%s5081_s8 + $0xe18] sm:$0xff] }
 0x20d   : > { %v4660_v57 = vcombine.high %v722_v25, %v726_v39 }
 0x20e   : > { %3833 = vmatpush1.bf16.msra.mxu0 %v4587_v21  ;;  %3997 = vmatpush1.bf16.msra.mxu1 %v4589_v23  ;;  %v4646_v21 = vcombine.high %v707_v12, %v711_v13  ;;  %v714_v23 = vld [vmem:[%s5081_s8 + $0xd90] sm:$0xff] }
 0x20f   : > { %3834 = vmatprep.subr.bf16.mxu0 %v4596_v26  ;;  %3998 = vmatprep.subr.bf16.mxu1 %v4598_v27  ;;  %v718_v26 = vld [vmem:[%s5081_s8 + $0xdb0] sm:$0xff]  ;;  %v3357_v27 = vrot.slane %v5656_v16, %v234_v4  ;;  %v3369_v4 = vrot.slane %v5656_v16, %v246_v11 }
 0x210   : > { %v4651_v11 = vcombine.low %v714_v23, %v718_v26 }
 0x212   : > { %3835 = vmatpush1.bf16.msra.mxu0 %v4595_v45  ;;  %3999 = vmatpush1.bf16.msra.mxu1 %v4597_v32  ;;  %v4643_v45 = vcombine.low %v706_v9, %v710_v10  ;;  %v4645_v32 = vcombine.low %v707_v12, %v711_v13  ;;  %v4670_v10 = vcombine.high %v731_v2, %v735_v5  ;;  %v738_v12 = vld [vmem:[%s5081_s8 + $0xe50] sm:$0xff] }
 0x213   : > { %3845 = vmatprep.subr.bf16.mxu0 %v4604_v34  ;;  %4009 = vmatprep.subr.bf16.mxu1 %v4606_v35  ;;  %v4652_v34 = vcombine.high %v714_v23, %v718_v26  ;;  %v742_v13 = vld [vmem:[%s5081_s8 + $0xe70] sm:$0xff] }
 0x214   : > { %v4676_v23 = vcombine.high %v738_v12, %v742_v13 }
 0x215   : > { %3837 = vmatmul.mubr.bf16.vlgmr.msra.gmra.mrb[4].mxu0 %v5351_v14  ;;  %4001 = vmatmul.mubr.bf16.vlgmr.msra.gmra.mrb[4].mxu1 %v5351_v14  ;;  %v4619_v14 = vcombine.low %v682_v46, %v686_v47 }
 0x216   : > { %3846 = vmatpush1.bf16.msra.mxu0 %v4603_v42  ;;  %4010 = vmatpush1.bf16.msra.mxu1 %v4605_v55  ;;  %v723_v55 = vld [vmem:[%s5081_s8 + $0xdd8] sm:$0xff] }
 0x217   : > { %3847 = vmatprep.subr.bf16.mxu0 %v4612_v43  ;;  %4011 = vmatprep.subr.bf16.mxu1 %v4614_v44  ;;  %v727_v43 = vld [vmem:[%s5081_s8 + $0xdf8] sm:$0xff] }
 0x218   : > { %3877 = vmatprep.mubr.bf16.mxu0 %v5357_v24  ;;  %4041 = vmatprep.mubr.bf16.mxu1 %v5357_v24  ;;  %v4629_v24 = vcombine.low %v691_v60, %v695_v3  ;;  %v5679_v3 = vsub.s32 %v4072_v36, %v5115_v41  ;;  %v755_v36 = vld [vmem:[%s5081_s8 + $0xed8] sm:$0xff] }
 0x21a   : > { %3848 = vmatpush1.bf16.msra.mxu0 %v4611_v51  ;;  %4012 = vmatpush1.bf16.msra.mxu1 %v4613_v52 }
 0x21b   : > { %3849 = vmatprep.subr.bf16.mxu0 %v4620_v53  ;;  %4013 = vmatprep.subr.bf16.mxu1 %v4622_v54  ;;  %v4653_v54 = vcombine.low %v715_v28, %v719_v29  ;;  %v750_v28 = vld [vmem:[%s5081_s8 + $0xeb0] sm:$0xff]  ;;  %v747_v29 = vld [vmem:[%s5081_s8 + $0xe98] sm:$0xff] }
 0x21e   : > { %3850 = vmatpush1.bf16.msra.mxu0 %v4619_v14  ;;  %4014 = vmatpush1.bf16.msra.mxu1 %v4621_v22  ;;  %v4662_v22 = vcombine.high %v723_v55, %v727_v43 }
 0x21f   : > { %3851 = vmatprep.subr.bf16.mxu0 %v4628_v61  ;;  %4015 = vmatprep.subr.bf16.mxu1 %v4630_v62  ;;  %v730_v61 = vld [vmem:[%s5081_s8 + $0xe10] sm:$0xff] }
 0x220   : > { %v734_v62 = vld [vmem:[%s5081_s8 + $0xe30] sm:$0xff] }
 0x221   : > { %v4667_v19 = vcombine.low %v730_v61, %v734_v62 }
 0x222   : > { %3852 = vmatpush1.bf16.msra.mxu0 %v4627_v7  ;;  %4016 = vmatpush1.bf16.msra.mxu1 %v4629_v24  ;;  %v4659_v7 = vcombine.low %v722_v25, %v726_v39 }
 0x223   : > { %3853 = vmatprep.subr.bf16.mxu0 %v4636_v8  ;;  %4017 = vmatprep.subr.bf16.mxu1 %v4638_v31  ;;  %v4661_v8 = vcombine.low %v723_v55, %v727_v43  ;;  %v4668_v31 = vcombine.high %v730_v61, %v734_v62  ;;  %v766_v55 = vld [vmem:[%s5081_s8 + $0xf30] sm:$0xff]  ;;  %v763_v43 = vld [vmem:[%s5081_s8 + $0xf18] sm:$0xff] }
 0x224   : > { %v779_v61 = vld [vmem:[%s5081_s8 + $0xf98] sm:$0xff] }
 0x225   : > { %v783_v62 = vld [vmem:[%s5081_s8 + $0xfb8] sm:$0xff] }
 0x226   : > { %3854 = vmatpush1.bf16.msra.mxu0 %v4635_v15  ;;  %4018 = vmatpush1.bf16.msra.mxu1 %v4637_v17  ;;  %v739_v17 = vld [vmem:[%s5081_s8 + $0xe58] sm:$0xff] }
 0x227   : > { %3855 = vmatprep.subr.bf16.mxu0 %v4644_v18  ;;  %4019 = vmatprep.subr.bf16.mxu1 %v4646_v21  ;;  %v743_v18 = vld [vmem:[%s5081_s8 + $0xe78] sm:$0xff]  ;;  %v4669_v21 = vcombine.low %v731_v2, %v735_v5 }
 0x228   : > { %v3551_v35 = vpop.f32.mrb[0].mxu0  ;;  %v3715_v42 = vpop.f32.mrb[0].mxu1  ;;  %v4678_v26 = vcombine.high %v739_v17, %v743_v18 }
 0x229   : > { %v4731_v40 = vadd.f32 %v3551_v35, %v3357_v27  ;;  %v3553_v50 = vpop.f32.mrb[1].mxu0  ;;  %v4733_v44 = vadd.f32 %v3715_v42, %v3365_v30  ;;  %v3717_v47 = vpop.f32.mrb[1].mxu1  ;;  %v746_v27 = vld [vmem:[%s5081_s8 + $0xe90] sm:$0xff]  ;;  %v751_v30 = vld [vmem:[%s5081_s8 + $0xeb8] sm:$0xff] }
 0x22a   : > { %v4732_v46 = vadd.f32 %v3553_v50, %v3361_v0  ;;  %v3555_v48 = vpop.f32.mrb[2].mxu0  ;;  %3856 = vmatpush1.bf16.msra.mxu0 %v4643_v45  ;;  %v4734_v51 = vadd.f32 %v3717_v47, %v3369_v4  ;;  %v3719_v52 = vpop.f32.mrb[2].mxu1  ;;  %4020 = vmatpush1.bf16.msra.mxu1 %v4645_v32  ;;  %v4675_v0 = vcombine.low %v738_v12, %v742_v13  ;;  %v758_v35 = vld [vmem:[%s5081_s8 + $0xef0] sm:$0xff] }
 0x22b   : > { %v4050_v49 = vmax.f32 %v4731_v40, 0.0  ;;  %v3556_v53 = vpop.f32.mrb[3].mxu0  ;;  %3857 = vmatprep.subr.bf16.mxu0 %v4652_v34  ;;  %v4052_v58 = vmax.f32 %v4733_v44, 0.0  ;;  %v3720_v14 = vpop.f32.mrb[3].mxu1  ;;  %4021 = vmatprep.subr.bf16.mxu1 %v4654_v37  ;;  %v4677_v45 = vcombine.low %v739_v17, %v743_v18  ;;  %v4684_v4 = vcombine.high %v746_v27, %v750_v28  ;;  %v754_v34 = vld [vmem:[%s5081_s8 + $0xed0] sm:$0xff]  ;;  %v759_v37 = vld [vmem:[%s5081_s8 + $0xef8] sm:$0xff] }
 0x22c   : > { %v4051_v60 = vmax.f32 %v4732_v46, 0.0  ;;  %v4053_v1 = vmax.f32 %v4734_v51, 0.0  ;;  %v4686_v32 = vcombine.high %v747_v29, %v751_v30  ;;  %v4683_v25 = vcombine.low %v746_v27, %v750_v28  ;;  %v762_v50 = vld [vmem:[%s5081_s8 + $0xf10] sm:$0xff]  ;;  %v767_v44 = vld [vmem:[%s5081_s8 + $0xf38] sm:$0xff] }
 0x22d   : > { %v4685_v39 = vcombine.low %v747_v29, %v751_v30  ;;  %v4692_v40 = vcombine.high %v754_v34, %v758_v35  ;;  %v4694_v42 = vcombine.high %v755_v36, %v759_v37  ;;  %v4691_v46 = vcombine.low %v754_v34, %v758_v35  ;;  %v774_v51 = vld [vmem:[%s5081_s8 + $0xf70] sm:$0xff]  ;;  %v771_v52 = vld [vmem:[%s5081_s8 + $0xf58] sm:$0xff] }
 0x22e   : > { %v4066_v6 = vcombine.low %v4050_v49, %v4051_v60  ;;  %3858 = vmatpush1.bf16.msra.mxu0 %v4651_v11  ;;  %v4067_v24 = vcombine.low %v4052_v58, %v4053_v1  ;;  %4022 = vmatpush1.bf16.msra.mxu1 %v4653_v54  ;;  %v4693_v47 = vcombine.low %v755_v36, %v759_v37  ;;  %v770_v49 = vld [vmem:[%s5081_s8 + $0xf50] sm:$0xff]  ;;  %v775_v53 = vld [vmem:[%s5081_s8 + $0xf78] sm:$0xff] }
 0x22f   : > { %3859 = vmatprep.subr.bf16.mxu0 %v4660_v57  ;;  %4023 = vmatprep.subr.bf16.mxu1 %v4662_v22  ;;  %v4700_v48 = vcombine.high %v762_v50, %v766_v55  ;;  %v4702_v11 = vcombine.high %v763_v43, %v767_v44  ;;  %v4699_v54 = vcombine.low %v762_v50, %v766_v55  ;;  %v778_v14 = vld [vmem:[%s5081_s8 + $0xf90] sm:$0xff] }
 0x230   : > { %v4076_v9 = vrot.slane %v4066_v6, %v5679_v3  ;;  %v4083_v15 = vrot.slane %v4067_v24, %v5679_v3  ;;  %v4701_v57 = vcombine.low %v763_v43, %v767_v44  ;;  %v4708_v58 = vcombine.high %v770_v49, %v774_v51  ;;  %v782_v22 = vld [vmem:[%s5081_s8 + $0xfb0] sm:$0xff] }
 0x231   : > { %v4710_v60 = vcombine.high %v771_v52, %v775_v53  ;;  %v4707_v1 = vcombine.low %v770_v49, %v774_v51  ;;  %v4709_v2 = vcombine.low %v771_v52, %v775_v53  ;;  %v4716_v5 = vcombine.high %v778_v14, %v782_v22  ;;  %v790_v24 = vld [vmem:[%s5081_s8 + $0xff0] sm:$0xff] }
 0x232   : > { %3860 = vmatpush1.bf16.msra.mxu0 %v4659_v7  ;;  %v5691_v20 = vcombine.low %v4076_v9, %v4083_v15  ;;  %4024 = vmatpush1.bf16.msra.mxu1 %v4661_v8  ;;  %v4718_v6 = vcombine.high %v779_v61, %v783_v62  ;;  %v786_v7 = vld [vmem:[%s5081_s8 + $0xfd0] sm:$0xff]  ;;  %v787_v8 = vld [vmem:[%s5081_s8 + $0xfd8] sm:$0xff]  ;;  %v4715_v9 = vcombine.low %v778_v14, %v782_v22 }
 0x233   : > { %3861 = vmatprep.subr.bf16.mxu0 %v4668_v31  ;;  %4025 = vmatprep.subr.bf16.mxu1 %v4670_v10  ;;  %v791_v31 = vld [vmem:[%s5081_s8 + $0xff8] sm:$0xff]  ;;  %v4717_v10 = vcombine.low %v779_v61, %v783_v62  ;;  %v4724_v12 = vcombine.high %v786_v7, %v790_v24  ;;  %v4723_v15 = vcombine.low %v786_v7, %v790_v24 }
 0x234   : > { %v4726_v13 = vcombine.high %v787_v8, %v791_v31  ;;  %v4725_v17 = vcombine.low %v787_v8, %v791_v31  ;;  %v3373_v18 = vrot.slane %v5656_v16, %v250_v56 }
 0x236   : > { %3862 = vmatpush1.bf16.msra.mxu0 %v4667_v19  ;;  %4026 = vmatpush1.bf16.msra.mxu1 %v4669_v21  ;;  %v3381_v19 = vrot.slane %v5656_v16, %v258_v38  ;;  %v3377_v21 = vrot.slane %v5656_v16, %v254_v33 }
 0x237   : > { %3863 = vmatprep.subr.bf16.mxu0 %v4676_v23  ;;  %4027 = vmatprep.subr.bf16.mxu1 %v4678_v26  ;;  %v3385_v23 = vrot.slane %v5656_v16, %v262_v63 }
 0x23a   : > { %3864 = vmatpush1.bf16.msra.mxu0 %v4675_v0  ;;  %4028 = vmatpush1.bf16.msra.mxu1 %v4677_v45 }
 0x23b   : > { %3865 = vmatprep.subr.bf16.mxu0 %v4684_v4  ;;  %4029 = vmatprep.subr.bf16.mxu1 %v4686_v32 }
 0x23e   : > { %3866 = vmatpush1.bf16.msra.mxu0 %v4683_v25  ;;  %4030 = vmatpush1.bf16.msra.mxu1 %v4685_v39  ;;  %v4106_v39 = vrot.slane %v5691_v20, %v5679_v3 }
 0x23f   : > { %3867 = vmatprep.subr.bf16.mxu0 %v4692_v40  ;;  %4031 = vmatprep.subr.bf16.mxu1 %v4694_v42 }
 0x242   : > { %3868 = vmatpush1.bf16.msra.mxu0 %v4691_v46  ;;  %4032 = vmatpush1.bf16.msra.mxu1 %v4693_v47 }
 0x243   : > { %3869 = vmatprep.subr.bf16.mxu0 %v4700_v48  ;;  %4033 = vmatprep.subr.bf16.mxu1 %v4702_v11 }
 0x246   : > { %3870 = vmatpush1.bf16.msra.mxu0 %v4699_v54  ;;  %4034 = vmatpush1.bf16.msra.mxu1 %v4701_v57 }
 0x247   : > { %3871 = vmatprep.subr.bf16.mxu0 %v4708_v58  ;;  %4035 = vmatprep.subr.bf16.mxu1 %v4710_v60 }
 0x24a   : > { %3872 = vmatpush1.bf16.msra.mxu0 %v4707_v1  ;;  %4036 = vmatpush1.bf16.msra.mxu1 %v4709_v2 }
 0x24b   : > { %3873 = vmatprep.subr.bf16.mxu0 %v4716_v5  ;;  %4037 = vmatprep.subr.bf16.mxu1 %v4718_v6 }
 0x24e   : > { %3874 = vmatpush1.bf16.msra.mxu0 %v4715_v9  ;;  %4038 = vmatpush1.bf16.msra.mxu1 %v4717_v10 }
 0x24f   : > { %3875 = vmatprep.subr.bf16.mxu0 %v4724_v12  ;;  %4039 = vmatprep.subr.bf16.mxu1 %v4726_v13 }
 0x252   : > { %3876 = vmatpush1.bf16.msra.mxu0 %v4723_v15  ;;  %4040 = vmatpush1.bf16.msra.mxu1 %v4725_v17 }
 0x255   : > { %3878 = vmatmul.mubr.bf16.vlgmr.msra.gmra.mrb[4].mxu0 %v5427_v59  ;;  %4042 = vmatmul.mubr.bf16.vlgmr.msra.gmra.mrb[4].mxu1 %v5427_v59 }
 0x328   : > { %v3879_v26 = vpop.f32.mrb[4].mxu0  ;;  %v4043_v28 = vpop.f32.mrb[4].mxu1 }
 0x329   : > { %v4735_v27 = vadd.f32 %v3879_v26, %v3373_v18  ;;  %v3881_v59 = vpop.f32.mrb[5].mxu0  ;;  %v4737_v29 = vadd.f32 %v4043_v28, %v3381_v19  ;;  %v4045_v0 = vpop.f32.mrb[5].mxu1 }
 0x32a   : > { %v4736_v30 = vadd.f32 %v3881_v59, %v3377_v21  ;;  %v3883_v56 = vpop.f32.mrb[6].mxu0  ;;  %v4738_v38 = vadd.f32 %v4045_v0, %v3385_v23  ;;  %v4047_v4 = vpop.f32.mrb[6].mxu1 }
 0x32b   : > { %v4054_v45 = vmax.f32 %v4735_v27, 0.0  ;;  %v3884_v32 = vpop.f32.mrb[7].mxu0  ;;  %v4056_v34 = vmax.f32 %v4737_v29, 0.0  ;;  %v4048_v35 = vpop.f32.mrb[7].mxu1 }
 0x32c   : > { %v4055_v33 = vmax.f32 %v4736_v30, 0.0  ;;  %v4057_v41 = vmax.f32 %v4738_v38, 0.0 }
 0x32e   : > { %v4068_v36 = vcombine.low %v4054_v45, %v4055_v33  ;;  %v4069_v63 = vcombine.low %v4056_v34, %v4057_v41 }
 0x330   : > { %v4090_v16 = vrot.slane %v4068_v36, %v5679_v3  ;;  %v4097_v37 = vrot.slane %v4069_v63, %v5679_v3 }
 0x332   : > { %v4099_v25 = vcombine.low %v4090_v16, %v4097_v37 }
 0x334   : > { %v4113_v40 = vrot.slane %v4099_v25, %v5679_v3 }
 0x336   : > { %v4114_v42 = vcombine.low %v4106_v39, %v4113_v40 }
 0x338   : > { %4116 = vst [vmem:[%s228_s4] sm:$0xff] %v4114_v42 }
 0x339 PF: > { %p16_p8 = scmp.ge.s32.totalorder %s4982_s17, 4   ;;  %s5764_s12 = smov %s4926_s13 }
 0x33a   : > { %s5765_s13 = smov %s4930_s14  ;;  %s5766_s14 = smov %s4992_s20 }
 0x33b   : > { %s5767_s15 = smov %s4982_s17  ;;  %18 = sbr.rel (!%p16_p8) target bundleno = 5 (0x5), region = 85 }
 0x342   :  { %4137 = vsyncpa [#allocation3], 1 }
 0x343   :  { %4139 = vsyncpa [#allocation3 + $0x1], 1 }
 0x344   :  { %4140 = vsyncpa [#allocation5], 1 }
 0x345   :  { %4142 = vsyncpa [#allocation5 + $0x1], 1 }

// kernel: net_forward.11
= control target key start
LH: loop header
LB: loop body
LE: loop exit
PB: predicated region body
PF: predicated region fallthrough
CT: control target
= control target key end

     0   :  { %s11986_s0 = inlined_call_operand.vmem [shape: f32[1,2048], index: 0, kind: input, shape index: {}]   ;;  %s11987_s1 = inlined_call_operand.hbm [shape: bf16[2048,4096], index: 1, kind: input, shape index: {}]   ;;  %s11988_s2 = inlined_call_operand.hbm [shape: f32[1,4096], index: 2, kind: input, shape index: {}]   ;;  %s11989_s3 = inlined_call_operand.hbm [shape: bf16[4096,128], index: 3, kind: input, shape index: {}]   ;;  %s11990_s4 = inlined_call_operand.hbm [shape: f32[1,128], index: 4, kind: input, shape index: {}]   ;;  %s11991_s5 = inlined_call_operand.hbm [shape: f32[1,128], index: 5, kind: output, shape index: {}]  }
   0x1   :  { %11999 = sst [smem:[#allocation16_spill]] %s11988_s2 }
   0x2   :  { %10 = vsyncpa [#allocation4], 0 }
   0x3   :  { %12 = vsyncpa [#allocation4 + $0x1], 0 }
   0x4   :  { %13 = vsyncpa [#allocation7], 0 }
   0x5   :  { %15 = vsyncpa [#allocation7 + $0x1], 0 }
   0x6   :  { %16 = vsyncpa [#allocation10], 0 }
   0x7   :  { %17 = vsyncpa [#allocation5], 0  ;;  %s10441_s18 = smov 0   ;;  %s10443_s19 = smov 0  }
   0x8   :  { %s10445_s20 = smov 0   ;;  %s10447_s21 = smov 0  }
   0x9 LB: > { %s10462_s22 = sadd.s32 1, %s10398_s21   ;;  %s51_s23 = sadd.s32 1, %s10394_s20  ;;  %s10398_s21 = sphi %s10447_s21, %s12017_s21   ;;  %s10394_s20 = sphi %s10445_s20, %s12016_s20   ;;  %s10390_s19 = sphi %s10443_s19, %s12015_s19   ;;  %s10386_s18 = sphi %s10441_s18, %s12014_s18  }
   0xa   : > { %s48_s24 = ssub.s32 %s10398_s21, %s10462_s22  ;;  %p58_p0 = scmp.ne.s32.totalorder %s10394_s20, %s10390_s19 }
   0xb   : > { %p49_p1 = scmp.eq.s32.totalorder %s48_s24, 0  ;;  %p59_p2 = scmp.eq.s32.totalorder %s10398_s21, 0 }
   0xc   : > { %p10094_p3 = scmp.lt.s32.totalorder %s10398_s21, 4  ;;  %s10475_s26 = sand.u32 1, %s10394_s20  }
   0xd   : > { %s10472_s25 = scalar_select %p49_p1, %s10394_s20, %s51_s23  }
   0xe   : > { %p60_p4 = por %p59_p2, %p58_p0  ;;  %s8745_s27 = sshll.u32 %s10475_s26, 13 }
   0xf   : > { %s217_s28 = sand.u32 1, %s10398_s21   ;;  %s8748_s30 = sshll.u32 %s10475_s26, 3 }
  0x10   : > { %p10479_p5 = pnand %p10094_p3, %p60_p4  ;;  %s9855_s6 = sshll.u32 %s10398_s21, 7 }
  0x11   : > { %s12001_s2 = sld [smem:[#allocation16_spill]]  ;;  %s221_s10 = scalar_lea.vmem [#allocation6], %s8748_s30 }
  0x12   : > { %s12000_s29 = scalar_select %p10479_p5, 1, 0 }
  0x13   : > { %s229_s11 = sshll.u32 %s221_s10, 4  ;;  %s10493_s13 = scalar_lea.sflag [#allocation7], %s217_s28  ;;  %s10490_s11 = int_to_ptr.vmem [resolvable:$true] %s229_s11 }
  0x14   : > { %p10499_p7 = pneg %p10479_p5 }
  0x16   : > { %s12002_s15 = scalar_select %p10499_p7, 1, 0 }
  0x17   : > { %s10488_s9 = scalar_lea.hbm %s12001_s2, %s9855_s6  ;;  %s10213_s23 = scalar_lea.hbm %s12001_s2, 512 }
  0x18   : > { %s10208_s14 = scalar_lea.hbm %s10488_s9, 128  ;;  %p10214_p10 = scmp.lt.u32.totalorder %s10488_s9, %s12001_s2 }
  0x19   : > { %p10209_p6 = scmp.ne.s32.totalorder %s10488_s9, %s10208_s14  ;;  %p10215_p11 = scmp.lt.u32.totalorder %s10213_s23, %s10208_s14 }
  0x1a   : > { %p10217_p13 = scmp.lt.u32.totalorder %s10208_s14, %s10488_s9 }
  0x1b   : > { %p10211_p8 = pnand %p10499_p7, %p10209_p6  ;;  %p10216_p12 = por %p10215_p11, %p10214_p10 }
  0x1d   : > { %p10212_p9 = pneg %p10211_p8  ;;  %p10218_p0 = por %p10217_p13, %p10216_p12 }
  0x1f   : > { %p10219_p1 = pnand %p10218_p0, %p10212_p9 }
  0x21   : > { %10222 = shalt.err (!%p10219_p1)
}
  0x22   : > { %s10223_s28 = scalar_lea.vmem %s10490_s11, 128  ;;  %s10400_s6 = smov [#allocation6]  }
  0x23   : > { %p10224_p2 = scmp.ne.s32.totalorder %s10490_s11, %s10223_s28  ;;  %s10228_s7 = sshll.u32 %s10400_s6, 4  ;;  %s10229_s7 = int_to_ptr.vmem [resolvable:$false] %s10228_s7 }
  0x24   : > { %s10230_s8 = scalar_lea.vmem %s10229_s7, 256  ;;  %p10231_p6 = scmp.lt.s32.totalorder %s10490_s11, %s10229_s7 }
  0x25   : > { %p10226_p3 = pnand %p10224_p2, %p10499_p7  ;;  %p10232_p8 = scmp.lt.s32.totalorder %s10230_s8, %s10223_s28 }
  0x27   : > { %p10227_p4 = pneg %p10226_p3  ;;  %p10233_p10 = por %p10232_p8, %p10231_p6 }
  0x29   : > { %p10234_p11 = pnand %p10233_p10, %p10227_p4 }
  0x2b   : > { %10237 = shalt.err (!%p10234_p11)
}
  0x2c   : > { %10089 = dma.hbm_to_vmem [thread:$0]  (!%p10479_p5), %s10488_s9, 128, %s10490_s11, %s10493_s13  }
  0x2d   : > { %s10524_s10 = sadd.s32 4294967295, %s10398_s21   ;;  %p64_p12 = scmp.ne.s32.totalorder %s10390_s19, %s10386_s18 }
  0x2e   : > { %p11992_p9 = scmp.eq.s32.totalorder %s10524_s10, 0  ;;  %p8742_p13 = scmp.ge.s32.totalorder %s10398_s21, 1 }
  0x2f   : > { %p169_p0 = scmp.lt.s32.totalorder %s10398_s21, 5  ;;  %s10401_s9 = smov [#allocation9]  }
  0x30   : > { %p10534_p2 = por %p11992_p9, %p64_p12  ;;  %s185_s11 = sshll.u32 %s10401_s9, 4  ;;  %s186_s11 = int_to_ptr.vmem [resolvable:$true] %s185_s11 }
  0x31   : > { %p10538_p3 = pnand %p8742_p13, %p169_p0  ;;  %s9854_s17 = sshll.u32 %s10398_s21, 9 }
  0x32   : > { %s12003_s14 = scalar_select %p10534_p2, 1, 0 }
  0x33   : > { %s12004_s16 = scalar_select %p10538_p3, 1, 0 }
  0x34   : > { %p10079_p4 = pneg %p10538_p3  ;;  %s200_s18 = scalar_lea.vmem [#allocation3], %s8745_s27 }
  0x35   : > { %s207_s23 = sshll.u32 %s200_s18, 4  ;;  %s10556_s6 = scalar_lea.hbm %s11987_s1, %s9854_s17  ;;  %s10558_s23 = int_to_ptr.vmem [resolvable:$true] %s207_s23 }
  0x36   : > { %p10549_p6 = pnand %p10079_p4, %p11992_p9  ;;  %s10238_s9 = scalar_lea.hbm %s11990_s4, 16 }
  0x37   : > { %p10239_p8 = scmp.ne.s32.totalorder %s11990_s4, %s10238_s9  ;;  %p10245_p13 = scmp.lt.u32.totalorder %s10238_s9, %s11990_s4 }
  0x38   : > { %p10240_p10 = pneg %p10549_p6 }
  0x3a   : > { %p10241_p11 = pnand %p10240_p10, %p10239_p8 }
  0x3c   : > { %p10242_p12 = pneg %p10241_p11 }
  0x3e   : > { %p10247_p0 = pnand %p10245_p13, %p10242_p12 }
  0x40   : > { %10250 = shalt.err (!%p10247_p0)
}
  0x41   : > { %s10251_s17 = scalar_lea.vmem %s186_s11, 16  ;;  %s10258_s30 = scalar_lea.vmem %s186_s11, 32 }
  0x42   : > { %p10252_p4 = scmp.ne.s32.totalorder %s186_s11, %s10251_s17  ;;  %p10259_p2 = scmp.lt.s32.totalorder %s186_s11, %s186_s11 }
  0x43   : > { %p10260_p3 = scmp.lt.s32.totalorder %s10258_s30, %s10251_s17 }
  0x44   : > { %p10254_p1 = pnand %p10252_p4, %p10240_p10 }
  0x45   : > { %p10261_p5 = por %p10260_p3, %p10259_p2 }
  0x46   : > { %p10255_p9 = pneg %p10254_p1 }
  0x48   : > { %p10262_p7 = pnand %p10261_p5, %p10255_p9 }
  0x4a   : > { %10265 = shalt.err (!%p10262_p7)
}
  0x4b   : > { %10082 = dma.hbm_to_vmem [thread:$0]  (!%p10549_p6), %s11990_s4, 16, %s186_s11, [#allocation10]  }
  0x4c   : > { %s197_s2 = scalar_lea.sflag [#allocation4], %s10475_s26  ;;  %s10266_s7 = scalar_lea.hbm %s10556_s6, 131072 }
  0x4d   : > { %p10267_p1 = scmp.ne.s32.totalorder %s10556_s6, %s10266_s7  ;;  %p12006_p8 = scmp.ne.s32.totalorder %s12002_s15, 0 }
  0x4e   : > { %s10271_s24 = scalar_lea.hbm %s11987_s1, 524288  ;;  %p10272_p5 = scmp.lt.u32.totalorder %s10556_s6, %s11987_s1 }
  0x4f   : > { %p10269_p10 = pnand %p10267_p1, %p12006_p8  ;;  %p10273_p7 = scmp.lt.u32.totalorder %s10271_s24, %s10266_s7 }
  0x50   : > { %p10275_p3 = scmp.lt.u32.totalorder %s10266_s7, %s10556_s6 }
  0x51   : > { %p10270_p2 = pneg %p10269_p10  ;;  %p10274_p9 = por %p10273_p7, %p10272_p5 }
  0x53   : > { %p10276_p11 = por %p10275_p3, %p10274_p9 }
  0x55   : > { %p10277_p12 = pnand %p10276_p11, %p10270_p2 }
  0x57   : > { %10280 = shalt.err (!%p10277_p12)
}
  0x58   : > { %s10281_s11 = scalar_lea.vmem %s10558_s23, 131072  ;;  %s10402_s17 = smov [#allocation3]  }
  0x59   : > { %p10282_p6 = scmp.ne.s32.totalorder %s10558_s23, %s10281_s11  ;;  %s10286_s30 = sshll.u32 %s10402_s17, 4  ;;  %s10287_s30 = int_to_ptr.vmem [resolvable:$false] %s10286_s30 }
  0x5a   : > { %s10288_s12 = scalar_lea.vmem %s10287_s30, 262144  ;;  %p10289_p4 = scmp.lt.s32.totalorder %s10558_s23, %s10287_s30 }
  0x5b   : > { %p10284_p13 = pnand %p10282_p6, %p12006_p8  ;;  %p10290_p1 = scmp.lt.s32.totalorder %s10288_s12, %s10281_s11 }
  0x5d   : > { %p10285_p0 = pneg %p10284_p13  ;;  %p10291_p10 = por %p10290_p1, %p10289_p4 }
  0x5f   : > { %p10292_p5 = pnand %p10291_p10, %p10285_p0 }
  0x61   : > { %10295 = shalt.err (!%p10292_p5)
}
  0x62   : > { %s10403_s28 = smov 2048   ;;  %s10404_s7 = smov 512  }
  0x63   : > { %s10405_s8 = smov 32   ;;  %p12007_p2 = scmp.ne.s32.totalorder %s12000_s29, 0 }
  0x64   : > { %s9856_s9 = sshll.u32 %s10398_s21, 13  ;;  %s12008_s24 = sshll.u32 %s10475_s26, 9 }
  0x65   : > { %10086 = dma.hbm_to_vmem [thread:$0]  (!%p12007_p2), %s10556_s6, 131072, %s10558_s23, %s197_s2, %s10403_s28, %s10404_s7, %s10405_s8  }
  0x66   : > { %s240_s27 = scalar_lea.vmem [#allocation8], %s12008_s24  ;;  %s10606_s30 = scalar_lea.hbm %s11989_s3, %s9856_s9 }
  0x67   : > { %s247_s18 = sshll.u32 %s240_s27, 4  ;;  %s10296_s12 = scalar_lea.hbm %s10606_s30, 8192  ;;  %s10608_s18 = int_to_ptr.vmem [resolvable:$true] %s247_s18 }
  0x68   : > { %p10297_p7 = scmp.ne.s32.totalorder %s10606_s30, %s10296_s12  ;;  %s10301_s23 = scalar_lea.hbm %s11989_s3, 32768 }
  0x69   : > { %p10302_p11 = scmp.lt.u32.totalorder %s10606_s30, %s11989_s3  ;;  %p10303_p12 = scmp.lt.u32.totalorder %s10301_s23, %s10296_s12 }
  0x6a   : > { %p10299_p9 = pnand %p10297_p7, %p12006_p8  ;;  %p10305_p13 = scmp.lt.u32.totalorder %s10296_s12, %s10606_s30 }
  0x6b   : > { %p10304_p6 = por %p10303_p12, %p10302_p11 }
  0x6c   : > { %p10300_p3 = pneg %p10299_p9 }
  0x6d   : > { %p10306_p0 = por %p10305_p13, %p10304_p6 }
  0x6f   : > { %p10307_p4 = pnand %p10306_p0, %p10300_p3 }
  0x71   : > { %10310 = shalt.err (!%p10307_p4)
}
  0x72   : > { %s10311_s28 = scalar_lea.vmem %s10608_s18, 8192  ;;  %s10406_s7 = smov [#allocation8]  }
  0x73   : > { %p10312_p1 = scmp.ne.s32.totalorder %s10608_s18, %s10311_s28  ;;  %s10316_s8 = sshll.u32 %s10406_s7, 4  ;;  %s10317_s8 = int_to_ptr.vmem [resolvable:$false] %s10316_s8 }
  0x74   : > { %s10318_s9 = scalar_lea.vmem %s10317_s8, 16384  ;;  %p10319_p7 = scmp.lt.s32.totalorder %s10608_s18, %s10317_s8 }
  0x75   : > { %p10314_p10 = pnand %p10312_p1, %p12006_p8  ;;  %p10320_p9 = scmp.lt.s32.totalorder %s10318_s9, %s10311_s28 }
  0x77   : > { %p10315_p5 = pneg %p10314_p10  ;;  %p10321_p11 = por %p10320_p9, %p10319_p7 }
  0x79   : > { %p10322_p12 = pnand %p10321_p11, %p10315_p5 }
  0x7b   : > { %10325 = shalt.err (!%p10322_p12)
}
  0x7c   : > { %s10407_s24 = smov 64   ;;  %s10408_s27 = smov 4  }
  0x7d   : > { %10092 = dma.hbm_to_vmem [thread:$0]  (!%p12007_p2), %s10606_s30, 8192, %s10608_s18, %s10493_s13, %s10407_s24, %s10407_s24, %s10408_s27  }
  0x7e   : > { %p12009_p8 = scmp.ne.s32.totalorder %s12004_s16, 0 }
  0x7f   : > { %s261_s15 = sand.u32 (!%p12009_p8), 1, %s10390_s19   ;;  %p12010_p3 = scmp.ne.s32.totalorder (!%p12009_p8), %s12003_s14, 0 }
  0x80   : > { %259 = sbr.rel (%p12009_p8) target bundleno = 1682 (0x692), region = 40  ;;  %s8755_s11 = sshll.u32 (!%p12009_p8), %s261_s15, 13 }
  0x81   : > { %s262_s17 = scalar_lea.sflag (!%p12009_p8), [#allocation4], %s261_s15  ;;  %s10635_s12 = scalar_lea.vmem (!%p12009_p8), [#allocation3], %s8755_s11 }
  0x87   : > { %10369 = dma.done.wait (%p12010_p3), %s262_s17, 131072  }
  0x88   : > { %10371 = vsyncadd (%p12010_p3), %s262_s17, 4294836224  ;;  %s270_s21 = sand.u32 1, %s10524_s10   ;;  %s8756_s29 = sshll.u32 %s261_s15, 3 }
  0x89   : > { %s271_s13 = scalar_lea.sflag [#allocation7], %s270_s21  ;;  %s10642_s18 = scalar_lea.vmem [#allocation6], %s8756_s29 }
  0x8a   : > { %10373 = dma.done.wait (%p12010_p3), %s271_s13, 8320  }
  0x8b   : > { %10375 = vsyncadd (%p12010_p3), %s271_s13, 4294958976  ;;  %s8757_s16 = sshll.u32 %s261_s15, 9  ;;  %p12011_p2 = scmp.eq.s32.totalorder %s10524_s10, 0 }
  0x8c   : > { %s10648_s30 = scalar_lea.vmem [#allocation8], %s8757_s16 }
  0x8d   : > { %10377 = dma.done.wait (%p12011_p2), [#allocation10], 16   ;;  %p12012_p6 = pmov %p12011_p2 }
  0x8e   : > { %p12013_p13 = scmp.ne.s32.totalorder %s10524_s10, 0 }
  0x8f   : > { %10379 = vsyncadd (%p12012_p6), [#allocation10], 4294967280  ;;  %v10409_v0 = vmov (!%p12013_p13), 0.0  }
  0x90   : > { %326 = sbr.rel (%p12013_p13) target bundleno = 151 (0x97), region = 60  ;;  %327 = vst [vmem:[#allocation2] sm:$0x1] (!%p12013_p13), %v10409_v0 }
  0x97 PF: > { %v428_v1 = vld [vmem:[%s10635_s12] sm:$0xff]  ;;  %v429_v3 = vld [vmem:[%s10635_s12 + $0x8] sm:$0xff]  ;;  %v332_v33 = vlaneseq  ;;  %p9848_p0 = scmp.ne.s32.totalorder %s10524_s10, 3 }
  0x98   : > { %v432_v2 = vld [vmem:[%s10635_s12 + $0x20] sm:$0xff]  ;;  %v433_v5 = vld [vmem:[%s10635_s12 + $0x28] sm:$0xff] }
  0x99   : > { %v8761_v4 = vcombine.high %v428_v1, %v432_v2  ;;  %v8760_v6 = vcombine.low %v428_v1, %v432_v2  ;;  %v436_v7 = vld [vmem:[%s10635_s12 + $0x40] sm:$0xff]  ;;  %v8763_v9 = vcombine.high %v429_v3, %v433_v5  ;;  %v8762_v10 = vcombine.low %v429_v3, %v433_v5  ;;  %v437_v12 = vld [vmem:[%s10635_s12 + $0x48] sm:$0xff] }
  0x9a   : > { %v440_v8 = vld [vmem:[%s10635_s12 + $0x60] sm:$0xff]  ;;  %v441_v13 = vld [vmem:[%s10635_s12 + $0x68] sm:$0xff]  ;;  %v10678_v42 = vshrl.u32 %v332_v33, 7 }
  0x9b   : > { %v8769_v11 = vcombine.high %v436_v7, %v440_v8  ;;  %v444_v14 = vld [vmem:[%s10635_s12 + $0x80] sm:$0xff]  ;;  %6614 = vmatprep.subr.bf16.mxu0 %v8761_v4  ;;  %v8771_v15 = vcombine.high %v437_v12, %v441_v13  ;;  %v445_v17 = vld [vmem:[%s10635_s12 + $0x88] sm:$0xff]  ;;  %6942 = vmatprep.subr.bf16.mxu1 %v8763_v9  ;;  %v8768_v19 = vcombine.low %v436_v7, %v440_v8 }
  0x9c   : > { %v448_v16 = vld [vmem:[%s10635_s12 + $0xa0] sm:$0xff]  ;;  %v449_v18 = vld [vmem:[%s10635_s12 + $0xa8] sm:$0xff]  ;;  %6615 = vmatpush1.bf16.msra.mxu0 %v8760_v6  ;;  %6943 = vmatpush1.bf16.msra.mxu1 %v8762_v10  ;;  %v8770_v20 = vcombine.low %v437_v12, %v441_v13  ;;  %v10685_v51 = vsub.s32 1, %v10678_v42 }
  0x9d   : > { %6616 = vmatprep.subr.bf16.mxu0 %v8769_v11  ;;  %v8777_v21 = vcombine.high %v444_v14, %v448_v16  ;;  %6944 = vmatprep.subr.bf16.mxu1 %v8771_v15  ;;  %v8779_v22 = vcombine.high %v445_v17, %v449_v18  ;;  %v452_v23 = vld [vmem:[%s10635_s12 + $0xc0] sm:$0xff]  ;;  %v453_v25 = vld [vmem:[%s10635_s12 + $0xc8] sm:$0xff]  ;;  %v8776_v27 = vcombine.low %v444_v14, %v448_v16 }
  0x9e   : > { %v456_v24 = vld [vmem:[%s10635_s12 + $0xe0] sm:$0xff]  ;;  %v457_v26 = vld [vmem:[%s10635_s12 + $0xe8] sm:$0xff]  ;;  %v8778_v28 = vcombine.low %v445_v17, %v449_v18 }
  0x9f   : > { %v8785_v29 = vcombine.high %v452_v23, %v456_v24  ;;  %v8787_v30 = vcombine.high %v453_v25, %v457_v26  ;;  %v460_v31 = vld [vmem:[%s10635_s12 + $0x100] sm:$0xff]  ;;  %v461_v34 = vld [vmem:[%s10635_s12 + $0x108] sm:$0xff]  ;;  %v8784_v36 = vcombine.low %v452_v23, %v456_v24  ;;  %v8786_v37 = vcombine.low %v453_v25, %v457_v26 }
  0xa0   : > { %6617 = vmatpush1.bf16.msra.mxu0 %v8768_v19  ;;  %6945 = vmatpush1.bf16.msra.mxu1 %v8770_v20  ;;  %v464_v32 = vld [vmem:[%s10635_s12 + $0x120] sm:$0xff]  ;;  %v465_v35 = vld [vmem:[%s10635_s12 + $0x128] sm:$0xff] }
  0xa1   : > { %6618 = vmatprep.subr.bf16.mxu0 %v8777_v21  ;;  %6946 = vmatprep.subr.bf16.mxu1 %v8779_v22  ;;  %v8793_v38 = vcombine.high %v460_v31, %v464_v32  ;;  %v8795_v39 = vcombine.high %v461_v34, %v465_v35  ;;  %v468_v40 = vld [vmem:[%s10635_s12 + $0x140] sm:$0xff]  ;;  %v469_v43 = vld [vmem:[%s10635_s12 + $0x148] sm:$0xff]  ;;  %v8792_v45 = vcombine.low %v460_v31, %v464_v32 }
  0xa2   : > { %v472_v41 = vld [vmem:[%s10635_s12 + $0x160] sm:$0xff]  ;;  %v473_v44 = vld [vmem:[%s10635_s12 + $0x168] sm:$0xff]  ;;  %v8794_v46 = vcombine.low %v461_v34, %v465_v35 }
  0xa3   : > { %v8801_v47 = vcombine.high %v468_v40, %v472_v41  ;;  %v8803_v48 = vcombine.high %v469_v43, %v473_v44  ;;  %v476_v49 = vld [vmem:[%s10635_s12 + $0x180] sm:$0xff]  ;;  %v477_v52 = vld [vmem:[%s10635_s12 + $0x188] sm:$0xff]  ;;  %v8800_v54 = vcombine.low %v468_v40, %v472_v41  ;;  %v8802_v55 = vcombine.low %v469_v43, %v473_v44 }
  0xa4   : > { %6619 = vmatpush1.bf16.msra.mxu0 %v8776_v27  ;;  %6947 = vmatpush1.bf16.msra.mxu1 %v8778_v28  ;;  %v480_v50 = vld [vmem:[%s10635_s12 + $0x1a0] sm:$0xff]  ;;  %v481_v53 = vld [vmem:[%s10635_s12 + $0x1a8] sm:$0xff] }
  0xa5   : > { %6620 = vmatprep.subr.bf16.mxu0 %v8785_v29  ;;  %6948 = vmatprep.subr.bf16.mxu1 %v8787_v30  ;;  %v8809_v56 = vcombine.high %v476_v49, %v480_v50  ;;  %v10692_v57 = vld [vmem:[%s11986_s0] sm:$0xff]  ;;  %v8811_v58 = vcombine.high %v477_v52, %v481_v53  ;;  %v485_v62 = vld [vmem:[%s10635_s12 + $0x1c8] sm:$0xff]  ;;  %v8808_v0 = vcombine.low %v476_v49, %v480_v50 }
  0xa6   : > { %v484_v59 = vld [vmem:[%s10635_s12 + $0x1c0] sm:$0xff]  ;;  %v339_v61 = vrot.slane %v10692_v57, %v10685_v51  ;;  %v489_v63 = vld [vmem:[%s10635_s12 + $0x1e8] sm:$0xff]  ;;  %v8810_v2 = vcombine.low %v477_v52, %v481_v53 }
  0xa7   : > { %v488_v60 = vld [vmem:[%s10635_s12 + $0x1e0] sm:$0xff]  ;;  %v8819_v4 = vcombine.high %v485_v62, %v489_v63  ;;  %v493_v7 = vld [vmem:[%s10635_s12 + $0x208] sm:$0xff]  ;;  %v8818_v10 = vcombine.low %v485_v62, %v489_v63 }
  0xa8   : > { %6621 = vmatpush1.bf16.msra.mxu0 %v8784_v36  ;;  %6949 = vmatpush1.bf16.msra.mxu1 %v8786_v37  ;;  %v10700_v1 = vpack.c.bf16 %v339_v61, %v339_v61  ;;  %v8817_v3 = vcombine.high %v484_v59, %v488_v60  ;;  %v492_v5 = vld [vmem:[%s10635_s12 + $0x200] sm:$0xff]  ;;  %v497_v8 = vld [vmem:[%s10635_s12 + $0x228] sm:$0xff]  ;;  %v8816_v9 = vcombine.low %v484_v59, %v488_v60 }
  0xa9   : > { %6622 = vmatprep.subr.bf16.mxu0 %v8793_v38  ;;  %6950 = vmatprep.subr.bf16.mxu1 %v8795_v39  ;;  %v496_v6 = vld [vmem:[%s10635_s12 + $0x220] sm:$0xff]  ;;  %v8827_v12 = vcombine.high %v493_v7, %v497_v8  ;;  %v501_v15 = vld [vmem:[%s10635_s12 + $0x248] sm:$0xff]  ;;  %v8826_v18 = vcombine.low %v493_v7, %v497_v8 }
  0xaa   : > { %6646 = vmatprep.mubr.bf16.mxu0 %v10700_v1  ;;  %6974 = vmatprep.mubr.bf16.mxu1 %v10700_v1  ;;  %v8825_v11 = vcombine.high %v492_v5, %v496_v6  ;;  %v500_v13 = vld [vmem:[%s10635_s12 + $0x240] sm:$0xff]  ;;  %v505_v16 = vld [vmem:[%s10635_s12 + $0x268] sm:$0xff]  ;;  %v8824_v17 = vcombine.low %v492_v5, %v496_v6  ;;  %v10737_v5 = vsub.s32 0, %v10678_v42 }
  0xab   : > { %v504_v14 = vld [vmem:[%s10635_s12 + $0x260] sm:$0xff]  ;;  %v8835_v20 = vcombine.high %v501_v15, %v505_v16  ;;  %v509_v23 = vld [vmem:[%s10635_s12 + $0x288] sm:$0xff]  ;;  %v8834_v26 = vcombine.low %v501_v15, %v505_v16 }
  0xac   : > { %6623 = vmatpush1.bf16.msra.mxu0 %v8792_v45  ;;  %6951 = vmatpush1.bf16.msra.mxu1 %v8794_v46  ;;  %v8833_v19 = vcombine.high %v500_v13, %v504_v14  ;;  %v508_v21 = vld [vmem:[%s10635_s12 + $0x280] sm:$0xff]  ;;  %v513_v24 = vld [vmem:[%s10635_s12 + $0x2a8] sm:$0xff]  ;;  %v8832_v25 = vcombine.low %v500_v13, %v504_v14  ;;  %v335_v15 = vrot.slane %v10692_v57, %v10737_v5 }
  0xad   : > { %6624 = vmatprep.subr.bf16.mxu0 %v8801_v47  ;;  %6952 = vmatprep.subr.bf16.mxu1 %v8803_v48  ;;  %v512_v22 = vld [vmem:[%s10635_s12 + $0x2a0] sm:$0xff]  ;;  %v8843_v28 = vcombine.high %v509_v23, %v513_v24  ;;  %v517_v31 = vld [vmem:[%s10635_s12 + $0x2c8] sm:$0xff]  ;;  %v8842_v34 = vcombine.low %v509_v23, %v513_v24 }
  0xae   : > { %v8841_v27 = vcombine.high %v508_v21, %v512_v22  ;;  %v516_v29 = vld [vmem:[%s10635_s12 + $0x2c0] sm:$0xff]  ;;  %v521_v32 = vld [vmem:[%s10635_s12 + $0x2e8] sm:$0xff]  ;;  %v8840_v33 = vcombine.low %v508_v21, %v512_v22  ;;  %v10752_v23 = vpack.c.bf16 %v335_v15, %v335_v15 }
  0xaf   : > { %v520_v30 = vld [vmem:[%s10635_s12 + $0x2e0] sm:$0xff]  ;;  %v8851_v36 = vcombine.high %v517_v31, %v521_v32  ;;  %v525_v39 = vld [vmem:[%s10635_s12 + $0x308] sm:$0xff]  ;;  %v8850_v43 = vcombine.low %v517_v31, %v521_v32 }
  0xb0   : > { %6625 = vmatpush1.bf16.msra.mxu0 %v8800_v54  ;;  %6953 = vmatpush1.bf16.msra.mxu1 %v8802_v55  ;;  %v8849_v35 = vcombine.high %v516_v29, %v520_v30  ;;  %v524_v37 = vld [vmem:[%s10635_s12 + $0x300] sm:$0xff]  ;;  %v529_v40 = vld [vmem:[%s10635_s12 + $0x328] sm:$0xff]  ;;  %v8848_v41 = vcombine.low %v516_v29, %v520_v30 }
  0xb1   : > { %6626 = vmatprep.subr.bf16.mxu0 %v8809_v56  ;;  %6954 = vmatprep.subr.bf16.mxu1 %v8811_v58  ;;  %v528_v38 = vld [vmem:[%s10635_s12 + $0x320] sm:$0xff]  ;;  %v8859_v45 = vcombine.high %v525_v39, %v529_v40  ;;  %v533_v48 = vld [vmem:[%s10635_s12 + $0x348] sm:$0xff]  ;;  %v8858_v52 = vcombine.low %v525_v39, %v529_v40 }
  0xb2   : > { %v8857_v44 = vcombine.high %v524_v37, %v528_v38  ;;  %v532_v46 = vld [vmem:[%s10635_s12 + $0x340] sm:$0xff]  ;;  %v537_v49 = vld [vmem:[%s10635_s12 + $0x368] sm:$0xff]  ;;  %v8856_v50 = vcombine.low %v524_v37, %v528_v38 }
  0xb3   : > { %v536_v47 = vld [vmem:[%s10635_s12 + $0x360] sm:$0xff]  ;;  %v8867_v54 = vcombine.high %v533_v48, %v537_v49  ;;  %v541_v58 = vld [vmem:[%s10635_s12 + $0x388] sm:$0xff]  ;;  %v8866_v61 = vcombine.low %v533_v48, %v537_v49 }
  0xb4   : > { %6627 = vmatpush1.bf16.msra.mxu0 %v8808_v0  ;;  %6955 = vmatpush1.bf16.msra.mxu1 %v8810_v2  ;;  %v8865_v53 = vcombine.high %v532_v46, %v536_v47  ;;  %v540_v55 = vld [vmem:[%s10635_s12 + $0x380] sm:$0xff]  ;;  %v545_v59 = vld [vmem:[%s10635_s12 + $0x3a8] sm:$0xff]  ;;  %v8864_v60 = vcombine.low %v532_v46, %v536_v47 }
  0xb5   : > { %6628 = vmatprep.subr.bf16.mxu0 %v8817_v3  ;;  %6956 = vmatprep.subr.bf16.mxu1 %v8819_v4  ;;  %v544_v56 = vld [vmem:[%s10635_s12 + $0x3a0] sm:$0xff]  ;;  %v8875_v63 = vcombine.high %v541_v58, %v545_v59  ;;  %v549_v3 = vld [vmem:[%s10635_s12 + $0x3c8] sm:$0xff]  ;;  %v8874_v7 = vcombine.low %v541_v58, %v545_v59 }
  0xb6   : > { %v8873_v62 = vcombine.high %v540_v55, %v544_v56  ;;  %v548_v0 = vld [vmem:[%s10635_s12 + $0x3c0] sm:$0xff]  ;;  %v553_v4 = vld [vmem:[%s10635_s12 + $0x3e8] sm:$0xff]  ;;  %v8872_v6 = vcombine.low %v540_v55, %v544_v56 }
  0xb7   : > { %v552_v2 = vld [vmem:[%s10635_s12 + $0x3e0] sm:$0xff]  ;;  %v557_v13 = vld [vmem:[%s10635_s12 + $0x408] sm:$0xff] }
  0xb8   : > { %6629 = vmatpush1.bf16.msra.mxu0 %v8816_v9  ;;  %6957 = vmatpush1.bf16.msra.mxu1 %v8818_v10  ;;  %v8881_v8 = vcombine.high %v548_v0, %v552_v2  ;;  %v8883_v9 = vcombine.high %v549_v3, %v553_v4  ;;  %v556_v10 = vld [vmem:[%s10635_s12 + $0x400] sm:$0xff]  ;;  %v561_v14 = vld [vmem:[%s10635_s12 + $0x428] sm:$0xff]  ;;  %v8880_v16 = vcombine.low %v548_v0, %v552_v2 }
  0xb9   : > { %6630 = vmatprep.subr.bf16.mxu0 %v8825_v11  ;;  %6958 = vmatprep.subr.bf16.mxu1 %v8827_v12  ;;  %v560_v11 = vld [vmem:[%s10635_s12 + $0x420] sm:$0xff]  ;;  %v10742_v12 = vsub.s32 3, %v10678_v42  ;;  %v565_v24 = vld [vmem:[%s10635_s12 + $0x448] sm:$0xff] }
  0xba   : > { %v568_v21 = vld [vmem:[%s10635_s12 + $0x460] sm:$0xff]  ;;  %v573_v31 = vld [vmem:[%s10635_s12 + $0x488] sm:$0xff] }
  0xbb   : > { %v347_v22 = vrot.slane %v10692_v57, %v10742_v12  ;;  %v572_v29 = vld [vmem:[%s10635_s12 + $0x480] sm:$0xff]  ;;  %v581_v40 = vld [vmem:[%s10635_s12 + $0x4c8] sm:$0xff] }
  0xbc   : > { %6631 = vmatpush1.bf16.msra.mxu0 %v8824_v17  ;;  %6959 = vmatpush1.bf16.msra.mxu1 %v8826_v18  ;;  %v8882_v17 = vcombine.low %v549_v3, %v553_v4  ;;  %v8889_v18 = vcombine.high %v556_v10, %v560_v11  ;;  %v576_v30 = vld [vmem:[%s10635_s12 + $0x4a0] sm:$0xff]  ;;  %v589_v49 = vld [vmem:[%s10635_s12 + $0x508] sm:$0xff] }
  0xbd   : > { %6632 = vmatprep.subr.bf16.mxu0 %v8833_v19  ;;  %6960 = vmatprep.subr.bf16.mxu1 %v8835_v20  ;;  %v8891_v19 = vcombine.high %v557_v13, %v561_v14  ;;  %v564_v20 = vld [vmem:[%s10635_s12 + $0x440] sm:$0xff]  ;;  %v8905_v37 = vcombine.high %v572_v29, %v576_v30  ;;  %v597_v59 = vld [vmem:[%s10635_s12 + $0x548] sm:$0xff] }
  0xbe   : > { %v580_v38 = vld [vmem:[%s10635_s12 + $0x4c0] sm:$0xff]  ;;  %v605_v4 = vld [vmem:[%s10635_s12 + $0x588] sm:$0xff] }
  0xbf   : > { %v584_v39 = vld [vmem:[%s10635_s12 + $0x4e0] sm:$0xff] }
  0xc0   : > { %6633 = vmatpush1.bf16.msra.mxu0 %v8832_v25  ;;  %6961 = vmatpush1.bf16.msra.mxu1 %v8834_v26  ;;  %v569_v25 = vld [vmem:[%s10635_s12 + $0x468] sm:$0xff]  ;;  %v8888_v26 = vcombine.low %v556_v10, %v560_v11  ;;  %v8913_v46 = vcombine.high %v580_v38, %v584_v39  ;;  %v588_v47 = vld [vmem:[%s10635_s12 + $0x500] sm:$0xff] }
  0xc1   : > { %6634 = vmatprep.subr.bf16.mxu0 %v8841_v27  ;;  %6962 = vmatprep.subr.bf16.mxu1 %v8843_v28  ;;  %v8890_v27 = vcombine.low %v557_v13, %v561_v14  ;;  %v8897_v28 = vcombine.high %v564_v20, %v568_v21  ;;  %v8899_v32 = vcombine.high %v565_v24, %v569_v25  ;;  %v592_v48 = vld [vmem:[%s10635_s12 + $0x520] sm:$0xff]  ;;  %v613_v14 = vld [vmem:[%s10635_s12 + $0x5c8] sm:$0xff] }
  0xc2   : > { %v8921_v55 = vcombine.high %v588_v47, %v592_v48  ;;  %v596_v56 = vld [vmem:[%s10635_s12 + $0x540] sm:$0xff] }
  0xc3   : > { %v600_v58 = vld [vmem:[%s10635_s12 + $0x560] sm:$0xff] }
  0xc4   : > { %6635 = vmatpush1.bf16.msra.mxu0 %v8840_v33  ;;  %6963 = vmatpush1.bf16.msra.mxu1 %v8842_v34  ;;  %v577_v33 = vld [vmem:[%s10635_s12 + $0x4a8] sm:$0xff]  ;;  %v10760_v34 = vpack.c.bf16 %v347_v22, %v347_v22  ;;  %v8929_v0 = vcombine.high %v596_v56, %v600_v58  ;;  %v604_v2 = vld [vmem:[%s10635_s12 + $0x580] sm:$0xff] }
  0xc5   : > { %6636 = vmatprep.subr.bf16.mxu0 %v8849_v35  ;;  %6964 = vmatprep.subr.bf16.mxu1 %v8851_v36  ;;  %v8896_v35 = vcombine.low %v564_v20, %v568_v21  ;;  %v8898_v36 = vcombine.low %v565_v24, %v569_v25  ;;  %v608_v3 = vld [vmem:[%s10635_s12 + $0x5a0] sm:$0xff]  ;;  %v621_v22 = vld [vmem:[%s10635_s12 + $0x608] sm:$0xff] }
  0xc6   : > { %v8937_v10 = vcombine.high %v604_v2, %v608_v3  ;;  %v612_v11 = vld [vmem:[%s10635_s12 + $0x5c0] sm:$0xff]  ;;  %v625_v25 = vld [vmem:[%s10635_s12 + $0x628] sm:$0xff] }
  0xc7   : > { %v616_v13 = vld [vmem:[%s10635_s12 + $0x5e0] sm:$0xff] }
  0xc8   : > { %6637 = vmatpush1.bf16.msra.mxu0 %v8848_v41  ;;  %6965 = vmatpush1.bf16.msra.mxu1 %v8850_v43  ;;  %v8907_v41 = vcombine.high %v573_v31, %v577_v33  ;;  %v585_v43 = vld [vmem:[%s10635_s12 + $0x4e8] sm:$0xff]  ;;  %v620_v20 = vld [vmem:[%s10635_s12 + $0x600] sm:$0xff] }
  0xc9   : > { %6638 = vmatprep.subr.bf16.mxu0 %v8857_v44  ;;  %6966 = vmatprep.subr.bf16.mxu1 %v8859_v45  ;;  %v8904_v44 = vcombine.low %v572_v29, %v576_v30  ;;  %v8906_v45 = vcombine.low %v573_v31, %v577_v33  ;;  %v624_v21 = vld [vmem:[%s10635_s12 + $0x620] sm:$0xff]  ;;  %v629_v31 = vld [vmem:[%s10635_s12 + $0x648] sm:$0xff] }
  0xca   : > { %v628_v29 = vld [vmem:[%s10635_s12 + $0x640] sm:$0xff]  ;;  %v633_v33 = vld [vmem:[%s10635_s12 + $0x668] sm:$0xff] }
  0xcb   : > { %v632_v30 = vld [vmem:[%s10635_s12 + $0x660] sm:$0xff] }
  0xcc   : > { %6639 = vmatpush1.bf16.msra.mxu0 %v8856_v50  ;;  %6967 = vmatpush1.bf16.msra.mxu1 %v8858_v52  ;;  %v8915_v50 = vcombine.high %v581_v40, %v585_v43  ;;  %v593_v52 = vld [vmem:[%s10635_s12 + $0x528] sm:$0xff] }
  0xcd   : > { %6640 = vmatprep.subr.bf16.mxu0 %v8865_v53  ;;  %6968 = vmatprep.subr.bf16.mxu1 %v8867_v54  ;;  %v8912_v53 = vcombine.low %v580_v38, %v584_v39  ;;  %v8914_v54 = vcombine.low %v581_v40, %v585_v43  ;;  %v636_v38 = vld [vmem:[%s10635_s12 + $0x680] sm:$0xff]  ;;  %v637_v40 = vld [vmem:[%s10635_s12 + $0x688] sm:$0xff] }
  0xce   : > { %v640_v39 = vld [vmem:[%s10635_s12 + $0x6a0] sm:$0xff]  ;;  %v641_v43 = vld [vmem:[%s10635_s12 + $0x6a8] sm:$0xff] }
  0xd0   : > { %6641 = vmatpush1.bf16.msra.mxu0 %v8864_v60  ;;  %6969 = vmatpush1.bf16.msra.mxu1 %v8866_v61  ;;  %v8923_v60 = vcombine.high %v589_v49, %v593_v52  ;;  %v601_v61 = vld [vmem:[%s10635_s12 + $0x568] sm:$0xff] }
  0xd1   : > { %6642 = vmatprep.subr.bf16.mxu0 %v8873_v62  ;;  %6970 = vmatprep.subr.bf16.mxu1 %v8875_v63  ;;  %v8920_v62 = vcombine.low %v588_v47, %v592_v48  ;;  %v8922_v63 = vcombine.low %v589_v49, %v593_v52  ;;  %v644_v47 = vld [vmem:[%s10635_s12 + $0x6c0] sm:$0xff]  ;;  %v645_v49 = vld [vmem:[%s10635_s12 + $0x6c8] sm:$0xff] }
  0xd2   : > { %v648_v48 = vld [vmem:[%s10635_s12 + $0x6e0] sm:$0xff]  ;;  %v649_v52 = vld [vmem:[%s10635_s12 + $0x6e8] sm:$0xff] }
  0xd4   : > { %6643 = vmatpush1.bf16.msra.mxu0 %v8872_v6  ;;  %6971 = vmatpush1.bf16.msra.mxu1 %v8874_v7  ;;  %v8931_v6 = vcombine.high %v597_v59, %v601_v61  ;;  %v609_v7 = vld [vmem:[%s10635_s12 + $0x5a8] sm:$0xff] }
  0xd5   : > { %6644 = vmatprep.subr.bf16.mxu0 %v8881_v8  ;;  %6972 = vmatprep.subr.bf16.mxu1 %v8883_v9  ;;  %v8928_v8 = vcombine.low %v596_v56, %v600_v58  ;;  %v8930_v9 = vcombine.low %v597_v59, %v601_v61  ;;  %v8939_v15 = vcombine.high %v605_v4, %v609_v7  ;;  %v652_v56 = vld [vmem:[%s10635_s12 + $0x700] sm:$0xff]  ;;  %v653_v59 = vld [vmem:[%s10635_s12 + $0x708] sm:$0xff] }
  0xd6   : > { %v656_v58 = vld [vmem:[%s10635_s12 + $0x720] sm:$0xff]  ;;  %v657_v61 = vld [vmem:[%s10635_s12 + $0x728] sm:$0xff] }
  0xd8   : > { %6645 = vmatpush1.bf16.msra.mxu0 %v8880_v16  ;;  %6973 = vmatpush1.bf16.msra.mxu1 %v8882_v17  ;;  %v617_v16 = vld [vmem:[%s10635_s12 + $0x5e8] sm:$0xff]  ;;  %v8936_v17 = vcombine.low %v604_v2, %v608_v3  ;;  %v660_v2 = vld [vmem:[%s10635_s12 + $0x740] sm:$0xff] }
  0xd9   : > { %6655 = vmatprep.subr.bf16.mxu0 %v8889_v18  ;;  %6983 = vmatprep.subr.bf16.mxu1 %v8891_v19  ;;  %v8938_v18 = vcombine.low %v605_v4, %v609_v7  ;;  %v8945_v19 = vcombine.high %v612_v11, %v616_v13  ;;  %v8947_v24 = vcombine.high %v613_v14, %v617_v16  ;;  %v664_v3 = vld [vmem:[%s10635_s12 + $0x760] sm:$0xff]  ;;  %v661_v4 = vld [vmem:[%s10635_s12 + $0x748] sm:$0xff] }
  0xda   : > { %v665_v7 = vld [vmem:[%s10635_s12 + $0x768] sm:$0xff] }
  0xdb   : > { %6647 = vmatmul.mubr.bf16.vlgmr.msra.gmra.mrb[0].mxu0 %v10752_v23  ;;  %6975 = vmatmul.mubr.bf16.vlgmr.msra.gmra.mrb[0].mxu1 %v10752_v23 }
  0xdc   : > { %6656 = vmatpush1.bf16.msra.mxu0 %v8888_v26  ;;  %6984 = vmatpush1.bf16.msra.mxu1 %v8890_v27  ;;  %v8944_v26 = vcombine.low %v612_v11, %v616_v13  ;;  %v8946_v27 = vcombine.low %v613_v14, %v617_v16  ;;  %v668_v11 = vld [vmem:[%s10635_s12 + $0x780] sm:$0xff]  ;;  %v669_v14 = vld [vmem:[%s10635_s12 + $0x788] sm:$0xff] }
  0xdd   : > { %6657 = vmatprep.subr.bf16.mxu0 %v8897_v28  ;;  %6985 = vmatprep.subr.bf16.mxu1 %v8899_v32  ;;  %v8953_v28 = vcombine.high %v620_v20, %v624_v21  ;;  %v8955_v32 = vcombine.high %v621_v22, %v625_v25  ;;  %v672_v13 = vld [vmem:[%s10635_s12 + $0x7a0] sm:$0xff]  ;;  %v673_v16 = vld [vmem:[%s10635_s12 + $0x7a8] sm:$0xff] }
  0xde   : > { %6687 = vmatprep.mubr.bf16.mxu0 %v10760_v34  ;;  %7015 = vmatprep.mubr.bf16.mxu1 %v10760_v34 }
  0xe0   : > { %6658 = vmatpush1.bf16.msra.mxu0 %v8896_v35  ;;  %6986 = vmatpush1.bf16.msra.mxu1 %v8898_v36  ;;  %v8952_v35 = vcombine.low %v620_v20, %v624_v21  ;;  %v8954_v36 = vcombine.low %v621_v22, %v625_v25  ;;  %v676_v20 = vld [vmem:[%s10635_s12 + $0x7c0] sm:$0xff]  ;;  %v677_v22 = vld [vmem:[%s10635_s12 + $0x7c8] sm:$0xff] }
  0xe1   : > { %6659 = vmatprep.subr.bf16.mxu0 %v8905_v37  ;;  %6987 = vmatprep.subr.bf16.mxu1 %v8907_v41  ;;  %v8961_v37 = vcombine.high %v628_v29, %v632_v30  ;;  %v8963_v41 = vcombine.high %v629_v31, %v633_v33  ;;  %v680_v21 = vld [vmem:[%s10635_s12 + $0x7e0] sm:$0xff]  ;;  %v681_v25 = vld [vmem:[%s10635_s12 + $0x7e8] sm:$0xff] }
  0xe4   : > { %6660 = vmatpush1.bf16.msra.mxu0 %v8904_v44  ;;  %6988 = vmatpush1.bf16.msra.mxu1 %v8906_v45  ;;  %v8960_v44 = vcombine.low %v628_v29, %v632_v30  ;;  %v8962_v45 = vcombine.low %v629_v31, %v633_v33  ;;  %v9009_v29 = vcombine.high %v676_v20, %v680_v21  ;;  %v684_v30 = vld [vmem:[%s10635_s12 + $0x800] sm:$0xff] }
  0xe5   : > { %6661 = vmatprep.subr.bf16.mxu0 %v8913_v46  ;;  %6989 = vmatprep.subr.bf16.mxu1 %v8915_v50  ;;  %v8969_v46 = vcombine.high %v636_v38, %v640_v39  ;;  %v8971_v50 = vcombine.high %v637_v40, %v641_v43  ;;  %v688_v31 = vld [vmem:[%s10635_s12 + $0x820] sm:$0xff]  ;;  %v9011_v33 = vcombine.high %v677_v22, %v681_v25 }
  0xe8   : > { %6662 = vmatpush1.bf16.msra.mxu0 %v8912_v53  ;;  %6990 = vmatpush1.bf16.msra.mxu1 %v8914_v54  ;;  %v8968_v53 = vcombine.low %v636_v38, %v640_v39  ;;  %v8970_v54 = vcombine.low %v637_v40, %v641_v43  ;;  %v9008_v38 = vcombine.low %v676_v20, %v680_v21  ;;  %v696_v43 = vld [vmem:[%s10635_s12 + $0x860] sm:$0xff]  ;;  %v725_v20 = vld [vmem:[%s10635_s12 + $0x948] sm:$0xff] }
  0xe9   : > { %6663 = vmatprep.subr.bf16.mxu0 %v8921_v55  ;;  %6991 = vmatprep.subr.bf16.mxu1 %v8923_v60  ;;  %v8977_v55 = vcombine.high %v644_v47, %v648_v48  ;;  %v8979_v60 = vcombine.high %v645_v49, %v649_v52  ;;  %v9010_v39 = vcombine.low %v677_v22, %v681_v25  ;;  %v729_v21 = vld [vmem:[%s10635_s12 + $0x968] sm:$0xff] }
  0xea   : > { %v9017_v40 = vcombine.high %v684_v30, %v688_v31 }
  0xec   : > { %6664 = vmatpush1.bf16.msra.mxu0 %v8920_v62  ;;  %6992 = vmatpush1.bf16.msra.mxu1 %v8922_v63  ;;  %v8976_v62 = vcombine.low %v644_v47, %v648_v48  ;;  %v8978_v63 = vcombine.low %v645_v49, %v649_v52  ;;  %v697_v48 = vld [vmem:[%s10635_s12 + $0x868] sm:$0xff]  ;;  %v9016_v49 = vcombine.low %v684_v30, %v688_v31 }
  0xed   : > { %6665 = vmatprep.subr.bf16.mxu0 %v8929_v0  ;;  %6993 = vmatprep.subr.bf16.mxu1 %v8931_v6  ;;  %v8985_v0 = vcombine.high %v652_v56, %v656_v58  ;;  %v8987_v6 = vcombine.high %v653_v59, %v657_v61  ;;  %v733_v30 = vld [vmem:[%s10635_s12 + $0x988] sm:$0xff] }
  0xee   : > { %v737_v31 = vld [vmem:[%s10635_s12 + $0x9a8] sm:$0xff] }
  0xf0   : > { %6666 = vmatpush1.bf16.msra.mxu0 %v8928_v8  ;;  %6994 = vmatpush1.bf16.msra.mxu1 %v8930_v9  ;;  %v8984_v8 = vcombine.low %v652_v56, %v656_v58  ;;  %v8986_v9 = vcombine.low %v653_v59, %v657_v61  ;;  %v705_v58 = vld [vmem:[%s10635_s12 + $0x8a8] sm:$0xff] }
  0xf1   : > { %6667 = vmatprep.subr.bf16.mxu0 %v8937_v10  ;;  %6995 = vmatprep.subr.bf16.mxu1 %v8939_v15  ;;  %v8993_v10 = vcombine.high %v660_v2, %v664_v3  ;;  %v8995_v15 = vcombine.high %v661_v4, %v665_v7 }
  0xf4   : > { %6668 = vmatpush1.bf16.msra.mxu0 %v8936_v17  ;;  %6996 = vmatpush1.bf16.msra.mxu1 %v8938_v18  ;;  %v8992_v17 = vcombine.low %v660_v2, %v664_v3  ;;  %v8994_v18 = vcombine.low %v661_v4, %v665_v7  ;;  %v709_v2 = vld [vmem:[%s10635_s12 + $0x8c8] sm:$0xff] }
  0xf5   : > { %6669 = vmatprep.subr.bf16.mxu0 %v8945_v19  ;;  %6997 = vmatprep.subr.bf16.mxu1 %v8947_v24  ;;  %v9001_v19 = vcombine.high %v668_v11, %v672_v13  ;;  %v9003_v24 = vcombine.high %v669_v14, %v673_v16  ;;  %v713_v3 = vld [vmem:[%s10635_s12 + $0x8e8] sm:$0xff] }
  0xf8   : > { %6670 = vmatpush1.bf16.msra.mxu0 %v8944_v26  ;;  %6998 = vmatpush1.bf16.msra.mxu1 %v8946_v27  ;;  %v10819_v26 = vsub.s32 2, %v10678_v42  ;;  %v9000_v27 = vcombine.low %v668_v11, %v672_v13  ;;  %v717_v11 = vld [vmem:[%s10635_s12 + $0x908] sm:$0xff] }
  0xf9   : > { %6671 = vmatprep.subr.bf16.mxu0 %v8953_v28  ;;  %6999 = vmatprep.subr.bf16.mxu1 %v8955_v32  ;;  %v9002_v28 = vcombine.low %v669_v14, %v673_v16  ;;  %v685_v32 = vld [vmem:[%s10635_s12 + $0x808] sm:$0xff] }
  0xfa   : > { %v721_v13 = vld [vmem:[%s10635_s12 + $0x928] sm:$0xff] }
  0xfc   : > { %6672 = vmatpush1.bf16.msra.mxu0 %v8952_v35  ;;  %7000 = vmatpush1.bf16.msra.mxu1 %v8954_v36  ;;  %v689_v35 = vld [vmem:[%s10635_s12 + $0x828] sm:$0xff]  ;;  %v10826_v36 = vsub.s32 5, %v10678_v42 }
  0xfd   : > { %6673 = vmatprep.subr.bf16.mxu0 %v8961_v37  ;;  %7001 = vmatprep.subr.bf16.mxu1 %v8963_v41  ;;  %v343_v37 = vrot.slane %v10692_v57, %v10819_v26  ;;  %v692_v41 = vld [vmem:[%s10635_s12 + $0x840] sm:$0xff] }
  0xfe   : > { %v9025_v52 = vcombine.high %v692_v41, %v696_v43  ;;  %v9024_v59 = vcombine.low %v692_v41, %v696_v43  ;;  %v745_v41 = vld [vmem:[%s10635_s12 + $0x9e8] sm:$0xff] }
  0xff   : > { %v10835_v47 = vpack.c.bf16 %v343_v37, %v343_v37  ;;  %v9067_v37 = vcombine.high %v733_v30, %v737_v31 }
 0x100   : > { %6674 = vmatpush1.bf16.msra.mxu0 %v8960_v44  ;;  %7002 = vmatpush1.bf16.msra.mxu1 %v8962_v45  ;;  %v9019_v44 = vcombine.high %v685_v32, %v689_v35  ;;  %v693_v45 = vld [vmem:[%s10635_s12 + $0x848] sm:$0xff] }
 0x101   : > { %6675 = vmatprep.subr.bf16.mxu0 %v8969_v46  ;;  %7003 = vmatprep.subr.bf16.mxu1 %v8971_v50  ;;  %v355_v46 = vrot.slane %v10692_v57, %v10826_v36  ;;  %v9018_v50 = vcombine.low %v685_v32, %v689_v35  ;;  %v701_v57 = vld [vmem:[%s10635_s12 + $0x888] sm:$0xff] }
 0x103   : > { %v10840_v56 = vpack.c.bf16 %v355_v46, %v355_v46 }
 0x104   : > { %6676 = vmatpush1.bf16.msra.mxu0 %v8968_v53  ;;  %7004 = vmatpush1.bf16.msra.mxu1 %v8970_v54  ;;  %v9027_v53 = vcombine.high %v693_v45, %v697_v48  ;;  %v700_v54 = vld [vmem:[%s10635_s12 + $0x880] sm:$0xff] }
 0x105   : > { %6677 = vmatprep.subr.bf16.mxu0 %v8977_v55  ;;  %7005 = vmatprep.subr.bf16.mxu1 %v8979_v60  ;;  %v704_v55 = vld [vmem:[%s10635_s12 + $0x8a0] sm:$0xff]  ;;  %v9026_v60 = vcombine.low %v693_v45, %v697_v48 }
 0x106   : > { %v9033_v61 = vcombine.high %v700_v54, %v704_v55  ;;  %v9032_v4 = vcombine.low %v700_v54, %v704_v55  ;;  %v748_v48 = vld [vmem:[%s10635_s12 + $0xa00] sm:$0xff] }
 0x108   : > { %6678 = vmatpush1.bf16.msra.mxu0 %v8976_v62  ;;  %7006 = vmatpush1.bf16.msra.mxu1 %v8978_v63  ;;  %v9035_v62 = vcombine.high %v701_v57, %v705_v58  ;;  %v708_v63 = vld [vmem:[%s10635_s12 + $0x8c0] sm:$0xff] }
 0x109   : > { %6679 = vmatprep.subr.bf16.mxu0 %v8985_v0  ;;  %7007 = vmatprep.subr.bf16.mxu1 %v8987_v6  ;;  %v712_v0 = vld [vmem:[%s10635_s12 + $0x8e0] sm:$0xff]  ;;  %v9034_v6 = vcombine.low %v701_v57, %v705_v58 }
 0x10a   : > { %v9041_v7 = vcombine.high %v708_v63, %v712_v0  ;;  %v9040_v14 = vcombine.low %v708_v63, %v712_v0  ;;  %v756_v58 = vld [vmem:[%s10635_s12 + $0xa40] sm:$0xff] }
 0x10c   : > { %6680 = vmatpush1.bf16.msra.mxu0 %v8984_v8  ;;  %7008 = vmatpush1.bf16.msra.mxu1 %v8986_v9  ;;  %v9043_v8 = vcombine.high %v709_v2, %v713_v3  ;;  %v716_v9 = vld [vmem:[%s10635_s12 + $0x900] sm:$0xff] }
 0x10d   : > { %6681 = vmatprep.subr.bf16.mxu0 %v8993_v10  ;;  %7009 = vmatprep.subr.bf16.mxu1 %v8995_v15  ;;  %v720_v10 = vld [vmem:[%s10635_s12 + $0x920] sm:$0xff]  ;;  %v9042_v15 = vcombine.low %v709_v2, %v713_v3 }
 0x10e   : > { %v9049_v16 = vcombine.high %v716_v9, %v720_v10  ;;  %v9048_v22 = vcombine.low %v716_v9, %v720_v10  ;;  %v764_v3 = vld [vmem:[%s10635_s12 + $0xa80] sm:$0xff] }
 0x110   : > { %6682 = vmatpush1.bf16.msra.mxu0 %v8992_v17  ;;  %7010 = vmatpush1.bf16.msra.mxu1 %v8994_v18  ;;  %v9051_v17 = vcombine.high %v717_v11, %v721_v13  ;;  %v724_v18 = vld [vmem:[%s10635_s12 + $0x940] sm:$0xff] }
 0x111   : > { %6683 = vmatprep.subr.bf16.mxu0 %v9001_v19  ;;  %7011 = vmatprep.subr.bf16.mxu1 %v9003_v24  ;;  %v728_v19 = vld [vmem:[%s10635_s12 + $0x960] sm:$0xff]  ;;  %v9050_v24 = vcombine.low %v717_v11, %v721_v13 }
 0x112   : > { %v9057_v25 = vcombine.high %v724_v18, %v728_v19  ;;  %v9056_v32 = vcombine.low %v724_v18, %v728_v19  ;;  %v772_v13 = vld [vmem:[%s10635_s12 + $0xac0] sm:$0xff] }
 0x114   : > { %6684 = vmatpush1.bf16.msra.mxu0 %v9000_v27  ;;  %7012 = vmatpush1.bf16.msra.mxu1 %v9002_v28  ;;  %v9059_v27 = vcombine.high %v725_v20, %v729_v21  ;;  %v732_v28 = vld [vmem:[%s10635_s12 + $0x980] sm:$0xff] }
 0x115   : > { %6685 = vmatprep.subr.bf16.mxu0 %v9009_v29  ;;  %7013 = vmatprep.subr.bf16.mxu1 %v9011_v33  ;;  %v736_v29 = vld [vmem:[%s10635_s12 + $0x9a0] sm:$0xff]  ;;  %v9058_v33 = vcombine.low %v725_v20, %v729_v21 }
 0x116   : > { %v9065_v35 = vcombine.high %v732_v28, %v736_v29  ;;  %v9064_v43 = vcombine.low %v732_v28, %v736_v29  ;;  %v780_v21 = vld [vmem:[%s10635_s12 + $0xb00] sm:$0xff] }
 0x118   : > { %6686 = vmatpush1.bf16.msra.mxu0 %v9008_v38  ;;  %7014 = vmatpush1.bf16.msra.mxu1 %v9010_v39  ;;  %v740_v38 = vld [vmem:[%s10635_s12 + $0x9c0] sm:$0xff] }
 0x119   : > { %6696 = vmatprep.subr.bf16.mxu0 %v9017_v40  ;;  %7024 = vmatprep.subr.bf16.mxu1 %v9019_v44  ;;  %v744_v39 = vld [vmem:[%s10635_s12 + $0x9e0] sm:$0xff]  ;;  %v741_v40 = vld [vmem:[%s10635_s12 + $0x9c8] sm:$0xff]  ;;  %v9066_v44 = vcombine.low %v733_v30, %v737_v31 }
 0x11a   : > { %v9073_v45 = vcombine.high %v740_v38, %v744_v39  ;;  %v9075_v46 = vcombine.high %v741_v40, %v745_v41  ;;  %v9074_v54 = vcombine.low %v741_v40, %v745_v41  ;;  %v788_v31 = vld [vmem:[%s10635_s12 + $0xb40] sm:$0xff] }
 0x11b   : > { %6688 = vmatmul.mubr.bf16.vlgmr.msra.gmra.mrb[0].mxu0 %v10835_v47  ;;  %7016 = vmatmul.mubr.bf16.vlgmr.msra.gmra.mrb[0].mxu1 %v10835_v47  ;;  %v796_v41 = vld [vmem:[%s10635_s12 + $0xb80] sm:$0xff] }
 0x11c   : > { %6697 = vmatpush1.bf16.msra.mxu0 %v9016_v49  ;;  %7025 = vmatpush1.bf16.msra.mxu1 %v9018_v50  ;;  %v752_v49 = vld [vmem:[%s10635_s12 + $0xa20] sm:$0xff]  ;;  %v749_v50 = vld [vmem:[%s10635_s12 + $0xa08] sm:$0xff] }
 0x11d   : > { %6698 = vmatprep.subr.bf16.mxu0 %v9025_v52  ;;  %7026 = vmatprep.subr.bf16.mxu1 %v9027_v53  ;;  %v753_v52 = vld [vmem:[%s10635_s12 + $0xa28] sm:$0xff]  ;;  %v9072_v53 = vcombine.low %v740_v38, %v744_v39  ;;  %v9081_v55 = vcombine.high %v748_v48, %v752_v49 }
 0x11e   : > { %6728 = vmatprep.mubr.bf16.mxu0 %v10840_v56  ;;  %7056 = vmatprep.mubr.bf16.mxu1 %v10840_v56  ;;  %v9083_v57 = vcombine.high %v749_v50, %v753_v52  ;;  %v9082_v63 = vcombine.low %v749_v50, %v753_v52  ;;  %v804_v52 = vld [vmem:[%s10635_s12 + $0xbc0] sm:$0xff] }
 0x120   : > { %6699 = vmatpush1.bf16.msra.mxu0 %v9024_v59  ;;  %7027 = vmatpush1.bf16.msra.mxu1 %v9026_v60  ;;  %v760_v59 = vld [vmem:[%s10635_s12 + $0xa60] sm:$0xff]  ;;  %v757_v60 = vld [vmem:[%s10635_s12 + $0xa48] sm:$0xff] }
 0x121   : > { %6700 = vmatprep.subr.bf16.mxu0 %v9033_v61  ;;  %7028 = vmatprep.subr.bf16.mxu1 %v9035_v62  ;;  %v761_v61 = vld [vmem:[%s10635_s12 + $0xa68] sm:$0xff]  ;;  %v9080_v62 = vcombine.low %v748_v48, %v752_v49  ;;  %v9089_v0 = vcombine.high %v756_v58, %v760_v59 }
 0x122   : > { %v9091_v2 = vcombine.high %v757_v60, %v761_v61  ;;  %v9090_v9 = vcombine.low %v757_v60, %v761_v61 }
 0x124   : > { %6701 = vmatpush1.bf16.msra.mxu0 %v9032_v4  ;;  %7029 = vmatpush1.bf16.msra.mxu1 %v9034_v6  ;;  %v768_v4 = vld [vmem:[%s10635_s12 + $0xaa0] sm:$0xff]  ;;  %v765_v6 = vld [vmem:[%s10635_s12 + $0xa88] sm:$0xff] }
 0x125   : > { %6702 = vmatprep.subr.bf16.mxu0 %v9041_v7  ;;  %7030 = vmatprep.subr.bf16.mxu1 %v9043_v8  ;;  %v769_v7 = vld [vmem:[%s10635_s12 + $0xaa8] sm:$0xff]  ;;  %v9088_v8 = vcombine.low %v756_v58, %v760_v59  ;;  %v9097_v10 = vcombine.high %v764_v3, %v768_v4 }
 0x126   : > { %v9099_v11 = vcombine.high %v765_v6, %v769_v7  ;;  %v9098_v18 = vcombine.low %v765_v6, %v769_v7 }
 0x128   : > { %6703 = vmatpush1.bf16.msra.mxu0 %v9040_v14  ;;  %7031 = vmatpush1.bf16.msra.mxu1 %v9042_v15  ;;  %v776_v14 = vld [vmem:[%s10635_s12 + $0xae0] sm:$0xff]  ;;  %v773_v15 = vld [vmem:[%s10635_s12 + $0xac8] sm:$0xff] }
 0x129   : > { %6704 = vmatprep.subr.bf16.mxu0 %v9049_v16  ;;  %7032 = vmatprep.subr.bf16.mxu1 %v9051_v17  ;;  %v777_v16 = vld [vmem:[%s10635_s12 + $0xae8] sm:$0xff]  ;;  %v9096_v17 = vcombine.low %v764_v3, %v768_v4  ;;  %v9105_v19 = vcombine.high %v772_v13, %v776_v14  ;;  %v10913_v4 = vld [vmem:[%s11986_s0] sm:$0xff] }
 0x12a   : > { %v9107_v20 = vcombine.high %v773_v15, %v777_v16  ;;  %v9106_v28 = vcombine.low %v773_v15, %v777_v16  ;;  %v817_v3 = vld [vmem:[%s10635_s12 + $0xc28] sm:$0xff] }
 0x12b   : > { %v821_v16 = vld [vmem:[%s10635_s12 + $0xc48] sm:$0xff] }
 0x12c   : > { %6705 = vmatpush1.bf16.msra.mxu0 %v9048_v22  ;;  %7033 = vmatpush1.bf16.msra.mxu1 %v9050_v24  ;;  %v784_v22 = vld [vmem:[%s10635_s12 + $0xb20] sm:$0xff]  ;;  %v781_v24 = vld [vmem:[%s10635_s12 + $0xb08] sm:$0xff] }
 0x12d   : > { %6706 = vmatprep.subr.bf16.mxu0 %v9057_v25  ;;  %7034 = vmatprep.subr.bf16.mxu1 %v9059_v27  ;;  %v785_v25 = vld [vmem:[%s10635_s12 + $0xb28] sm:$0xff]  ;;  %v9104_v27 = vcombine.low %v772_v13, %v776_v14  ;;  %v9113_v29 = vcombine.high %v780_v21, %v784_v22  ;;  %v824_v13 = vld [vmem:[%s10635_s12 + $0xc60] sm:$0xff] }
 0x12e   : > { %v9115_v30 = vcombine.high %v781_v24, %v785_v25  ;;  %v9114_v38 = vcombine.low %v781_v24, %v785_v25  ;;  %v832_v24 = vld [vmem:[%s10635_s12 + $0xca0] sm:$0xff] }
 0x130   : > { %6707 = vmatpush1.bf16.msra.mxu0 %v9056_v32  ;;  %7035 = vmatpush1.bf16.msra.mxu1 %v9058_v33  ;;  %v792_v32 = vld [vmem:[%s10635_s12 + $0xb60] sm:$0xff]  ;;  %v789_v33 = vld [vmem:[%s10635_s12 + $0xb48] sm:$0xff] }
 0x131   : > { %6708 = vmatprep.subr.bf16.mxu0 %v9065_v35  ;;  %7036 = vmatprep.subr.bf16.mxu1 %v9067_v37  ;;  %v793_v35 = vld [vmem:[%s10635_s12 + $0xb68] sm:$0xff]  ;;  %v9112_v37 = vcombine.low %v780_v21, %v784_v22  ;;  %v9121_v39 = vcombine.high %v788_v31, %v792_v32  ;;  %v828_v22 = vld [vmem:[%s10635_s12 + $0xc80] sm:$0xff] }
 0x132   : > { %v9123_v40 = vcombine.high %v789_v33, %v793_v35  ;;  %v9122_v48 = vcombine.low %v789_v33, %v793_v35  ;;  %v836_v33 = vld [vmem:[%s10635_s12 + $0xcc0] sm:$0xff] }
 0x133   : > { %v840_v35 = vld [vmem:[%s10635_s12 + $0xce0] sm:$0xff] }
 0x134   : > { %6709 = vmatpush1.bf16.msra.mxu0 %v9064_v43  ;;  %7037 = vmatpush1.bf16.msra.mxu1 %v9066_v44  ;;  %v800_v43 = vld [vmem:[%s10635_s12 + $0xba0] sm:$0xff]  ;;  %v797_v44 = vld [vmem:[%s10635_s12 + $0xb88] sm:$0xff] }
 0x135   : > { %6710 = vmatprep.subr.bf16.mxu0 %v9073_v45  ;;  %7038 = vmatprep.subr.bf16.mxu1 %v9075_v46  ;;  %v801_v45 = vld [vmem:[%s10635_s12 + $0xba8] sm:$0xff]  ;;  %v9120_v46 = vcombine.low %v788_v31, %v792_v32  ;;  %v9129_v49 = vcombine.high %v796_v41, %v800_v43  ;;  %v9128_v58 = vcombine.low %v796_v41, %v800_v43 }
 0x136   : > { %v9131_v50 = vcombine.high %v797_v44, %v801_v45  ;;  %v9130_v59 = vcombine.low %v797_v44, %v801_v45  ;;  %v9161_v31 = vcombine.high %v828_v22, %v832_v24  ;;  %v9169_v41 = vcombine.high %v836_v33, %v840_v35  ;;  %v844_v44 = vld [vmem:[%s10635_s12 + $0xd00] sm:$0xff] }
 0x137   : > { %v848_v45 = vld [vmem:[%s10635_s12 + $0xd20] sm:$0xff] }
 0x138   : > { %6711 = vmatpush1.bf16.msra.mxu0 %v9072_v53  ;;  %7039 = vmatpush1.bf16.msra.mxu1 %v9074_v54  ;;  %v808_v53 = vld [vmem:[%s10635_s12 + $0xbe0] sm:$0xff]  ;;  %v805_v54 = vld [vmem:[%s10635_s12 + $0xbc8] sm:$0xff] }
 0x139   : > { %6712 = vmatprep.subr.bf16.mxu0 %v9081_v55  ;;  %7040 = vmatprep.subr.bf16.mxu1 %v9083_v57  ;;  %v809_v55 = vld [vmem:[%s10635_s12 + $0xbe8] sm:$0xff]  ;;  %v10901_v57 = vsub.s32 4, %v10678_v42  ;;  %v9137_v60 = vcombine.high %v804_v52, %v808_v53  ;;  %v9136_v7 = vcombine.low %v804_v52, %v808_v53  ;;  %v9177_v52 = vcombine.high %v844_v44, %v848_v45 }
 0x13a   : > { %v9139_v61 = vcombine.high %v805_v54, %v809_v55 }
 0x13b   : > { %v351_v6 = vrot.slane %v10913_v4, %v10901_v57 }
 0x13c   : > { %6713 = vmatpush1.bf16.msra.mxu0 %v9080_v62  ;;  %7041 = vmatpush1.bf16.msra.mxu1 %v9082_v63  ;;  %v812_v62 = vld [vmem:[%s10635_s12 + $0xc00] sm:$0xff] }
 0x13d   : > { %6714 = vmatprep.subr.bf16.mxu0 %v9089_v0  ;;  %7042 = vmatprep.subr.bf16.mxu1 %v9091_v2  ;;  %v816_v63 = vld [vmem:[%s10635_s12 + $0xc20] sm:$0xff]  ;;  %v10906_v0 = vsub.s32 7, %v10678_v42  ;;  %v813_v2 = vld [vmem:[%s10635_s12 + $0xc08] sm:$0xff]  ;;  %v10921_v15 = vpack.c.bf16 %v351_v6, %v351_v6 }
 0x13e   : > { %v861_v6 = vld [vmem:[%s10635_s12 + $0xd88] sm:$0xff] }
 0x13f   : > { %v363_v14 = vrot.slane %v10913_v4, %v10906_v0 }
 0x140   : > { %6715 = vmatpush1.bf16.msra.mxu0 %v9088_v8  ;;  %7043 = vmatpush1.bf16.msra.mxu1 %v9090_v9  ;;  %v9138_v8 = vcombine.low %v805_v54, %v809_v55  ;;  %v9145_v9 = vcombine.high %v812_v62, %v816_v63  ;;  %v852_v54 = vld [vmem:[%s10635_s12 + $0xd40] sm:$0xff] }
 0x141   : > { %6716 = vmatprep.subr.bf16.mxu0 %v9097_v10  ;;  %7044 = vmatprep.subr.bf16.mxu1 %v9099_v11  ;;  %v9147_v10 = vcombine.high %v813_v2, %v817_v3  ;;  %v820_v11 = vld [vmem:[%s10635_s12 + $0xc40] sm:$0xff]  ;;  %v10927_v25 = vpack.c.bf16 %v363_v14, %v363_v14 }
 0x142   : > { %v856_v55 = vld [vmem:[%s10635_s12 + $0xd60] sm:$0xff] }
 0x143   : > { %v872_v14 = vld [vmem:[%s10635_s12 + $0xde0] sm:$0xff] }
 0x144   : > { %6717 = vmatpush1.bf16.msra.mxu0 %v9096_v17  ;;  %7045 = vmatpush1.bf16.msra.mxu1 %v9098_v18  ;;  %v825_v17 = vld [vmem:[%s10635_s12 + $0xc68] sm:$0xff]  ;;  %v9144_v18 = vcombine.low %v812_v62, %v816_v63  ;;  %v9185_v62 = vcombine.high %v852_v54, %v856_v55 }
 0x145   : > { %6718 = vmatprep.subr.bf16.mxu0 %v9105_v19  ;;  %7046 = vmatprep.subr.bf16.mxu1 %v9107_v20  ;;  %v9146_v19 = vcombine.low %v813_v2, %v817_v3  ;;  %v9153_v20 = vcombine.high %v820_v11, %v824_v13  ;;  %v9155_v21 = vcombine.high %v821_v16, %v825_v17  ;;  %v860_v2 = vld [vmem:[%s10635_s12 + $0xd80] sm:$0xff] }
 0x146   : > { %v864_v3 = vld [vmem:[%s10635_s12 + $0xda0] sm:$0xff] }
 0x148   : > { %6719 = vmatpush1.bf16.msra.mxu0 %v9104_v27  ;;  %7047 = vmatpush1.bf16.msra.mxu1 %v9106_v28  ;;  %v829_v27 = vld [vmem:[%s10635_s12 + $0xc88] sm:$0xff] }
 0x149   : > { %6720 = vmatprep.subr.bf16.mxu0 %v9113_v29  ;;  %7048 = vmatprep.subr.bf16.mxu1 %v9115_v30  ;;  %v833_v28 = vld [vmem:[%s10635_s12 + $0xca8] sm:$0xff]  ;;  %v9152_v29 = vcombine.low %v820_v11, %v824_v13  ;;  %v9154_v30 = vcombine.low %v821_v16, %v825_v17  ;;  %v868_v13 = vld [vmem:[%s10635_s12 + $0xdc0] sm:$0xff] }
 0x14a   : > { %v9163_v32 = vcombine.high %v829_v27, %v833_v28  ;;  %v869_v16 = vld [vmem:[%s10635_s12 + $0xdc8] sm:$0xff] }
 0x14b   : > { %v873_v17 = vld [vmem:[%s10635_s12 + $0xde8] sm:$0xff] }
 0x14c   : > { %6721 = vmatpush1.bf16.msra.mxu0 %v9112_v37  ;;  %7049 = vmatpush1.bf16.msra.mxu1 %v9114_v38  ;;  %v837_v37 = vld [vmem:[%s10635_s12 + $0xcc8] sm:$0xff] }
 0x14d   : > { %6722 = vmatprep.subr.bf16.mxu0 %v9121_v39  ;;  %7050 = vmatprep.subr.bf16.mxu1 %v9123_v40  ;;  %v841_v38 = vld [vmem:[%s10635_s12 + $0xce8] sm:$0xff]  ;;  %v9160_v39 = vcombine.low %v828_v22, %v832_v24  ;;  %v9162_v40 = vcombine.low %v829_v27, %v833_v28  ;;  %v876_v22 = vld [vmem:[%s10635_s12 + $0xe00] sm:$0xff] }
 0x14e   : > { %v9171_v43 = vcombine.high %v837_v37, %v841_v38  ;;  %v880_v24 = vld [vmem:[%s10635_s12 + $0xe20] sm:$0xff]  ;;  %v877_v27 = vld [vmem:[%s10635_s12 + $0xe08] sm:$0xff] }
 0x14f   : > { %v881_v28 = vld [vmem:[%s10635_s12 + $0xe28] sm:$0xff] }
 0x150   : > { %6723 = vmatpush1.bf16.msra.mxu0 %v9120_v46  ;;  %7051 = vmatpush1.bf16.msra.mxu1 %v9122_v48  ;;  %v845_v46 = vld [vmem:[%s10635_s12 + $0xd08] sm:$0xff] }
 0x151   : > { %6724 = vmatprep.subr.bf16.mxu0 %v9129_v49  ;;  %7052 = vmatprep.subr.bf16.mxu1 %v9131_v50  ;;  %v849_v48 = vld [vmem:[%s10635_s12 + $0xd28] sm:$0xff]  ;;  %v9168_v49 = vcombine.low %v836_v33, %v840_v35  ;;  %v9170_v50 = vcombine.low %v837_v37, %v841_v38  ;;  %v884_v33 = vld [vmem:[%s10635_s12 + $0xe40] sm:$0xff] }
 0x152   : > { %v9179_v53 = vcombine.high %v845_v46, %v849_v48  ;;  %v888_v35 = vld [vmem:[%s10635_s12 + $0xe60] sm:$0xff]  ;;  %v885_v37 = vld [vmem:[%s10635_s12 + $0xe48] sm:$0xff] }
 0x153   : > { %v889_v38 = vld [vmem:[%s10635_s12 + $0xe68] sm:$0xff] }
 0x154   : > { %6725 = vmatpush1.bf16.msra.mxu0 %v9128_v58  ;;  %7053 = vmatpush1.bf16.msra.mxu1 %v9130_v59  ;;  %v853_v58 = vld [vmem:[%s10635_s12 + $0xd48] sm:$0xff] }
 0x155   : > { %6726 = vmatprep.subr.bf16.mxu0 %v9137_v60  ;;  %7054 = vmatprep.subr.bf16.mxu1 %v9139_v61  ;;  %v857_v59 = vld [vmem:[%s10635_s12 + $0xd68] sm:$0xff]  ;;  %v9176_v60 = vcombine.low %v844_v44, %v848_v45  ;;  %v9178_v61 = vcombine.low %v845_v46, %v849_v48  ;;  %v892_v44 = vld [vmem:[%s10635_s12 + $0xe80] sm:$0xff] }
 0x156   : > { %v9187_v63 = vcombine.high %v853_v58, %v857_v59  ;;  %v896_v45 = vld [vmem:[%s10635_s12 + $0xea0] sm:$0xff]  ;;  %v893_v46 = vld [vmem:[%s10635_s12 + $0xe88] sm:$0xff] }
 0x157   : > { %v897_v48 = vld [vmem:[%s10635_s12 + $0xea8] sm:$0xff] }
 0x158   : > { %6727 = vmatpush1.bf16.msra.mxu0 %v9136_v7  ;;  %7055 = vmatpush1.bf16.msra.mxu1 %v9138_v8  ;;  %v865_v7 = vld [vmem:[%s10635_s12 + $0xda8] sm:$0xff]  ;;  %v9184_v8 = vcombine.low %v852_v54, %v856_v55  ;;  %v900_v54 = vld [vmem:[%s10635_s12 + $0xec0] sm:$0xff] }
 0x159   : > { %6737 = vmatprep.subr.bf16.mxu0 %v9145_v9  ;;  %7065 = vmatprep.subr.bf16.mxu1 %v9147_v10  ;;  %v9186_v9 = vcombine.low %v853_v58, %v857_v59  ;;  %v9193_v10 = vcombine.high %v860_v2, %v864_v3  ;;  %v9195_v11 = vcombine.high %v861_v6, %v865_v7  ;;  %v904_v55 = vld [vmem:[%s10635_s12 + $0xee0] sm:$0xff]  ;;  %v901_v58 = vld [vmem:[%s10635_s12 + $0xec8] sm:$0xff] }
 0x15a   : > { %v905_v59 = vld [vmem:[%s10635_s12 + $0xee8] sm:$0xff] }
 0x15b   : > { %6729 = vmatmul.mubr.bf16.vlgmr.msra.gmra.mrb[0].mxu0 %v10921_v15  ;;  %7057 = vmatmul.mubr.bf16.vlgmr.msra.gmra.mrb[0].mxu1 %v10921_v15 }
 0x15c   : > { %6738 = vmatpush1.bf16.msra.mxu0 %v9144_v18  ;;  %7066 = vmatpush1.bf16.msra.mxu1 %v9146_v19  ;;  %v9192_v18 = vcombine.low %v860_v2, %v864_v3  ;;  %v9194_v19 = vcombine.low %v861_v6, %v865_v7  ;;  %v908_v2 = vld [vmem:[%s10635_s12 + $0xf00] sm:$0xff]  ;;  %v909_v6 = vld [vmem:[%s10635_s12 + $0xf08] sm:$0xff] }
 0x15d   : > { %6739 = vmatprep.subr.bf16.mxu0 %v9153_v20  ;;  %7067 = vmatprep.subr.bf16.mxu1 %v9155_v21  ;;  %v9201_v20 = vcombine.high %v868_v13, %v872_v14  ;;  %v9203_v21 = vcombine.high %v869_v16, %v873_v17  ;;  %v912_v3 = vld [vmem:[%s10635_s12 + $0xf20] sm:$0xff]  ;;  %v913_v7 = vld [vmem:[%s10635_s12 + $0xf28] sm:$0xff] }
 0x15e   : > { %6769 = vmatprep.mubr.bf16.mxu0 %v10927_v25  ;;  %7097 = vmatprep.mubr.bf16.mxu1 %v10927_v25 }
 0x160   : > { %6740 = vmatpush1.bf16.msra.mxu0 %v9152_v29  ;;  %7068 = vmatpush1.bf16.msra.mxu1 %v9154_v30  ;;  %v9200_v29 = vcombine.low %v868_v13, %v872_v14  ;;  %v9202_v30 = vcombine.low %v869_v16, %v873_v17  ;;  %v916_v13 = vld [vmem:[%s10635_s12 + $0xf40] sm:$0xff]  ;;  %v917_v16 = vld [vmem:[%s10635_s12 + $0xf48] sm:$0xff] }
 0x161   : > { %6741 = vmatprep.subr.bf16.mxu0 %v9161_v31  ;;  %7069 = vmatprep.subr.bf16.mxu1 %v9163_v32  ;;  %v9209_v31 = vcombine.high %v876_v22, %v880_v24  ;;  %v9211_v32 = vcombine.high %v877_v27, %v881_v28  ;;  %v920_v14 = vld [vmem:[%s10635_s12 + $0xf60] sm:$0xff]  ;;  %v921_v17 = vld [vmem:[%s10635_s12 + $0xf68] sm:$0xff] }
 0x164   : > { %6742 = vmatpush1.bf16.msra.mxu0 %v9160_v39  ;;  %7070 = vmatpush1.bf16.msra.mxu1 %v9162_v40  ;;  %v9208_v39 = vcombine.low %v876_v22, %v880_v24  ;;  %v9210_v40 = vcombine.low %v877_v27, %v881_v28  ;;  %v924_v22 = vld [vmem:[%s10635_s12 + $0xf80] sm:$0xff]  ;;  %v925_v27 = vld [vmem:[%s10635_s12 + $0xf88] sm:$0xff] }
 0x165   : > { %6743 = vmatprep.subr.bf16.mxu0 %v9169_v41  ;;  %7071 = vmatprep.subr.bf16.mxu1 %v9171_v43  ;;  %v9217_v41 = vcombine.high %v884_v33, %v888_v35  ;;  %v9219_v43 = vcombine.high %v885_v37, %v889_v38  ;;  %v928_v24 = vld [vmem:[%s10635_s12 + $0xfa0] sm:$0xff]  ;;  %v929_v28 = vld [vmem:[%s10635_s12 + $0xfa8] sm:$0xff] }
 0x168   : > { %6744 = vmatpush1.bf16.msra.mxu0 %v9168_v49  ;;  %7072 = vmatpush1.bf16.msra.mxu1 %v9170_v50  ;;  %v9216_v49 = vcombine.low %v884_v33, %v888_v35  ;;  %v9218_v50 = vcombine.low %v885_v37, %v889_v38  ;;  %v932_v33 = vld [vmem:[%s10635_s12 + $0xfc0] sm:$0xff]  ;;  %v933_v37 = vld [vmem:[%s10635_s12 + $0xfc8] sm:$0xff] }
 0x169   : > { %6745 = vmatprep.subr.bf16.mxu0 %v9177_v52  ;;  %7073 = vmatprep.subr.bf16.mxu1 %v9179_v53  ;;  %v9225_v52 = vcombine.high %v892_v44, %v896_v45  ;;  %v9227_v53 = vcombine.high %v893_v46, %v897_v48  ;;  %v936_v35 = vld [vmem:[%s10635_s12 + $0xfe0] sm:$0xff]  ;;  %v937_v38 = vld [vmem:[%s10635_s12 + $0xfe8] sm:$0xff] }
 0x16c   : > { %6746 = vmatpush1.bf16.msra.mxu0 %v9176_v60  ;;  %7074 = vmatpush1.bf16.msra.mxu1 %v9178_v61  ;;  %v9224_v60 = vcombine.low %v892_v44, %v896_v45  ;;  %v9226_v61 = vcombine.low %v893_v46, %v897_v48  ;;  %v9267_v44 = vcombine.high %v933_v37, %v937_v38  ;;  %v940_v45 = vld [vmem:[%s10635_s12 + $0x1000] sm:$0xff]  ;;  %v941_v48 = vld [vmem:[%s10635_s12 + $0x1008] sm:$0xff] }
 0x16d   : > { %6747 = vmatprep.subr.bf16.mxu0 %v9185_v62  ;;  %7075 = vmatprep.subr.bf16.mxu1 %v9187_v63  ;;  %v9233_v62 = vcombine.high %v900_v54, %v904_v55  ;;  %v9235_v63 = vcombine.high %v901_v58, %v905_v59  ;;  %v944_v46 = vld [vmem:[%s10635_s12 + $0x1020] sm:$0xff] }
 0x170   : > { %6748 = vmatpush1.bf16.msra.mxu0 %v9184_v8  ;;  %7076 = vmatpush1.bf16.msra.mxu1 %v9186_v9  ;;  %v9232_v8 = vcombine.low %v900_v54, %v904_v55  ;;  %v9234_v9 = vcombine.low %v901_v58, %v905_v59  ;;  %v9273_v54 = vcombine.high %v940_v45, %v944_v46  ;;  %v948_v58 = vld [vmem:[%s10635_s12 + $0x1040] sm:$0xff] }
 0x171   : > { %6749 = vmatprep.subr.bf16.mxu0 %v9193_v10  ;;  %7077 = vmatprep.subr.bf16.mxu1 %v9195_v11  ;;  %v9241_v10 = vcombine.high %v908_v2, %v912_v3  ;;  %v9243_v11 = vcombine.high %v909_v6, %v913_v7  ;;  %v952_v59 = vld [vmem:[%s10635_s12 + $0x1060] sm:$0xff] }
 0x174   : > { %6750 = vmatpush1.bf16.msra.mxu0 %v9192_v18  ;;  %7078 = vmatpush1.bf16.msra.mxu1 %v9194_v19  ;;  %v9240_v18 = vcombine.low %v908_v2, %v912_v3  ;;  %v9242_v19 = vcombine.low %v909_v6, %v913_v7  ;;  %v9281_v3 = vcombine.high %v948_v58, %v952_v59  ;;  %v956_v7 = vld [vmem:[%s10635_s12 + $0x1080] sm:$0xff] }
 0x175   : > { %6751 = vmatprep.subr.bf16.mxu0 %v9201_v20  ;;  %7079 = vmatprep.subr.bf16.mxu1 %v9203_v21  ;;  %v9249_v20 = vcombine.high %v916_v13, %v920_v14  ;;  %v9251_v21 = vcombine.high %v917_v16, %v921_v17 }
 0x178   : > { %6752 = vmatpush1.bf16.msra.mxu0 %v9200_v29  ;;  %7080 = vmatpush1.bf16.msra.mxu1 %v9202_v30  ;;  %v9248_v29 = vcombine.low %v916_v13, %v920_v14  ;;  %v9250_v30 = vcombine.low %v917_v16, %v921_v17  ;;  %v9280_v13 = vcombine.low %v948_v58, %v952_v59 }
 0x179   : > { %6753 = vmatprep.subr.bf16.mxu0 %v9209_v31  ;;  %7081 = vmatprep.subr.bf16.mxu1 %v9211_v32  ;;  %v9257_v31 = vcombine.high %v924_v22, %v928_v24  ;;  %v9259_v32 = vcombine.high %v925_v27, %v929_v28 }
 0x17c   : > { %6754 = vmatpush1.bf16.msra.mxu0 %v9208_v39  ;;  %7082 = vmatpush1.bf16.msra.mxu1 %v9210_v40  ;;  %v10988_v39 = vsub.s32 6, %v10678_v42  ;;  %v9256_v40 = vcombine.low %v924_v22, %v928_v24 }
 0x17d   : > { %6755 = vmatprep.subr.bf16.mxu0 %v9217_v41  ;;  %7083 = vmatprep.subr.bf16.mxu1 %v9219_v43  ;;  %v9258_v41 = vcombine.low %v925_v27, %v929_v28  ;;  %v9265_v43 = vcombine.high %v932_v33, %v936_v35 }
 0x17e   : > { %v359_v42 = vrot.slane %v10913_v4, %v10988_v39 }
 0x180   : > { %6756 = vmatpush1.bf16.msra.mxu0 %v9216_v49  ;;  %7084 = vmatpush1.bf16.msra.mxu1 %v9218_v50  ;;  %v945_v49 = vld [vmem:[%s10635_s12 + $0x1028] sm:$0xff] }
 0x181   : > { %6757 = vmatprep.subr.bf16.mxu0 %v9225_v52  ;;  %7085 = vmatprep.subr.bf16.mxu1 %v9227_v53  ;;  %v10999_v50 = vld [vmem:[%s11986_s0 + $0x8] sm:$0xff]  ;;  %v9264_v52 = vcombine.low %v932_v33, %v936_v35  ;;  %v9266_v53 = vcombine.low %v933_v37, %v937_v38  ;;  %v9275_v55 = vcombine.high %v941_v48, %v945_v49 }
 0x182   : > { %v371_v4 = vrot.slane %v10999_v50, %v10685_v51  ;;  %v9274_v2 = vcombine.low %v941_v48, %v945_v49 }
 0x184   : > { %6758 = vmatpush1.bf16.msra.mxu0 %v9224_v60  ;;  %7086 = vmatpush1.bf16.msra.mxu1 %v9226_v61  ;;  %v11005_v60 = vpack.c.bf16 %v359_v42, %v359_v42  ;;  %v949_v61 = vld [vmem:[%s10635_s12 + $0x1048] sm:$0xff]  ;;  %v988_v42 = vld [vmem:[%s10635_s12 + $0x1180] sm:$0xff] }
 0x185   : > { %6759 = vmatprep.subr.bf16.mxu0 %v9233_v62  ;;  %7087 = vmatprep.subr.bf16.mxu1 %v9235_v63  ;;  %v953_v62 = vld [vmem:[%s10635_s12 + $0x1068] sm:$0xff]  ;;  %v9272_v63 = vcombine.low %v940_v45, %v944_v46 }
 0x186   : > { %v9283_v6 = vcombine.high %v949_v61, %v953_v62  ;;  %v9282_v14 = vcombine.low %v949_v61, %v953_v62  ;;  %v996_v61 = vld [vmem:[%s10635_s12 + $0x11c0] sm:$0xff] }
 0x187   : > { %v1000_v62 = vld [vmem:[%s10635_s12 + $0x11e0] sm:$0xff] }
 0x188   : > { %6760 = vmatpush1.bf16.msra.mxu0 %v9232_v8  ;;  %7088 = vmatpush1.bf16.msra.mxu1 %v9234_v9  ;;  %v960_v8 = vld [vmem:[%s10635_s12 + $0x10a0] sm:$0xff]  ;;  %v11011_v9 = vpack.c.bf16 %v371_v4, %v371_v4 }
 0x189   : > { %6761 = vmatprep.subr.bf16.mxu0 %v9241_v10  ;;  %7089 = vmatprep.subr.bf16.mxu1 %v9243_v11  ;;  %v957_v10 = vld [vmem:[%s10635_s12 + $0x1088] sm:$0xff]  ;;  %v9289_v16 = vcombine.high %v956_v7, %v960_v8  ;;  %v9288_v22 = vcombine.low %v956_v7, %v960_v8  ;;  %v9329_v7 = vcombine.high %v996_v61, %v1000_v62 }
 0x18a   : > { %v961_v11 = vld [vmem:[%s10635_s12 + $0x10a8] sm:$0xff] }
 0x18b   : > { %v9291_v17 = vcombine.high %v957_v10, %v961_v11  ;;  %v9290_v24 = vcombine.low %v957_v10, %v961_v11  ;;  %v1004_v10 = vld [vmem:[%s10635_s12 + $0x1200] sm:$0xff] }
 0x18c   : > { %6762 = vmatpush1.bf16.msra.mxu0 %v9240_v18  ;;  %7090 = vmatpush1.bf16.msra.mxu1 %v9242_v19  ;;  %v964_v18 = vld [vmem:[%s10635_s12 + $0x10c0] sm:$0xff] }
 0x18d   : > { %6763 = vmatprep.subr.bf16.mxu0 %v9249_v20  ;;  %7091 = vmatprep.subr.bf16.mxu1 %v9251_v21  ;;  %v968_v19 = vld [vmem:[%s10635_s12 + $0x10e0] sm:$0xff]  ;;  %v965_v20 = vld [vmem:[%s10635_s12 + $0x10c8] sm:$0xff] }
 0x18e   : > { %v969_v21 = vld [vmem:[%s10635_s12 + $0x10e8] sm:$0xff]  ;;  %v9297_v27 = vcombine.high %v964_v18, %v968_v19  ;;  %v9296_v33 = vcombine.low %v964_v18, %v968_v19  ;;  %v1008_v11 = vld [vmem:[%s10635_s12 + $0x1220] sm:$0xff] }
 0x18f   : > { %v9299_v28 = vcombine.high %v965_v20, %v969_v21  ;;  %v9298_v35 = vcombine.low %v965_v20, %v969_v21  ;;  %v9337_v18 = vcombine.high %v1004_v10, %v1008_v11  ;;  %v1012_v20 = vld [vmem:[%s10635_s12 + $0x1240] sm:$0xff] }
 0x190   : > { %6764 = vmatpush1.bf16.msra.mxu0 %v9248_v29  ;;  %7092 = vmatpush1.bf16.msra.mxu1 %v9250_v30  ;;  %v972_v29 = vld [vmem:[%s10635_s12 + $0x1100] sm:$0xff] }
 0x191   : > { %6765 = vmatprep.subr.bf16.mxu0 %v9257_v31  ;;  %7093 = vmatprep.subr.bf16.mxu1 %v9259_v32  ;;  %v976_v30 = vld [vmem:[%s10635_s12 + $0x1120] sm:$0xff]  ;;  %v973_v31 = vld [vmem:[%s10635_s12 + $0x1108] sm:$0xff] }
 0x192   : > { %v977_v32 = vld [vmem:[%s10635_s12 + $0x1128] sm:$0xff]  ;;  %v9305_v37 = vcombine.high %v972_v29, %v976_v30  ;;  %v9304_v45 = vcombine.low %v972_v29, %v976_v30  ;;  %v1016_v21 = vld [vmem:[%s10635_s12 + $0x1260] sm:$0xff] }
 0x193   : > { %v9307_v38 = vcombine.high %v973_v31, %v977_v32  ;;  %v9306_v46 = vcombine.low %v973_v31, %v977_v32  ;;  %v9345_v29 = vcombine.high %v1012_v20, %v1016_v21  ;;  %v1020_v31 = vld [vmem:[%s10635_s12 + $0x1280] sm:$0xff] }
 0x194   : > { %6766 = vmatpush1.bf16.msra.mxu0 %v9256_v40  ;;  %7094 = vmatpush1.bf16.msra.mxu1 %v9258_v41  ;;  %v980_v40 = vld [vmem:[%s10635_s12 + $0x1140] sm:$0xff] }
 0x195   : > { %6767 = vmatprep.subr.bf16.mxu0 %v9265_v43  ;;  %7095 = vmatprep.subr.bf16.mxu1 %v9267_v44  ;;  %v984_v41 = vld [vmem:[%s10635_s12 + $0x1160] sm:$0xff]  ;;  %v981_v43 = vld [vmem:[%s10635_s12 + $0x1148] sm:$0xff] }
 0x196   : > { %v985_v44 = vld [vmem:[%s10635_s12 + $0x1168] sm:$0xff]  ;;  %v9313_v48 = vcombine.high %v980_v40, %v984_v41  ;;  %v1024_v32 = vld [vmem:[%s10635_s12 + $0x12a0] sm:$0xff] }
 0x197   : > { %v9315_v49 = vcombine.high %v981_v43, %v985_v44  ;;  %v9314_v58 = vcombine.low %v981_v43, %v985_v44  ;;  %v1028_v43 = vld [vmem:[%s10635_s12 + $0x12c0] sm:$0xff] }
 0x198   : > { %6768 = vmatpush1.bf16.msra.mxu0 %v9264_v52  ;;  %7096 = vmatpush1.bf16.msra.mxu1 %v9266_v53  ;;  %v992_v52 = vld [vmem:[%s10635_s12 + $0x11a0] sm:$0xff]  ;;  %v989_v53 = vld [vmem:[%s10635_s12 + $0x1188] sm:$0xff] }
 0x199   : > { %6778 = vmatprep.subr.bf16.mxu0 %v9273_v54  ;;  %7106 = vmatprep.subr.bf16.mxu1 %v9275_v55  ;;  %v993_v54 = vld [vmem:[%s10635_s12 + $0x11a8] sm:$0xff]  ;;  %v9312_v55 = vcombine.low %v980_v40, %v984_v41  ;;  %v9321_v59 = vcombine.high %v988_v42, %v992_v52  ;;  %v9353_v40 = vcombine.high %v1020_v31, %v1024_v32  ;;  %v1032_v44 = vld [vmem:[%s10635_s12 + $0x12e0] sm:$0xff] }
 0x19a   : > { %v9323_v4 = vcombine.high %v989_v53, %v993_v54 }
 0x19b   : > { %6770 = vmatmul.mubr.bf16.vlgmr.msra.gmra.mrb[0].mxu0 %v11005_v60  ;;  %7098 = vmatmul.mubr.bf16.vlgmr.msra.gmra.mrb[0].mxu1 %v11005_v60 }
 0x19c   : > { %6779 = vmatpush1.bf16.msra.mxu0 %v9272_v63  ;;  %7107 = vmatpush1.bf16.msra.mxu1 %v9274_v2  ;;  %v997_v63 = vld [vmem:[%s10635_s12 + $0x11c8] sm:$0xff] }
 0x19d   : > { %6780 = vmatprep.subr.bf16.mxu0 %v9281_v3  ;;  %7108 = vmatprep.subr.bf16.mxu1 %v9283_v6  ;;  %v1001_v2 = vld [vmem:[%s10635_s12 + $0x11e8] sm:$0xff]  ;;  %v9320_v3 = vcombine.low %v988_v42, %v992_v52  ;;  %v9322_v6 = vcombine.low %v989_v53, %v993_v54  ;;  %v9361_v42 = vcombine.high %v1028_v43, %v1032_v44  ;;  %v1036_v53 = vld [vmem:[%s10635_s12 + $0x1300] sm:$0xff] }
 0x19e   : > { %6810 = vmatprep.mubr.bf16.mxu0 %v11011_v9  ;;  %7138 = vmatprep.mubr.bf16.mxu1 %v11011_v9  ;;  %v9331_v8 = vcombine.high %v997_v63, %v1001_v2  ;;  %v1040_v54 = vld [vmem:[%s10635_s12 + $0x1320] sm:$0xff] }
 0x1a0   : > { %6781 = vmatpush1.bf16.msra.mxu0 %v9280_v13  ;;  %7109 = vmatpush1.bf16.msra.mxu1 %v9282_v14  ;;  %v1005_v13 = vld [vmem:[%s10635_s12 + $0x1208] sm:$0xff] }
 0x1a1   : > { %6782 = vmatprep.subr.bf16.mxu0 %v9289_v16  ;;  %7110 = vmatprep.subr.bf16.mxu1 %v9291_v17  ;;  %v1009_v14 = vld [vmem:[%s10635_s12 + $0x1228] sm:$0xff]  ;;  %v9328_v16 = vcombine.low %v996_v61, %v1000_v62  ;;  %v9330_v17 = vcombine.low %v997_v63, %v1001_v2  ;;  %v9369_v61 = vcombine.high %v1036_v53, %v1040_v54  ;;  %v1044_v63 = vld [vmem:[%s10635_s12 + $0x1340] sm:$0xff] }
 0x1a2   : > { %v9339_v19 = vcombine.high %v1005_v13, %v1009_v14  ;;  %v1048_v2 = vld [vmem:[%s10635_s12 + $0x1360] sm:$0xff] }
 0x1a4   : > { %6783 = vmatpush1.bf16.msra.mxu0 %v9288_v22  ;;  %7111 = vmatpush1.bf16.msra.mxu1 %v9290_v24  ;;  %v1013_v22 = vld [vmem:[%s10635_s12 + $0x1248] sm:$0xff] }
 0x1a5   : > { %6784 = vmatprep.subr.bf16.mxu0 %v9297_v27  ;;  %7112 = vmatprep.subr.bf16.mxu1 %v9299_v28  ;;  %v1017_v24 = vld [vmem:[%s10635_s12 + $0x1268] sm:$0xff]  ;;  %v9336_v27 = vcombine.low %v1004_v10, %v1008_v11  ;;  %v9338_v28 = vcombine.low %v1005_v13, %v1009_v14  ;;  %v9377_v10 = vcombine.high %v1044_v63, %v1048_v2  ;;  %v1052_v13 = vld [vmem:[%s10635_s12 + $0x1380] sm:$0xff] }
 0x1a6   : > { %v9347_v30 = vcombine.high %v1013_v22, %v1017_v24  ;;  %v1056_v14 = vld [vmem:[%s10635_s12 + $0x13a0] sm:$0xff] }
 0x1a8   : > { %6785 = vmatpush1.bf16.msra.mxu0 %v9296_v33  ;;  %7113 = vmatpush1.bf16.msra.mxu1 %v9298_v35  ;;  %v1021_v33 = vld [vmem:[%s10635_s12 + $0x1288] sm:$0xff] }
 0x1a9   : > { %6786 = vmatprep.subr.bf16.mxu0 %v9305_v37  ;;  %7114 = vmatprep.subr.bf16.mxu1 %v9307_v38  ;;  %v1025_v35 = vld [vmem:[%s10635_s12 + $0x12a8] sm:$0xff]  ;;  %v9344_v37 = vcombine.low %v1012_v20, %v1016_v21  ;;  %v9346_v38 = vcombine.low %v1013_v22, %v1017_v24  ;;  %v9385_v20 = vcombine.high %v1052_v13, %v1056_v14  ;;  %v1060_v22 = vld [vmem:[%s10635_s12 + $0x13c0] sm:$0xff] }
 0x1aa   : > { %v9355_v41 = vcombine.high %v1021_v33, %v1025_v35  ;;  %v1064_v24 = vld [vmem:[%s10635_s12 + $0x13e0] sm:$0xff] }
 0x1ac   : > { %6787 = vmatpush1.bf16.msra.mxu0 %v9304_v45  ;;  %7115 = vmatpush1.bf16.msra.mxu1 %v9306_v46  ;;  %v1029_v45 = vld [vmem:[%s10635_s12 + $0x12c8] sm:$0xff] }
 0x1ad   : > { %6788 = vmatprep.subr.bf16.mxu0 %v9313_v48  ;;  %7116 = vmatprep.subr.bf16.mxu1 %v9315_v49  ;;  %v1033_v46 = vld [vmem:[%s10635_s12 + $0x12e8] sm:$0xff]  ;;  %v9352_v48 = vcombine.low %v1020_v31, %v1024_v32  ;;  %v9354_v49 = vcombine.low %v1021_v33, %v1025_v35  ;;  %v9393_v31 = vcombine.high %v1060_v22, %v1064_v24  ;;  %v1068_v33 = vld [vmem:[%s10635_s12 + $0x1400] sm:$0xff] }
 0x1ae   : > { %v9363_v52 = vcombine.high %v1029_v45, %v1033_v46  ;;  %v1072_v35 = vld [vmem:[%s10635_s12 + $0x1420] sm:$0xff] }
 0x1b0   : > { %6789 = vmatpush1.bf16.msra.mxu0 %v9312_v55  ;;  %7117 = vmatpush1.bf16.msra.mxu1 %v9314_v58  ;;  %v1037_v55 = vld [vmem:[%s10635_s12 + $0x1308] sm:$0xff] }
 0x1b1   : > { %6790 = vmatprep.subr.bf16.mxu0 %v9321_v59  ;;  %7118 = vmatprep.subr.bf16.mxu1 %v9323_v4  ;;  %v1041_v58 = vld [vmem:[%s10635_s12 + $0x1328] sm:$0xff]  ;;  %v9360_v59 = vcombine.low %v1028_v43, %v1032_v44  ;;  %v9362_v4 = vcombine.low %v1029_v45, %v1033_v46  ;;  %v9401_v44 = vcombine.high %v1068_v33, %v1072_v35  ;;  %v1076_v46 = vld [vmem:[%s10635_s12 + $0x1440] sm:$0xff] }
 0x1b2   : > { %v9371_v62 = vcombine.high %v1037_v55, %v1041_v58 }
 0x1b4   : > { %6791 = vmatpush1.bf16.msra.mxu0 %v9320_v3  ;;  %7119 = vmatpush1.bf16.msra.mxu1 %v9322_v6  ;;  %v1045_v3 = vld [vmem:[%s10635_s12 + $0x1348] sm:$0xff] }
 0x1b5   : > { %6792 = vmatprep.subr.bf16.mxu0 %v9329_v7  ;;  %7120 = vmatprep.subr.bf16.mxu1 %v9331_v8  ;;  %v1049_v6 = vld [vmem:[%s10635_s12 + $0x1368] sm:$0xff]  ;;  %v9368_v7 = vcombine.low %v1036_v53, %v1040_v54  ;;  %v9370_v8 = vcombine.low %v1037_v55, %v1041_v58  ;;  %v9400_v54 = vcombine.low %v1068_v33, %v1072_v35 }
 0x1b6   : > { %v9379_v11 = vcombine.high %v1045_v3, %v1049_v6  ;;  %v1081_v53 = vld [vmem:[%s10635_s12 + $0x1468] sm:$0xff] }
 0x1b7   : > { %v1109_v33 = vld [vmem:[%s10635_s12 + $0x1548] sm:$0xff] }
 0x1b8   : > { %6793 = vmatpush1.bf16.msra.mxu0 %v9328_v16  ;;  %7121 = vmatpush1.bf16.msra.mxu1 %v9330_v17  ;;  %v1053_v16 = vld [vmem:[%s10635_s12 + $0x1388] sm:$0xff] }
 0x1b9   : > { %6794 = vmatprep.subr.bf16.mxu0 %v9337_v18  ;;  %7122 = vmatprep.subr.bf16.mxu1 %v9339_v19  ;;  %v1057_v17 = vld [vmem:[%s10635_s12 + $0x13a8] sm:$0xff]  ;;  %v9376_v18 = vcombine.low %v1044_v63, %v1048_v2  ;;  %v9378_v19 = vcombine.low %v1045_v3, %v1049_v6 }
 0x1ba   : > { %v9387_v21 = vcombine.high %v1053_v16, %v1057_v17  ;;  %v1085_v63 = vld [vmem:[%s10635_s12 + $0x1488] sm:$0xff] }
 0x1bb   : > { %v1089_v2 = vld [vmem:[%s10635_s12 + $0x14a8] sm:$0xff] }
 0x1bc   : > { %6795 = vmatpush1.bf16.msra.mxu0 %v9336_v27  ;;  %7123 = vmatpush1.bf16.msra.mxu1 %v9338_v28  ;;  %v1061_v27 = vld [vmem:[%s10635_s12 + $0x13c8] sm:$0xff] }
 0x1bd   : > { %6796 = vmatprep.subr.bf16.mxu0 %v9345_v29  ;;  %7124 = vmatprep.subr.bf16.mxu1 %v9347_v30  ;;  %v1065_v28 = vld [vmem:[%s10635_s12 + $0x13e8] sm:$0xff]  ;;  %v9384_v29 = vcombine.low %v1052_v13, %v1056_v14  ;;  %v9386_v30 = vcombine.low %v1053_v16, %v1057_v17  ;;  %v9418_v17 = vcombine.low %v1085_v63, %v1089_v2 }
 0x1be   : > { %v9395_v32 = vcombine.high %v1061_v27, %v1065_v28  ;;  %v9394_v43 = vcombine.low %v1061_v27, %v1065_v28  ;;  %v1093_v13 = vld [vmem:[%s10635_s12 + $0x14c8] sm:$0xff] }
 0x1bf   : > { %v1097_v14 = vld [vmem:[%s10635_s12 + $0x14e8] sm:$0xff] }
 0x1c0   : > { %6797 = vmatpush1.bf16.msra.mxu0 %v9344_v37  ;;  %7125 = vmatpush1.bf16.msra.mxu1 %v9346_v38  ;;  %v1069_v37 = vld [vmem:[%s10635_s12 + $0x1408] sm:$0xff]  ;;  %v9426_v28 = vcombine.low %v1093_v13, %v1097_v14 }
 0x1c1   : > { %6798 = vmatprep.subr.bf16.mxu0 %v9353_v40  ;;  %7126 = vmatprep.subr.bf16.mxu1 %v9355_v41  ;;  %v1073_v38 = vld [vmem:[%s10635_s12 + $0x1428] sm:$0xff]  ;;  %v367_v40 = vrot.slane %v10999_v50, %v10737_v5  ;;  %v9392_v41 = vcombine.low %v1060_v22, %v1064_v24 }
 0x1c2   : > { %v9403_v45 = vcombine.high %v1069_v37, %v1073_v38  ;;  %v9402_v55 = vcombine.low %v1069_v37, %v1073_v38  ;;  %v1101_v22 = vld [vmem:[%s10635_s12 + $0x1508] sm:$0xff] }
 0x1c3   : > { %v1105_v24 = vld [vmem:[%s10635_s12 + $0x1528] sm:$0xff] }
 0x1c4   : > { %6799 = vmatpush1.bf16.msra.mxu0 %v9352_v48  ;;  %7127 = vmatpush1.bf16.msra.mxu1 %v9354_v49  ;;  %v1080_v48 = vld [vmem:[%s10635_s12 + $0x1460] sm:$0xff]  ;;  %v379_v49 = vrot.slane %v10999_v50, %v10742_v12  ;;  %v1113_v35 = vld [vmem:[%s10635_s12 + $0x1568] sm:$0xff]  ;;  %v9434_v38 = vcombine.low %v1101_v22, %v1105_v24 }
 0x1c5   : > { %6800 = vmatprep.subr.bf16.mxu0 %v9361_v42  ;;  %7128 = vmatprep.subr.bf16.mxu1 %v9363_v52  ;;  %v11081_v42 = vpack.c.bf16 %v367_v40, %v367_v40  ;;  %v1077_v52 = vld [vmem:[%s10635_s12 + $0x1448] sm:$0xff]  ;;  %v9409_v58 = vcombine.high %v1076_v46, %v1080_v48  ;;  %v9408_v3 = vcombine.low %v1076_v46, %v1080_v48 }
 0x1c6   : > { %v9410_v6 = vcombine.low %v1077_v52, %v1081_v53  ;;  %v1121_v46 = vld [vmem:[%s10635_s12 + $0x15a8] sm:$0xff] }
 0x1c8   : > { %6801 = vmatpush1.bf16.msra.mxu0 %v9360_v59  ;;  %7129 = vmatpush1.bf16.msra.mxu1 %v9362_v4  ;;  %v9411_v59 = vcombine.high %v1077_v52, %v1081_v53  ;;  %v1084_v4 = vld [vmem:[%s10635_s12 + $0x1480] sm:$0xff] }
 0x1c9   : > { %6802 = vmatprep.subr.bf16.mxu0 %v9369_v61  ;;  %7130 = vmatprep.subr.bf16.mxu1 %v9371_v62  ;;  %v1088_v61 = vld [vmem:[%s10635_s12 + $0x14a0] sm:$0xff]  ;;  %v11087_v62 = vpack.c.bf16 %v379_v49, %v379_v49  ;;  %v9442_v49 = vcombine.low %v1109_v33, %v1113_v35 }
 0x1ca   : > { %v9416_v16 = vcombine.low %v1084_v4, %v1088_v61 }
 0x1cc   : > { %6803 = vmatpush1.bf16.msra.mxu0 %v9368_v7  ;;  %7131 = vmatpush1.bf16.msra.mxu1 %v9370_v8  ;;  %v9417_v7 = vcombine.high %v1084_v4, %v1088_v61  ;;  %v9419_v8 = vcombine.high %v1085_v63, %v1089_v2 }
 0x1cd   : > { %6804 = vmatprep.subr.bf16.mxu0 %v9377_v10  ;;  %7132 = vmatprep.subr.bf16.mxu1 %v9379_v11  ;;  %v1092_v10 = vld [vmem:[%s10635_s12 + $0x14c0] sm:$0xff] }
 0x1ce   : > { %v1096_v11 = vld [vmem:[%s10635_s12 + $0x14e0] sm:$0xff] }
 0x1cf   : > { %v9424_v27 = vcombine.low %v1092_v10, %v1096_v11 }
 0x1d0   : > { %6805 = vmatpush1.bf16.msra.mxu0 %v9376_v18  ;;  %7133 = vmatpush1.bf16.msra.mxu1 %v9378_v19  ;;  %v9425_v18 = vcombine.high %v1092_v10, %v1096_v11  ;;  %v9427_v19 = vcombine.high %v1093_v13, %v1097_v14 }
 0x1d1   : > { %6806 = vmatprep.subr.bf16.mxu0 %v9385_v20  ;;  %7134 = vmatprep.subr.bf16.mxu1 %v9387_v21  ;;  %v1100_v20 = vld [vmem:[%s10635_s12 + $0x1500] sm:$0xff] }
 0x1d2   : > { %v1104_v21 = vld [vmem:[%s10635_s12 + $0x1520] sm:$0xff] }
 0x1d3   : > { %v9432_v37 = vcombine.low %v1100_v20, %v1104_v21 }
 0x1d4   : > { %6807 = vmatpush1.bf16.msra.mxu0 %v9384_v29  ;;  %7135 = vmatpush1.bf16.msra.mxu1 %v9386_v30  ;;  %v9433_v29 = vcombine.high %v1100_v20, %v1104_v21  ;;  %v9435_v30 = vcombine.high %v1101_v22, %v1105_v24 }
 0x1d5   : > { %6808 = vmatprep.subr.bf16.mxu0 %v9393_v31  ;;  %7136 = vmatprep.subr.bf16.mxu1 %v9395_v32  ;;  %v1108_v31 = vld [vmem:[%s10635_s12 + $0x1540] sm:$0xff] }
 0x1d6   : > { %v1112_v32 = vld [vmem:[%s10635_s12 + $0x1560] sm:$0xff] }
 0x1d7   : > { %v9441_v40 = vcombine.high %v1108_v31, %v1112_v32  ;;  %v9440_v48 = vcombine.low %v1108_v31, %v1112_v32 }
 0x1d8   : > { %6809 = vmatpush1.bf16.msra.mxu0 %v9392_v41  ;;  %7137 = vmatpush1.bf16.msra.mxu1 %v9394_v43  ;;  %v9443_v41 = vcombine.high %v1109_v33, %v1113_v35  ;;  %v1116_v43 = vld [vmem:[%s10635_s12 + $0x1580] sm:$0xff] }
 0x1d9   : > { %6819 = vmatprep.subr.bf16.mxu0 %v9401_v44  ;;  %7147 = vmatprep.subr.bf16.mxu1 %v9403_v45  ;;  %v1120_v44 = vld [vmem:[%s10635_s12 + $0x15a0] sm:$0xff]  ;;  %v1117_v45 = vld [vmem:[%s10635_s12 + $0x1588] sm:$0xff] }
 0x1da   : > { %v9449_v52 = vcombine.high %v1116_v43, %v1120_v44  ;;  %v9451_v53 = vcombine.high %v1117_v45, %v1121_v46  ;;  %v9448_v4 = vcombine.low %v1116_v43, %v1120_v44  ;;  %v9450_v61 = vcombine.low %v1117_v45, %v1121_v46 }
 0x1db   : > { %6811 = vmatmul.mubr.bf16.vlgmr.msra.gmra.mrb[0].mxu0 %v11081_v42  ;;  %7139 = vmatmul.mubr.bf16.vlgmr.msra.gmra.mrb[0].mxu1 %v11081_v42 }
 0x1dc   : > { %6820 = vmatpush1.bf16.msra.mxu0 %v9400_v54  ;;  %7148 = vmatpush1.bf16.msra.mxu1 %v9402_v55  ;;  %v1124_v54 = vld [vmem:[%s10635_s12 + $0x15c0] sm:$0xff] }
 0x1dd   : > { %6821 = vmatprep.subr.bf16.mxu0 %v9409_v58  ;;  %7149 = vmatprep.subr.bf16.mxu1 %v9411_v59  ;;  %v1128_v55 = vld [vmem:[%s10635_s12 + $0x15e0] sm:$0xff]  ;;  %v1125_v58 = vld [vmem:[%s10635_s12 + $0x15c8] sm:$0xff] }
 0x1de   : > { %6851 = vmatprep.mubr.bf16.mxu0 %v11087_v62  ;;  %7179 = vmatprep.mubr.bf16.mxu1 %v11087_v62  ;;  %v1129_v59 = vld [vmem:[%s10635_s12 + $0x15e8] sm:$0xff]  ;;  %v9457_v63 = vcombine.high %v1124_v54, %v1128_v55  ;;  %v9456_v10 = vcombine.low %v1124_v54, %v1128_v55 }
 0x1df   : > { %v9459_v2 = vcombine.high %v1125_v58, %v1129_v59  ;;  %v9458_v11 = vcombine.low %v1125_v58, %v1129_v59 }
 0x1e0   : > { %6822 = vmatpush1.bf16.msra.mxu0 %v9408_v3  ;;  %7150 = vmatpush1.bf16.msra.mxu1 %v9410_v6  ;;  %v1132_v3 = vld [vmem:[%s10635_s12 + $0x1600] sm:$0xff] }
 0x1e1   : > { %6823 = vmatprep.subr.bf16.mxu0 %v9417_v7  ;;  %7151 = vmatprep.subr.bf16.mxu1 %v9419_v8  ;;  %v1136_v6 = vld [vmem:[%s10635_s12 + $0x1620] sm:$0xff]  ;;  %v1133_v7 = vld [vmem:[%s10635_s12 + $0x1608] sm:$0xff] }
 0x1e2   : > { %v1137_v8 = vld [vmem:[%s10635_s12 + $0x1628] sm:$0xff]  ;;  %v9465_v13 = vcombine.high %v1132_v3, %v1136_v6  ;;  %v9464_v20 = vcombine.low %v1132_v3, %v1136_v6 }
 0x1e3   : > { %v9467_v14 = vcombine.high %v1133_v7, %v1137_v8  ;;  %v9466_v21 = vcombine.low %v1133_v7, %v1137_v8 }
 0x1e4   : > { %6824 = vmatpush1.bf16.msra.mxu0 %v9416_v16  ;;  %7152 = vmatpush1.bf16.msra.mxu1 %v9418_v17  ;;  %v1140_v16 = vld [vmem:[%s10635_s12 + $0x1640] sm:$0xff] }
 0x1e5   : > { %6825 = vmatprep.subr.bf16.mxu0 %v9425_v18  ;;  %7153 = vmatprep.subr.bf16.mxu1 %v9427_v19  ;;  %v1144_v17 = vld [vmem:[%s10635_s12 + $0x1660] sm:$0xff]  ;;  %v1141_v18 = vld [vmem:[%s10635_s12 + $0x1648] sm:$0xff] }
 0x1e6   : > { %v1145_v19 = vld [vmem:[%s10635_s12 + $0x1668] sm:$0xff]  ;;  %v9473_v22 = vcombine.high %v1140_v16, %v1144_v17  ;;  %v9472_v31 = vcombine.low %v1140_v16, %v1144_v17 }
 0x1e7   : > { %v9475_v24 = vcombine.high %v1141_v18, %v1145_v19  ;;  %v9474_v32 = vcombine.low %v1141_v18, %v1145_v19 }
 0x1e8   : > { %6826 = vmatpush1.bf16.msra.mxu0 %v9424_v27  ;;  %7154 = vmatpush1.bf16.msra.mxu1 %v9426_v28  ;;  %v1148_v27 = vld [vmem:[%s10635_s12 + $0x1680] sm:$0xff] }
 0x1e9   : > { %6827 = vmatprep.subr.bf16.mxu0 %v9433_v29  ;;  %7155 = vmatprep.subr.bf16.mxu1 %v9435_v30  ;;  %v1152_v28 = vld [vmem:[%s10635_s12 + $0x16a0] sm:$0xff]  ;;  %v1149_v29 = vld [vmem:[%s10635_s12 + $0x1688] sm:$0xff] }
 0x1ea   : > { %v1153_v30 = vld [vmem:[%s10635_s12 + $0x16a8] sm:$0xff]  ;;  %v9481_v33 = vcombine.high %v1148_v27, %v1152_v28  ;;  %v9480_v43 = vcombine.low %v1148_v27, %v1152_v28 }
 0x1eb   : > { %v9483_v35 = vcombine.high %v1149_v29, %v1153_v30  ;;  %v9482_v44 = vcombine.low %v1149_v29, %v1153_v30 }
 0x1ec   : > { %6828 = vmatpush1.bf16.msra.mxu0 %v9432_v37  ;;  %7156 = vmatpush1.bf16.msra.mxu1 %v9434_v38  ;;  %v1156_v37 = vld [vmem:[%s10635_s12 + $0x16c0] sm:$0xff] }
 0x1ed   : > { %6829 = vmatprep.subr.bf16.mxu0 %v9441_v40  ;;  %7157 = vmatprep.subr.bf16.mxu1 %v9443_v41  ;;  %v1160_v38 = vld [vmem:[%s10635_s12 + $0x16e0] sm:$0xff]  ;;  %v1157_v40 = vld [vmem:[%s10635_s12 + $0x16c8] sm:$0xff] }
 0x1ee   : > { %v1161_v41 = vld [vmem:[%s10635_s12 + $0x16e8] sm:$0xff]  ;;  %v9489_v45 = vcombine.high %v1156_v37, %v1160_v38  ;;  %v9488_v54 = vcombine.low %v1156_v37, %v1160_v38  ;;  %v375_v37 = vrot.slane %v10999_v50, %v10819_v26 }
 0x1ef   : > { %v9491_v46 = vcombine.high %v1157_v40, %v1161_v41  ;;  %v9490_v55 = vcombine.low %v1157_v40, %v1161_v41 }
 0x1f0   : > { %6830 = vmatpush1.bf16.msra.mxu0 %v9440_v48  ;;  %7158 = vmatpush1.bf16.msra.mxu1 %v9442_v49  ;;  %v1164_v48 = vld [vmem:[%s10635_s12 + $0x1700] sm:$0xff] }
 0x1f1   : > { %6831 = vmatprep.subr.bf16.mxu0 %v9449_v52  ;;  %7159 = vmatprep.subr.bf16.mxu1 %v9451_v53  ;;  %v1168_v49 = vld [vmem:[%s10635_s12 + $0x1720] sm:$0xff]  ;;  %v1165_v52 = vld [vmem:[%s10635_s12 + $0x1708] sm:$0xff] }
 0x1f2   : > { %v1169_v53 = vld [vmem:[%s10635_s12 + $0x1728] sm:$0xff]  ;;  %v9497_v58 = vcombine.high %v1164_v48, %v1168_v49  ;;  %v9496_v3 = vcombine.low %v1164_v48, %v1168_v49  ;;  %v11157_v48 = vpack.c.bf16 %v375_v37, %v375_v37 }
 0x1f3   : > { %v9499_v59 = vcombine.high %v1165_v52, %v1169_v53  ;;  %v9498_v6 = vcombine.low %v1165_v52, %v1169_v53  ;;  %v1205_v49 = vld [vmem:[%s10635_s12 + $0x1848] sm:$0xff] }
 0x1f4   : > { %6832 = vmatpush1.bf16.msra.mxu0 %v9448_v4  ;;  %7160 = vmatpush1.bf16.msra.mxu1 %v9450_v61  ;;  %v1172_v4 = vld [vmem:[%s10635_s12 + $0x1740] sm:$0xff]  ;;  %v1209_v52 = vld [vmem:[%s10635_s12 + $0x1868] sm:$0xff] }
 0x1f5   : > { %6833 = vmatprep.subr.bf16.mxu0 %v9457_v63  ;;  %7161 = vmatprep.subr.bf16.mxu1 %v9459_v2  ;;  %v1176_v61 = vld [vmem:[%s10635_s12 + $0x1760] sm:$0xff]  ;;  %v1173_v63 = vld [vmem:[%s10635_s12 + $0x1748] sm:$0xff] }
 0x1f6   : > { %v1177_v2 = vld [vmem:[%s10635_s12 + $0x1768] sm:$0xff]  ;;  %v9505_v7 = vcombine.high %v1172_v4, %v1176_v61  ;;  %v9504_v16 = vcombine.low %v1172_v4, %v1176_v61  ;;  %v1216_v4 = vld [vmem:[%s10635_s12 + $0x18a0] sm:$0xff] }
 0x1f7   : > { %v9507_v8 = vcombine.high %v1173_v63, %v1177_v2  ;;  %v9506_v17 = vcombine.low %v1173_v63, %v1177_v2  ;;  %v1217_v63 = vld [vmem:[%s10635_s12 + $0x18a8] sm:$0xff] }
 0x1f8   : > { %6834 = vmatpush1.bf16.msra.mxu0 %v9456_v10  ;;  %7162 = vmatpush1.bf16.msra.mxu1 %v9458_v11  ;;  %v1180_v10 = vld [vmem:[%s10635_s12 + $0x1780] sm:$0xff] }
 0x1f9   : > { %6835 = vmatprep.subr.bf16.mxu0 %v9465_v13  ;;  %7163 = vmatprep.subr.bf16.mxu1 %v9467_v14  ;;  %v1184_v11 = vld [vmem:[%s10635_s12 + $0x17a0] sm:$0xff]  ;;  %v1181_v13 = vld [vmem:[%s10635_s12 + $0x1788] sm:$0xff] }
 0x1fa   : > { %v1185_v14 = vld [vmem:[%s10635_s12 + $0x17a8] sm:$0xff]  ;;  %v9513_v18 = vcombine.high %v1180_v10, %v1184_v11  ;;  %v9512_v27 = vcombine.low %v1180_v10, %v1184_v11  ;;  %v1224_v10 = vld [vmem:[%s10635_s12 + $0x18e0] sm:$0xff] }
 0x1fb   : > { %v9515_v19 = vcombine.high %v1181_v13, %v1185_v14  ;;  %v9514_v28 = vcombine.low %v1181_v13, %v1185_v14  ;;  %v1221_v11 = vld [vmem:[%s10635_s12 + $0x18c8] sm:$0xff] }
 0x1fc   : > { %6836 = vmatpush1.bf16.msra.mxu0 %v9464_v20  ;;  %7164 = vmatpush1.bf16.msra.mxu1 %v9466_v21  ;;  %v1188_v20 = vld [vmem:[%s10635_s12 + $0x17c0] sm:$0xff]  ;;  %v1225_v13 = vld [vmem:[%s10635_s12 + $0x18e8] sm:$0xff] }
 0x1fd   : > { %6837 = vmatprep.subr.bf16.mxu0 %v9473_v22  ;;  %7165 = vmatprep.subr.bf16.mxu1 %v9475_v24  ;;  %v1192_v21 = vld [vmem:[%s10635_s12 + $0x17e0] sm:$0xff]  ;;  %v1189_v22 = vld [vmem:[%s10635_s12 + $0x17c8] sm:$0xff] }
 0x1fe   : > { %v1193_v24 = vld [vmem:[%s10635_s12 + $0x17e8] sm:$0xff]  ;;  %v9521_v29 = vcombine.high %v1188_v20, %v1192_v21  ;;  %v9520_v38 = vcombine.low %v1188_v20, %v1192_v21  ;;  %v1232_v20 = vld [vmem:[%s10635_s12 + $0x1920] sm:$0xff] }
 0x1ff   : > { %v9523_v30 = vcombine.high %v1189_v22, %v1193_v24  ;;  %v9522_v40 = vcombine.low %v1189_v22, %v1193_v24  ;;  %v1229_v21 = vld [vmem:[%s10635_s12 + $0x1908] sm:$0xff] }
 0x200   : > { %6838 = vmatpush1.bf16.msra.mxu0 %v9472_v31  ;;  %7166 = vmatpush1.bf16.msra.mxu1 %v9474_v32  ;;  %v1196_v31 = vld [vmem:[%s10635_s12 + $0x1800] sm:$0xff]  ;;  %v1233_v22 = vld [vmem:[%s10635_s12 + $0x1928] sm:$0xff] }
 0x201   : > { %6839 = vmatprep.subr.bf16.mxu0 %v9481_v33  ;;  %7167 = vmatprep.subr.bf16.mxu1 %v9483_v35  ;;  %v1200_v32 = vld [vmem:[%s10635_s12 + $0x1820] sm:$0xff]  ;;  %v1197_v33 = vld [vmem:[%s10635_s12 + $0x1808] sm:$0xff]  ;;  %v9562_v37 = vcombine.low %v1229_v21, %v1233_v22 }
 0x202   : > { %v1201_v35 = vld [vmem:[%s10635_s12 + $0x1828] sm:$0xff]  ;;  %v9529_v41 = vcombine.high %v1196_v31, %v1200_v32  ;;  %v9528_v53 = vcombine.low %v1196_v31, %v1200_v32  ;;  %v1240_v31 = vld [vmem:[%s10635_s12 + $0x1960] sm:$0xff] }
 0x203   : > { %v1237_v32 = vld [vmem:[%s10635_s12 + $0x1948] sm:$0xff] }
 0x204   : > { %6840 = vmatpush1.bf16.msra.mxu0 %v9480_v43  ;;  %7168 = vmatpush1.bf16.msra.mxu1 %v9482_v44  ;;  %v9531_v43 = vcombine.high %v1197_v33, %v1201_v35  ;;  %v1204_v44 = vld [vmem:[%s10635_s12 + $0x1840] sm:$0xff] }
 0x205   : > { %6841 = vmatprep.subr.bf16.mxu0 %v9489_v45  ;;  %7169 = vmatprep.subr.bf16.mxu1 %v9491_v46  ;;  %v1208_v45 = vld [vmem:[%s10635_s12 + $0x1860] sm:$0xff]  ;;  %v387_v46 = vrot.slane %v10999_v50, %v10826_v36  ;;  %v1213_v50 = vld [vmem:[%s10635_s12 + $0x1888] sm:$0xff] }
 0x206   : > { %v9536_v2 = vcombine.low %v1204_v44, %v1208_v45 }
 0x207   : > { %v11163_v61 = vpack.c.bf16 %v387_v46, %v387_v46 }
 0x208   : > { %6842 = vmatpush1.bf16.msra.mxu0 %v9488_v54  ;;  %7170 = vmatpush1.bf16.msra.mxu1 %v9490_v55  ;;  %v9530_v54 = vcombine.low %v1197_v33, %v1201_v35  ;;  %v9537_v55 = vcombine.high %v1204_v44, %v1208_v45  ;;  %v1241_v33 = vld [vmem:[%s10635_s12 + $0x1968] sm:$0xff] }
 0x209   : > { %6843 = vmatprep.subr.bf16.mxu0 %v9497_v58  ;;  %7171 = vmatprep.subr.bf16.mxu1 %v9499_v59  ;;  %v9539_v58 = vcombine.high %v1205_v49, %v1209_v52  ;;  %v1212_v59 = vld [vmem:[%s10635_s12 + $0x1880] sm:$0xff]  ;;  %v1245_v44 = vld [vmem:[%s10635_s12 + $0x1988] sm:$0xff] }
 0x20a   : > { %v9544_v14 = vcombine.low %v1212_v59, %v1216_v4  ;;  %v1249_v45 = vld [vmem:[%s10635_s12 + $0x19a8] sm:$0xff] }
 0x20c   : > { %6844 = vmatpush1.bf16.msra.mxu0 %v9496_v3  ;;  %7172 = vmatpush1.bf16.msra.mxu1 %v9498_v6  ;;  %v9538_v3 = vcombine.low %v1205_v49, %v1209_v52  ;;  %v9545_v6 = vcombine.high %v1212_v59, %v1216_v4  ;;  %v9570_v49 = vcombine.low %v1237_v32, %v1241_v33  ;;  %v1257_v59 = vld [vmem:[%s10635_s12 + $0x19e8] sm:$0xff] }
 0x20d   : > { %6845 = vmatprep.subr.bf16.mxu0 %v9505_v7  ;;  %7173 = vmatprep.subr.bf16.mxu1 %v9507_v8  ;;  %v9547_v7 = vcombine.high %v1213_v50, %v1217_v63  ;;  %v1220_v8 = vld [vmem:[%s10635_s12 + $0x18c0] sm:$0xff] }
 0x20e   : > { %v9552_v24 = vcombine.low %v1220_v8, %v1224_v10 }
 0x210   : > { %6846 = vmatpush1.bf16.msra.mxu0 %v9504_v16  ;;  %7174 = vmatpush1.bf16.msra.mxu1 %v9506_v17  ;;  %v9546_v16 = vcombine.low %v1213_v50, %v1217_v63  ;;  %v9553_v17 = vcombine.high %v1220_v8, %v1224_v10  ;;  %v9578_v50 = vcombine.low %v1245_v44, %v1249_v45  ;;  %v1265_v8 = vld [vmem:[%s10635_s12 + $0x1a28] sm:$0xff] }
 0x211   : > { %6847 = vmatprep.subr.bf16.mxu0 %v9513_v18  ;;  %7175 = vmatprep.subr.bf16.mxu1 %v9515_v19  ;;  %v9555_v18 = vcombine.high %v1221_v11, %v1225_v13  ;;  %v1228_v19 = vld [vmem:[%s10635_s12 + $0x1900] sm:$0xff] }
 0x212   : > { %v9560_v35 = vcombine.low %v1228_v19, %v1232_v20 }
 0x214   : > { %6848 = vmatpush1.bf16.msra.mxu0 %v9512_v27  ;;  %7176 = vmatpush1.bf16.msra.mxu1 %v9514_v28  ;;  %v9554_v27 = vcombine.low %v1221_v11, %v1225_v13  ;;  %v9561_v28 = vcombine.high %v1228_v19, %v1232_v20  ;;  %v1273_v19 = vld [vmem:[%s10635_s12 + $0x1a68] sm:$0xff] }
 0x215   : > { %6849 = vmatprep.subr.bf16.mxu0 %v9521_v29  ;;  %7177 = vmatprep.subr.bf16.mxu1 %v9523_v30  ;;  %v9563_v29 = vcombine.high %v1229_v21, %v1233_v22  ;;  %v1236_v30 = vld [vmem:[%s10635_s12 + $0x1940] sm:$0xff] }
 0x216   : > { %v9568_v46 = vcombine.low %v1236_v30, %v1240_v31 }
 0x218   : > { %6850 = vmatpush1.bf16.msra.mxu0 %v9520_v38  ;;  %7178 = vmatpush1.bf16.msra.mxu1 %v9522_v40  ;;  %v9569_v38 = vcombine.high %v1236_v30, %v1240_v31  ;;  %v9571_v40 = vcombine.high %v1237_v32, %v1241_v33  ;;  %v1281_v30 = vld [vmem:[%s10635_s12 + $0x1aa8] sm:$0xff] }
 0x219   : > { %6860 = vmatprep.subr.bf16.mxu0 %v9529_v41  ;;  %7188 = vmatprep.subr.bf16.mxu1 %v9531_v43  ;;  %v1244_v41 = vld [vmem:[%s10635_s12 + $0x1980] sm:$0xff] }
 0x21a   : > { %v1248_v43 = vld [vmem:[%s10635_s12 + $0x19a0] sm:$0xff] }
 0x21b   : > { %6852 = vmatmul.mubr.bf16.vlgmr.msra.gmra.mrb[0].mxu0 %v11157_v48  ;;  %7180 = vmatmul.mubr.bf16.vlgmr.msra.gmra.mrb[0].mxu1 %v11157_v48  ;;  %v9577_v52 = vcombine.high %v1244_v41, %v1248_v43  ;;  %v9576_v4 = vcombine.low %v1244_v41, %v1248_v43  ;;  %v1289_v41 = vld [vmem:[%s10635_s12 + $0x1ae8] sm:$0xff] }
 0x21c   : > { %6861 = vmatpush1.bf16.msra.mxu0 %v9528_v53  ;;  %7189 = vmatpush1.bf16.msra.mxu1 %v9530_v54  ;;  %v9579_v53 = vcombine.high %v1245_v44, %v1249_v45  ;;  %v1252_v54 = vld [vmem:[%s10635_s12 + $0x19c0] sm:$0xff] }
 0x21d   : > { %6862 = vmatprep.subr.bf16.mxu0 %v9537_v55  ;;  %7190 = vmatprep.subr.bf16.mxu1 %v9539_v58  ;;  %v1256_v55 = vld [vmem:[%s10635_s12 + $0x19e0] sm:$0xff]  ;;  %v1253_v58 = vld [vmem:[%s10635_s12 + $0x19c8] sm:$0xff] }
 0x21e   : > { %6892 = vmatprep.mubr.bf16.mxu0 %v11163_v61  ;;  %7220 = vmatprep.mubr.bf16.mxu1 %v11163_v61  ;;  %v9585_v63 = vcombine.high %v1252_v54, %v1256_v55  ;;  %v9584_v10 = vcombine.low %v1252_v54, %v1256_v55  ;;  %v9586_v11 = vcombine.low %v1253_v58, %v1257_v59  ;;  %v1297_v54 = vld [vmem:[%s10635_s12 + $0x1b28] sm:$0xff] }
 0x220   : > { %6863 = vmatpush1.bf16.msra.mxu0 %v9536_v2  ;;  %7191 = vmatpush1.bf16.msra.mxu1 %v9538_v3  ;;  %v9587_v2 = vcombine.high %v1253_v58, %v1257_v59  ;;  %v1260_v3 = vld [vmem:[%s10635_s12 + $0x1a00] sm:$0xff] }
 0x221   : > { %6864 = vmatprep.subr.bf16.mxu0 %v9545_v6  ;;  %7192 = vmatprep.subr.bf16.mxu1 %v9547_v7  ;;  %v1264_v6 = vld [vmem:[%s10635_s12 + $0x1a20] sm:$0xff]  ;;  %v1261_v7 = vld [vmem:[%s10635_s12 + $0x1a08] sm:$0xff] }
 0x222   : > { %v9593_v13 = vcombine.high %v1260_v3, %v1264_v6  ;;  %v9592_v20 = vcombine.low %v1260_v3, %v1264_v6  ;;  %v9594_v21 = vcombine.low %v1261_v7, %v1265_v8  ;;  %v1305_v3 = vld [vmem:[%s10635_s12 + $0x1b68] sm:$0xff] }
 0x224   : > { %6865 = vmatpush1.bf16.msra.mxu0 %v9544_v14  ;;  %7193 = vmatpush1.bf16.msra.mxu1 %v9546_v16  ;;  %v9595_v14 = vcombine.high %v1261_v7, %v1265_v8  ;;  %v1268_v16 = vld [vmem:[%s10635_s12 + $0x1a40] sm:$0xff] }
 0x225   : > { %6866 = vmatprep.subr.bf16.mxu0 %v9553_v17  ;;  %7194 = vmatprep.subr.bf16.mxu1 %v9555_v18  ;;  %v1272_v17 = vld [vmem:[%s10635_s12 + $0x1a60] sm:$0xff]  ;;  %v1269_v18 = vld [vmem:[%s10635_s12 + $0x1a48] sm:$0xff] }
 0x226   : > { %v9601_v22 = vcombine.high %v1268_v16, %v1272_v17  ;;  %v9600_v31 = vcombine.low %v1268_v16, %v1272_v17  ;;  %v9602_v32 = vcombine.low %v1269_v18, %v1273_v19  ;;  %v1313_v16 = vld [vmem:[%s10635_s12 + $0x1ba8] sm:$0xff] }
 0x228   : > { %6867 = vmatpush1.bf16.msra.mxu0 %v9552_v24  ;;  %7195 = vmatpush1.bf16.msra.mxu1 %v9554_v27  ;;  %v9603_v24 = vcombine.high %v1269_v18, %v1273_v19  ;;  %v1276_v27 = vld [vmem:[%s10635_s12 + $0x1a80] sm:$0xff] }
 0x229   : > { %6868 = vmatprep.subr.bf16.mxu0 %v9561_v28  ;;  %7196 = vmatprep.subr.bf16.mxu1 %v9563_v29  ;;  %v1280_v28 = vld [vmem:[%s10635_s12 + $0x1aa0] sm:$0xff]  ;;  %v1277_v29 = vld [vmem:[%s10635_s12 + $0x1a88] sm:$0xff] }
 0x22a   : > { %v9609_v33 = vcombine.high %v1276_v27, %v1280_v28  ;;  %v9608_v43 = vcombine.low %v1276_v27, %v1280_v28  ;;  %v9610_v44 = vcombine.low %v1277_v29, %v1281_v30  ;;  %v1321_v27 = vld [vmem:[%s10635_s12 + $0x1be8] sm:$0xff] }
 0x22c   : > { %6869 = vmatpush1.bf16.msra.mxu0 %v9560_v35  ;;  %7197 = vmatpush1.bf16.msra.mxu1 %v9562_v37  ;;  %v9611_v35 = vcombine.high %v1277_v29, %v1281_v30  ;;  %v1284_v37 = vld [vmem:[%s10635_s12 + $0x1ac0] sm:$0xff] }
 0x22d   : > { %6870 = vmatprep.subr.bf16.mxu0 %v9569_v38  ;;  %7198 = vmatprep.subr.bf16.mxu1 %v9571_v40  ;;  %v1288_v38 = vld [vmem:[%s10635_s12 + $0x1ae0] sm:$0xff]  ;;  %v1285_v40 = vld [vmem:[%s10635_s12 + $0x1ac8] sm:$0xff] }
 0x22e   : > { %v9617_v45 = vcombine.high %v1284_v37, %v1288_v38  ;;  %v9616_v55 = vcombine.low %v1284_v37, %v1288_v38  ;;  %v9618_v58 = vcombine.low %v1285_v40, %v1289_v41  ;;  %v1329_v37 = vld [vmem:[%s10635_s12 + $0x1c28] sm:$0xff] }
 0x22f   : > { %v11230_v38 = vld [vmem:[%s11986_s0 + $0x8] sm:$0xff] }
 0x230   : > { %6871 = vmatpush1.bf16.msra.mxu0 %v9568_v46  ;;  %7199 = vmatpush1.bf16.msra.mxu1 %v9570_v49  ;;  %v9619_v46 = vcombine.high %v1285_v40, %v1289_v41  ;;  %v1292_v49 = vld [vmem:[%s10635_s12 + $0x1b00] sm:$0xff]  ;;  %v383_v40 = vrot.slane %v11230_v38, %v10901_v57 }
 0x231   : > { %6872 = vmatprep.subr.bf16.mxu0 %v9577_v52  ;;  %7200 = vmatprep.subr.bf16.mxu1 %v9579_v53  ;;  %v1296_v52 = vld [vmem:[%s10635_s12 + $0x1b20] sm:$0xff]  ;;  %v1293_v53 = vld [vmem:[%s10635_s12 + $0x1b08] sm:$0xff] }
 0x232   : > { %v9625_v59 = vcombine.high %v1292_v49, %v1296_v52  ;;  %v9624_v6 = vcombine.low %v1292_v49, %v1296_v52  ;;  %v9626_v7 = vcombine.low %v1293_v53, %v1297_v54  ;;  %v1336_v49 = vld [vmem:[%s10635_s12 + $0x1c60] sm:$0xff]  ;;  %v395_v52 = vrot.slane %v11230_v38, %v10906_v0 }
 0x234   : > { %6873 = vmatpush1.bf16.msra.mxu0 %v9576_v4  ;;  %7201 = vmatpush1.bf16.msra.mxu1 %v9578_v50  ;;  %v9627_v4 = vcombine.high %v1293_v53, %v1297_v54  ;;  %v1300_v50 = vld [vmem:[%s10635_s12 + $0x1b40] sm:$0xff]  ;;  %v11238_v53 = vpack.c.bf16 %v383_v40, %v383_v40  ;;  %v1333_v54 = vld [vmem:[%s10635_s12 + $0x1c48] sm:$0xff] }
 0x235   : > { %6874 = vmatprep.subr.bf16.mxu0 %v9585_v63  ;;  %7202 = vmatprep.subr.bf16.mxu1 %v9587_v2  ;;  %v1304_v63 = vld [vmem:[%s10635_s12 + $0x1b60] sm:$0xff]  ;;  %v1301_v2 = vld [vmem:[%s10635_s12 + $0x1b48] sm:$0xff] }
 0x236   : > { %v9633_v8 = vcombine.high %v1300_v50, %v1304_v63  ;;  %v9632_v17 = vcombine.low %v1300_v50, %v1304_v63  ;;  %v9634_v18 = vcombine.low %v1301_v2, %v1305_v3  ;;  %v1340_v63 = vld [vmem:[%s10635_s12 + $0x1c80] sm:$0xff]  ;;  %v1365_v40 = vld [vmem:[%s10635_s12 + $0x1d48] sm:$0xff] }
 0x238   : > { %6875 = vmatpush1.bf16.msra.mxu0 %v9584_v10  ;;  %7203 = vmatpush1.bf16.msra.mxu1 %v9586_v11  ;;  %v9635_v10 = vcombine.high %v1301_v2, %v1305_v3  ;;  %v1308_v11 = vld [vmem:[%s10635_s12 + $0x1b80] sm:$0xff]  ;;  %v11244_v3 = vpack.c.bf16 %v395_v52, %v395_v52 }
 0x239   : > { %6876 = vmatprep.subr.bf16.mxu0 %v9593_v13  ;;  %7204 = vmatprep.subr.bf16.mxu1 %v9595_v14  ;;  %v1312_v13 = vld [vmem:[%s10635_s12 + $0x1ba0] sm:$0xff]  ;;  %v1309_v14 = vld [vmem:[%s10635_s12 + $0x1b88] sm:$0xff] }
 0x23a   : > { %v9641_v19 = vcombine.high %v1308_v11, %v1312_v13  ;;  %v9640_v28 = vcombine.low %v1308_v11, %v1312_v13  ;;  %v9642_v29 = vcombine.low %v1309_v14, %v1313_v16  ;;  %v1344_v2 = vld [vmem:[%s10635_s12 + $0x1ca0] sm:$0xff] }
 0x23b   : > { %v9673_v11 = vcombine.high %v1340_v63, %v1344_v2  ;;  %v1376_v52 = vld [vmem:[%s10635_s12 + $0x1da0] sm:$0xff] }
 0x23c   : > { %6877 = vmatpush1.bf16.msra.mxu0 %v9592_v20  ;;  %7205 = vmatpush1.bf16.msra.mxu1 %v9594_v21  ;;  %v9643_v20 = vcombine.high %v1309_v14, %v1313_v16  ;;  %v1316_v21 = vld [vmem:[%s10635_s12 + $0x1bc0] sm:$0xff] }
 0x23d   : > { %6878 = vmatprep.subr.bf16.mxu0 %v9601_v22  ;;  %7206 = vmatprep.subr.bf16.mxu1 %v9603_v24  ;;  %v1320_v22 = vld [vmem:[%s10635_s12 + $0x1be0] sm:$0xff]  ;;  %v1317_v24 = vld [vmem:[%s10635_s12 + $0x1bc8] sm:$0xff] }
 0x23e   : > { %v9649_v30 = vcombine.high %v1316_v21, %v1320_v22  ;;  %v9648_v41 = vcombine.low %v1316_v21, %v1320_v22  ;;  %v1348_v14 = vld [vmem:[%s10635_s12 + $0x1cc0] sm:$0xff] }
 0x23f   : > { %v1352_v16 = vld [vmem:[%s10635_s12 + $0x1ce0] sm:$0xff] }
 0x240   : > { %6879 = vmatpush1.bf16.msra.mxu0 %v9600_v31  ;;  %7207 = vmatpush1.bf16.msra.mxu1 %v9602_v32  ;;  %v9651_v31 = vcombine.high %v1317_v24, %v1321_v27  ;;  %v1324_v32 = vld [vmem:[%s10635_s12 + $0x1c00] sm:$0xff]  ;;  %v9681_v21 = vcombine.high %v1348_v14, %v1352_v16 }
 0x241   : > { %6880 = vmatprep.subr.bf16.mxu0 %v9609_v33  ;;  %7208 = vmatprep.subr.bf16.mxu1 %v9611_v35  ;;  %v1328_v33 = vld [vmem:[%s10635_s12 + $0x1c20] sm:$0xff]  ;;  %v1325_v35 = vld [vmem:[%s10635_s12 + $0x1c08] sm:$0xff] }
 0x244   : > { %6881 = vmatpush1.bf16.msra.mxu0 %v9608_v43  ;;  %7209 = vmatpush1.bf16.msra.mxu1 %v9610_v44  ;;  %v9650_v43 = vcombine.low %v1317_v24, %v1321_v27  ;;  %v9657_v44 = vcombine.high %v1324_v32, %v1328_v33  ;;  %v1356_v24 = vld [vmem:[%s10635_s12 + $0x1d00] sm:$0xff] }
 0x245   : > { %6882 = vmatprep.subr.bf16.mxu0 %v9617_v45  ;;  %7210 = vmatprep.subr.bf16.mxu1 %v9619_v46  ;;  %v9659_v45 = vcombine.high %v1325_v35, %v1329_v37  ;;  %v1332_v46 = vld [vmem:[%s10635_s12 + $0x1c40] sm:$0xff] }
 0x246   : > { %v1360_v27 = vld [vmem:[%s10635_s12 + $0x1d20] sm:$0xff] }
 0x248   : > { %6883 = vmatpush1.bf16.msra.mxu0 %v9616_v55  ;;  %7211 = vmatpush1.bf16.msra.mxu1 %v9618_v58  ;;  %v1337_v55 = vld [vmem:[%s10635_s12 + $0x1c68] sm:$0xff]  ;;  %v9656_v58 = vcombine.low %v1324_v32, %v1328_v33  ;;  %v9689_v32 = vcombine.high %v1356_v24, %v1360_v27 }
 0x249   : > { %6884 = vmatprep.subr.bf16.mxu0 %v9625_v59  ;;  %7212 = vmatprep.subr.bf16.mxu1 %v9627_v4  ;;  %v9658_v59 = vcombine.low %v1325_v35, %v1329_v37  ;;  %v9665_v4 = vcombine.high %v1332_v46, %v1336_v49  ;;  %v9667_v50 = vcombine.high %v1333_v54, %v1337_v55  ;;  %v1364_v35 = vld [vmem:[%s10635_s12 + $0x1d40] sm:$0xff] }
 0x24a   : > { %v1368_v37 = vld [vmem:[%s10635_s12 + $0x1d60] sm:$0xff] }
 0x24c   : > { %6885 = vmatpush1.bf16.msra.mxu0 %v9624_v6  ;;  %7213 = vmatpush1.bf16.msra.mxu1 %v9626_v7  ;;  %v1341_v6 = vld [vmem:[%s10635_s12 + $0x1c88] sm:$0xff] }
 0x24d   : > { %6886 = vmatprep.subr.bf16.mxu0 %v9633_v8  ;;  %7214 = vmatprep.subr.bf16.mxu1 %v9635_v10  ;;  %v1345_v7 = vld [vmem:[%s10635_s12 + $0x1ca8] sm:$0xff]  ;;  %v9664_v8 = vcombine.low %v1332_v46, %v1336_v49  ;;  %v9666_v10 = vcombine.low %v1333_v54, %v1337_v55  ;;  %v1372_v49 = vld [vmem:[%s10635_s12 + $0x1d80] sm:$0xff] }
 0x24e   : > { %v9675_v13 = vcombine.high %v1341_v6, %v1345_v7  ;;  %v1373_v54 = vld [vmem:[%s10635_s12 + $0x1d88] sm:$0xff] }
 0x24f   : > { %v1377_v55 = vld [vmem:[%s10635_s12 + $0x1da8] sm:$0xff] }
 0x250   : > { %6887 = vmatpush1.bf16.msra.mxu0 %v9632_v17  ;;  %7215 = vmatpush1.bf16.msra.mxu1 %v9634_v18  ;;  %v1349_v17 = vld [vmem:[%s10635_s12 + $0x1cc8] sm:$0xff] }
 0x251   : > { %6888 = vmatprep.subr.bf16.mxu0 %v9641_v19  ;;  %7216 = vmatprep.subr.bf16.mxu1 %v9643_v20  ;;  %v1353_v18 = vld [vmem:[%s10635_s12 + $0x1ce8] sm:$0xff]  ;;  %v9672_v19 = vcombine.low %v1340_v63, %v1344_v2  ;;  %v9674_v20 = vcombine.low %v1341_v6, %v1345_v7  ;;  %v1380_v63 = vld [vmem:[%s10635_s12 + $0x1dc0] sm:$0xff] }
 0x252   : > { %v9683_v22 = vcombine.high %v1349_v17, %v1353_v18  ;;  %v1384_v2 = vld [vmem:[%s10635_s12 + $0x1de0] sm:$0xff]  ;;  %v1381_v6 = vld [vmem:[%s10635_s12 + $0x1dc8] sm:$0xff] }
 0x253   : > { %v1385_v7 = vld [vmem:[%s10635_s12 + $0x1de8] sm:$0xff] }
 0x254   : > { %6889 = vmatpush1.bf16.msra.mxu0 %v9640_v28  ;;  %7217 = vmatpush1.bf16.msra.mxu1 %v9642_v29  ;;  %v1357_v28 = vld [vmem:[%s10635_s12 + $0x1d08] sm:$0xff] }
 0x255   : > { %6890 = vmatprep.subr.bf16.mxu0 %v9649_v30  ;;  %7218 = vmatprep.subr.bf16.mxu1 %v9651_v31  ;;  %v1361_v29 = vld [vmem:[%s10635_s12 + $0x1d28] sm:$0xff]  ;;  %v9680_v30 = vcombine.low %v1348_v14, %v1352_v16  ;;  %v9682_v31 = vcombine.low %v1349_v17, %v1353_v18  ;;  %v1388_v14 = vld [vmem:[%s10635_s12 + $0x1e00] sm:$0xff] }
 0x256   : > { %v9691_v33 = vcombine.high %v1357_v28, %v1361_v29  ;;  %v1392_v16 = vld [vmem:[%s10635_s12 + $0x1e20] sm:$0xff]  ;;  %v1389_v17 = vld [vmem:[%s10635_s12 + $0x1e08] sm:$0xff] }
 0x257   : > { %v1393_v18 = vld [vmem:[%s10635_s12 + $0x1e28] sm:$0xff] }
 0x258   : > { %6891 = vmatpush1.bf16.msra.mxu0 %v9648_v41  ;;  %7219 = vmatpush1.bf16.msra.mxu1 %v9650_v43  ;;  %v1369_v41 = vld [vmem:[%s10635_s12 + $0x1d68] sm:$0xff]  ;;  %v9688_v43 = vcombine.low %v1356_v24, %v1360_v27  ;;  %v1396_v24 = vld [vmem:[%s10635_s12 + $0x1e40] sm:$0xff] }
 0x259   : > { %6901 = vmatprep.subr.bf16.mxu0 %v9657_v44  ;;  %7229 = vmatprep.subr.bf16.mxu1 %v9659_v45  ;;  %v9690_v44 = vcombine.low %v1357_v28, %v1361_v29  ;;  %v9697_v45 = vcombine.high %v1364_v35, %v1368_v37  ;;  %v9699_v46 = vcombine.high %v1365_v40, %v1369_v41  ;;  %v1400_v27 = vld [vmem:[%s10635_s12 + $0x1e60] sm:$0xff]  ;;  %v1397_v28 = vld [vmem:[%s10635_s12 + $0x1e48] sm:$0xff] }
 0x25a   : > { %v1401_v29 = vld [vmem:[%s10635_s12 + $0x1e68] sm:$0xff] }
 0x25b   : > { %6893 = vmatmul.mubr.bf16.vlgmr.msra.gmra.mrb[0].mxu0 %v11238_v53  ;;  %7221 = vmatmul.mubr.bf16.vlgmr.msra.gmra.mrb[0].mxu1 %v11238_v53 }
 0x25c   : > { %6902 = vmatpush1.bf16.msra.mxu0 %v9656_v58  ;;  %7230 = vmatpush1.bf16.msra.mxu1 %v9658_v59  ;;  %v9696_v58 = vcombine.low %v1364_v35, %v1368_v37  ;;  %v9698_v59 = vcombine.low %v1365_v40, %v1369_v41  ;;  %v1404_v35 = vld [vmem:[%s10635_s12 + $0x1e80] sm:$0xff]  ;;  %v1405_v40 = vld [vmem:[%s10635_s12 + $0x1e88] sm:$0xff] }
 0x25d   : > { %6903 = vmatprep.subr.bf16.mxu0 %v9665_v4  ;;  %7231 = vmatprep.subr.bf16.mxu1 %v9667_v50  ;;  %v9705_v4 = vcombine.high %v1372_v49, %v1376_v52  ;;  %v9707_v50 = vcombine.high %v1373_v54, %v1377_v55  ;;  %v1408_v37 = vld [vmem:[%s10635_s12 + $0x1ea0] sm:$0xff]  ;;  %v1409_v41 = vld [vmem:[%s10635_s12 + $0x1ea8] sm:$0xff] }
 0x25e   : > { %6933 = vmatprep.mubr.bf16.mxu0 %v11244_v3  ;;  %7261 = vmatprep.mubr.bf16.mxu1 %v11244_v3 }
 0x260   : > { %6904 = vmatpush1.bf16.msra.mxu0 %v9664_v8  ;;  %7232 = vmatpush1.bf16.msra.mxu1 %v9666_v10  ;;  %v9704_v8 = vcombine.low %v1372_v49, %v1376_v52  ;;  %v9706_v10 = vcombine.low %v1373_v54, %v1377_v55  ;;  %v1412_v49 = vld [vmem:[%s10635_s12 + $0x1ec0] sm:$0xff]  ;;  %v1413_v54 = vld [vmem:[%s10635_s12 + $0x1ec8] sm:$0xff] }
 0x261   : > { %6905 = vmatprep.subr.bf16.mxu0 %v9673_v11  ;;  %7233 = vmatprep.subr.bf16.mxu1 %v9675_v13  ;;  %v9713_v11 = vcombine.high %v1380_v63, %v1384_v2  ;;  %v9715_v13 = vcombine.high %v1381_v6, %v1385_v7  ;;  %v1416_v52 = vld [vmem:[%s10635_s12 + $0x1ee0] sm:$0xff]  ;;  %v1417_v55 = vld [vmem:[%s10635_s12 + $0x1ee8] sm:$0xff] }
 0x264   : > { %6906 = vmatpush1.bf16.msra.mxu0 %v9672_v19  ;;  %7234 = vmatpush1.bf16.msra.mxu1 %v9674_v20  ;;  %v9712_v19 = vcombine.low %v1380_v63, %v1384_v2  ;;  %v9714_v20 = vcombine.low %v1381_v6, %v1385_v7  ;;  %v1420_v63 = vld [vmem:[%s10635_s12 + $0x1f00] sm:$0xff]  ;;  %v1421_v6 = vld [vmem:[%s10635_s12 + $0x1f08] sm:$0xff] }
 0x265   : > { %6907 = vmatprep.subr.bf16.mxu0 %v9681_v21  ;;  %7235 = vmatprep.subr.bf16.mxu1 %v9683_v22  ;;  %v9721_v21 = vcombine.high %v1388_v14, %v1392_v16  ;;  %v9723_v22 = vcombine.high %v1389_v17, %v1393_v18  ;;  %v1424_v2 = vld [vmem:[%s10635_s12 + $0x1f20] sm:$0xff]  ;;  %v1425_v7 = vld [vmem:[%s10635_s12 + $0x1f28] sm:$0xff] }
 0x268   : > { %6908 = vmatpush1.bf16.msra.mxu0 %v9680_v30  ;;  %7236 = vmatpush1.bf16.msra.mxu1 %v9682_v31  ;;  %v9720_v30 = vcombine.low %v1388_v14, %v1392_v16  ;;  %v9722_v31 = vcombine.low %v1389_v17, %v1393_v18  ;;  %v1428_v14 = vld [vmem:[%s10635_s12 + $0x1f40] sm:$0xff]  ;;  %v1429_v17 = vld [vmem:[%s10635_s12 + $0x1f48] sm:$0xff] }
 0x269   : > { %6909 = vmatprep.subr.bf16.mxu0 %v9689_v32  ;;  %7237 = vmatprep.subr.bf16.mxu1 %v9691_v33  ;;  %v9729_v32 = vcombine.high %v1396_v24, %v1400_v27  ;;  %v9731_v33 = vcombine.high %v1397_v28, %v1401_v29  ;;  %v1432_v16 = vld [vmem:[%s10635_s12 + $0x1f60] sm:$0xff]  ;;  %v1433_v18 = vld [vmem:[%s10635_s12 + $0x1f68] sm:$0xff] }
 0x26c   : > { %6910 = vmatpush1.bf16.msra.mxu0 %v9688_v43  ;;  %7238 = vmatpush1.bf16.msra.mxu1 %v9690_v44  ;;  %v9728_v43 = vcombine.low %v1396_v24, %v1400_v27  ;;  %v9730_v44 = vcombine.low %v1397_v28, %v1401_v29  ;;  %v1436_v24 = vld [vmem:[%s10635_s12 + $0x1f80] sm:$0xff]  ;;  %v1437_v28 = vld [vmem:[%s10635_s12 + $0x1f88] sm:$0xff] }
 0x26d   : > { %6911 = vmatprep.subr.bf16.mxu0 %v9697_v45  ;;  %7239 = vmatprep.subr.bf16.mxu1 %v9699_v46  ;;  %v9737_v45 = vcombine.high %v1404_v35, %v1408_v37  ;;  %v9739_v46 = vcombine.high %v1405_v40, %v1409_v41  ;;  %v1440_v27 = vld [vmem:[%s10635_s12 + $0x1fa0] sm:$0xff]  ;;  %v1441_v29 = vld [vmem:[%s10635_s12 + $0x1fa8] sm:$0xff] }
 0x270   : > { %6912 = vmatpush1.bf16.msra.mxu0 %v9696_v58  ;;  %7240 = vmatpush1.bf16.msra.mxu1 %v9698_v59  ;;  %v9736_v58 = vcombine.low %v1404_v35, %v1408_v37  ;;  %v9738_v59 = vcombine.low %v1405_v40, %v1409_v41  ;;  %v1444_v35 = vld [vmem:[%s10635_s12 + $0x1fc0] sm:$0xff]  ;;  %v1445_v40 = vld [vmem:[%s10635_s12 + $0x1fc8] sm:$0xff] }
 0x271   : > { %6913 = vmatprep.subr.bf16.mxu0 %v9705_v4  ;;  %7241 = vmatprep.subr.bf16.mxu1 %v9707_v50  ;;  %v9745_v4 = vcombine.high %v1412_v49, %v1416_v52  ;;  %v9747_v50 = vcombine.high %v1413_v54, %v1417_v55  ;;  %v1448_v37 = vld [vmem:[%s10635_s12 + $0x1fe0] sm:$0xff]  ;;  %v1449_v41 = vld [vmem:[%s10635_s12 + $0x1fe8] sm:$0xff] }
 0x274   : > { %6914 = vmatpush1.bf16.msra.mxu0 %v9704_v8  ;;  %7242 = vmatpush1.bf16.msra.mxu1 %v9706_v10  ;;  %v9744_v8 = vcombine.low %v1412_v49, %v1416_v52  ;;  %v9746_v10 = vcombine.low %v1413_v54, %v1417_v55  ;;  %v430_v49 = vld [vmem:[%s10635_s12 + $0x10] sm:$0xff]  ;;  %v391_v54 = vrot.slane %v11230_v38, %v10988_v39  ;;  %v431_v55 = vld [vmem:[%s10635_s12 + $0x18] sm:$0xff] }
 0x275   : > { %6915 = vmatprep.subr.bf16.mxu0 %v9713_v11  ;;  %7243 = vmatprep.subr.bf16.mxu1 %v9715_v13  ;;  %v9753_v11 = vcombine.high %v1420_v63, %v1424_v2  ;;  %v9755_v13 = vcombine.high %v1421_v6, %v1425_v7  ;;  %v434_v52 = vld [vmem:[%s10635_s12 + $0x30] sm:$0xff]  ;;  %v443_v38 = vld [vmem:[%s10635_s12 + $0x78] sm:$0xff] }
 0x278   : > { %6916 = vmatpush1.bf16.msra.mxu0 %v9712_v19  ;;  %7244 = vmatpush1.bf16.msra.mxu1 %v9714_v20  ;;  %v9752_v19 = vcombine.low %v1420_v63, %v1424_v2  ;;  %v9754_v20 = vcombine.low %v1421_v6, %v1425_v7  ;;  %v438_v2 = vld [vmem:[%s10635_s12 + $0x50] sm:$0xff]  ;;  %v11312_v7 = vpack.c.bf16 %v391_v54, %v391_v54  ;;  %v471_v54 = vld [vmem:[%s10635_s12 + $0x158] sm:$0xff] }
 0x279   : > { %6917 = vmatprep.subr.bf16.mxu0 %v9721_v21  ;;  %7245 = vmatprep.subr.bf16.mxu1 %v9723_v22  ;;  %v9761_v21 = vcombine.high %v1428_v14, %v1432_v16  ;;  %v9763_v22 = vcombine.high %v1429_v17, %v1433_v18  ;;  %v442_v6 = vld [vmem:[%s10635_s12 + $0x70] sm:$0xff] }
 0x27c   : > { %6918 = vmatpush1.bf16.msra.mxu0 %v9720_v30  ;;  %7246 = vmatpush1.bf16.msra.mxu1 %v9722_v31  ;;  %v9760_v30 = vcombine.low %v1428_v14, %v1432_v16  ;;  %v9762_v31 = vcombine.low %v1429_v17, %v1433_v18  ;;  %v446_v16 = vld [vmem:[%s10635_s12 + $0x90] sm:$0xff]  ;;  %v447_v18 = vld [vmem:[%s10635_s12 + $0x98] sm:$0xff] }
 0x27d   : > { %6919 = vmatprep.subr.bf16.mxu0 %v9729_v32  ;;  %7247 = vmatprep.subr.bf16.mxu1 %v9731_v33  ;;  %v9769_v32 = vcombine.high %v1436_v24, %v1440_v27  ;;  %v9771_v33 = vcombine.high %v1437_v28, %v1441_v29  ;;  %v450_v17 = vld [vmem:[%s10635_s12 + $0xb0] sm:$0xff] }
 0x280   : > { %6920 = vmatpush1.bf16.msra.mxu0 %v9728_v43  ;;  %7248 = vmatpush1.bf16.msra.mxu1 %v9730_v44  ;;  %v9768_v43 = vcombine.low %v1436_v24, %v1440_v27  ;;  %v9770_v44 = vcombine.low %v1437_v28, %v1441_v29  ;;  %v454_v27 = vld [vmem:[%s10635_s12 + $0xd0] sm:$0xff]  ;;  %v455_v29 = vld [vmem:[%s10635_s12 + $0xd8] sm:$0xff] }
 0x281   : > { %6921 = vmatprep.subr.bf16.mxu0 %v9737_v45  ;;  %7249 = vmatprep.subr.bf16.mxu1 %v9739_v46  ;;  %v9777_v45 = vcombine.high %v1444_v35, %v1448_v37  ;;  %v9779_v46 = vcombine.high %v1445_v40, %v1449_v41  ;;  %v458_v28 = vld [vmem:[%s10635_s12 + $0xf0] sm:$0xff] }
 0x284   : > { %6922 = vmatpush1.bf16.msra.mxu0 %v9736_v58  ;;  %7250 = vmatpush1.bf16.msra.mxu1 %v9738_v59  ;;  %v435_v58 = vld [vmem:[%s10635_s12 + $0x38] sm:$0xff]  ;;  %v9776_v59 = vcombine.low %v1444_v35, %v1448_v37  ;;  %v462_v37 = vld [vmem:[%s10635_s12 + $0x110] sm:$0xff] }
 0x285   : > { %6923 = vmatprep.subr.bf16.mxu0 %v9745_v4  ;;  %7251 = vmatprep.subr.bf16.mxu1 %v9747_v50  ;;  %v9778_v4 = vcombine.low %v1445_v40, %v1449_v41  ;;  %v8765_v50 = vcombine.high %v430_v49, %v434_v52  ;;  %v8767_v63 = vcombine.high %v431_v55, %v435_v58  ;;  %v466_v40 = vld [vmem:[%s10635_s12 + $0x130] sm:$0xff]  ;;  %v463_v41 = vld [vmem:[%s10635_s12 + $0x118] sm:$0xff] }
 0x288   : > { %6924 = vmatpush1.bf16.msra.mxu0 %v9744_v8  ;;  %7252 = vmatpush1.bf16.msra.mxu1 %v9746_v10  ;;  %v439_v8 = vld [vmem:[%s10635_s12 + $0x58] sm:$0xff]  ;;  %v8764_v10 = vcombine.low %v430_v49, %v434_v52  ;;  %v470_v49 = vld [vmem:[%s10635_s12 + $0x150] sm:$0xff] }
 0x289   : > { %6925 = vmatprep.subr.bf16.mxu0 %v9753_v11  ;;  %7253 = vmatprep.subr.bf16.mxu1 %v9755_v13  ;;  %v8766_v11 = vcombine.low %v431_v55, %v435_v58  ;;  %v8773_v13 = vcombine.high %v438_v2, %v442_v6  ;;  %v8775_v14 = vcombine.high %v439_v8, %v443_v38  ;;  %v474_v52 = vld [vmem:[%s10635_s12 + $0x170] sm:$0xff]  ;;  %v475_v55 = vld [vmem:[%s10635_s12 + $0x178] sm:$0xff] }
 0x28a   : > { %v8796_v58 = vcombine.low %v462_v37, %v466_v40 }
 0x28c   : > { %6926 = vmatpush1.bf16.msra.mxu0 %v9752_v19  ;;  %7254 = vmatpush1.bf16.msra.mxu1 %v9754_v20  ;;  %v451_v19 = vld [vmem:[%s10635_s12 + $0xb8] sm:$0xff]  ;;  %v8772_v20 = vcombine.low %v438_v2, %v442_v6  ;;  %v482_v2 = vld [vmem:[%s10635_s12 + $0x1b0] sm:$0xff] }
 0x28d   : > { %6927 = vmatprep.subr.bf16.mxu0 %v9761_v21  ;;  %7255 = vmatprep.subr.bf16.mxu1 %v9763_v22  ;;  %v8774_v21 = vcombine.low %v439_v8, %v443_v38  ;;  %v8781_v22 = vcombine.high %v446_v16, %v450_v17  ;;  %v8783_v24 = vcombine.high %v447_v18, %v451_v19  ;;  %v479_v6 = vld [vmem:[%s10635_s12 + $0x198] sm:$0xff] }
 0x28e   : > { %v483_v8 = vld [vmem:[%s10635_s12 + $0x1b8] sm:$0xff]  ;;  %v8804_v38 = vcombine.low %v470_v49, %v474_v52 }
 0x290   : > { %6928 = vmatpush1.bf16.msra.mxu0 %v9760_v30  ;;  %7256 = vmatpush1.bf16.msra.mxu1 %v9762_v31  ;;  %v459_v30 = vld [vmem:[%s10635_s12 + $0xf8] sm:$0xff]  ;;  %v8780_v31 = vcombine.low %v446_v16, %v450_v17  ;;  %v490_v16 = vld [vmem:[%s10635_s12 + $0x1f0] sm:$0xff] }
 0x291   : > { %6929 = vmatprep.subr.bf16.mxu0 %v9769_v32  ;;  %7257 = vmatprep.subr.bf16.mxu1 %v9771_v33  ;;  %v8782_v32 = vcombine.low %v447_v18, %v451_v19  ;;  %v8789_v33 = vcombine.high %v454_v27, %v458_v28  ;;  %v8791_v35 = vcombine.high %v455_v29, %v459_v30  ;;  %v487_v17 = vld [vmem:[%s10635_s12 + $0x1d8] sm:$0xff] }
 0x292   : > { %v491_v18 = vld [vmem:[%s10635_s12 + $0x1f8] sm:$0xff] }
 0x294   : > { %6930 = vmatpush1.bf16.msra.mxu0 %v9768_v43  ;;  %7258 = vmatpush1.bf16.msra.mxu1 %v9770_v44  ;;  %v467_v43 = vld [vmem:[%s10635_s12 + $0x138] sm:$0xff]  ;;  %v8788_v44 = vcombine.low %v454_v27, %v458_v28  ;;  %v498_v27 = vld [vmem:[%s10635_s12 + $0x230] sm:$0xff] }
 0x295   : > { %6931 = vmatprep.subr.bf16.mxu0 %v9777_v45  ;;  %7259 = vmatprep.subr.bf16.mxu1 %v9779_v46  ;;  %v8797_v45 = vcombine.high %v462_v37, %v466_v40  ;;  %v8799_v46 = vcombine.high %v463_v41, %v467_v43  ;;  %v495_v28 = vld [vmem:[%s10635_s12 + $0x218] sm:$0xff]  ;;  %v506_v37 = vld [vmem:[%s10635_s12 + $0x270] sm:$0xff] }
 0x296   : > { %v503_v40 = vld [vmem:[%s10635_s12 + $0x258] sm:$0xff] }
 0x298   : > { %6932 = vmatpush1.bf16.msra.mxu0 %v9776_v59  ;;  %7260 = vmatpush1.bf16.msra.mxu1 %v9778_v4  ;;  %v8798_v59 = vcombine.low %v463_v41, %v467_v43  ;;  %v8805_v4 = vcombine.high %v470_v49, %v474_v52  ;;  %v507_v41 = vld [vmem:[%s10635_s12 + $0x278] sm:$0xff]  ;;  %v514_v49 = vld [vmem:[%s10635_s12 + $0x2b0] sm:$0xff] }
 0x299   : > { %7270 = vmatprep.subr.bf16.mxu0 %v8765_v50  ;;  %7598 = vmatprep.subr.bf16.mxu1 %v8767_v63  ;;  %v8807_v50 = vcombine.high %v471_v54, %v475_v55  ;;  %v478_v63 = vld [vmem:[%s10635_s12 + $0x190] sm:$0xff]  ;;  %v511_v52 = vld [vmem:[%s10635_s12 + $0x298] sm:$0xff] }
 0x29a   : > { %v8812_v19 = vcombine.low %v478_v63, %v482_v2 }
 0x29b   : > { %6934 = vmatmul.mubr.bf16.vlgmr.msra.gmra.mrb[0].mxu0 %v11312_v7  ;;  %7262 = vmatmul.mubr.bf16.vlgmr.msra.gmra.mrb[0].mxu1 %v11312_v7 }
 0x29c   : > { %7271 = vmatpush1.bf16.msra.mxu0 %v8764_v10  ;;  %7599 = vmatpush1.bf16.msra.mxu1 %v8766_v11  ;;  %v8806_v10 = vcombine.low %v471_v54, %v475_v55  ;;  %v8813_v11 = vcombine.high %v478_v63, %v482_v2  ;;  %v515_v54 = vld [vmem:[%s10635_s12 + $0x2b8] sm:$0xff]  ;;  %v522_v63 = vld [vmem:[%s10635_s12 + $0x2f0] sm:$0xff] }
 0x29d   : > { %7272 = vmatprep.subr.bf16.mxu0 %v8773_v13  ;;  %7600 = vmatprep.subr.bf16.mxu1 %v8775_v14  ;;  %v8815_v13 = vcombine.high %v479_v6, %v483_v8  ;;  %v486_v14 = vld [vmem:[%s10635_s12 + $0x1d0] sm:$0xff]  ;;  %v519_v2 = vld [vmem:[%s10635_s12 + $0x2d8] sm:$0xff] }
 0x29e   : > { %7302 = vmatprep.mubr.bf16.mxu0 %v10700_v1  ;;  %7630 = vmatprep.mubr.bf16.mxu1 %v10700_v1  ;;  %v8790_v1 = vcombine.low %v455_v29, %v459_v30  ;;  %v499_v29 = vld [vmem:[%s10635_s12 + $0x238] sm:$0xff]  ;;  %v8820_v30 = vcombine.low %v486_v14, %v490_v16 }
 0x2a0   : > { %7273 = vmatpush1.bf16.msra.mxu0 %v8772_v20  ;;  %7601 = vmatpush1.bf16.msra.mxu1 %v8774_v21  ;;  %v8814_v20 = vcombine.low %v479_v6, %v483_v8  ;;  %v8821_v21 = vcombine.high %v486_v14, %v490_v16  ;;  %v523_v6 = vld [vmem:[%s10635_s12 + $0x2f8] sm:$0xff]  ;;  %v530_v14 = vld [vmem:[%s10635_s12 + $0x330] sm:$0xff] }
 0x2a1   : > { %7274 = vmatprep.subr.bf16.mxu0 %v8781_v22  ;;  %7602 = vmatprep.subr.bf16.mxu1 %v8783_v24  ;;  %v8823_v22 = vcombine.high %v487_v17, %v491_v18  ;;  %v494_v24 = vld [vmem:[%s10635_s12 + $0x210] sm:$0xff]  ;;  %v527_v16 = vld [vmem:[%s10635_s12 + $0x318] sm:$0xff] }
 0x2a2   : > { %v8828_v43 = vcombine.low %v494_v24, %v498_v27 }
 0x2a4   : > { %7275 = vmatpush1.bf16.msra.mxu0 %v8780_v31  ;;  %7603 = vmatpush1.bf16.msra.mxu1 %v8782_v32  ;;  %v8822_v31 = vcombine.low %v487_v17, %v491_v18  ;;  %v8829_v32 = vcombine.high %v494_v24, %v498_v27  ;;  %v531_v17 = vld [vmem:[%s10635_s12 + $0x338] sm:$0xff]  ;;  %v538_v24 = vld [vmem:[%s10635_s12 + $0x370] sm:$0xff] }
 0x2a5   : > { %7276 = vmatprep.subr.bf16.mxu0 %v8789_v33  ;;  %7604 = vmatprep.subr.bf16.mxu1 %v8791_v35  ;;  %v8831_v33 = vcombine.high %v495_v28, %v499_v29  ;;  %v502_v35 = vld [vmem:[%s10635_s12 + $0x250] sm:$0xff]  ;;  %v535_v27 = vld [vmem:[%s10635_s12 + $0x358] sm:$0xff] }
 0x2a6   : > { %v8836_v55 = vcombine.low %v502_v35, %v506_v37 }
 0x2a8   : > { %7277 = vmatpush1.bf16.msra.mxu0 %v8788_v44  ;;  %7605 = vmatpush1.bf16.msra.mxu1 %v8790_v1  ;;  %v8830_v44 = vcombine.low %v495_v28, %v499_v29  ;;  %v8837_v1 = vcombine.high %v502_v35, %v506_v37  ;;  %v539_v28 = vld [vmem:[%s10635_s12 + $0x378] sm:$0xff]  ;;  %v546_v35 = vld [vmem:[%s10635_s12 + $0x3b0] sm:$0xff] }
 0x2a9   : > { %7278 = vmatprep.subr.bf16.mxu0 %v8797_v45  ;;  %7606 = vmatprep.subr.bf16.mxu1 %v8799_v46  ;;  %v8839_v45 = vcombine.high %v503_v40, %v507_v41  ;;  %v510_v46 = vld [vmem:[%s10635_s12 + $0x290] sm:$0xff]  ;;  %v543_v37 = vld [vmem:[%s10635_s12 + $0x398] sm:$0xff] }
 0x2aa   : > { %v8844_v8 = vcombine.low %v510_v46, %v514_v49 }
 0x2ac   : > { %7279 = vmatpush1.bf16.msra.mxu0 %v8796_v58  ;;  %7607 = vmatpush1.bf16.msra.mxu1 %v8798_v59  ;;  %v8838_v58 = vcombine.low %v503_v40, %v507_v41  ;;  %v8845_v59 = vcombine.high %v510_v46, %v514_v49  ;;  %v547_v40 = vld [vmem:[%s10635_s12 + $0x3b8] sm:$0xff]  ;;  %v554_v46 = vld [vmem:[%s10635_s12 + $0x3f0] sm:$0xff] }
 0x2ad   : > { %7280 = vmatprep.subr.bf16.mxu0 %v8805_v4  ;;  %7608 = vmatprep.subr.bf16.mxu1 %v8807_v50  ;;  %v8847_v4 = vcombine.high %v511_v52, %v515_v54  ;;  %v518_v50 = vld [vmem:[%s10635_s12 + $0x2d0] sm:$0xff]  ;;  %v551_v49 = vld [vmem:[%s10635_s12 + $0x3d8] sm:$0xff] }
 0x2ae   : > { %v8852_v18 = vcombine.low %v518_v50, %v522_v63 }
 0x2b0   : > { %7281 = vmatpush1.bf16.msra.mxu0 %v8804_v38  ;;  %7609 = vmatpush1.bf16.msra.mxu1 %v8806_v10  ;;  %v8846_v38 = vcombine.low %v511_v52, %v515_v54  ;;  %v8853_v10 = vcombine.high %v518_v50, %v522_v63  ;;  %v555_v52 = vld [vmem:[%s10635_s12 + $0x3f8] sm:$0xff]  ;;  %v562_v50 = vld [vmem:[%s10635_s12 + $0x430] sm:$0xff] }
 0x2b1   : > { %7282 = vmatprep.subr.bf16.mxu0 %v8813_v11  ;;  %7610 = vmatprep.subr.bf16.mxu1 %v8815_v13  ;;  %v8855_v11 = vcombine.high %v519_v2, %v523_v6  ;;  %v526_v13 = vld [vmem:[%s10635_s12 + $0x310] sm:$0xff]  ;;  %v559_v63 = vld [vmem:[%s10635_s12 + $0x418] sm:$0xff] }
 0x2b2   : > { %v8860_v29 = vcombine.low %v526_v13, %v530_v14 }
 0x2b4   : > { %7283 = vmatpush1.bf16.msra.mxu0 %v8812_v19  ;;  %7611 = vmatpush1.bf16.msra.mxu1 %v8814_v20  ;;  %v8854_v19 = vcombine.low %v519_v2, %v523_v6  ;;  %v8861_v20 = vcombine.high %v526_v13, %v530_v14  ;;  %v563_v2 = vld [vmem:[%s10635_s12 + $0x438] sm:$0xff]  ;;  %v570_v13 = vld [vmem:[%s10635_s12 + $0x470] sm:$0xff] }
 0x2b5   : > { %7284 = vmatprep.subr.bf16.mxu0 %v8821_v21  ;;  %7612 = vmatprep.subr.bf16.mxu1 %v8823_v22  ;;  %v8863_v21 = vcombine.high %v527_v16, %v531_v17  ;;  %v534_v22 = vld [vmem:[%s10635_s12 + $0x350] sm:$0xff]  ;;  %v567_v14 = vld [vmem:[%s10635_s12 + $0x458] sm:$0xff] }
 0x2b6   : > { %v8868_v41 = vcombine.low %v534_v22, %v538_v24 }
 0x2b8   : > { %7285 = vmatpush1.bf16.msra.mxu0 %v8820_v30  ;;  %7613 = vmatpush1.bf16.msra.mxu1 %v8822_v31  ;;  %v8862_v30 = vcombine.low %v527_v16, %v531_v17  ;;  %v8869_v31 = vcombine.high %v534_v22, %v538_v24  ;;  %v571_v16 = vld [vmem:[%s10635_s12 + $0x478] sm:$0xff]  ;;  %v578_v22 = vld [vmem:[%s10635_s12 + $0x4b0] sm:$0xff] }
 0x2b9   : > { %7286 = vmatprep.subr.bf16.mxu0 %v8829_v32  ;;  %7614 = vmatprep.subr.bf16.mxu1 %v8831_v33  ;;  %v8871_v32 = vcombine.high %v535_v27, %v539_v28  ;;  %v542_v33 = vld [vmem:[%s10635_s12 + $0x390] sm:$0xff]  ;;  %v575_v24 = vld [vmem:[%s10635_s12 + $0x498] sm:$0xff] }
 0x2ba   : > { %v8876_v54 = vcombine.low %v542_v33, %v546_v35 }
 0x2bc   : > { %7287 = vmatpush1.bf16.msra.mxu0 %v8828_v43  ;;  %7615 = vmatpush1.bf16.msra.mxu1 %v8830_v44  ;;  %v8870_v43 = vcombine.low %v535_v27, %v539_v28  ;;  %v8877_v44 = vcombine.high %v542_v33, %v546_v35  ;;  %v579_v27 = vld [vmem:[%s10635_s12 + $0x4b8] sm:$0xff]  ;;  %v586_v33 = vld [vmem:[%s10635_s12 + $0x4f0] sm:$0xff] }
 0x2bd   : > { %7288 = vmatprep.subr.bf16.mxu0 %v8837_v1  ;;  %7616 = vmatprep.subr.bf16.mxu1 %v8839_v45  ;;  %v8879_v1 = vcombine.high %v543_v37, %v547_v40  ;;  %v550_v45 = vld [vmem:[%s10635_s12 + $0x3d0] sm:$0xff]  ;;  %v583_v35 = vld [vmem:[%s10635_s12 + $0x4d8] sm:$0xff] }
 0x2be   : > { %v8884_v6 = vcombine.low %v550_v45, %v554_v46 }
 0x2c0   : > { %7289 = vmatpush1.bf16.msra.mxu0 %v8836_v55  ;;  %7617 = vmatpush1.bf16.msra.mxu1 %v8838_v58  ;;  %v8878_v55 = vcombine.low %v543_v37, %v547_v40  ;;  %v8885_v58 = vcombine.high %v550_v45, %v554_v46  ;;  %v587_v37 = vld [vmem:[%s10635_s12 + $0x4f8] sm:$0xff]  ;;  %v8910_v40 = vcombine.low %v575_v24, %v579_v27 }
 0x2c1   : > { %7290 = vmatprep.subr.bf16.mxu0 %v8845_v59  ;;  %7618 = vmatprep.subr.bf16.mxu1 %v8847_v4  ;;  %v8887_v59 = vcombine.high %v551_v49, %v555_v52  ;;  %v558_v4 = vld [vmem:[%s10635_s12 + $0x410] sm:$0xff]  ;;  %v591_v45 = vld [vmem:[%s10635_s12 + $0x518] sm:$0xff] }
 0x2c2   : > { %v8892_v17 = vcombine.low %v558_v4, %v562_v50  ;;  %v595_v46 = vld [vmem:[%s10635_s12 + $0x538] sm:$0xff] }
 0x2c4   : > { %7291 = vmatpush1.bf16.msra.mxu0 %v8844_v8  ;;  %7619 = vmatpush1.bf16.msra.mxu1 %v8846_v38  ;;  %v8886_v8 = vcombine.low %v551_v49, %v555_v52  ;;  %v8893_v38 = vcombine.high %v558_v4, %v562_v50  ;;  %v603_v4 = vld [vmem:[%s10635_s12 + $0x578] sm:$0xff] }
 0x2c5   : > { %7292 = vmatprep.subr.bf16.mxu0 %v8853_v10  ;;  %7620 = vmatprep.subr.bf16.mxu1 %v8855_v11  ;;  %v8895_v10 = vcombine.high %v559_v63, %v563_v2  ;;  %v566_v11 = vld [vmem:[%s10635_s12 + $0x450] sm:$0xff] }
 0x2c6   : > { %v8900_v28 = vcombine.low %v566_v11, %v570_v13 }
 0x2c8   : > { %7293 = vmatpush1.bf16.msra.mxu0 %v8852_v18  ;;  %7621 = vmatpush1.bf16.msra.mxu1 %v8854_v19  ;;  %v8894_v18 = vcombine.low %v559_v63, %v563_v2  ;;  %v8901_v19 = vcombine.high %v566_v11, %v570_v13  ;;  %v8926_v63 = vcombine.low %v591_v45, %v595_v46  ;;  %v611_v11 = vld [vmem:[%s10635_s12 + $0x5b8] sm:$0xff] }
 0x2c9   : > { %7294 = vmatprep.subr.bf16.mxu0 %v8861_v20  ;;  %7622 = vmatprep.subr.bf16.mxu1 %v8863_v21  ;;  %v8903_v20 = vcombine.high %v567_v14, %v571_v16  ;;  %v574_v21 = vld [vmem:[%s10635_s12 + $0x490] sm:$0xff] }
 0x2cc   : > { %7295 = vmatpush1.bf16.msra.mxu0 %v8860_v29  ;;  %7623 = vmatpush1.bf16.msra.mxu1 %v8862_v30  ;;  %v8902_v29 = vcombine.low %v567_v14, %v571_v16  ;;  %v8909_v30 = vcombine.high %v574_v21, %v578_v22 }
 0x2cd   : > { %7296 = vmatprep.subr.bf16.mxu0 %v8869_v31  ;;  %7624 = vmatprep.subr.bf16.mxu1 %v8871_v32  ;;  %v8911_v31 = vcombine.high %v575_v24, %v579_v27  ;;  %v582_v32 = vld [vmem:[%s10635_s12 + $0x4d0] sm:$0xff] }
 0x2ce   : > { %v8916_v49 = vcombine.low %v582_v32, %v586_v33 }
 0x2d0   : > { %7297 = vmatpush1.bf16.msra.mxu0 %v8868_v41  ;;  %7625 = vmatpush1.bf16.msra.mxu1 %v8870_v43  ;;  %v8917_v41 = vcombine.high %v582_v32, %v586_v33  ;;  %v8919_v43 = vcombine.high %v583_v35, %v587_v37  ;;  %v627_v32 = vld [vmem:[%s10635_s12 + $0x638] sm:$0xff] }
 0x2d1   : > { %7298 = vmatprep.subr.bf16.mxu0 %v8877_v44  ;;  %7626 = vmatprep.subr.bf16.mxu1 %v8879_v1  ;;  %v590_v44 = vld [vmem:[%s10635_s12 + $0x510] sm:$0xff] }
 0x2d2   : > { %v594_v1 = vld [vmem:[%s10635_s12 + $0x530] sm:$0xff] }
 0x2d3   : > { %v8925_v52 = vcombine.high %v590_v44, %v594_v1  ;;  %v8924_v50 = vcombine.low %v590_v44, %v594_v1  ;;  %v635_v44 = vld [vmem:[%s10635_s12 + $0x678] sm:$0xff] }
 0x2d4   : > { %7299 = vmatpush1.bf16.msra.mxu0 %v8876_v54  ;;  %7627 = vmatpush1.bf16.msra.mxu1 %v8878_v55  ;;  %v8927_v54 = vcombine.high %v591_v45, %v595_v46  ;;  %v598_v55 = vld [vmem:[%s10635_s12 + $0x550] sm:$0xff] }
 0x2d5   : > { %7300 = vmatprep.subr.bf16.mxu0 %v8885_v58  ;;  %7628 = vmatprep.subr.bf16.mxu1 %v8887_v59  ;;  %v602_v58 = vld [vmem:[%s10635_s12 + $0x570] sm:$0xff]  ;;  %v599_v59 = vld [vmem:[%s10635_s12 + $0x558] sm:$0xff] }
 0x2d6   : > { %v8933_v2 = vcombine.high %v598_v55, %v602_v58  ;;  %v8932_v13 = vcombine.low %v598_v55, %v602_v58  ;;  %v8934_v14 = vcombine.low %v599_v59, %v603_v4  ;;  %v643_v55 = vld [vmem:[%s10635_s12 + $0x6b8] sm:$0xff] }
 0x2d8   : > { %7301 = vmatpush1.bf16.msra.mxu0 %v8884_v6  ;;  %7629 = vmatpush1.bf16.msra.mxu1 %v8886_v8  ;;  %v8935_v6 = vcombine.high %v599_v59, %v603_v4  ;;  %v606_v8 = vld [vmem:[%s10635_s12 + $0x590] sm:$0xff] }
 0x2d9   : > { %7311 = vmatprep.subr.bf16.mxu0 %v8893_v38  ;;  %7639 = vmatprep.subr.bf16.mxu1 %v8895_v10  ;;  %v610_v38 = vld [vmem:[%s10635_s12 + $0x5b0] sm:$0xff]  ;;  %v607_v10 = vld [vmem:[%s10635_s12 + $0x598] sm:$0xff] }
 0x2da   : > { %v8941_v16 = vcombine.high %v606_v8, %v610_v38  ;;  %v8942_v24 = vcombine.low %v607_v10, %v611_v11 }
 0x2db   : > { %7303 = vmatmul.mubr.bf16.vlgmr.msra.gmra.mrb[4].mxu0 %v10752_v23  ;;  %7631 = vmatmul.mubr.bf16.vlgmr.msra.gmra.mrb[4].mxu1 %v10752_v23  ;;  %v8908_v23 = vcombine.low %v574_v21, %v578_v22  ;;  %v619_v21 = vld [vmem:[%s10635_s12 + $0x5f8] sm:$0xff]  ;;  %v8940_v22 = vcombine.low %v606_v8, %v610_v38 }
 0x2dc   : > { %7312 = vmatpush1.bf16.msra.mxu0 %v8892_v17  ;;  %7640 = vmatpush1.bf16.msra.mxu1 %v8894_v18  ;;  %v8943_v17 = vcombine.high %v607_v10, %v611_v11  ;;  %v614_v18 = vld [vmem:[%s10635_s12 + $0x5d0] sm:$0xff]  ;;  %v651_v8 = vld [vmem:[%s10635_s12 + $0x6f8] sm:$0xff] }
 0x2dd   : > { %7313 = vmatprep.subr.bf16.mxu0 %v8901_v19  ;;  %7641 = vmatprep.subr.bf16.mxu1 %v8903_v20  ;;  %v618_v19 = vld [vmem:[%s10635_s12 + $0x5f0] sm:$0xff]  ;;  %v615_v20 = vld [vmem:[%s10635_s12 + $0x5d8] sm:$0xff] }
 0x2de   : > { %7343 = vmatprep.mubr.bf16.mxu0 %v10760_v34  ;;  %7671 = vmatprep.mubr.bf16.mxu1 %v10760_v34  ;;  %v8918_v34 = vcombine.low %v583_v35, %v587_v37  ;;  %v8949_v27 = vcombine.high %v614_v18, %v618_v19  ;;  %v8948_v33 = vcombine.low %v614_v18, %v618_v19  ;;  %v659_v18 = vld [vmem:[%s10635_s12 + $0x738] sm:$0xff] }
 0x2df   : > { %v8950_v35 = vcombine.low %v615_v20, %v619_v21 }
 0x2e0   : > { %7314 = vmatpush1.bf16.msra.mxu0 %v8900_v28  ;;  %7642 = vmatpush1.bf16.msra.mxu1 %v8902_v29  ;;  %v8951_v28 = vcombine.high %v615_v20, %v619_v21  ;;  %v622_v29 = vld [vmem:[%s10635_s12 + $0x610] sm:$0xff] }
 0x2e1   : > { %7315 = vmatprep.subr.bf16.mxu0 %v8909_v30  ;;  %7643 = vmatprep.subr.bf16.mxu1 %v8911_v31  ;;  %v626_v30 = vld [vmem:[%s10635_s12 + $0x630] sm:$0xff]  ;;  %v623_v31 = vld [vmem:[%s10635_s12 + $0x618] sm:$0xff] }
 0x2e2   : > { %v8957_v37 = vcombine.high %v622_v29, %v626_v30  ;;  %v8956_v1 = vcombine.low %v622_v29, %v626_v30  ;;  %v8958_v45 = vcombine.low %v623_v31, %v627_v32  ;;  %v667_v29 = vld [vmem:[%s10635_s12 + $0x778] sm:$0xff] }
 0x2e4   : > { %7316 = vmatpush1.bf16.msra.mxu0 %v8908_v23  ;;  %7644 = vmatpush1.bf16.msra.mxu1 %v8910_v40  ;;  %v8959_v23 = vcombine.high %v623_v31, %v627_v32  ;;  %v630_v40 = vld [vmem:[%s10635_s12 + $0x650] sm:$0xff] }
 0x2e5   : > { %7317 = vmatprep.subr.bf16.mxu0 %v8917_v41  ;;  %7645 = vmatprep.subr.bf16.mxu1 %v8919_v43  ;;  %v634_v41 = vld [vmem:[%s10635_s12 + $0x670] sm:$0xff]  ;;  %v631_v43 = vld [vmem:[%s10635_s12 + $0x658] sm:$0xff] }
 0x2e6   : > { %v8965_v46 = vcombine.high %v630_v40, %v634_v41  ;;  %v8964_v58 = vcombine.low %v630_v40, %v634_v41  ;;  %v8966_v59 = vcombine.low %v631_v43, %v635_v44  ;;  %v675_v40 = vld [vmem:[%s10635_s12 + $0x7b8] sm:$0xff] }
 0x2e8   : > { %7318 = vmatpush1.bf16.msra.mxu0 %v8916_v49  ;;  %7646 = vmatpush1.bf16.msra.mxu1 %v8918_v34  ;;  %v8967_v49 = vcombine.high %v631_v43, %v635_v44  ;;  %v638_v34 = vld [vmem:[%s10635_s12 + $0x690] sm:$0xff] }
 0x2e9   : > { %7319 = vmatprep.subr.bf16.mxu0 %v8925_v52  ;;  %7647 = vmatprep.subr.bf16.mxu1 %v8927_v54  ;;  %v642_v52 = vld [vmem:[%s10635_s12 + $0x6b0] sm:$0xff]  ;;  %v639_v54 = vld [vmem:[%s10635_s12 + $0x698] sm:$0xff] }
 0x2ea   : > { %v8973_v4 = vcombine.high %v638_v34, %v642_v52  ;;  %v8972_v38 = vcombine.low %v638_v34, %v642_v52  ;;  %v8974_v10 = vcombine.low %v639_v54, %v643_v55  ;;  %v683_v34 = vld [vmem:[%s10635_s12 + $0x7f8] sm:$0xff] }
 0x2ec   : > { %7320 = vmatpush1.bf16.msra.mxu0 %v8924_v50  ;;  %7648 = vmatpush1.bf16.msra.mxu1 %v8926_v63  ;;  %v8975_v50 = vcombine.high %v639_v54, %v643_v55  ;;  %v646_v63 = vld [vmem:[%s10635_s12 + $0x6d0] sm:$0xff] }
 0x2ed   : > { %7321 = vmatprep.subr.bf16.mxu0 %v8933_v2  ;;  %7649 = vmatprep.subr.bf16.mxu1 %v8935_v6  ;;  %v650_v2 = vld [vmem:[%s10635_s12 + $0x6f0] sm:$0xff]  ;;  %v647_v6 = vld [vmem:[%s10635_s12 + $0x6d8] sm:$0xff] }
 0x2ee   : > { %v8981_v11 = vcombine.high %v646_v63, %v650_v2  ;;  %v8980_v19 = vcombine.low %v646_v63, %v650_v2  ;;  %v8982_v20 = vcombine.low %v647_v6, %v651_v8  ;;  %v691_v63 = vld [vmem:[%s10635_s12 + $0x838] sm:$0xff] }
 0x2f0   : > { %7322 = vmatpush1.bf16.msra.mxu0 %v8932_v13  ;;  %7650 = vmatpush1.bf16.msra.mxu1 %v8934_v14  ;;  %v8983_v13 = vcombine.high %v647_v6, %v651_v8  ;;  %v654_v14 = vld [vmem:[%s10635_s12 + $0x710] sm:$0xff] }
 0x2f1   : > { %7323 = vmatprep.subr.bf16.mxu0 %v8941_v16  ;;  %7651 = vmatprep.subr.bf16.mxu1 %v8943_v17  ;;  %v658_v16 = vld [vmem:[%s10635_s12 + $0x730] sm:$0xff]  ;;  %v655_v17 = vld [vmem:[%s10635_s12 + $0x718] sm:$0xff] }
 0x2f2   : > { %v8989_v21 = vcombine.high %v654_v14, %v658_v16  ;;  %v8988_v30 = vcombine.low %v654_v14, %v658_v16  ;;  %v8990_v31 = vcombine.low %v655_v17, %v659_v18  ;;  %v699_v14 = vld [vmem:[%s10635_s12 + $0x878] sm:$0xff] }
 0x2f4   : > { %7324 = vmatpush1.bf16.msra.mxu0 %v8940_v22  ;;  %7652 = vmatpush1.bf16.msra.mxu1 %v8942_v24  ;;  %v8991_v22 = vcombine.high %v655_v17, %v659_v18  ;;  %v662_v24 = vld [vmem:[%s10635_s12 + $0x750] sm:$0xff] }
 0x2f5   : > { %7325 = vmatprep.subr.bf16.mxu0 %v8949_v27  ;;  %7653 = vmatprep.subr.bf16.mxu1 %v8951_v28  ;;  %v666_v27 = vld [vmem:[%s10635_s12 + $0x770] sm:$0xff]  ;;  %v663_v28 = vld [vmem:[%s10635_s12 + $0x758] sm:$0xff] }
 0x2f6   : > { %v8997_v32 = vcombine.high %v662_v24, %v666_v27  ;;  %v8996_v41 = vcombine.low %v662_v24, %v666_v27  ;;  %v8998_v43 = vcombine.low %v663_v28, %v667_v29  ;;  %v707_v24 = vld [vmem:[%s10635_s12 + $0x8b8] sm:$0xff] }
 0x2f8   : > { %7326 = vmatpush1.bf16.msra.mxu0 %v8948_v33  ;;  %7654 = vmatpush1.bf16.msra.mxu1 %v8950_v35  ;;  %v8999_v33 = vcombine.high %v663_v28, %v667_v29  ;;  %v670_v35 = vld [vmem:[%s10635_s12 + $0x790] sm:$0xff] }
 0x2f9   : > { %7327 = vmatprep.subr.bf16.mxu0 %v8957_v37  ;;  %7655 = vmatprep.subr.bf16.mxu1 %v8959_v23  ;;  %v674_v37 = vld [vmem:[%s10635_s12 + $0x7b0] sm:$0xff]  ;;  %v671_v23 = vld [vmem:[%s10635_s12 + $0x798] sm:$0xff] }
 0x2fa   : > { %v9005_v44 = vcombine.high %v670_v35, %v674_v37  ;;  %v9004_v52 = vcombine.low %v670_v35, %v674_v37  ;;  %v9006_v54 = vcombine.low %v671_v23, %v675_v40  ;;  %v715_v35 = vld [vmem:[%s10635_s12 + $0x8f8] sm:$0xff] }
 0x2fc   : > { %7328 = vmatpush1.bf16.msra.mxu0 %v8956_v1  ;;  %7656 = vmatpush1.bf16.msra.mxu1 %v8958_v45  ;;  %v9007_v1 = vcombine.high %v671_v23, %v675_v40  ;;  %v678_v45 = vld [vmem:[%s10635_s12 + $0x7d0] sm:$0xff] }
 0x2fd   : > { %7329 = vmatprep.subr.bf16.mxu0 %v8965_v46  ;;  %7657 = vmatprep.subr.bf16.mxu1 %v8967_v49  ;;  %v682_v46 = vld [vmem:[%s10635_s12 + $0x7f0] sm:$0xff]  ;;  %v679_v49 = vld [vmem:[%s10635_s12 + $0x7d8] sm:$0xff] }
 0x2fe   : > { %v9013_v55 = vcombine.high %v678_v45, %v682_v46  ;;  %v9012_v2 = vcombine.low %v678_v45, %v682_v46  ;;  %v9014_v6 = vcombine.low %v679_v49, %v683_v34 }
 0x300   : > { %7330 = vmatpush1.bf16.msra.mxu0 %v8964_v58  ;;  %7658 = vmatpush1.bf16.msra.mxu1 %v8966_v59  ;;  %v9015_v58 = vcombine.high %v679_v49, %v683_v34  ;;  %v686_v59 = vld [vmem:[%s10635_s12 + $0x810] sm:$0xff] }
 0x301   : > { %7331 = vmatprep.subr.bf16.mxu0 %v8973_v4  ;;  %7659 = vmatprep.subr.bf16.mxu1 %v8975_v50  ;;  %v690_v4 = vld [vmem:[%s10635_s12 + $0x830] sm:$0xff]  ;;  %v687_v50 = vld [vmem:[%s10635_s12 + $0x818] sm:$0xff] }
 0x302   : > { %v9021_v8 = vcombine.high %v686_v59, %v690_v4  ;;  %v9020_v16 = vcombine.low %v686_v59, %v690_v4  ;;  %v9022_v17 = vcombine.low %v687_v50, %v691_v63  ;;  %v726_v34 = vld [vmem:[%s10635_s12 + $0x950] sm:$0xff] }
 0x304   : > { %7332 = vmatpush1.bf16.msra.mxu0 %v8972_v38  ;;  %7660 = vmatpush1.bf16.msra.mxu1 %v8974_v10  ;;  %v9023_v38 = vcombine.high %v687_v50, %v691_v63  ;;  %v694_v10 = vld [vmem:[%s10635_s12 + $0x850] sm:$0xff] }
 0x305   : > { %7333 = vmatprep.subr.bf16.mxu0 %v8981_v11  ;;  %7661 = vmatprep.subr.bf16.mxu1 %v8983_v13  ;;  %v698_v11 = vld [vmem:[%s10635_s12 + $0x870] sm:$0xff]  ;;  %v695_v13 = vld [vmem:[%s10635_s12 + $0x858] sm:$0xff] }
 0x306   : > { %v9029_v18 = vcombine.high %v694_v10, %v698_v11  ;;  %v9028_v27 = vcombine.low %v694_v10, %v698_v11  ;;  %v9030_v28 = vcombine.low %v695_v13, %v699_v14  ;;  %v734_v63 = vld [vmem:[%s10635_s12 + $0x990] sm:$0xff] }
 0x308   : > { %7334 = vmatpush1.bf16.msra.mxu0 %v8980_v19  ;;  %7662 = vmatpush1.bf16.msra.mxu1 %v8982_v20  ;;  %v9031_v19 = vcombine.high %v695_v13, %v699_v14  ;;  %v702_v20 = vld [vmem:[%s10635_s12 + $0x890] sm:$0xff] }
 0x309   : > { %7335 = vmatprep.subr.bf16.mxu0 %v8989_v21  ;;  %7663 = vmatprep.subr.bf16.mxu1 %v8991_v22  ;;  %v706_v21 = vld [vmem:[%s10635_s12 + $0x8b0] sm:$0xff]  ;;  %v703_v22 = vld [vmem:[%s10635_s12 + $0x898] sm:$0xff] }
 0x30a   : > { %v9037_v29 = vcombine.high %v702_v20, %v706_v21  ;;  %v9038_v37 = vcombine.low %v703_v22, %v707_v24  ;;  %v742_v14 = vld [vmem:[%s10635_s12 + $0x9d0] sm:$0xff] }
 0x30c   : > { %7336 = vmatpush1.bf16.msra.mxu0 %v8988_v30  ;;  %7664 = vmatpush1.bf16.msra.mxu1 %v8990_v31  ;;  %v9039_v30 = vcombine.high %v703_v22, %v707_v24  ;;  %v710_v31 = vld [vmem:[%s10635_s12 + $0x8d0] sm:$0xff] }
 0x30d   : > { %7337 = vmatprep.subr.bf16.mxu0 %v8997_v32  ;;  %7665 = vmatprep.subr.bf16.mxu1 %v8999_v33  ;;  %v714_v32 = vld [vmem:[%s10635_s12 + $0x8f0] sm:$0xff]  ;;  %v711_v33 = vld [vmem:[%s10635_s12 + $0x8d8] sm:$0xff] }
 0x30e   : > { %v9045_v23 = vcombine.high %v710_v31, %v714_v32  ;;  %v9047_v40 = vcombine.high %v711_v33, %v715_v35  ;;  %v9044_v45 = vcombine.low %v710_v31, %v714_v32  ;;  %v750_v24 = vld [vmem:[%s10635_s12 + $0xa10] sm:$0xff] }
 0x310   : > { %7338 = vmatpush1.bf16.msra.mxu0 %v8996_v41  ;;  %7666 = vmatpush1.bf16.msra.mxu1 %v8998_v43  ;;  %v718_v41 = vld [vmem:[%s10635_s12 + $0x910] sm:$0xff] }
 0x311   : > { %7339 = vmatprep.subr.bf16.mxu0 %v9005_v44  ;;  %7667 = vmatprep.subr.bf16.mxu1 %v9007_v1  ;;  %v722_v43 = vld [vmem:[%s10635_s12 + $0x930] sm:$0xff]  ;;  %v719_v44 = vld [vmem:[%s10635_s12 + $0x918] sm:$0xff] }
 0x312   : > { %v723_v1 = vld [vmem:[%s10635_s12 + $0x938] sm:$0xff]  ;;  %v9053_v46 = vcombine.high %v718_v41, %v722_v43 }
 0x313   : > { %v9055_v49 = vcombine.high %v719_v44, %v723_v1  ;;  %v9054_v59 = vcombine.low %v719_v44, %v723_v1  ;;  %v766_v1 = vld [vmem:[%s10635_s12 + $0xa90] sm:$0xff] }
 0x314   : > { %7340 = vmatpush1.bf16.msra.mxu0 %v9004_v52  ;;  %7668 = vmatpush1.bf16.msra.mxu1 %v9006_v54  ;;  %v730_v52 = vld [vmem:[%s10635_s12 + $0x970] sm:$0xff]  ;;  %v727_v54 = vld [vmem:[%s10635_s12 + $0x958] sm:$0xff] }
 0x315   : > { %7341 = vmatprep.subr.bf16.mxu0 %v9013_v55  ;;  %7669 = vmatprep.subr.bf16.mxu1 %v9015_v58  ;;  %v731_v55 = vld [vmem:[%s10635_s12 + $0x978] sm:$0xff]  ;;  %v9052_v58 = vcombine.low %v718_v41, %v722_v43  ;;  %v9061_v4 = vcombine.high %v726_v34, %v730_v52 }
 0x316   : > { %v9063_v50 = vcombine.high %v727_v54, %v731_v55  ;;  %v9062_v10 = vcombine.low %v727_v54, %v731_v55  ;;  %v774_v55 = vld [vmem:[%s10635_s12 + $0xad0] sm:$0xff] }
 0x318   : > { %7342 = vmatpush1.bf16.msra.mxu0 %v9012_v2  ;;  %7670 = vmatpush1.bf16.msra.mxu1 %v9014_v6  ;;  %v738_v2 = vld [vmem:[%s10635_s12 + $0x9b0] sm:$0xff]  ;;  %v735_v6 = vld [vmem:[%s10635_s12 + $0x998] sm:$0xff] }
 0x319   : > { %7352 = vmatprep.subr.bf16.mxu0 %v9021_v8  ;;  %7680 = vmatprep.subr.bf16.mxu1 %v9023_v38  ;;  %v739_v8 = vld [vmem:[%s10635_s12 + $0x9b8] sm:$0xff]  ;;  %v9060_v38 = vcombine.low %v726_v34, %v730_v52  ;;  %v9069_v11 = vcombine.high %v734_v63, %v738_v2 }
 0x31a   : > { %v9071_v13 = vcombine.high %v735_v6, %v739_v8 }
 0x31b   : > { %7344 = vmatmul.mubr.bf16.vlgmr.msra.gmra.mrb[4].mxu0 %v10835_v47  ;;  %7672 = vmatmul.mubr.bf16.vlgmr.msra.gmra.mrb[4].mxu1 %v10835_v47  ;;  %v9036_v47 = vcombine.low %v702_v20, %v706_v21  ;;  %v9070_v20 = vcombine.low %v735_v6, %v739_v8  ;;  %v782_v8 = vld [vmem:[%s10635_s12 + $0xb10] sm:$0xff] }
 0x31c   : > { %7353 = vmatpush1.bf16.msra.mxu0 %v9020_v16  ;;  %7681 = vmatpush1.bf16.msra.mxu1 %v9022_v17  ;;  %v746_v16 = vld [vmem:[%s10635_s12 + $0x9f0] sm:$0xff]  ;;  %v743_v17 = vld [vmem:[%s10635_s12 + $0x9d8] sm:$0xff] }
 0x31d   : > { %7354 = vmatprep.subr.bf16.mxu0 %v9029_v18  ;;  %7682 = vmatprep.subr.bf16.mxu1 %v9031_v19  ;;  %v747_v18 = vld [vmem:[%s10635_s12 + $0x9f8] sm:$0xff]  ;;  %v9068_v19 = vcombine.low %v734_v63, %v738_v2  ;;  %v9077_v21 = vcombine.high %v742_v14, %v746_v16 }
 0x31e   : > { %7384 = vmatprep.mubr.bf16.mxu0 %v10840_v56  ;;  %7712 = vmatprep.mubr.bf16.mxu1 %v10840_v56  ;;  %v9046_v56 = vcombine.low %v711_v33, %v715_v35  ;;  %v9079_v22 = vcombine.high %v743_v17, %v747_v18  ;;  %v9078_v31 = vcombine.low %v743_v17, %v747_v18  ;;  %v758_v35 = vld [vmem:[%s10635_s12 + $0xa50] sm:$0xff] }
 0x31f   : > { %v790_v18 = vld [vmem:[%s10635_s12 + $0xb50] sm:$0xff] }
 0x320   : > { %7355 = vmatpush1.bf16.msra.mxu0 %v9028_v27  ;;  %7683 = vmatpush1.bf16.msra.mxu1 %v9030_v28  ;;  %v754_v27 = vld [vmem:[%s10635_s12 + $0xa30] sm:$0xff]  ;;  %v751_v28 = vld [vmem:[%s10635_s12 + $0xa18] sm:$0xff] }
 0x321   : > { %7356 = vmatprep.subr.bf16.mxu0 %v9037_v29  ;;  %7684 = vmatprep.subr.bf16.mxu1 %v9039_v30  ;;  %v755_v29 = vld [vmem:[%s10635_s12 + $0xa38] sm:$0xff]  ;;  %v9076_v30 = vcombine.low %v742_v14, %v746_v16  ;;  %v9085_v32 = vcombine.high %v750_v24, %v754_v27 }
 0x322   : > { %v9087_v33 = vcombine.high %v751_v28, %v755_v29  ;;  %v9086_v41 = vcombine.low %v751_v28, %v755_v29  ;;  %v798_v29 = vld [vmem:[%s10635_s12 + $0xb90] sm:$0xff] }
 0x324   : > { %7357 = vmatpush1.bf16.msra.mxu0 %v9036_v47  ;;  %7685 = vmatpush1.bf16.msra.mxu1 %v9038_v37  ;;  %v762_v47 = vld [vmem:[%s10635_s12 + $0xa70] sm:$0xff]  ;;  %v759_v37 = vld [vmem:[%s10635_s12 + $0xa58] sm:$0xff] }
 0x325   : > { %7358 = vmatprep.subr.bf16.mxu0 %v9045_v23  ;;  %7686 = vmatprep.subr.bf16.mxu1 %v9047_v40  ;;  %v763_v23 = vld [vmem:[%s10635_s12 + $0xa78] sm:$0xff]  ;;  %v9084_v40 = vcombine.low %v750_v24, %v754_v27  ;;  %v9093_v43 = vcombine.high %v758_v35, %v762_v47 }
 0x326   : > { %v9095_v44 = vcombine.high %v759_v37, %v763_v23  ;;  %v9094_v34 = vcombine.low %v759_v37, %v763_v23  ;;  %v806_v23 = vld [vmem:[%s10635_s12 + $0xbd0] sm:$0xff] }
 0x328   : > { %7359 = vmatpush1.bf16.msra.mxu0 %v9044_v45  ;;  %7687 = vmatpush1.bf16.msra.mxu1 %v9046_v56  ;;  %v770_v45 = vld [vmem:[%s10635_s12 + $0xab0] sm:$0xff]  ;;  %v767_v56 = vld [vmem:[%s10635_s12 + $0xa98] sm:$0xff] }
 0x329   : > { %7360 = vmatprep.subr.bf16.mxu0 %v9053_v46  ;;  %7688 = vmatprep.subr.bf16.mxu1 %v9055_v49  ;;  %v771_v46 = vld [vmem:[%s10635_s12 + $0xab8] sm:$0xff]  ;;  %v9092_v49 = vcombine.low %v758_v35, %v762_v47  ;;  %v9101_v52 = vcombine.high %v766_v1, %v770_v45 }
 0x32a   : > { %v9103_v54 = vcombine.high %v767_v56, %v771_v46  ;;  %v9102_v63 = vcombine.low %v767_v56, %v771_v46  ;;  %v814_v46 = vld [vmem:[%s10635_s12 + $0xc10] sm:$0xff] }
 0x32c   : > { %7361 = vmatpush1.bf16.msra.mxu0 %v9052_v58  ;;  %7689 = vmatpush1.bf16.msra.mxu1 %v9054_v59  ;;  %v778_v58 = vld [vmem:[%s10635_s12 + $0xaf0] sm:$0xff]  ;;  %v775_v59 = vld [vmem:[%s10635_s12 + $0xad8] sm:$0xff] }
 0x32d   : > { %7362 = vmatprep.subr.bf16.mxu0 %v9061_v4  ;;  %7690 = vmatprep.subr.bf16.mxu1 %v9063_v50  ;;  %v779_v4 = vld [vmem:[%s10635_s12 + $0xaf8] sm:$0xff]  ;;  %v9100_v50 = vcombine.low %v766_v1, %v770_v45  ;;  %v9109_v2 = vcombine.high %v774_v55, %v778_v58 }
 0x32e   : > { %v9111_v6 = vcombine.high %v775_v59, %v779_v4  ;;  %v9110_v14 = vcombine.low %v775_v59, %v779_v4  ;;  %v822_v4 = vld [vmem:[%s10635_s12 + $0xc50] sm:$0xff] }
 0x330   : > { %7363 = vmatpush1.bf16.msra.mxu0 %v9060_v38  ;;  %7691 = vmatpush1.bf16.msra.mxu1 %v9062_v10  ;;  %v786_v38 = vld [vmem:[%s10635_s12 + $0xb30] sm:$0xff]  ;;  %v783_v10 = vld [vmem:[%s10635_s12 + $0xb18] sm:$0xff] }
 0x331   : > { %7364 = vmatprep.subr.bf16.mxu0 %v9069_v11  ;;  %7692 = vmatprep.subr.bf16.mxu1 %v9071_v13  ;;  %v787_v11 = vld [vmem:[%s10635_s12 + $0xb38] sm:$0xff]  ;;  %v9108_v13 = vcombine.low %v774_v55, %v778_v58  ;;  %v9117_v16 = vcombine.high %v782_v8, %v786_v38 }
 0x332   : > { %v9119_v17 = vcombine.high %v783_v10, %v787_v11  ;;  %v9118_v24 = vcombine.low %v783_v10, %v787_v11  ;;  %v830_v11 = vld [vmem:[%s10635_s12 + $0xc90] sm:$0xff] }
 0x334   : > { %7365 = vmatpush1.bf16.msra.mxu0 %v9068_v19  ;;  %7693 = vmatpush1.bf16.msra.mxu1 %v9070_v20  ;;  %v794_v19 = vld [vmem:[%s10635_s12 + $0xb70] sm:$0xff]  ;;  %v791_v20 = vld [vmem:[%s10635_s12 + $0xb58] sm:$0xff] }
 0x335   : > { %7366 = vmatprep.subr.bf16.mxu0 %v9077_v21  ;;  %7694 = vmatprep.subr.bf16.mxu1 %v9079_v22  ;;  %v795_v21 = vld [vmem:[%s10635_s12 + $0xb78] sm:$0xff]  ;;  %v9116_v22 = vcombine.low %v782_v8, %v786_v38  ;;  %v9125_v27 = vcombine.high %v790_v18, %v794_v19 }
 0x336   : > { %v9127_v28 = vcombine.high %v791_v20, %v795_v21  ;;  %v9126_v35 = vcombine.low %v791_v20, %v795_v21  ;;  %v838_v21 = vld [vmem:[%s10635_s12 + $0xcd0] sm:$0xff] }
 0x338   : > { %7367 = vmatpush1.bf16.msra.mxu0 %v9076_v30  ;;  %7695 = vmatpush1.bf16.msra.mxu1 %v9078_v31  ;;  %v802_v30 = vld [vmem:[%s10635_s12 + $0xbb0] sm:$0xff]  ;;  %v799_v31 = vld [vmem:[%s10635_s12 + $0xb98] sm:$0xff] }
 0x339   : > { %7368 = vmatprep.subr.bf16.mxu0 %v9085_v32  ;;  %7696 = vmatprep.subr.bf16.mxu1 %v9087_v33  ;;  %v803_v32 = vld [vmem:[%s10635_s12 + $0xbb8] sm:$0xff]  ;;  %v9124_v33 = vcombine.low %v790_v18, %v794_v19  ;;  %v9133_v47 = vcombine.high %v798_v29, %v802_v30 }
 0x33a   : > { %v9135_v37 = vcombine.high %v799_v31, %v803_v32  ;;  %v9134_v1 = vcombine.low %v799_v31, %v803_v32  ;;  %v846_v31 = vld [vmem:[%s10635_s12 + $0xd10] sm:$0xff] }
 0x33b   : > { %v850_v32 = vld [vmem:[%s10635_s12 + $0xd30] sm:$0xff] }
 0x33c   : > { %7369 = vmatpush1.bf16.msra.mxu0 %v9084_v40  ;;  %7697 = vmatpush1.bf16.msra.mxu1 %v9086_v41  ;;  %v810_v40 = vld [vmem:[%s10635_s12 + $0xbf0] sm:$0xff]  ;;  %v807_v41 = vld [vmem:[%s10635_s12 + $0xbd8] sm:$0xff] }
 0x33d   : > { %7370 = vmatprep.subr.bf16.mxu0 %v9093_v43  ;;  %7698 = vmatprep.subr.bf16.mxu1 %v9095_v44  ;;  %v811_v43 = vld [vmem:[%s10635_s12 + $0xbf8] sm:$0xff]  ;;  %v9132_v44 = vcombine.low %v798_v29, %v802_v30  ;;  %v9141_v45 = vcombine.high %v806_v23, %v810_v40 }
 0x33e   : > { %v9143_v56 = vcombine.high %v807_v41, %v811_v43  ;;  %v9142_v55 = vcombine.low %v807_v41, %v811_v43  ;;  %v858_v41 = vld [vmem:[%s10635_s12 + $0xd70] sm:$0xff]  ;;  %v855_v43 = vld [vmem:[%s10635_s12 + $0xd58] sm:$0xff] }
 0x340   : > { %7371 = vmatpush1.bf16.msra.mxu0 %v9092_v49  ;;  %7699 = vmatpush1.bf16.msra.mxu1 %v9094_v34  ;;  %v818_v49 = vld [vmem:[%s10635_s12 + $0xc30] sm:$0xff]  ;;  %v815_v34 = vld [vmem:[%s10635_s12 + $0xc18] sm:$0xff] }
 0x341   : > { %7372 = vmatprep.subr.bf16.mxu0 %v9101_v52  ;;  %7700 = vmatprep.subr.bf16.mxu1 %v9103_v54  ;;  %v819_v52 = vld [vmem:[%s10635_s12 + $0xc38] sm:$0xff]  ;;  %v9140_v54 = vcombine.low %v806_v23, %v810_v40  ;;  %v9149_v58 = vcombine.high %v814_v46, %v818_v49  ;;  %v854_v40 = vld [vmem:[%s10635_s12 + $0xd50] sm:$0xff] }
 0x342   : > { %v9151_v59 = vcombine.high %v815_v34, %v819_v52  ;;  %v9150_v8 = vcombine.low %v815_v34, %v819_v52  ;;  %v866_v34 = vld [vmem:[%s10635_s12 + $0xdb0] sm:$0xff]  ;;  %v863_v52 = vld [vmem:[%s10635_s12 + $0xd98] sm:$0xff] }
 0x344   : > { %7373 = vmatpush1.bf16.msra.mxu0 %v9100_v50  ;;  %7701 = vmatpush1.bf16.msra.mxu1 %v9102_v63  ;;  %v826_v50 = vld [vmem:[%s10635_s12 + $0xc70] sm:$0xff]  ;;  %v823_v63 = vld [vmem:[%s10635_s12 + $0xc58] sm:$0xff] }
 0x345   : > { %7374 = vmatprep.subr.bf16.mxu0 %v9109_v2  ;;  %7702 = vmatprep.subr.bf16.mxu1 %v9111_v6  ;;  %v827_v2 = vld [vmem:[%s10635_s12 + $0xc78] sm:$0xff]  ;;  %v9148_v6 = vcombine.low %v814_v46, %v818_v49  ;;  %v9157_v38 = vcombine.high %v822_v4, %v826_v50  ;;  %v862_v49 = vld [vmem:[%s10635_s12 + $0xd90] sm:$0xff] }
 0x346   : > { %v9159_v10 = vcombine.high %v823_v63, %v827_v2  ;;  %v9158_v18 = vcombine.low %v823_v63, %v827_v2  ;;  %v870_v63 = vld [vmem:[%s10635_s12 + $0xdd0] sm:$0xff] }
 0x347   : > { %v874_v2 = vld [vmem:[%s10635_s12 + $0xdf0] sm:$0xff] }
 0x348   : > { %7375 = vmatpush1.bf16.msra.mxu0 %v9108_v13  ;;  %7703 = vmatpush1.bf16.msra.mxu1 %v9110_v14  ;;  %v834_v13 = vld [vmem:[%s10635_s12 + $0xcb0] sm:$0xff]  ;;  %v831_v14 = vld [vmem:[%s10635_s12 + $0xc98] sm:$0xff] }
 0x349   : > { %7376 = vmatprep.subr.bf16.mxu0 %v9117_v16  ;;  %7704 = vmatprep.subr.bf16.mxu1 %v9119_v17  ;;  %v835_v16 = vld [vmem:[%s10635_s12 + $0xcb8] sm:$0xff]  ;;  %v9156_v17 = vcombine.low %v822_v4, %v826_v50  ;;  %v9165_v19 = vcombine.high %v830_v11, %v834_v13 }
 0x34a   : > { %v9167_v20 = vcombine.high %v831_v14, %v835_v16 }
 0x34c   : > { %7377 = vmatpush1.bf16.msra.mxu0 %v9116_v22  ;;  %7705 = vmatpush1.bf16.msra.mxu1 %v9118_v24  ;;  %v842_v22 = vld [vmem:[%s10635_s12 + $0xcf0] sm:$0xff]  ;;  %v839_v24 = vld [vmem:[%s10635_s12 + $0xcd8] sm:$0xff] }
 0x34d   : > { %7378 = vmatprep.subr.bf16.mxu0 %v9125_v27  ;;  %7706 = vmatprep.subr.bf16.mxu1 %v9127_v28  ;;  %v843_v27 = vld [vmem:[%s10635_s12 + $0xcf8] sm:$0xff]  ;;  %v9166_v28 = vcombine.low %v831_v14, %v835_v16  ;;  %v9173_v29 = vcombine.high %v838_v21, %v842_v22  ;;  %v9196_v14 = vcombine.low %v862_v49, %v866_v34 }
 0x34e   : > { %v9175_v30 = vcombine.high %v839_v24, %v843_v27 }
 0x350   : > { %7379 = vmatpush1.bf16.msra.mxu0 %v9124_v33  ;;  %7707 = vmatpush1.bf16.msra.mxu1 %v9126_v35  ;;  %v847_v33 = vld [vmem:[%s10635_s12 + $0xd18] sm:$0xff] }
 0x351   : > { %7380 = vmatprep.subr.bf16.mxu0 %v9133_v47  ;;  %7708 = vmatprep.subr.bf16.mxu1 %v9135_v37  ;;  %v851_v35 = vld [vmem:[%s10635_s12 + $0xd38] sm:$0xff]  ;;  %v9172_v47 = vcombine.low %v838_v21, %v842_v22  ;;  %v9181_v37 = vcombine.high %v846_v31, %v850_v32  ;;  %v878_v22 = vld [vmem:[%s10635_s12 + $0xe10] sm:$0xff] }
 0x352   : > { %v9183_v23 = vcombine.high %v847_v33, %v851_v35 }
 0x354   : > { %7381 = vmatpush1.bf16.msra.mxu0 %v9132_v44  ;;  %7709 = vmatpush1.bf16.msra.mxu1 %v9134_v1  ;;  %v859_v44 = vld [vmem:[%s10635_s12 + $0xd78] sm:$0xff]  ;;  %v9180_v1 = vcombine.low %v846_v31, %v850_v32  ;;  %v886_v32 = vld [vmem:[%s10635_s12 + $0xe50] sm:$0xff] }
 0x355   : > { %7382 = vmatprep.subr.bf16.mxu0 %v9141_v45  ;;  %7710 = vmatprep.subr.bf16.mxu1 %v9143_v56  ;;  %v9182_v45 = vcombine.low %v847_v33, %v851_v35  ;;  %v9189_v56 = vcombine.high %v854_v40, %v858_v41  ;;  %v9191_v46 = vcombine.high %v855_v43, %v859_v44  ;;  %v890_v33 = vld [vmem:[%s10635_s12 + $0xe70] sm:$0xff]  ;;  %v887_v35 = vld [vmem:[%s10635_s12 + $0xe58] sm:$0xff] }
 0x358   : > { %7383 = vmatpush1.bf16.msra.mxu0 %v9140_v54  ;;  %7711 = vmatpush1.bf16.msra.mxu1 %v9142_v55  ;;  %v867_v54 = vld [vmem:[%s10635_s12 + $0xdb8] sm:$0xff]  ;;  %v9188_v55 = vcombine.low %v854_v40, %v858_v41  ;;  %v894_v41 = vld [vmem:[%s10635_s12 + $0xe90] sm:$0xff] }
 0x359   : > { %7393 = vmatprep.subr.bf16.mxu0 %v9149_v58  ;;  %7721 = vmatprep.subr.bf16.mxu1 %v9151_v59  ;;  %v9190_v58 = vcombine.low %v855_v43, %v859_v44  ;;  %v9197_v59 = vcombine.high %v862_v49, %v866_v34  ;;  %v9199_v50 = vcombine.high %v863_v52, %v867_v54  ;;  %v898_v43 = vld [vmem:[%s10635_s12 + $0xeb0] sm:$0xff]  ;;  %v895_v44 = vld [vmem:[%s10635_s12 + $0xe98] sm:$0xff] }
 0x35a   : > { %v902_v34 = vld [vmem:[%s10635_s12 + $0xed0] sm:$0xff] }
 0x35b   : > { %7385 = vmatmul.mubr.bf16.vlgmr.msra.gmra.mrb[4].mxu0 %v10921_v15  ;;  %7713 = vmatmul.mubr.bf16.vlgmr.msra.gmra.mrb[4].mxu1 %v10921_v15  ;;  %v9164_v15 = vcombine.low %v830_v11, %v834_v13 }
 0x35c   : > { %7394 = vmatpush1.bf16.msra.mxu0 %v9148_v6  ;;  %7722 = vmatpush1.bf16.msra.mxu1 %v9150_v8 }
 0x35d   : > { %7395 = vmatprep.subr.bf16.mxu0 %v9157_v38  ;;  %7723 = vmatprep.subr.bf16.mxu1 %v9159_v10  ;;  %v871_v38 = vld [vmem:[%s10635_s12 + $0xdd8] sm:$0xff] }
 0x35e   : > { %7425 = vmatprep.mubr.bf16.mxu0 %v10927_v25  ;;  %7753 = vmatprep.mubr.bf16.mxu1 %v10927_v25  ;;  %v9174_v25 = vcombine.low %v839_v24, %v843_v27  ;;  %v875_v10 = vld [vmem:[%s10635_s12 + $0xdf8] sm:$0xff]  ;;  %v882_v24 = vld [vmem:[%s10635_s12 + $0xe30] sm:$0xff] }
 0x35f   : > { %v9207_v21 = vcombine.high %v871_v38, %v875_v10  ;;  %v879_v27 = vld [vmem:[%s10635_s12 + $0xe18] sm:$0xff] }
 0x360   : > { %7396 = vmatpush1.bf16.msra.mxu0 %v9156_v17  ;;  %7724 = vmatpush1.bf16.msra.mxu1 %v9158_v18  ;;  %v9198_v18 = vcombine.low %v863_v52, %v867_v54  ;;  %v906_v52 = vld [vmem:[%s10635_s12 + $0xef0] sm:$0xff]  ;;  %v903_v54 = vld [vmem:[%s10635_s12 + $0xed8] sm:$0xff] }
 0x361   : > { %7397 = vmatprep.subr.bf16.mxu0 %v9165_v19  ;;  %7725 = vmatprep.subr.bf16.mxu1 %v9167_v20  ;;  %v9205_v19 = vcombine.high %v870_v63, %v874_v2 }
 0x364   : > { %7398 = vmatpush1.bf16.msra.mxu0 %v9164_v15  ;;  %7726 = vmatpush1.bf16.msra.mxu1 %v9166_v28  ;;  %v883_v15 = vld [vmem:[%s10635_s12 + $0xe38] sm:$0xff]  ;;  %v9204_v28 = vcombine.low %v870_v63, %v874_v2  ;;  %v910_v2 = vld [vmem:[%s10635_s12 + $0xf10] sm:$0xff] }
 0x365   : > { %7399 = vmatprep.subr.bf16.mxu0 %v9173_v29  ;;  %7727 = vmatprep.subr.bf16.mxu1 %v9175_v30  ;;  %v9206_v29 = vcombine.low %v871_v38, %v875_v10  ;;  %v9213_v30 = vcombine.high %v878_v22, %v882_v24  ;;  %v9215_v31 = vcombine.high %v879_v27, %v883_v15  ;;  %v914_v38 = vld [vmem:[%s10635_s12 + $0xf30] sm:$0xff]  ;;  %v911_v10 = vld [vmem:[%s10635_s12 + $0xf18] sm:$0xff] }
 0x368   : > { %7400 = vmatpush1.bf16.msra.mxu0 %v9172_v47  ;;  %7728 = vmatpush1.bf16.msra.mxu1 %v9174_v25  ;;  %v891_v47 = vld [vmem:[%s10635_s12 + $0xe78] sm:$0xff]  ;;  %v9212_v25 = vcombine.low %v878_v22, %v882_v24  ;;  %v9244_v24 = vcombine.low %v910_v2, %v914_v38 }
 0x369   : > { %7401 = vmatprep.subr.bf16.mxu0 %v9181_v37  ;;  %7729 = vmatprep.subr.bf16.mxu1 %v9183_v23  ;;  %v9214_v37 = vcombine.low %v879_v27, %v883_v15  ;;  %v9221_v23 = vcombine.high %v886_v32, %v890_v33  ;;  %v9223_v40 = vcombine.high %v887_v35, %v891_v47  ;;  %v923_v22 = vld [vmem:[%s10635_s12 + $0xf78] sm:$0xff] }
 0x36c   : > { %7402 = vmatpush1.bf16.msra.mxu0 %v9180_v1  ;;  %7730 = vmatpush1.bf16.msra.mxu1 %v9182_v45  ;;  %v899_v1 = vld [vmem:[%s10635_s12 + $0xeb8] sm:$0xff]  ;;  %v9220_v45 = vcombine.low %v886_v32, %v890_v33 }
 0x36d   : > { %7403 = vmatprep.subr.bf16.mxu0 %v9189_v56  ;;  %7731 = vmatprep.subr.bf16.mxu1 %v9191_v46  ;;  %v9222_v56 = vcombine.low %v887_v35, %v891_v47  ;;  %v9229_v46 = vcombine.high %v894_v41, %v898_v43  ;;  %v9231_v49 = vcombine.high %v895_v44, %v899_v1  ;;  %v931_v32 = vld [vmem:[%s10635_s12 + $0xfb8] sm:$0xff] }
 0x36e   : > { %v11544_v4 = vpop.f32.mrb[0].mxu0  ;;  %v11548_v6 = vpop.f32.mrb[0].mxu1 }
 0x36f   : > { %v11550_v8 = vpop.f32.mrb[1].mxu0  ;;  %v11554_v11 = vpop.f32.mrb[1].mxu1 }
 0x370   : > { %v6939_v13 = vpop.f32.mrb[2].mxu0  ;;  %7404 = vmatpush1.bf16.msra.mxu0 %v9188_v55  ;;  %v7267_v16 = vpop.f32.mrb[2].mxu1  ;;  %7732 = vmatpush1.bf16.msra.mxu1 %v9190_v58  ;;  %v907_v55 = vld [vmem:[%s10635_s12 + $0xef8] sm:$0xff]  ;;  %v9228_v58 = vcombine.low %v894_v41, %v898_v43 }
 0x371   : > { %v6940_v17 = vpop.f32.mrb[3].mxu0  ;;  %7405 = vmatprep.subr.bf16.mxu0 %v9197_v59  ;;  %v7268_v20 = vpop.f32.mrb[3].mxu1  ;;  %7733 = vmatprep.subr.bf16.mxu1 %v9199_v50  ;;  %v9230_v59 = vcombine.low %v895_v44, %v899_v1  ;;  %v9237_v50 = vcombine.high %v902_v34, %v906_v52  ;;  %v9239_v63 = vcombine.high %v903_v54, %v907_v55  ;;  %v915_v13 = vld [vmem:[%s10635_s12 + $0xf38] sm:$0xff] }
 0x372   : > { %v9238_v16 = vcombine.low %v903_v54, %v907_v55  ;;  %v9245_v17 = vcombine.high %v910_v2, %v914_v38  ;;  %v922_v20 = vld [vmem:[%s10635_s12 + $0xf70] sm:$0xff]  ;;  %v9246_v27 = vcombine.low %v911_v10, %v915_v13  ;;  %v939_v41 = vld [vmem:[%s10635_s12 + $0xff8] sm:$0xff] }
 0x373   : > { %v955_v2 = vld [vmem:[%s10635_s12 + $0x1078] sm:$0xff] }
 0x374   : > { %7406 = vmatpush1.bf16.msra.mxu0 %v9196_v14  ;;  %7734 = vmatpush1.bf16.msra.mxu1 %v9198_v18  ;;  %v9236_v14 = vcombine.low %v902_v34, %v906_v52  ;;  %v9247_v18 = vcombine.high %v911_v10, %v915_v13  ;;  %v947_v34 = vld [vmem:[%s10635_s12 + $0x1038] sm:$0xff] }
 0x375   : > { %7407 = vmatprep.subr.bf16.mxu0 %v9205_v19  ;;  %7735 = vmatprep.subr.bf16.mxu1 %v9207_v21  ;;  %v918_v19 = vld [vmem:[%s10635_s12 + $0xf50] sm:$0xff]  ;;  %v919_v21 = vld [vmem:[%s10635_s12 + $0xf58] sm:$0xff] }
 0x376   : > { %v9253_v15 = vcombine.high %v918_v19, %v922_v20  ;;  %v9252_v33 = vcombine.low %v918_v19, %v922_v20  ;;  %v9254_v35 = vcombine.low %v919_v21, %v923_v22  ;;  %v963_v19 = vld [vmem:[%s10635_s12 + $0x10b8] sm:$0xff] }
 0x378   : > { %7408 = vmatpush1.bf16.msra.mxu0 %v9204_v28  ;;  %7736 = vmatpush1.bf16.msra.mxu1 %v9206_v29  ;;  %v9255_v28 = vcombine.high %v919_v21, %v923_v22  ;;  %v926_v29 = vld [vmem:[%s10635_s12 + $0xf90] sm:$0xff] }
 0x379   : > { %7409 = vmatprep.subr.bf16.mxu0 %v9213_v30  ;;  %7737 = vmatprep.subr.bf16.mxu1 %v9215_v31  ;;  %v930_v30 = vld [vmem:[%s10635_s12 + $0xfb0] sm:$0xff]  ;;  %v927_v31 = vld [vmem:[%s10635_s12 + $0xf98] sm:$0xff] }
 0x37a   : > { %v9261_v47 = vcombine.high %v926_v29, %v930_v30  ;;  %v9260_v43 = vcombine.low %v926_v29, %v930_v30  ;;  %v9262_v44 = vcombine.low %v927_v31, %v931_v32  ;;  %v971_v29 = vld [vmem:[%s10635_s12 + $0x10f8] sm:$0xff] }
 0x37c   : > { %7410 = vmatpush1.bf16.msra.mxu0 %v9212_v25  ;;  %7738 = vmatpush1.bf16.msra.mxu1 %v9214_v37  ;;  %v9263_v25 = vcombine.high %v927_v31, %v931_v32  ;;  %v934_v37 = vld [vmem:[%s10635_s12 + $0xfd0] sm:$0xff] }
 0x37d   : > { %7411 = vmatprep.subr.bf16.mxu0 %v9221_v23  ;;  %7739 = vmatprep.subr.bf16.mxu1 %v9223_v40  ;;  %v938_v23 = vld [vmem:[%s10635_s12 + $0xff0] sm:$0xff]  ;;  %v935_v40 = vld [vmem:[%s10635_s12 + $0xfd8] sm:$0xff] }
 0x37e   : > { %v9269_v1 = vcombine.high %v934_v37, %v938_v23  ;;  %v9268_v52 = vcombine.low %v934_v37, %v938_v23  ;;  %v9270_v54 = vcombine.low %v935_v40, %v939_v41 }
 0x380   : > { %7412 = vmatpush1.bf16.msra.mxu0 %v9220_v45  ;;  %7740 = vmatpush1.bf16.msra.mxu1 %v9222_v56  ;;  %v9271_v45 = vcombine.high %v935_v40, %v939_v41  ;;  %v942_v56 = vld [vmem:[%s10635_s12 + $0x1010] sm:$0xff] }
 0x381   : > { %7413 = vmatprep.subr.bf16.mxu0 %v9229_v46  ;;  %7741 = vmatprep.subr.bf16.mxu1 %v9231_v49  ;;  %v946_v46 = vld [vmem:[%s10635_s12 + $0x1030] sm:$0xff]  ;;  %v943_v49 = vld [vmem:[%s10635_s12 + $0x1018] sm:$0xff] }
 0x382   : > { %v9277_v55 = vcombine.high %v942_v56, %v946_v46  ;;  %v9276_v38 = vcombine.low %v942_v56, %v946_v46  ;;  %v9278_v10 = vcombine.low %v943_v49, %v947_v34  ;;  %v982_v41 = vld [vmem:[%s10635_s12 + $0x1150] sm:$0xff] }
 0x384   : > { %7414 = vmatpush1.bf16.msra.mxu0 %v9228_v58  ;;  %7742 = vmatpush1.bf16.msra.mxu1 %v9230_v59  ;;  %v9279_v58 = vcombine.high %v943_v49, %v947_v34  ;;  %v950_v59 = vld [vmem:[%s10635_s12 + $0x1050] sm:$0xff] }
 0x385   : > { %7415 = vmatprep.subr.bf16.mxu0 %v9237_v50  ;;  %7743 = vmatprep.subr.bf16.mxu1 %v9239_v63  ;;  %v954_v50 = vld [vmem:[%s10635_s12 + $0x1070] sm:$0xff]  ;;  %v951_v63 = vld [vmem:[%s10635_s12 + $0x1058] sm:$0xff] }
 0x386   : > { %v9285_v13 = vcombine.high %v950_v59, %v954_v50  ;;  %v9284_v20 = vcombine.low %v950_v59, %v954_v50  ;;  %v9286_v21 = vcombine.low %v951_v63, %v955_v2  ;;  %v990_v34 = vld [vmem:[%s10635_s12 + $0x1190] sm:$0xff] }
 0x388   : > { %7416 = vmatpush1.bf16.msra.mxu0 %v9236_v14  ;;  %7744 = vmatpush1.bf16.msra.mxu1 %v9238_v16  ;;  %v9287_v14 = vcombine.high %v951_v63, %v955_v2  ;;  %v958_v16 = vld [vmem:[%s10635_s12 + $0x1090] sm:$0xff] }
 0x389   : > { %7417 = vmatprep.subr.bf16.mxu0 %v9245_v17  ;;  %7745 = vmatprep.subr.bf16.mxu1 %v9247_v18  ;;  %v962_v17 = vld [vmem:[%s10635_s12 + $0x10b0] sm:$0xff]  ;;  %v959_v18 = vld [vmem:[%s10635_s12 + $0x1098] sm:$0xff] }
 0x38a   : > { %v9293_v22 = vcombine.high %v958_v16, %v962_v17  ;;  %v9294_v30 = vcombine.low %v959_v18, %v963_v19  ;;  %v998_v2 = vld [vmem:[%s10635_s12 + $0x11d0] sm:$0xff] }
 0x38c   : > { %7418 = vmatpush1.bf16.msra.mxu0 %v9244_v24  ;;  %7746 = vmatpush1.bf16.msra.mxu1 %v9246_v27  ;;  %v9295_v24 = vcombine.high %v959_v18, %v963_v19  ;;  %v966_v27 = vld [vmem:[%s10635_s12 + $0x10d0] sm:$0xff] }
 0x38d   : > { %7419 = vmatprep.subr.bf16.mxu0 %v9253_v15  ;;  %7747 = vmatprep.subr.bf16.mxu1 %v9255_v28  ;;  %v970_v15 = vld [vmem:[%s10635_s12 + $0x10f0] sm:$0xff]  ;;  %v967_v28 = vld [vmem:[%s10635_s12 + $0x10d8] sm:$0xff] }
 0x38e   : > { %v9301_v31 = vcombine.high %v966_v27, %v970_v15  ;;  %v9303_v32 = vcombine.high %v967_v28, %v971_v29  ;;  %v9300_v37 = vcombine.low %v966_v27, %v970_v15  ;;  %v1006_v19 = vld [vmem:[%s10635_s12 + $0x1210] sm:$0xff] }
 0x390   : > { %7420 = vmatpush1.bf16.msra.mxu0 %v9252_v33  ;;  %7748 = vmatpush1.bf16.msra.mxu1 %v9254_v35  ;;  %v974_v33 = vld [vmem:[%s10635_s12 + $0x1110] sm:$0xff] }
 0x391   : > { %7421 = vmatprep.subr.bf16.mxu0 %v9261_v47  ;;  %7749 = vmatprep.subr.bf16.mxu1 %v9263_v25  ;;  %v978_v35 = vld [vmem:[%s10635_s12 + $0x1130] sm:$0xff]  ;;  %v975_v47 = vld [vmem:[%s10635_s12 + $0x1118] sm:$0xff] }
 0x392   : > { %v979_v25 = vld [vmem:[%s10635_s12 + $0x1138] sm:$0xff]  ;;  %v9309_v23 = vcombine.high %v974_v33, %v978_v35 }
 0x393   : > { %v9311_v40 = vcombine.high %v975_v47, %v979_v25  ;;  %v9310_v56 = vcombine.low %v975_v47, %v979_v25  ;;  %v1022_v25 = vld [vmem:[%s10635_s12 + $0x1290] sm:$0xff] }
 0x394   : > { %7422 = vmatpush1.bf16.msra.mxu0 %v9260_v43  ;;  %7750 = vmatpush1.bf16.msra.mxu1 %v9262_v44  ;;  %v986_v43 = vld [vmem:[%s10635_s12 + $0x1170] sm:$0xff]  ;;  %v983_v44 = vld [vmem:[%s10635_s12 + $0x1158] sm:$0xff] }
 0x395   : > { %7423 = vmatprep.subr.bf16.mxu0 %v9269_v1  ;;  %7751 = vmatprep.subr.bf16.mxu1 %v9271_v45  ;;  %v987_v1 = vld [vmem:[%s10635_s12 + $0x1178] sm:$0xff]  ;;  %v9308_v45 = vcombine.low %v974_v33, %v978_v35  ;;  %v9317_v46 = vcombine.high %v982_v41, %v986_v43 }
 0x396   : > { %v9319_v49 = vcombine.high %v983_v44, %v987_v1  ;;  %v9318_v59 = vcombine.low %v983_v44, %v987_v1  ;;  %v1030_v1 = vld [vmem:[%s10635_s12 + $0x12d0] sm:$0xff] }
 0x398   : > { %7424 = vmatpush1.bf16.msra.mxu0 %v9268_v52  ;;  %7752 = vmatpush1.bf16.msra.mxu1 %v9270_v54  ;;  %v994_v52 = vld [vmem:[%s10635_s12 + $0x11b0] sm:$0xff]  ;;  %v991_v54 = vld [vmem:[%s10635_s12 + $0x1198] sm:$0xff] }
 0x399   : > { %7434 = vmatprep.subr.bf16.mxu0 %v9277_v55  ;;  %7762 = vmatprep.subr.bf16.mxu1 %v9279_v58  ;;  %v995_v55 = vld [vmem:[%s10635_s12 + $0x11b8] sm:$0xff]  ;;  %v9316_v58 = vcombine.low %v982_v41, %v986_v43  ;;  %v9325_v50 = vcombine.high %v990_v34, %v994_v52 }
 0x39a   : > { %v9327_v63 = vcombine.high %v991_v54, %v995_v55 }
 0x39b   : > { %7426 = vmatmul.mubr.bf16.vlgmr.msra.gmra.mrb[4].mxu0 %v11005_v60  ;;  %7754 = vmatmul.mubr.bf16.vlgmr.msra.gmra.mrb[4].mxu1 %v11005_v60  ;;  %v9292_v60 = vcombine.low %v958_v16, %v962_v17  ;;  %v9326_v16 = vcombine.low %v991_v54, %v995_v55  ;;  %v1038_v55 = vld [vmem:[%s10635_s12 + $0x1310] sm:$0xff] }
 0x39c   : > { %7435 = vmatpush1.bf16.msra.mxu0 %v9276_v38  ;;  %7763 = vmatpush1.bf16.msra.mxu1 %v9278_v10  ;;  %v1002_v38 = vld [vmem:[%s10635_s12 + $0x11f0] sm:$0xff]  ;;  %v999_v10 = vld [vmem:[%s10635_s12 + $0x11d8] sm:$0xff] }
 0x39d   : > { %7436 = vmatprep.subr.bf16.mxu0 %v9285_v13  ;;  %7764 = vmatprep.subr.bf16.mxu1 %v9287_v14  ;;  %v1003_v13 = vld [vmem:[%s10635_s12 + $0x11f8] sm:$0xff]  ;;  %v9324_v14 = vcombine.low %v990_v34, %v994_v52  ;;  %v9333_v17 = vcombine.high %v998_v2, %v1002_v38 }
 0x39e   : > { %7466 = vmatprep.mubr.bf16.mxu0 %v11011_v9  ;;  %7794 = vmatprep.mubr.bf16.mxu1 %v11011_v9  ;;  %v9302_v9 = vcombine.low %v967_v28, %v971_v29  ;;  %v9335_v18 = vcombine.high %v999_v10, %v1003_v13  ;;  %v9334_v27 = vcombine.low %v999_v10, %v1003_v13  ;;  %v1014_v29 = vld [vmem:[%s10635_s12 + $0x1250] sm:$0xff] }
 0x39f   : > { %v1046_v13 = vld [vmem:[%s10635_s12 + $0x1350] sm:$0xff] }
 0x3a0   : > { %7437 = vmatpush1.bf16.msra.mxu0 %v9284_v20  ;;  %7765 = vmatpush1.bf16.msra.mxu1 %v9286_v21  ;;  %v1010_v20 = vld [vmem:[%s10635_s12 + $0x1230] sm:$0xff]  ;;  %v1007_v21 = vld [vmem:[%s10635_s12 + $0x1218] sm:$0xff] }
 0x3a1   : > { %7438 = vmatprep.subr.bf16.mxu0 %v9293_v22  ;;  %7766 = vmatprep.subr.bf16.mxu1 %v9295_v24  ;;  %v1011_v22 = vld [vmem:[%s10635_s12 + $0x1238] sm:$0xff]  ;;  %v9332_v24 = vcombine.low %v998_v2, %v1002_v38  ;;  %v9341_v15 = vcombine.high %v1006_v19, %v1010_v20 }
 0x3a2   : > { %v9343_v28 = vcombine.high %v1007_v21, %v1011_v22  ;;  %v9342_v33 = vcombine.low %v1007_v21, %v1011_v22  ;;  %v1054_v22 = vld [vmem:[%s10635_s12 + $0x1390] sm:$0xff] }
 0x3a4   : > { %7439 = vmatpush1.bf16.msra.mxu0 %v9292_v60  ;;  %7767 = vmatpush1.bf16.msra.mxu1 %v9294_v30  ;;  %v1018_v60 = vld [vmem:[%s10635_s12 + $0x1270] sm:$0xff]  ;;  %v1015_v30 = vld [vmem:[%s10635_s12 + $0x1258] sm:$0xff] }
 0x3a5   : > { %7440 = vmatprep.subr.bf16.mxu0 %v9301_v31  ;;  %7768 = vmatprep.subr.bf16.mxu1 %v9303_v32  ;;  %v1019_v31 = vld [vmem:[%s10635_s12 + $0x1278] sm:$0xff]  ;;  %v9340_v32 = vcombine.low %v1006_v19, %v1010_v20  ;;  %v9349_v35 = vcombine.high %v1014_v29, %v1018_v60 }
 0x3a6   : > { %v9351_v47 = vcombine.high %v1015_v30, %v1019_v31  ;;  %v9350_v41 = vcombine.low %v1015_v30, %v1019_v31  ;;  %v1062_v31 = vld [vmem:[%s10635_s12 + $0x13d0] sm:$0xff] }
 0x3a8   : > { %7441 = vmatpush1.bf16.msra.mxu0 %v9300_v37  ;;  %7769 = vmatpush1.bf16.msra.mxu1 %v9302_v9  ;;  %v1026_v37 = vld [vmem:[%s10635_s12 + $0x12b0] sm:$0xff]  ;;  %v1023_v9 = vld [vmem:[%s10635_s12 + $0x1298] sm:$0xff] }
 0x3a9   : > { %7442 = vmatprep.subr.bf16.mxu0 %v9309_v23  ;;  %7770 = vmatprep.subr.bf16.mxu1 %v9311_v40  ;;  %v1027_v23 = vld [vmem:[%s10635_s12 + $0x12b8] sm:$0xff]  ;;  %v9348_v40 = vcombine.low %v1014_v29, %v1018_v60  ;;  %v9357_v43 = vcombine.high %v1022_v25, %v1026_v37 }
 0x3aa   : > { %v9359_v44 = vcombine.high %v1023_v9, %v1027_v23  ;;  %v9358_v34 = vcombine.low %v1023_v9, %v1027_v23  ;;  %v1070_v23 = vld [vmem:[%s10635_s12 + $0x1410] sm:$0xff] }
 0x3ac   : > { %7443 = vmatpush1.bf16.msra.mxu0 %v9308_v45  ;;  %7771 = vmatpush1.bf16.msra.mxu1 %v9310_v56  ;;  %v1034_v45 = vld [vmem:[%s10635_s12 + $0x12f0] sm:$0xff]  ;;  %v1031_v56 = vld [vmem:[%s10635_s12 + $0x12d8] sm:$0xff] }
 0x3ad   : > { %7444 = vmatprep.subr.bf16.mxu0 %v9317_v46  ;;  %7772 = vmatprep.subr.bf16.mxu1 %v9319_v49  ;;  %v1035_v46 = vld [vmem:[%s10635_s12 + $0x12f8] sm:$0xff]  ;;  %v9356_v49 = vcombine.low %v1022_v25, %v1026_v37  ;;  %v9365_v52 = vcombine.high %v1030_v1, %v1034_v45 }
 0x3ae   : > { %v9367_v54 = vcombine.high %v1031_v56, %v1035_v46  ;;  %v9366_v2 = vcombine.low %v1031_v56, %v1035_v46  ;;  %v1078_v46 = vld [vmem:[%s10635_s12 + $0x1450] sm:$0xff] }
 0x3b0   : > { %7445 = vmatpush1.bf16.msra.mxu0 %v9316_v58  ;;  %7773 = vmatpush1.bf16.msra.mxu1 %v9318_v59  ;;  %v1042_v58 = vld [vmem:[%s10635_s12 + $0x1330] sm:$0xff]  ;;  %v1039_v59 = vld [vmem:[%s10635_s12 + $0x1318] sm:$0xff] }
 0x3b1   : > { %7446 = vmatprep.subr.bf16.mxu0 %v9325_v50  ;;  %7774 = vmatprep.subr.bf16.mxu1 %v9327_v63  ;;  %v1043_v50 = vld [vmem:[%s10635_s12 + $0x1338] sm:$0xff]  ;;  %v9364_v63 = vcombine.low %v1030_v1, %v1034_v45  ;;  %v9373_v38 = vcombine.high %v1038_v55, %v1042_v58 }
 0x3b2   : > { %v9375_v10 = vcombine.high %v1039_v59, %v1043_v50  ;;  %v9374_v19 = vcombine.low %v1039_v59, %v1043_v50  ;;  %v1086_v50 = vld [vmem:[%s10635_s12 + $0x1490] sm:$0xff] }
 0x3b4   : > { %7447 = vmatpush1.bf16.msra.mxu0 %v9324_v14  ;;  %7775 = vmatpush1.bf16.msra.mxu1 %v9326_v16  ;;  %v1050_v14 = vld [vmem:[%s10635_s12 + $0x1370] sm:$0xff]  ;;  %v1047_v16 = vld [vmem:[%s10635_s12 + $0x1358] sm:$0xff] }
 0x3b5   : > { %7448 = vmatprep.subr.bf16.mxu0 %v9333_v17  ;;  %7776 = vmatprep.subr.bf16.mxu1 %v9335_v18  ;;  %v1051_v17 = vld [vmem:[%s10635_s12 + $0x1378] sm:$0xff]  ;;  %v9372_v18 = vcombine.low %v1038_v55, %v1042_v58  ;;  %v9381_v20 = vcombine.high %v1046_v13, %v1050_v14 }
 0x3b6   : > { %v9383_v21 = vcombine.high %v1047_v16, %v1051_v17  ;;  %v9382_v29 = vcombine.low %v1047_v16, %v1051_v17  ;;  %v1094_v17 = vld [vmem:[%s10635_s12 + $0x14d0] sm:$0xff] }
 0x3b8   : > { %7449 = vmatpush1.bf16.msra.mxu0 %v9332_v24  ;;  %7777 = vmatpush1.bf16.msra.mxu1 %v9334_v27  ;;  %v1058_v24 = vld [vmem:[%s10635_s12 + $0x13b0] sm:$0xff]  ;;  %v1055_v27 = vld [vmem:[%s10635_s12 + $0x1398] sm:$0xff] }
 0x3b9   : > { %7450 = vmatprep.subr.bf16.mxu0 %v9341_v15  ;;  %7778 = vmatprep.subr.bf16.mxu1 %v9343_v28  ;;  %v1059_v15 = vld [vmem:[%s10635_s12 + $0x13b8] sm:$0xff]  ;;  %v9380_v28 = vcombine.low %v1046_v13, %v1050_v14  ;;  %v9389_v60 = vcombine.high %v1054_v22, %v1058_v24 }
 0x3ba   : > { %v9391_v30 = vcombine.high %v1055_v27, %v1059_v15  ;;  %v9390_v25 = vcombine.low %v1055_v27, %v1059_v15  ;;  %v1102_v27 = vld [vmem:[%s10635_s12 + $0x1510] sm:$0xff] }
 0x3bb   : > { %v1106_v15 = vld [vmem:[%s10635_s12 + $0x1530] sm:$0xff] }
 0x3bc   : > { %7451 = vmatpush1.bf16.msra.mxu0 %v9340_v32  ;;  %7779 = vmatpush1.bf16.msra.mxu1 %v9342_v33  ;;  %v1066_v32 = vld [vmem:[%s10635_s12 + $0x13f0] sm:$0xff]  ;;  %v1063_v33 = vld [vmem:[%s10635_s12 + $0x13d8] sm:$0xff] }
 0x3bd   : > { %7452 = vmatprep.subr.bf16.mxu0 %v9349_v35  ;;  %7780 = vmatprep.subr.bf16.mxu1 %v9351_v47  ;;  %v1067_v35 = vld [vmem:[%s10635_s12 + $0x13f8] sm:$0xff]  ;;  %v9388_v47 = vcombine.low %v1054_v22, %v1058_v24  ;;  %v9397_v37 = vcombine.high %v1062_v31, %v1066_v32 }
 0x3be   : > { %v9399_v9 = vcombine.high %v1063_v33, %v1067_v35  ;;  %v9398_v1 = vcombine.low %v1063_v33, %v1067_v35  ;;  %v1114_v33 = vld [vmem:[%s10635_s12 + $0x1570] sm:$0xff]  ;;  %v1111_v35 = vld [vmem:[%s10635_s12 + $0x1558] sm:$0xff] }
 0x3c0   : > { %7453 = vmatpush1.bf16.msra.mxu0 %v9348_v40  ;;  %7781 = vmatpush1.bf16.msra.mxu1 %v9350_v41  ;;  %v1074_v40 = vld [vmem:[%s10635_s12 + $0x1430] sm:$0xff]  ;;  %v1071_v41 = vld [vmem:[%s10635_s12 + $0x1418] sm:$0xff] }
 0x3c1   : > { %7454 = vmatprep.subr.bf16.mxu0 %v9357_v43  ;;  %7782 = vmatprep.subr.bf16.mxu1 %v9359_v44  ;;  %v1075_v43 = vld [vmem:[%s10635_s12 + $0x1438] sm:$0xff]  ;;  %v9396_v44 = vcombine.low %v1062_v31, %v1066_v32  ;;  %v9405_v45 = vcombine.high %v1070_v23, %v1074_v40  ;;  %v1110_v32 = vld [vmem:[%s10635_s12 + $0x1550] sm:$0xff] }
 0x3c2   : > { %v9407_v56 = vcombine.high %v1071_v41, %v1075_v43  ;;  %v9406_v55 = vcombine.low %v1071_v41, %v1075_v43  ;;  %v1122_v41 = vld [vmem:[%s10635_s12 + $0x15b0] sm:$0xff]  ;;  %v1119_v43 = vld [vmem:[%s10635_s12 + $0x1598] sm:$0xff] }
 0x3c4   : > { %7455 = vmatpush1.bf16.msra.mxu0 %v9356_v49  ;;  %7783 = vmatpush1.bf16.msra.mxu1 %v9358_v34  ;;  %v1082_v49 = vld [vmem:[%s10635_s12 + $0x1470] sm:$0xff]  ;;  %v1079_v34 = vld [vmem:[%s10635_s12 + $0x1458] sm:$0xff] }
 0x3c5   : > { %7456 = vmatprep.subr.bf16.mxu0 %v9365_v52  ;;  %7784 = vmatprep.subr.bf16.mxu1 %v9367_v54  ;;  %v1083_v52 = vld [vmem:[%s10635_s12 + $0x1478] sm:$0xff]  ;;  %v9404_v54 = vcombine.low %v1070_v23, %v1074_v40  ;;  %v9413_v58 = vcombine.high %v1078_v46, %v1082_v49  ;;  %v1118_v40 = vld [vmem:[%s10635_s12 + $0x1590] sm:$0xff] }
 0x3c6   : > { %v9415_v59 = vcombine.high %v1079_v34, %v1083_v52  ;;  %v9414_v13 = vcombine.low %v1079_v34, %v1083_v52  ;;  %v1130_v34 = vld [vmem:[%s10635_s12 + $0x15f0] sm:$0xff]  ;;  %v1127_v52 = vld [vmem:[%s10635_s12 + $0x15d8] sm:$0xff] }
 0x3c8   : > { %7457 = vmatpush1.bf16.msra.mxu0 %v9364_v63  ;;  %7785 = vmatpush1.bf16.msra.mxu1 %v9366_v2  ;;  %v1090_v63 = vld [vmem:[%s10635_s12 + $0x14b0] sm:$0xff]  ;;  %v1087_v2 = vld [vmem:[%s10635_s12 + $0x1498] sm:$0xff] }
 0x3c9   : > { %7458 = vmatprep.subr.bf16.mxu0 %v9373_v38  ;;  %7786 = vmatprep.subr.bf16.mxu1 %v9375_v10  ;;  %v1091_v38 = vld [vmem:[%s10635_s12 + $0x14b8] sm:$0xff]  ;;  %v9412_v10 = vcombine.low %v1078_v46, %v1082_v49  ;;  %v9421_v14 = vcombine.high %v1086_v50, %v1090_v63  ;;  %v1126_v49 = vld [vmem:[%s10635_s12 + $0x15d0] sm:$0xff] }
 0x3ca   : > { %v9423_v16 = vcombine.high %v1087_v2, %v1091_v38 }
 0x3cc   : > { %7459 = vmatpush1.bf16.msra.mxu0 %v9372_v18  ;;  %7787 = vmatpush1.bf16.msra.mxu1 %v9374_v19  ;;  %v1098_v18 = vld [vmem:[%s10635_s12 + $0x14f0] sm:$0xff]  ;;  %v1095_v19 = vld [vmem:[%s10635_s12 + $0x14d8] sm:$0xff] }
 0x3cd   : > { %7460 = vmatprep.subr.bf16.mxu0 %v9381_v20  ;;  %7788 = vmatprep.subr.bf16.mxu1 %v9383_v21  ;;  %v1099_v20 = vld [vmem:[%s10635_s12 + $0x14f8] sm:$0xff]  ;;  %v9422_v21 = vcombine.low %v1087_v2, %v1091_v38  ;;  %v9429_v22 = vcombine.high %v1094_v17, %v1098_v18  ;;  %v1138_v2 = vld [vmem:[%s10635_s12 + $0x1630] sm:$0xff] }
 0x3ce   : > { %v9431_v24 = vcombine.high %v1095_v19, %v1099_v20  ;;  %v1135_v38 = vld [vmem:[%s10635_s12 + $0x1618] sm:$0xff] }
 0x3d0   : > { %7461 = vmatpush1.bf16.msra.mxu0 %v9380_v28  ;;  %7789 = vmatpush1.bf16.msra.mxu1 %v9382_v29  ;;  %v1103_v28 = vld [vmem:[%s10635_s12 + $0x1518] sm:$0xff] }
 0x3d1   : > { %7462 = vmatprep.subr.bf16.mxu0 %v9389_v60  ;;  %7790 = vmatprep.subr.bf16.mxu1 %v9391_v30  ;;  %v1107_v29 = vld [vmem:[%s10635_s12 + $0x1538] sm:$0xff]  ;;  %v9428_v60 = vcombine.low %v1094_v17, %v1098_v18  ;;  %v9437_v30 = vcombine.high %v1102_v27, %v1106_v15  ;;  %v1142_v18 = vld [vmem:[%s10635_s12 + $0x1650] sm:$0xff] }
 0x3d2   : > { %v9439_v31 = vcombine.high %v1103_v28, %v1107_v29 }
 0x3d4   : > { %7463 = vmatpush1.bf16.msra.mxu0 %v9388_v47  ;;  %7791 = vmatpush1.bf16.msra.mxu1 %v9390_v25  ;;  %v1115_v47 = vld [vmem:[%s10635_s12 + $0x1578] sm:$0xff]  ;;  %v9436_v25 = vcombine.low %v1102_v27, %v1106_v15  ;;  %v1150_v15 = vld [vmem:[%s10635_s12 + $0x1690] sm:$0xff] }
 0x3d5   : > { %7464 = vmatprep.subr.bf16.mxu0 %v9397_v37  ;;  %7792 = vmatprep.subr.bf16.mxu1 %v9399_v9  ;;  %v9438_v37 = vcombine.low %v1103_v28, %v1107_v29  ;;  %v9445_v9 = vcombine.high %v1110_v32, %v1114_v33  ;;  %v9447_v23 = vcombine.high %v1111_v35, %v1115_v47  ;;  %v1154_v28 = vld [vmem:[%s10635_s12 + $0x16b0] sm:$0xff]  ;;  %v1151_v29 = vld [vmem:[%s10635_s12 + $0x1698] sm:$0xff] }
 0x3d8   : > { %7465 = vmatpush1.bf16.msra.mxu0 %v9396_v44  ;;  %7793 = vmatpush1.bf16.msra.mxu1 %v9398_v1  ;;  %v1123_v44 = vld [vmem:[%s10635_s12 + $0x15b8] sm:$0xff]  ;;  %v9444_v1 = vcombine.low %v1110_v32, %v1114_v33  ;;  %v1158_v33 = vld [vmem:[%s10635_s12 + $0x16d0] sm:$0xff] }
 0x3d9   : > { %7475 = vmatprep.subr.bf16.mxu0 %v9405_v45  ;;  %7803 = vmatprep.subr.bf16.mxu1 %v9407_v56  ;;  %v9446_v45 = vcombine.low %v1111_v35, %v1115_v47  ;;  %v9453_v56 = vcombine.high %v1118_v40, %v1122_v41  ;;  %v9455_v46 = vcombine.high %v1119_v43, %v1123_v44  ;;  %v1162_v35 = vld [vmem:[%s10635_s12 + $0x16f0] sm:$0xff]  ;;  %v1159_v47 = vld [vmem:[%s10635_s12 + $0x16d8] sm:$0xff] }
 0x3db   : > { %7467 = vmatmul.mubr.bf16.vlgmr.msra.gmra.mrb[4].mxu0 %v11081_v42  ;;  %7795 = vmatmul.mubr.bf16.vlgmr.msra.gmra.mrb[4].mxu1 %v11081_v42  ;;  %v9420_v42 = vcombine.low %v1086_v50, %v1090_v63  ;;  %v1134_v63 = vld [vmem:[%s10635_s12 + $0x1610] sm:$0xff] }
 0x3dc   : > { %7476 = vmatpush1.bf16.msra.mxu0 %v9404_v54  ;;  %7804 = vmatpush1.bf16.msra.mxu1 %v9406_v55  ;;  %v1131_v54 = vld [vmem:[%s10635_s12 + $0x15f8] sm:$0xff]  ;;  %v9452_v55 = vcombine.low %v1118_v40, %v1122_v41  ;;  %v1166_v41 = vld [vmem:[%s10635_s12 + $0x1710] sm:$0xff] }
 0x3dd   : > { %7477 = vmatprep.subr.bf16.mxu0 %v9413_v58  ;;  %7805 = vmatprep.subr.bf16.mxu1 %v9415_v59  ;;  %v9454_v58 = vcombine.low %v1119_v43, %v1123_v44  ;;  %v9461_v59 = vcombine.high %v1126_v49, %v1130_v34  ;;  %v9463_v50 = vcombine.high %v1127_v52, %v1131_v54  ;;  %v1170_v43 = vld [vmem:[%s10635_s12 + $0x1730] sm:$0xff]  ;;  %v1167_v44 = vld [vmem:[%s10635_s12 + $0x1718] sm:$0xff] }
 0x3de   : > { %7507 = vmatprep.mubr.bf16.mxu0 %v11087_v62  ;;  %7835 = vmatprep.mubr.bf16.mxu1 %v11087_v62  ;;  %v9430_v62 = vcombine.low %v1095_v19, %v1099_v20  ;;  %v1146_v19 = vld [vmem:[%s10635_s12 + $0x1670] sm:$0xff]  ;;  %v1143_v20 = vld [vmem:[%s10635_s12 + $0x1658] sm:$0xff] }
 0x3e0   : > { %7478 = vmatpush1.bf16.msra.mxu0 %v9412_v10  ;;  %7806 = vmatpush1.bf16.msra.mxu1 %v9414_v13  ;;  %v1139_v10 = vld [vmem:[%s10635_s12 + $0x1638] sm:$0xff]  ;;  %v9460_v13 = vcombine.low %v1126_v49, %v1130_v34  ;;  %v1174_v34 = vld [vmem:[%s10635_s12 + $0x1750] sm:$0xff] }
 0x3e1   : > { %7479 = vmatprep.subr.bf16.mxu0 %v9421_v14  ;;  %7807 = vmatprep.subr.bf16.mxu1 %v9423_v16  ;;  %v9462_v14 = vcombine.low %v1127_v52, %v1131_v54  ;;  %v9469_v16 = vcombine.high %v1134_v63, %v1138_v2  ;;  %v9471_v17 = vcombine.high %v1135_v38, %v1139_v10  ;;  %v1178_v52 = vld [vmem:[%s10635_s12 + $0x1770] sm:$0xff]  ;;  %v1175_v54 = vld [vmem:[%s10635_s12 + $0x1758] sm:$0xff] }
 0x3e4   : > { %7480 = vmatpush1.bf16.msra.mxu0 %v9420_v42  ;;  %7808 = vmatpush1.bf16.msra.mxu1 %v9422_v21  ;;  %v1147_v42 = vld [vmem:[%s10635_s12 + $0x1678] sm:$0xff]  ;;  %v9468_v21 = vcombine.low %v1134_v63, %v1138_v2  ;;  %v1182_v2 = vld [vmem:[%s10635_s12 + $0x1790] sm:$0xff] }
 0x3e5   : > { %7481 = vmatprep.subr.bf16.mxu0 %v9429_v22  ;;  %7809 = vmatprep.subr.bf16.mxu1 %v9431_v24  ;;  %v9470_v22 = vcombine.low %v1135_v38, %v1139_v10  ;;  %v9477_v24 = vcombine.high %v1142_v18, %v1146_v19  ;;  %v9479_v27 = vcombine.high %v1143_v20, %v1147_v42  ;;  %v1186_v38 = vld [vmem:[%s10635_s12 + $0x17b0] sm:$0xff]  ;;  %v1183_v10 = vld [vmem:[%s10635_s12 + $0x1798] sm:$0xff] }
 0x3e8   : > { %7482 = vmatpush1.bf16.msra.mxu0 %v9428_v60  ;;  %7810 = vmatpush1.bf16.msra.mxu1 %v9430_v62  ;;  %v1155_v60 = vld [vmem:[%s10635_s12 + $0x16b8] sm:$0xff]  ;;  %v9476_v62 = vcombine.low %v1142_v18, %v1146_v19  ;;  %v1190_v19 = vld [vmem:[%s10635_s12 + $0x17d0] sm:$0xff] }
 0x3e9   : > { %7483 = vmatprep.subr.bf16.mxu0 %v9437_v30  ;;  %7811 = vmatprep.subr.bf16.mxu1 %v9439_v31  ;;  %v9478_v30 = vcombine.low %v1143_v20, %v1147_v42  ;;  %v9485_v31 = vcombine.high %v1150_v15, %v1154_v28  ;;  %v9487_v32 = vcombine.high %v1151_v29, %v1155_v60  ;;  %v1194_v20 = vld [vmem:[%s10635_s12 + $0x17f0] sm:$0xff]  ;;  %v1191_v42 = vld [vmem:[%s10635_s12 + $0x17d8] sm:$0xff] }
 0x3ec   : > { %7484 = vmatpush1.bf16.msra.mxu0 %v9436_v25  ;;  %7812 = vmatpush1.bf16.msra.mxu1 %v9438_v37  ;;  %v1163_v25 = vld [vmem:[%s10635_s12 + $0x16f8] sm:$0xff]  ;;  %v9484_v37 = vcombine.low %v1150_v15, %v1154_v28  ;;  %v1198_v28 = vld [vmem:[%s10635_s12 + $0x1810] sm:$0xff] }
 0x3ed   : > { %7485 = vmatprep.subr.bf16.mxu0 %v9445_v9  ;;  %7813 = vmatprep.subr.bf16.mxu1 %v9447_v23  ;;  %v9486_v9 = vcombine.low %v1151_v29, %v1155_v60  ;;  %v9493_v23 = vcombine.high %v1158_v33, %v1162_v35  ;;  %v9495_v40 = vcombine.high %v1159_v47, %v1163_v25  ;;  %v1202_v29 = vld [vmem:[%s10635_s12 + $0x1830] sm:$0xff]  ;;  %v1199_v60 = vld [vmem:[%s10635_s12 + $0x1818] sm:$0xff] }
 0x3f0   : > { %7486 = vmatpush1.bf16.msra.mxu0 %v9444_v1  ;;  %7814 = vmatpush1.bf16.msra.mxu1 %v9446_v45  ;;  %v1171_v1 = vld [vmem:[%s10635_s12 + $0x1738] sm:$0xff]  ;;  %v9492_v45 = vcombine.low %v1158_v33, %v1162_v35  ;;  %v1206_v35 = vld [vmem:[%s10635_s12 + $0x1850] sm:$0xff] }
 0x3f1   : > { %7487 = vmatprep.subr.bf16.mxu0 %v9453_v56  ;;  %7815 = vmatprep.subr.bf16.mxu1 %v9455_v46  ;;  %v9494_v56 = vcombine.low %v1159_v47, %v1163_v25  ;;  %v9501_v46 = vcombine.high %v1166_v41, %v1170_v43  ;;  %v9503_v49 = vcombine.high %v1167_v44, %v1171_v1  ;;  %v1210_v47 = vld [vmem:[%s10635_s12 + $0x1870] sm:$0xff]  ;;  %v1207_v25 = vld [vmem:[%s10635_s12 + $0x1858] sm:$0xff] }
 0x3f4   : > { %7488 = vmatpush1.bf16.msra.mxu0 %v9452_v55  ;;  %7816 = vmatpush1.bf16.msra.mxu1 %v9454_v58  ;;  %v1179_v55 = vld [vmem:[%s10635_s12 + $0x1778] sm:$0xff]  ;;  %v9500_v58 = vcombine.low %v1166_v41, %v1170_v43  ;;  %v1214_v43 = vld [vmem:[%s10635_s12 + $0x1890] sm:$0xff] }
 0x3f5   : > { %7489 = vmatprep.subr.bf16.mxu0 %v9461_v59  ;;  %7817 = vmatprep.subr.bf16.mxu1 %v9463_v50  ;;  %v9502_v59 = vcombine.low %v1167_v44, %v1171_v1  ;;  %v9509_v50 = vcombine.high %v1174_v34, %v1178_v52  ;;  %v9511_v63 = vcombine.high %v1175_v54, %v1179_v55  ;;  %v1218_v44 = vld [vmem:[%s10635_s12 + $0x18b0] sm:$0xff]  ;;  %v1215_v1 = vld [vmem:[%s10635_s12 + $0x1898] sm:$0xff] }
 0x3f8   : > { %7490 = vmatpush1.bf16.msra.mxu0 %v9460_v13  ;;  %7818 = vmatpush1.bf16.msra.mxu1 %v9462_v14  ;;  %v1187_v13 = vld [vmem:[%s10635_s12 + $0x17b8] sm:$0xff]  ;;  %v9508_v14 = vcombine.low %v1174_v34, %v1178_v52  ;;  %v1222_v52 = vld [vmem:[%s10635_s12 + $0x18d0] sm:$0xff] }
 0x3f9   : > { %7491 = vmatprep.subr.bf16.mxu0 %v9469_v16  ;;  %7819 = vmatprep.subr.bf16.mxu1 %v9471_v17  ;;  %v9510_v16 = vcombine.low %v1175_v54, %v1179_v55  ;;  %v9517_v17 = vcombine.high %v1182_v2, %v1186_v38  ;;  %v9519_v18 = vcombine.high %v1183_v10, %v1187_v13  ;;  %v1226_v54 = vld [vmem:[%s10635_s12 + $0x18f0] sm:$0xff]  ;;  %v1223_v55 = vld [vmem:[%s10635_s12 + $0x18d8] sm:$0xff] }
 0x3fc   : > { %7492 = vmatpush1.bf16.msra.mxu0 %v9468_v21  ;;  %7820 = vmatpush1.bf16.msra.mxu1 %v9470_v22  ;;  %v1195_v21 = vld [vmem:[%s10635_s12 + $0x17f8] sm:$0xff]  ;;  %v9516_v22 = vcombine.low %v1182_v2, %v1186_v38  ;;  %v1230_v2 = vld [vmem:[%s10635_s12 + $0x1910] sm:$0xff] }
 0x3fd   : > { %7493 = vmatprep.subr.bf16.mxu0 %v9477_v24  ;;  %7821 = vmatprep.subr.bf16.mxu1 %v9479_v27  ;;  %v9518_v24 = vcombine.low %v1183_v10, %v1187_v13  ;;  %v9525_v27 = vcombine.high %v1190_v19, %v1194_v20  ;;  %v9527_v15 = vcombine.high %v1191_v42, %v1195_v21  ;;  %v1234_v38 = vld [vmem:[%s10635_s12 + $0x1930] sm:$0xff]  ;;  %v1231_v10 = vld [vmem:[%s10635_s12 + $0x1918] sm:$0xff] }
 0x3fe   : > { %v1235_v13 = vld [vmem:[%s10635_s12 + $0x1938] sm:$0xff] }
 0x400   : > { %7494 = vmatpush1.bf16.msra.mxu0 %v9476_v62  ;;  %7822 = vmatpush1.bf16.msra.mxu1 %v9478_v30  ;;  %v1203_v62 = vld [vmem:[%s10635_s12 + $0x1838] sm:$0xff]  ;;  %v9524_v30 = vcombine.low %v1190_v19, %v1194_v20  ;;  %v1242_v19 = vld [vmem:[%s10635_s12 + $0x1970] sm:$0xff] }
 0x401   : > { %7495 = vmatprep.subr.bf16.mxu0 %v9485_v31  ;;  %7823 = vmatprep.subr.bf16.mxu1 %v9487_v32  ;;  %v9526_v31 = vcombine.low %v1191_v42, %v1195_v21  ;;  %v9533_v32 = vcombine.high %v1198_v28, %v1202_v29  ;;  %v9535_v33 = vcombine.high %v1199_v60, %v1203_v62  ;;  %v1239_v20 = vld [vmem:[%s10635_s12 + $0x1958] sm:$0xff] }
 0x402   : > { %v1243_v42 = vld [vmem:[%s10635_s12 + $0x1978] sm:$0xff]  ;;  %v9564_v21 = vcombine.low %v1230_v2, %v1234_v38 }
 0x404   : > { %7496 = vmatpush1.bf16.msra.mxu0 %v9484_v37  ;;  %7824 = vmatpush1.bf16.msra.mxu1 %v9486_v9  ;;  %v1211_v37 = vld [vmem:[%s10635_s12 + $0x1878] sm:$0xff]  ;;  %v9532_v9 = vcombine.low %v1198_v28, %v1202_v29  ;;  %v1250_v28 = vld [vmem:[%s10635_s12 + $0x19b0] sm:$0xff] }
 0x405   : > { %7497 = vmatprep.subr.bf16.mxu0 %v9493_v23  ;;  %7825 = vmatprep.subr.bf16.mxu1 %v9495_v40  ;;  %v9534_v23 = vcombine.low %v1199_v60, %v1203_v62  ;;  %v9541_v40 = vcombine.high %v1206_v35, %v1210_v47  ;;  %v9543_v41 = vcombine.high %v1207_v25, %v1211_v37  ;;  %v1247_v29 = vld [vmem:[%s10635_s12 + $0x1998] sm:$0xff] }
 0x406   : > { %v1251_v60 = vld [vmem:[%s10635_s12 + $0x19b8] sm:$0xff] }
 0x408   : > { %7498 = vmatpush1.bf16.msra.mxu0 %v9492_v45  ;;  %7826 = vmatpush1.bf16.msra.mxu1 %v9494_v56  ;;  %v1219_v45 = vld [vmem:[%s10635_s12 + $0x18b8] sm:$0xff]  ;;  %v9540_v56 = vcombine.low %v1206_v35, %v1210_v47  ;;  %v1258_v35 = vld [vmem:[%s10635_s12 + $0x19f0] sm:$0xff] }
 0x409   : > { %7499 = vmatprep.subr.bf16.mxu0 %v9501_v46  ;;  %7827 = vmatprep.subr.bf16.mxu1 %v9503_v49  ;;  %v9542_v46 = vcombine.low %v1207_v25, %v1211_v37  ;;  %v9549_v49 = vcombine.high %v1214_v43, %v1218_v44  ;;  %v9551_v34 = vcombine.high %v1215_v1, %v1219_v45  ;;  %v1255_v47 = vld [vmem:[%s10635_s12 + $0x19d8] sm:$0xff] }
 0x40a   : > { %v1259_v25 = vld [vmem:[%s10635_s12 + $0x19f8] sm:$0xff] }
 0x40c   : > { %7500 = vmatpush1.bf16.msra.mxu0 %v9500_v58  ;;  %7828 = vmatpush1.bf16.msra.mxu1 %v9502_v59  ;;  %v1227_v58 = vld [vmem:[%s10635_s12 + $0x18f8] sm:$0xff]  ;;  %v9550_v59 = vcombine.low %v1215_v1, %v1219_v45 }
 0x40d   : > { %7501 = vmatprep.subr.bf16.mxu0 %v9509_v50  ;;  %7829 = vmatprep.subr.bf16.mxu1 %v9511_v63  ;;  %v9557_v50 = vcombine.high %v1222_v52, %v1226_v54  ;;  %v9559_v63 = vcombine.high %v1223_v55, %v1227_v58  ;;  %v1267_v1 = vld [vmem:[%s10635_s12 + $0x1a38] sm:$0xff] }
 0x410   : > { %7502 = vmatpush1.bf16.msra.mxu0 %v9508_v14  ;;  %7830 = vmatpush1.bf16.msra.mxu1 %v9510_v16  ;;  %v9556_v14 = vcombine.low %v1222_v52, %v1226_v54  ;;  %v9565_v16 = vcombine.high %v1230_v2, %v1234_v38  ;;  %v1274_v52 = vld [vmem:[%s10635_s12 + $0x1a70] sm:$0xff]  ;;  %v1271_v54 = vld [vmem:[%s10635_s12 + $0x1a58] sm:$0xff] }
 0x411   : > { %7503 = vmatprep.subr.bf16.mxu0 %v9517_v17  ;;  %7831 = vmatprep.subr.bf16.mxu1 %v9519_v18  ;;  %v9567_v17 = vcombine.high %v1231_v10, %v1235_v13  ;;  %v1238_v18 = vld [vmem:[%s10635_s12 + $0x1950] sm:$0xff]  ;;  %v1279_v38 = vld [vmem:[%s10635_s12 + $0x1a98] sm:$0xff] }
 0x412   : > { %v9572_v62 = vcombine.low %v1238_v18, %v1242_v19  ;;  %v1282_v2 = vld [vmem:[%s10635_s12 + $0x1ab0] sm:$0xff] }
 0x414   : > { %7504 = vmatpush1.bf16.msra.mxu0 %v9516_v22  ;;  %7832 = vmatpush1.bf16.msra.mxu1 %v9518_v24  ;;  %v9566_v22 = vcombine.low %v1231_v10, %v1235_v13  ;;  %v9573_v24 = vcombine.high %v1238_v18, %v1242_v19  ;;  %v1283_v10 = vld [vmem:[%s10635_s12 + $0x1ab8] sm:$0xff]  ;;  %v1290_v18 = vld [vmem:[%s10635_s12 + $0x1af0] sm:$0xff] }
 0x415   : > { %7505 = vmatprep.subr.bf16.mxu0 %v9525_v27  ;;  %7833 = vmatprep.subr.bf16.mxu1 %v9527_v15  ;;  %v9575_v27 = vcombine.high %v1239_v20, %v1243_v42  ;;  %v1246_v15 = vld [vmem:[%s10635_s12 + $0x1990] sm:$0xff]  ;;  %v1287_v19 = vld [vmem:[%s10635_s12 + $0x1ad8] sm:$0xff] }
 0x416   : > { %v9580_v37 = vcombine.low %v1246_v15, %v1250_v28 }
 0x418   : > { %7506 = vmatpush1.bf16.msra.mxu0 %v9524_v30  ;;  %7834 = vmatpush1.bf16.msra.mxu1 %v9526_v31  ;;  %v9574_v30 = vcombine.low %v1239_v20, %v1243_v42  ;;  %v9581_v31 = vcombine.high %v1246_v15, %v1250_v28  ;;  %v1291_v20 = vld [vmem:[%s10635_s12 + $0x1af8] sm:$0xff]  ;;  %v1298_v15 = vld [vmem:[%s10635_s12 + $0x1b30] sm:$0xff] }
 0x419   : > { %7516 = vmatprep.subr.bf16.mxu0 %v9533_v32  ;;  %7844 = vmatprep.subr.bf16.mxu1 %v9535_v33  ;;  %v9583_v32 = vcombine.high %v1247_v29, %v1251_v60  ;;  %v1254_v33 = vld [vmem:[%s10635_s12 + $0x19d0] sm:$0xff]  ;;  %v1295_v28 = vld [vmem:[%s10635_s12 + $0x1b18] sm:$0xff] }
 0x41a   : > { %v9588_v45 = vcombine.low %v1254_v33, %v1258_v35 }
 0x41b   : > { %7508 = vmatmul.mubr.bf16.vlgmr.msra.gmra.mrb[4].mxu0 %v11157_v48  ;;  %7836 = vmatmul.mubr.bf16.vlgmr.msra.gmra.mrb[4].mxu1 %v11157_v48  ;;  %v9548_v48 = vcombine.low %v1214_v43, %v1218_v44  ;;  %v1266_v43 = vld [vmem:[%s10635_s12 + $0x1a30] sm:$0xff]  ;;  %v1263_v44 = vld [vmem:[%s10635_s12 + $0x1a18] sm:$0xff] }
 0x41c   : > { %7517 = vmatpush1.bf16.msra.mxu0 %v9532_v9  ;;  %7845 = vmatpush1.bf16.msra.mxu1 %v9534_v23  ;;  %v9582_v9 = vcombine.low %v1247_v29, %v1251_v60  ;;  %v9589_v23 = vcombine.high %v1254_v33, %v1258_v35  ;;  %v1299_v29 = vld [vmem:[%s10635_s12 + $0x1b38] sm:$0xff]  ;;  %v1306_v33 = vld [vmem:[%s10635_s12 + $0x1b70] sm:$0xff] }
 0x41d   : > { %7518 = vmatprep.subr.bf16.mxu0 %v9541_v40  ;;  %7846 = vmatprep.subr.bf16.mxu1 %v9543_v41  ;;  %v9591_v40 = vcombine.high %v1255_v47, %v1259_v25  ;;  %v1262_v41 = vld [vmem:[%s10635_s12 + $0x1a10] sm:$0xff]  ;;  %v1303_v35 = vld [vmem:[%s10635_s12 + $0x1b58] sm:$0xff] }
 0x41e   : > { %7548 = vmatprep.mubr.bf16.mxu0 %v11163_v61  ;;  %7876 = vmatprep.mubr.bf16.mxu1 %v11163_v61  ;;  %v9558_v61 = vcombine.low %v1223_v55, %v1227_v58  ;;  %v1275_v55 = vld [vmem:[%s10635_s12 + $0x1a78] sm:$0xff]  ;;  %v9596_v58 = vcombine.low %v1262_v41, %v1266_v43 }
 0x420   : > { %7519 = vmatpush1.bf16.msra.mxu0 %v9540_v56  ;;  %7847 = vmatpush1.bf16.msra.mxu1 %v9542_v46  ;;  %v9590_v56 = vcombine.low %v1255_v47, %v1259_v25  ;;  %v9597_v46 = vcombine.high %v1262_v41, %v1266_v43  ;;  %v1307_v47 = vld [vmem:[%s10635_s12 + $0x1b78] sm:$0xff]  ;;  %v1314_v41 = vld [vmem:[%s10635_s12 + $0x1bb0] sm:$0xff] }
 0x421   : > { %7520 = vmatprep.subr.bf16.mxu0 %v9549_v49  ;;  %7848 = vmatprep.subr.bf16.mxu1 %v9551_v34  ;;  %v9599_v49 = vcombine.high %v1263_v44, %v1267_v1  ;;  %v1270_v34 = vld [vmem:[%s10635_s12 + $0x1a50] sm:$0xff]  ;;  %v1311_v43 = vld [vmem:[%s10635_s12 + $0x1b98] sm:$0xff] }
 0x422   : > { %v9604_v13 = vcombine.low %v1270_v34, %v1274_v52 }
 0x424   : > { %7521 = vmatpush1.bf16.msra.mxu0 %v9548_v48  ;;  %7849 = vmatpush1.bf16.msra.mxu1 %v9550_v59  ;;  %v9598_v48 = vcombine.low %v1263_v44, %v1267_v1  ;;  %v9605_v59 = vcombine.high %v1270_v34, %v1274_v52  ;;  %v1315_v44 = vld [vmem:[%s10635_s12 + $0x1bb8] sm:$0xff]  ;;  %v1322_v34 = vld [vmem:[%s10635_s12 + $0x1bf0] sm:$0xff] }
 0x425   : > { %7522 = vmatprep.subr.bf16.mxu0 %v9557_v50  ;;  %7850 = vmatprep.subr.bf16.mxu1 %v9559_v63  ;;  %v9607_v50 = vcombine.high %v1271_v54, %v1275_v55  ;;  %v1278_v63 = vld [vmem:[%s10635_s12 + $0x1a90] sm:$0xff]  ;;  %v1319_v52 = vld [vmem:[%s10635_s12 + $0x1bd8] sm:$0xff] }
 0x426   : > { %v9612_v42 = vcombine.low %v1278_v63, %v1282_v2 }
 0x428   : > { %7523 = vmatpush1.bf16.msra.mxu0 %v9556_v14  ;;  %7851 = vmatpush1.bf16.msra.mxu1 %v9558_v61  ;;  %v9606_v14 = vcombine.low %v1271_v54, %v1275_v55  ;;  %v9613_v61 = vcombine.high %v1278_v63, %v1282_v2  ;;  %v1323_v54 = vld [vmem:[%s10635_s12 + $0x1bf8] sm:$0xff]  ;;  %v1330_v63 = vld [vmem:[%s10635_s12 + $0x1c30] sm:$0xff] }
 0x429   : > { %7524 = vmatprep.subr.bf16.mxu0 %v9565_v16  ;;  %7852 = vmatprep.subr.bf16.mxu1 %v9567_v17  ;;  %v9615_v16 = vcombine.high %v1279_v38, %v1283_v10  ;;  %v1286_v17 = vld [vmem:[%s10635_s12 + $0x1ad0] sm:$0xff]  ;;  %v1327_v2 = vld [vmem:[%s10635_s12 + $0x1c18] sm:$0xff] }
 0x42a   : > { %v9620_v60 = vcombine.low %v1286_v17, %v1290_v18 }
 0x42c   : > { %7525 = vmatpush1.bf16.msra.mxu0 %v9564_v21  ;;  %7853 = vmatpush1.bf16.msra.mxu1 %v9566_v22  ;;  %v9614_v21 = vcombine.low %v1279_v38, %v1283_v10  ;;  %v9621_v22 = vcombine.high %v1286_v17, %v1290_v18  ;;  %v1331_v38 = vld [vmem:[%s10635_s12 + $0x1c38] sm:$0xff]  ;;  %v1338_v17 = vld [vmem:[%s10635_s12 + $0x1c70] sm:$0xff] }
 0x42d   : > { %7526 = vmatprep.subr.bf16.mxu0 %v9573_v24  ;;  %7854 = vmatprep.subr.bf16.mxu1 %v9575_v27  ;;  %v9623_v24 = vcombine.high %v1287_v19, %v1291_v20  ;;  %v1294_v27 = vld [vmem:[%s10635_s12 + $0x1b10] sm:$0xff]  ;;  %v1335_v18 = vld [vmem:[%s10635_s12 + $0x1c58] sm:$0xff] }
 0x42e   : > { %v9628_v25 = vcombine.low %v1294_v27, %v1298_v15 }
 0x430   : > { %7527 = vmatpush1.bf16.msra.mxu0 %v9572_v62  ;;  %7855 = vmatpush1.bf16.msra.mxu1 %v9574_v30  ;;  %v9622_v62 = vcombine.low %v1287_v19, %v1291_v20  ;;  %v9629_v30 = vcombine.high %v1294_v27, %v1298_v15  ;;  %v1339_v19 = vld [vmem:[%s10635_s12 + $0x1c78] sm:$0xff]  ;;  %v1346_v27 = vld [vmem:[%s10635_s12 + $0x1cb0] sm:$0xff] }
 0x431   : > { %7528 = vmatprep.subr.bf16.mxu0 %v9581_v31  ;;  %7856 = vmatprep.subr.bf16.mxu1 %v9583_v32  ;;  %v9631_v31 = vcombine.high %v1295_v28, %v1299_v29  ;;  %v1302_v32 = vld [vmem:[%s10635_s12 + $0x1b50] sm:$0xff]  ;;  %v1343_v15 = vld [vmem:[%s10635_s12 + $0x1c98] sm:$0xff] }
 0x432   : > { %v9636_v1 = vcombine.low %v1302_v32, %v1306_v33 }
 0x434   : > { %7529 = vmatpush1.bf16.msra.mxu0 %v9580_v37  ;;  %7857 = vmatpush1.bf16.msra.mxu1 %v9582_v9  ;;  %v9630_v37 = vcombine.low %v1295_v28, %v1299_v29  ;;  %v9637_v9 = vcombine.high %v1302_v32, %v1306_v33  ;;  %v1347_v28 = vld [vmem:[%s10635_s12 + $0x1cb8] sm:$0xff]  ;;  %v1354_v32 = vld [vmem:[%s10635_s12 + $0x1cf0] sm:$0xff] }
 0x435   : > { %7530 = vmatprep.subr.bf16.mxu0 %v9589_v23  ;;  %7858 = vmatprep.subr.bf16.mxu1 %v9591_v40  ;;  %v9639_v23 = vcombine.high %v1303_v35, %v1307_v47  ;;  %v1310_v40 = vld [vmem:[%s10635_s12 + $0x1b90] sm:$0xff]  ;;  %v1351_v33 = vld [vmem:[%s10635_s12 + $0x1cd8] sm:$0xff] }
 0x436   : > { %v9644_v55 = vcombine.low %v1310_v40, %v1314_v41 }
 0x438   : > { %7531 = vmatpush1.bf16.msra.mxu0 %v9588_v45  ;;  %7859 = vmatpush1.bf16.msra.mxu1 %v9590_v56  ;;  %v9638_v45 = vcombine.low %v1303_v35, %v1307_v47  ;;  %v9645_v56 = vcombine.high %v1310_v40, %v1314_v41  ;;  %v1355_v35 = vld [vmem:[%s10635_s12 + $0x1cf8] sm:$0xff]  ;;  %v9678_v47 = vcombine.low %v1343_v15, %v1347_v28 }
 0x439   : > { %7532 = vmatprep.subr.bf16.mxu0 %v9597_v46  ;;  %7860 = vmatprep.subr.bf16.mxu1 %v9599_v49  ;;  %v9647_v46 = vcombine.high %v1311_v43, %v1315_v44  ;;  %v1318_v49 = vld [vmem:[%s10635_s12 + $0x1bd0] sm:$0xff]  ;;  %v1359_v40 = vld [vmem:[%s10635_s12 + $0x1d18] sm:$0xff] }
 0x43a   : > { %v9652_v10 = vcombine.low %v1318_v49, %v1322_v34  ;;  %v1363_v41 = vld [vmem:[%s10635_s12 + $0x1d38] sm:$0xff] }
 0x43c   : > { %7533 = vmatpush1.bf16.msra.mxu0 %v9596_v58  ;;  %7861 = vmatpush1.bf16.msra.mxu1 %v9598_v48  ;;  %v9646_v58 = vcombine.low %v1311_v43, %v1315_v44  ;;  %v9653_v48 = vcombine.high %v1318_v49, %v1322_v34  ;;  %v1371_v49 = vld [vmem:[%s10635_s12 + $0x1d78] sm:$0xff] }
 0x43d   : > { %7534 = vmatprep.subr.bf16.mxu0 %v9605_v59  ;;  %7862 = vmatprep.subr.bf16.mxu1 %v9607_v50  ;;  %v9655_v59 = vcombine.high %v1319_v52, %v1323_v54  ;;  %v1326_v50 = vld [vmem:[%s10635_s12 + $0x1c10] sm:$0xff] }
 0x43e   : > { %v9660_v20 = vcombine.low %v1326_v50, %v1330_v63 }
 0x440   : > { %7535 = vmatpush1.bf16.msra.mxu0 %v9604_v13  ;;  %7863 = vmatpush1.bf16.msra.mxu1 %v9606_v14  ;;  %v9654_v13 = vcombine.low %v1319_v52, %v1323_v54  ;;  %v9661_v14 = vcombine.high %v1326_v50, %v1330_v63  ;;  %v9694_v52 = vcombine.low %v1359_v40, %v1363_v41  ;;  %v1379_v50 = vld [vmem:[%s10635_s12 + $0x1db8] sm:$0xff] }
 0x441   : > { %7536 = vmatprep.subr.bf16.mxu0 %v9613_v61  ;;  %7864 = vmatprep.subr.bf16.mxu1 %v9615_v16  ;;  %v9663_v61 = vcombine.high %v1327_v2, %v1331_v38  ;;  %v1334_v16 = vld [vmem:[%s10635_s12 + $0x1c50] sm:$0xff] }
 0x442   : > { %v9668_v29 = vcombine.low %v1334_v16, %v1338_v17 }
 0x444   : > { %7537 = vmatpush1.bf16.msra.mxu0 %v9612_v42  ;;  %7865 = vmatpush1.bf16.msra.mxu1 %v9614_v21  ;;  %v9662_v42 = vcombine.low %v1327_v2, %v1331_v38  ;;  %v9669_v21 = vcombine.high %v1334_v16, %v1338_v17  ;;  %v1387_v16 = vld [vmem:[%s10635_s12 + $0x1df8] sm:$0xff] }
 0x445   : > { %7538 = vmatprep.subr.bf16.mxu0 %v9621_v22  ;;  %7866 = vmatprep.subr.bf16.mxu1 %v9623_v24  ;;  %v9671_v22 = vcombine.high %v1335_v18, %v1339_v19  ;;  %v1342_v24 = vld [vmem:[%s10635_s12 + $0x1c90] sm:$0xff] }
 0x448   : > { %7539 = vmatpush1.bf16.msra.mxu0 %v9620_v60  ;;  %7867 = vmatpush1.bf16.msra.mxu1 %v9622_v62  ;;  %v9670_v60 = vcombine.low %v1335_v18, %v1339_v19  ;;  %v9677_v62 = vcombine.high %v1342_v24, %v1346_v27 }
 0x449   : > { %7540 = vmatprep.subr.bf16.mxu0 %v9629_v30  ;;  %7868 = vmatprep.subr.bf16.mxu1 %v9631_v31  ;;  %v9679_v30 = vcombine.high %v1343_v15, %v1347_v28  ;;  %v1350_v31 = vld [vmem:[%s10635_s12 + $0x1cd0] sm:$0xff] }
 0x44a   : > { %v9684_v43 = vcombine.low %v1350_v31, %v1354_v32 }
 0x44c   : > { %7541 = vmatpush1.bf16.msra.mxu0 %v9628_v25  ;;  %7869 = vmatpush1.bf16.msra.mxu1 %v9630_v37  ;;  %v9685_v25 = vcombine.high %v1350_v31, %v1354_v32  ;;  %v9687_v37 = vcombine.high %v1351_v33, %v1355_v35  ;;  %v1403_v31 = vld [vmem:[%s10635_s12 + $0x1e78] sm:$0xff] }
 0x44d   : > { %7542 = vmatprep.subr.bf16.mxu0 %v9637_v9  ;;  %7870 = vmatprep.subr.bf16.mxu1 %v9639_v23  ;;  %v1358_v9 = vld [vmem:[%s10635_s12 + $0x1d10] sm:$0xff] }
 0x44e   : > { %v1362_v23 = vld [vmem:[%s10635_s12 + $0x1d30] sm:$0xff] }
 0x44f   : > { %v9693_v44 = vcombine.high %v1358_v9, %v1362_v23  ;;  %v9692_v34 = vcombine.low %v1358_v9, %v1362_v23  ;;  %v1411_v9 = vld [vmem:[%s10635_s12 + $0x1eb8] sm:$0xff] }
 0x450   : > { %7543 = vmatpush1.bf16.msra.mxu0 %v9636_v1  ;;  %7871 = vmatpush1.bf16.msra.mxu1 %v9638_v45  ;;  %v9695_v1 = vcombine.high %v1359_v40, %v1363_v41  ;;  %v1366_v45 = vld [vmem:[%s10635_s12 + $0x1d50] sm:$0xff] }
 0x451   : > { %7544 = vmatprep.subr.bf16.mxu0 %v9645_v56  ;;  %7872 = vmatprep.subr.bf16.mxu1 %v9647_v46  ;;  %v1370_v56 = vld [vmem:[%s10635_s12 + $0x1d70] sm:$0xff]  ;;  %v1367_v46 = vld [vmem:[%s10635_s12 + $0x1d58] sm:$0xff] }
 0x452   : > { %v9701_v54 = vcombine.high %v1366_v45, %v1370_v56  ;;  %v9700_v63 = vcombine.low %v1366_v45, %v1370_v56  ;;  %v9702_v2 = vcombine.low %v1367_v46, %v1371_v49  ;;  %v1419_v45 = vld [vmem:[%s10635_s12 + $0x1ef8] sm:$0xff] }
 0x454   : > { %7545 = vmatpush1.bf16.msra.mxu0 %v9644_v55  ;;  %7873 = vmatpush1.bf16.msra.mxu1 %v9646_v58  ;;  %v9703_v55 = vcombine.high %v1367_v46, %v1371_v49  ;;  %v1374_v58 = vld [vmem:[%s10635_s12 + $0x1d90] sm:$0xff] }
 0x455   : > { %7546 = vmatprep.subr.bf16.mxu0 %v9653_v48  ;;  %7874 = vmatprep.subr.bf16.mxu1 %v9655_v59  ;;  %v1378_v48 = vld [vmem:[%s10635_s12 + $0x1db0] sm:$0xff]  ;;  %v1375_v59 = vld [vmem:[%s10635_s12 + $0x1d98] sm:$0xff] }
 0x456   : > { %v9709_v38 = vcombine.high %v1374_v58, %v1378_v48  ;;  %v9708_v17 = vcombine.low %v1374_v58, %v1378_v48  ;;  %v9710_v18 = vcombine.low %v1375_v59, %v1379_v50  ;;  %v1427_v58 = vld [vmem:[%s10635_s12 + $0x1f38] sm:$0xff] }
 0x458   : > { %7547 = vmatpush1.bf16.msra.mxu0 %v9652_v10  ;;  %7875 = vmatpush1.bf16.msra.mxu1 %v9654_v13  ;;  %v9711_v10 = vcombine.high %v1375_v59, %v1379_v50  ;;  %v1382_v13 = vld [vmem:[%s10635_s12 + $0x1dd0] sm:$0xff] }
 0x459   : > { %7557 = vmatprep.subr.bf16.mxu0 %v9661_v14  ;;  %7885 = vmatprep.subr.bf16.mxu1 %v9663_v61  ;;  %v1386_v14 = vld [vmem:[%s10635_s12 + $0x1df0] sm:$0xff]  ;;  %v1383_v61 = vld [vmem:[%s10635_s12 + $0x1dd8] sm:$0xff] }
 0x45a   : > { %v9717_v19 = vcombine.high %v1382_v13, %v1386_v14  ;;  %v9718_v15 = vcombine.low %v1383_v61, %v1387_v16 }
 0x45b   : > { %7549 = vmatmul.mubr.bf16.vlgmr.msra.gmra.mrb[4].mxu0 %v11238_v53  ;;  %7877 = vmatmul.mubr.bf16.vlgmr.msra.gmra.mrb[4].mxu1 %v11238_v53  ;;  %v9676_v53 = vcombine.low %v1342_v24, %v1346_v27  ;;  %v1395_v24 = vld [vmem:[%s10635_s12 + $0x1e38] sm:$0xff]  ;;  %v9716_v27 = vcombine.low %v1382_v13, %v1386_v14 }
 0x45c   : > { %7558 = vmatpush1.bf16.msra.mxu0 %v9660_v20  ;;  %7886 = vmatpush1.bf16.msra.mxu1 %v9662_v42  ;;  %v9719_v20 = vcombine.high %v1383_v61, %v1387_v16  ;;  %v1390_v42 = vld [vmem:[%s10635_s12 + $0x1e10] sm:$0xff]  ;;  %v1435_v13 = vld [vmem:[%s10635_s12 + $0x1f78] sm:$0xff] }
 0x45d   : > { %7559 = vmatprep.subr.bf16.mxu0 %v9669_v21  ;;  %7887 = vmatprep.subr.bf16.mxu1 %v9671_v22  ;;  %v1394_v21 = vld [vmem:[%s10635_s12 + $0x1e30] sm:$0xff]  ;;  %v1391_v22 = vld [vmem:[%s10635_s12 + $0x1e18] sm:$0xff] }
 0x45e   : > { %7589 = vmatprep.mubr.bf16.mxu0 %v11244_v3  ;;  %7917 = vmatprep.mubr.bf16.mxu1 %v11244_v3  ;;  %v9686_v3 = vcombine.low %v1351_v33, %v1355_v35  ;;  %v9725_v28 = vcombine.high %v1390_v42, %v1394_v21  ;;  %v9724_v32 = vcombine.low %v1390_v42, %v1394_v21  ;;  %v1443_v42 = vld [vmem:[%s10635_s12 + $0x1fb8] sm:$0xff]  ;;  %v11857_v21 = vld [vmem:[%s10642_s18] sm:$0xff] }
 0x45f   : > { %v9726_v33 = vcombine.low %v1391_v22, %v1395_v24 }
 0x460   : > { %7560 = vmatpush1.bf16.msra.mxu0 %v9668_v29  ;;  %7888 = vmatpush1.bf16.msra.mxu1 %v9670_v60  ;;  %v9727_v29 = vcombine.high %v1391_v22, %v1395_v24  ;;  %v1398_v60 = vld [vmem:[%s10635_s12 + $0x1e50] sm:$0xff] }
 0x461   : > { %7561 = vmatprep.subr.bf16.mxu0 %v9677_v62  ;;  %7889 = vmatprep.subr.bf16.mxu1 %v9679_v30  ;;  %v1402_v62 = vld [vmem:[%s10635_s12 + $0x1e70] sm:$0xff]  ;;  %v1399_v30 = vld [vmem:[%s10635_s12 + $0x1e58] sm:$0xff] }
 0x462   : > { %v9733_v35 = vcombine.high %v1398_v60, %v1402_v62  ;;  %v9732_v23 = vcombine.low %v1398_v60, %v1402_v62  ;;  %v9734_v40 = vcombine.low %v1399_v30, %v1403_v31  ;;  %v6581_v60 = vrot.slane %v11857_v21, %v10685_v51  ;;  %v1447_v62 = vld [vmem:[%s10635_s12 + $0x1fd8] sm:$0xff] }
 0x464   : > { %7562 = vmatpush1.bf16.msra.mxu0 %v9676_v53  ;;  %7890 = vmatpush1.bf16.msra.mxu1 %v9678_v47  ;;  %v9735_v53 = vcombine.high %v1399_v30, %v1403_v31  ;;  %v1406_v47 = vld [vmem:[%s10635_s12 + $0x1e90] sm:$0xff]  ;;  %v1451_v30 = vld [vmem:[%s10635_s12 + $0x1ff8] sm:$0xff]  ;;  %v6589_v31 = vrot.slane %v11857_v21, %v10742_v12 }
 0x465   : > { %7563 = vmatprep.subr.bf16.mxu0 %v9685_v25  ;;  %7891 = vmatprep.subr.bf16.mxu1 %v9687_v37  ;;  %v1410_v25 = vld [vmem:[%s10635_s12 + $0x1eb0] sm:$0xff]  ;;  %v1407_v37 = vld [vmem:[%s10635_s12 + $0x1e98] sm:$0xff]  ;;  %v9782_v12 = vcombine.low %v1447_v62, %v1451_v30 }
 0x466   : > { %v9741_v41 = vcombine.high %v1406_v47, %v1410_v25  ;;  %v9740_v56 = vcombine.low %v1406_v47, %v1410_v25  ;;  %v9742_v46 = vcombine.low %v1407_v37, %v1411_v9  ;;  %v9946_v47 = vadd.f32 %v11550_v8, %v6581_v60  ;;  %v10141_v8 = vld [vmem:[%s10648_s30 + $0x80] sm:$0xff]   ;;  %v10174_v60 = vld [vmem:[%s10648_s30 + $0x148] sm:$0xff]  }
 0x467   : > { %v9948_v51 = vadd.f32 %v11554_v11, %v6589_v31  ;;  %v10142_v11 = vld [vmem:[%s10648_s30 + $0x48] sm:$0xff]  }
 0x468   : > { %7564 = vmatpush1.bf16.msra.mxu0 %v9684_v43  ;;  %7892 = vmatpush1.bf16.msra.mxu1 %v9686_v3  ;;  %v9743_v43 = vcombine.high %v1407_v37, %v1411_v9  ;;  %v1414_v3 = vld [vmem:[%s10635_s12 + $0x1ed0] sm:$0xff]  ;;  %v10176_v31 = vld [vmem:[%s10648_s30 + $0x108] sm:$0xff]  }
 0x469   : > { %7565 = vmatprep.subr.bf16.mxu0 %v9693_v44  ;;  %7893 = vmatprep.subr.bf16.mxu1 %v9695_v1  ;;  %v1418_v44 = vld [vmem:[%s10635_s12 + $0x1ef0] sm:$0xff]  ;;  %v1415_v1 = vld [vmem:[%s10635_s12 + $0x1ed8] sm:$0xff] }
 0x46a   : > { %v9749_v49 = vcombine.high %v1414_v3, %v1418_v44  ;;  %v9748_v48 = vcombine.low %v1414_v3, %v1418_v44  ;;  %v9750_v59 = vcombine.low %v1415_v1, %v1419_v45  ;;  %v10138_v37 = vld [vmem:[%s10648_s30 + $0x40] sm:$0xff]   ;;  %v10143_v3 = vld [vmem:[%s10648_s30 + $0xc8] sm:$0xff]  }
 0x46b   : > { %v10139_v9 = vld [vmem:[%s10648_s30 + $0xc0] sm:$0xff]  }
 0x46c   : > { %7566 = vmatpush1.bf16.msra.mxu0 %v9692_v34  ;;  %7894 = vmatpush1.bf16.msra.mxu1 %v9694_v52  ;;  %v9751_v34 = vcombine.high %v1415_v1, %v1419_v45  ;;  %v1422_v52 = vld [vmem:[%s10635_s12 + $0x1f10] sm:$0xff]  ;;  %v10144_v1 = vld [vmem:[%s10648_s30 + $0x8] sm:$0xff]  }
 0x46d   : > { %7567 = vmatprep.subr.bf16.mxu0 %v9701_v54  ;;  %7895 = vmatprep.subr.bf16.mxu1 %v9703_v55  ;;  %v1426_v54 = vld [vmem:[%s10635_s12 + $0x1f30] sm:$0xff]  ;;  %v1423_v55 = vld [vmem:[%s10635_s12 + $0x1f18] sm:$0xff] }
 0x46e   : > { %v9757_v50 = vcombine.high %v1422_v52, %v1426_v54  ;;  %v9756_v14 = vcombine.low %v1422_v52, %v1426_v54  ;;  %v9758_v61 = vcombine.low %v1423_v55, %v1427_v58  ;;  %v10145_v45 = vld [vmem:[%s10648_s30 + $0x88] sm:$0xff]   ;;  %v10151_v52 = vld [vmem:[%s10648_s30 + $0xd8] sm:$0xff]  }
 0x46f   : > { %v10152_v54 = vld [vmem:[%s10648_s30 + $0x18] sm:$0xff]  }
 0x470   : > { %7568 = vmatpush1.bf16.msra.mxu0 %v9700_v63  ;;  %7896 = vmatpush1.bf16.msra.mxu1 %v9702_v2  ;;  %v9759_v63 = vcombine.high %v1423_v55, %v1427_v58  ;;  %v1430_v2 = vld [vmem:[%s10635_s12 + $0x1f50] sm:$0xff]  ;;  %v10153_v55 = vld [vmem:[%s10648_s30 + $0x98] sm:$0xff]  }
 0x471   : > { %7569 = vmatprep.subr.bf16.mxu0 %v9709_v38  ;;  %7897 = vmatprep.subr.bf16.mxu1 %v9711_v10  ;;  %v1434_v38 = vld [vmem:[%s10635_s12 + $0x1f70] sm:$0xff]  ;;  %v1431_v10 = vld [vmem:[%s10635_s12 + $0x1f58] sm:$0xff] }
 0x472   : > { %v9765_v16 = vcombine.high %v1430_v2, %v1434_v38  ;;  %v9764_v22 = vcombine.low %v1430_v2, %v1434_v38  ;;  %v9766_v24 = vcombine.low %v1431_v10, %v1435_v13  ;;  %v10154_v58 = vld [vmem:[%s10648_s30 + $0x60] sm:$0xff]   ;;  %v10159_v2 = vld [vmem:[%s10648_s30 + $0xe8] sm:$0xff]  }
 0x473   : > { %v10160_v38 = vld [vmem:[%s10648_s30 + $0x28] sm:$0xff]  }
 0x474   : > { %7570 = vmatpush1.bf16.msra.mxu0 %v9708_v17  ;;  %7898 = vmatpush1.bf16.msra.mxu1 %v9710_v18  ;;  %v9767_v17 = vcombine.high %v1431_v10, %v1435_v13  ;;  %v1438_v18 = vld [vmem:[%s10635_s12 + $0x1f90] sm:$0xff]  ;;  %v6577_v10 = vrot.slane %v11857_v21, %v10737_v5  ;;  %v10161_v13 = vld [vmem:[%s10648_s30 + $0xa8] sm:$0xff]   ;;  %v10165_v5 = vld [vmem:[%s10648_s30 + $0xb0] sm:$0xff]  }
 0x475   : > { %7571 = vmatprep.subr.bf16.mxu0 %v9717_v19  ;;  %7899 = vmatprep.subr.bf16.mxu1 %v9719_v20  ;;  %v1442_v19 = vld [vmem:[%s10635_s12 + $0x1fb0] sm:$0xff]  ;;  %v1439_v20 = vld [vmem:[%s10635_s12 + $0x1f98] sm:$0xff] }
 0x478   : > { %7572 = vmatpush1.bf16.msra.mxu0 %v9716_v27  ;;  %7900 = vmatpush1.bf16.msra.mxu1 %v9718_v15  ;;  %v9773_v27 = vcombine.high %v1438_v18, %v1442_v19  ;;  %v9775_v15 = vcombine.high %v1439_v20, %v1443_v42 }
 0x479   : > { %7573 = vmatprep.subr.bf16.mxu0 %v9725_v28  ;;  %7901 = vmatprep.subr.bf16.mxu1 %v9727_v29  ;;  %v1446_v28 = vld [vmem:[%s10635_s12 + $0x1fd0] sm:$0xff] }
 0x47a   : > { %v1450_v29 = vld [vmem:[%s10635_s12 + $0x1ff0] sm:$0xff] }
 0x47b   : > { %v9780_v25 = vcombine.low %v1446_v28, %v1450_v29 }
 0x47c   : > { %7574 = vmatpush1.bf16.msra.mxu0 %v9724_v32  ;;  %7902 = vmatpush1.bf16.msra.mxu1 %v9726_v33  ;;  %v9772_v32 = vcombine.low %v1438_v18, %v1442_v19  ;;  %v9774_v33 = vcombine.low %v1439_v20, %v1443_v42  ;;  %v9945_v18 = vadd.f32 %v11544_v4, %v6577_v10  ;;  %v10166_v19 = vld [vmem:[%s10648_s30 + $0x78] sm:$0xff]   ;;  %v10170_v4 = vld [vmem:[%s10648_s30 + $0x140] sm:$0xff]  }
 0x47d   : > { %7575 = vmatprep.subr.bf16.mxu0 %v9733_v35  ;;  %7903 = vmatprep.subr.bf16.mxu1 %v9735_v53  ;;  %v9781_v35 = vcombine.high %v1446_v28, %v1450_v29  ;;  %v9783_v53 = vcombine.high %v1447_v62, %v1451_v30  ;;  %v10167_v42 = vld [vmem:[%s10648_s30 + $0xf8] sm:$0xff]   ;;  %v10172_v28 = vld [vmem:[%s10648_s30 + $0x100] sm:$0xff]   ;;  %v10175_v30 = vld [vmem:[%s10648_s30 + $0x1c8] sm:$0xff]  }
 0x47e   : > { %v10173_v29 = vld [vmem:[%s10648_s30 + $0x180] sm:$0xff]  }
 0x480   : > { %7576 = vmatpush1.bf16.msra.mxu0 %v9732_v23  ;;  %7904 = vmatpush1.bf16.msra.mxu1 %v9734_v40  ;;  %v7927_v23 = vmax.f32 %v9946_v47, 0.0  ;;  %v7929_v40 = vmax.f32 %v9948_v51, 0.0  ;;  %v10181_v47 = vld [vmem:[%s10648_s30 + $0x190] sm:$0xff]   ;;  %v10182_v51 = vld [vmem:[%s10648_s30 + $0x158] sm:$0xff]  }
 0x481   : > { %7577 = vmatprep.subr.bf16.mxu0 %v9741_v41  ;;  %7905 = vmatprep.subr.bf16.mxu1 %v9743_v43  ;;  %v10140_v41 = vld [vmem:[%s10648_s30] sm:$0xff]  }
 0x482   : > { %v7936_v43 = vpack.c.bf16 %v7927_v23, %v7927_v23  ;;  %v7938_v44 = vpack.c.bf16 %v7929_v40, %v7929_v40  ;;  %v10187_v23 = vld [vmem:[%s10648_s30 + $0x1e0] sm:$0xff]  }
 0x483   : > { %v10188_v40 = vld [vmem:[%s10648_s30 + $0x120] sm:$0xff]  }
 0x484   : > { %7578 = vmatpush1.bf16.msra.mxu0 %v9740_v56  ;;  %7906 = vmatpush1.bf16.msra.mxu1 %v9742_v46  ;;  %v10146_v56 = vld [vmem:[%s10648_s30 + $0x50] sm:$0xff]  }
 0x485   : > { %7579 = vmatprep.subr.bf16.mxu0 %v9749_v49  ;;  %7907 = vmatprep.subr.bf16.mxu1 %v9751_v34  ;;  %v10147_v46 = vld [vmem:[%s10648_s30 + $0xd0] sm:$0xff]   ;;  %v10150_v34 = vld [vmem:[%s10648_s30 + $0x58] sm:$0xff]  }
 0x486   : > { %v10148_v49 = vld [vmem:[%s10648_s30 + $0x10] sm:$0xff]  }
 0x488   : > { %7580 = vmatpush1.bf16.msra.mxu0 %v9748_v48  ;;  %7908 = vmatpush1.bf16.msra.mxu1 %v9750_v59  ;;  %v10155_v48 = vld [vmem:[%s10648_s30 + $0xe0] sm:$0xff]  }
 0x489   : > { %7581 = vmatprep.subr.bf16.mxu0 %v9757_v50  ;;  %7909 = vmatprep.subr.bf16.mxu1 %v9759_v63  ;;  %v10156_v59 = vld [vmem:[%s10648_s30 + $0x20] sm:$0xff]   ;;  %v10158_v63 = vld [vmem:[%s10648_s30 + $0x68] sm:$0xff]  }
 0x48a   : > { %v10157_v50 = vld [vmem:[%s10648_s30 + $0xa0] sm:$0xff]  }
 0x48c   : > { %7582 = vmatpush1.bf16.msra.mxu0 %v9756_v14  ;;  %7910 = vmatpush1.bf16.msra.mxu1 %v9758_v61  ;;  %v10162_v14 = vld [vmem:[%s10648_s30 + $0x70] sm:$0xff]   ;;  %v6585_v61 = vrot.slane %v11857_v21, %v10819_v26  ;;  %v10168_v26 = vld [vmem:[%s10648_s30 + $0x38] sm:$0xff]  }
 0x48d   : > { %7583 = vmatprep.subr.bf16.mxu0 %v9765_v16  ;;  %7911 = vmatprep.subr.bf16.mxu1 %v9767_v17  ;;  %v10163_v16 = vld [vmem:[%s10648_s30 + $0xf0] sm:$0xff]  }
 0x48e   : > { %v10164_v17 = vld [vmem:[%s10648_s30 + $0x30] sm:$0xff]   ;;  %v9947_v20 = vadd.f32 %v11548_v6, %v6585_v61 }
 0x490   : > { %7584 = vmatpush1.bf16.msra.mxu0 %v9764_v22  ;;  %7912 = vmatpush1.bf16.msra.mxu1 %v9766_v24  ;;  %v7926_v22 = vmax.f32 %v9945_v18, 0.0  ;;  %v10169_v24 = vld [vmem:[%s10648_s30 + $0xb8] sm:$0xff]  }
 0x491   : > { %7585 = vmatprep.subr.bf16.mxu0 %v9773_v27  ;;  %7913 = vmatprep.subr.bf16.mxu1 %v9775_v15  ;;  %v7928_v27 = vmax.f32 %v9947_v20, 0.0  ;;  %v10171_v15 = vld [vmem:[%s10648_s30 + $0x1c0] sm:$0xff]  }
 0x492   : > { %v7935_v6 = vpack.c.bf16 %v7926_v22, %v7926_v22 }
 0x493   : > { %v7937_v62 = vpack.c.bf16 %v7928_v27, %v7928_v27 }
 0x494   : > { %7586 = vmatpush1.bf16.msra.mxu0 %v9772_v32  ;;  %7914 = vmatpush1.bf16.msra.mxu1 %v9774_v33  ;;  %v10177_v32 = vld [vmem:[%s10648_s30 + $0x188] sm:$0xff]   ;;  %v10178_v33 = vld [vmem:[%s10648_s30 + $0x150] sm:$0xff]  }
 0x495   : > { %7587 = vmatprep.subr.bf16.mxu0 %v9781_v35  ;;  %7915 = vmatprep.subr.bf16.mxu1 %v9783_v53  ;;  %v10179_v35 = vld [vmem:[%s10648_s30 + $0x1d0] sm:$0xff]  }
 0x496   : > { %v10180_v53 = vld [vmem:[%s10648_s30 + $0x110] sm:$0xff]  }
 0x498   : > { %7588 = vmatpush1.bf16.msra.mxu0 %v9780_v25  ;;  %7916 = vmatpush1.bf16.msra.mxu1 %v9782_v12  ;;  %v10183_v25 = vld [vmem:[%s10648_s30 + $0x1d8] sm:$0xff]  }
 0x499   : > { %9857 = vmatprep.subr.bf16.mxu0 %v10138_v37  ;;  %9879 = vmatprep.subr.bf16.mxu1 %v10139_v9  ;;  %v10184_v12 = vld [vmem:[%s10648_s30 + $0x118] sm:$0xff]   ;;  %v10186_v9 = vld [vmem:[%s10648_s30 + $0x160] sm:$0xff]  }
 0x49a   : > { %v10185_v37 = vld [vmem:[%s10648_s30 + $0x198] sm:$0xff]  }
 0x49b   : > { %7590 = vmatmul.mubr.bf16.vlgmr.msra.gmra.mrb[4].mxu0 %v11312_v7  ;;  %7918 = vmatmul.mubr.bf16.vlgmr.msra.gmra.mrb[4].mxu1 %v11312_v7  ;;  %v10149_v7 = vld [vmem:[%s10648_s30 + $0x90] sm:$0xff]  }
 0x49c   : > { %9858 = vmatpush3.bf16.msra.mxu0 %v10140_v41  ;;  %8487 = vmatprep.mubr.bf16.mxu0 %v7936_v43  ;;  %v10189_v41 = vld [vmem:[%s10648_s30 + $0x1a0] sm:$0xff]   ;;  %v10192_v43 = vld [vmem:[%s10648_s30 + $0x128] sm:$0xff]  }
 0x49d   : > { %9880 = vmatpush3.bf16.msra.mxu1 %v10141_v8  ;;  %8527 = vmatprep.mubr.bf16.mxu1 %v7938_v44  ;;  %v10190_v8 = vld [vmem:[%s10648_s30 + $0x168] sm:$0xff]   ;;  %v10194_v44 = vld [vmem:[%s10648_s30 + $0x170] sm:$0xff]  }
 0x49e   : > { %9859 = vmatprep.subr.bf16.mxu0 %v10142_v11  ;;  %9881 = vmatprep.subr.bf16.mxu1 %v10143_v3  ;;  %v10191_v11 = vld [vmem:[%s10648_s30 + $0x1e8] sm:$0xff]  }
 0x49f   : > { %v10193_v3 = vld [vmem:[%s10648_s30 + $0x1a8] sm:$0xff]  }
 0x4a0   : > { %9860 = vmatpush3.bf16.msra.mxu0 %v10144_v1  ;;  %v10195_v1 = vld [vmem:[%s10648_s30 + $0x1f0] sm:$0xff]  }
 0x4a1   : > { %9882 = vmatpush3.bf16.msra.mxu1 %v10145_v45  ;;  %9861 = vmatprep.subr.bf16.mxu0 %v10146_v56  ;;  %v10196_v45 = vld [vmem:[%s10648_s30 + $0x130] sm:$0xff]  }
 0x4a2   : > { %9883 = vmatprep.subr.bf16.mxu1 %v10147_v46  ;;  %v10197_v56 = vld [vmem:[%s10648_s30 + $0x1b0] sm:$0xff]   ;;  %v10198_v46 = vld [vmem:[%s10648_s30 + $0x178] sm:$0xff]  }
 0x4a4   : > { %9862 = vmatpush3.bf16.msra.mxu0 %v10148_v49  ;;  %v10199_v49 = vld [vmem:[%s10648_s30 + $0x1f8] sm:$0xff]  }
 0x4a5   : > { %9884 = vmatpush3.bf16.msra.mxu1 %v10149_v7  ;;  %9863 = vmatprep.subr.bf16.mxu0 %v10150_v34  ;;  %v10200_v7 = vld [vmem:[%s10648_s30 + $0x138] sm:$0xff]  }
 0x4a6   : > { %9885 = vmatprep.subr.bf16.mxu1 %v10151_v52  ;;  %v10201_v34 = vld [vmem:[%s10648_s30 + $0x1b8] sm:$0xff]   ;;  %v6593_v52 = vrot.slane %v11857_v21, %v10901_v57 }
 0x4a8   : > { %9864 = vmatpush3.bf16.msra.mxu0 %v10152_v54  ;;  %v6601_v54 = vrot.slane %v11857_v21, %v10988_v39 }
 0x4a9   : > { %9886 = vmatpush3.bf16.msra.mxu1 %v10153_v55  ;;  %9865 = vmatprep.subr.bf16.mxu0 %v10154_v58  ;;  %v6597_v55 = vrot.slane %v11857_v21, %v10826_v36  ;;  %v6605_v58 = vrot.slane %v11857_v21, %v10906_v0 }
 0x4aa   : > { %9887 = vmatprep.subr.bf16.mxu1 %v10155_v48 }
 0x4ac   : > { %9866 = vmatpush3.bf16.msra.mxu0 %v10156_v59 }
 0x4ad   : > { %9888 = vmatpush3.bf16.msra.mxu1 %v10157_v50  ;;  %9867 = vmatprep.subr.bf16.mxu0 %v10158_v63 }
 0x4ae   : > { %9889 = vmatprep.subr.bf16.mxu1 %v10159_v2 }
 0x4b0   : > { %9868 = vmatpush3.bf16.msra.mxu0 %v10160_v38 }
 0x4b1   : > { %9890 = vmatpush3.bf16.msra.mxu1 %v10161_v13  ;;  %9869 = vmatprep.subr.bf16.mxu0 %v10162_v14 }
 0x4b2   : > { %9891 = vmatprep.subr.bf16.mxu1 %v10163_v16 }
 0x4b4   : > { %9870 = vmatpush3.bf16.msra.mxu0 %v10164_v17 }
 0x4b5   : > { %9892 = vmatpush3.bf16.msra.mxu1 %v10165_v5  ;;  %9871 = vmatprep.subr.bf16.mxu0 %v10166_v19 }
 0x4b6   : > { %9893 = vmatprep.subr.bf16.mxu1 %v10167_v42 }
 0x4b8   : > { %9872 = vmatpush3.bf16.msra.mxu0 %v10168_v26 }
 0x4b9   : > { %9894 = vmatpush3.bf16.msra.mxu1 %v10169_v24  ;;  %9901 = vmatprep.subr.bf16.mxu0 %v10170_v4 }
 0x4ba   : > { %9923 = vmatprep.subr.bf16.mxu1 %v10171_v15 }
 0x4bb   : > { %8488 = vmatmul.mubr.bf16.vlgmr.msra.gmra.mrb[8].mxu0 %v7935_v6 }
 0x4bc   : > { %8528 = vmatmul.mubr.bf16.vlgmr.msra.gmra.mrb[8].mxu1 %v7937_v62  ;;  %9902 = vmatpush3.bf16.msra.mxu0 %v10172_v28 }
 0x4bd   : > { %9924 = vmatpush3.bf16.msra.mxu1 %v10173_v29  ;;  %9903 = vmatprep.subr.bf16.mxu0 %v10174_v60 }
 0x4be   : > { %9925 = vmatprep.subr.bf16.mxu1 %v10175_v30 }
 0x4c0   : > { %9904 = vmatpush3.bf16.msra.mxu0 %v10176_v31 }
 0x4c1   : > { %9926 = vmatpush3.bf16.msra.mxu1 %v10177_v32  ;;  %9905 = vmatprep.subr.bf16.mxu0 %v10178_v33 }
 0x4c2   : > { %9927 = vmatprep.subr.bf16.mxu1 %v10179_v35 }
 0x4c4   : > { %9906 = vmatpush3.bf16.msra.mxu0 %v10180_v53 }
 0x4c5   : > { %9928 = vmatpush3.bf16.msra.mxu1 %v10181_v47  ;;  %9907 = vmatprep.subr.bf16.mxu0 %v10182_v51 }
 0x4c6   : > { %9929 = vmatprep.subr.bf16.mxu1 %v10183_v25 }
 0x4c8   : > { %9908 = vmatpush3.bf16.msra.mxu0 %v10184_v12  ;;  %v7934_v12 = vld [vmem:[#allocation2] sm:$0x1] }
 0x4c9   : > { %9930 = vmatpush3.bf16.msra.mxu1 %v10185_v37  ;;  %9909 = vmatprep.subr.bf16.mxu0 %v10186_v9 }
 0x4ca   : > { %9931 = vmatprep.subr.bf16.mxu1 %v10187_v23 }
 0x4cc   : > { %9910 = vmatpush3.bf16.msra.mxu0 %v10188_v40  ;;  %v8622_v40 = vld [vmem:[#allocation9] sm:$0x1] (!%p9848_p0) }
 0x4cd   : > { %9932 = vmatpush3.bf16.msra.mxu1 %v10189_v41  ;;  %9911 = vmatprep.subr.bf16.mxu0 %v10190_v8 }
 0x4ce   : > { %9933 = vmatprep.subr.bf16.mxu1 %v10191_v11 }
 0x4d0   : > { %9912 = vmatpush3.bf16.msra.mxu0 %v10192_v43 }
 0x4d1   : > { %9934 = vmatpush3.bf16.msra.mxu1 %v10193_v3  ;;  %9913 = vmatprep.subr.bf16.mxu0 %v10194_v44 }
 0x4d2   : > { %9935 = vmatprep.subr.bf16.mxu1 %v10195_v1 }
 0x4d4   : > { %9914 = vmatpush3.bf16.msra.mxu0 %v10196_v45 }
 0x4d5   : > { %9936 = vmatpush3.bf16.msra.mxu1 %v10197_v56  ;;  %9915 = vmatprep.subr.bf16.mxu0 %v10198_v46 }
 0x4d6   : > { %9937 = vmatprep.subr.bf16.mxu1 %v10199_v49 }
 0x4d8   : > { %9916 = vmatpush3.bf16.msra.mxu0 %v10200_v7 }
 0x4d9   : > { %9938 = vmatpush3.bf16.msra.mxu1 %v10201_v34 }
 0x56e   : > { %v7591_v48 = vpop.f32.mrb[4].mxu0  ;;  %v7919_v50 = vpop.f32.mrb[4].mxu1 }
 0x56f   : > { %v9949_v59 = vadd.f32 %v7591_v48, %v6593_v52  ;;  %v7593_v63 = vpop.f32.mrb[5].mxu0  ;;  %v9951_v2 = vadd.f32 %v7919_v50, %v6601_v54  ;;  %v7921_v10 = vpop.f32.mrb[5].mxu1 }
 0x570   : > { %v9950_v38 = vadd.f32 %v7593_v63, %v6597_v55  ;;  %v7595_v13 = vpop.f32.mrb[6].mxu0  ;;  %v9952_v61 = vadd.f32 %v7921_v10, %v6605_v58  ;;  %v7923_v57 = vpop.f32.mrb[6].mxu1 }
 0x571   : > { %v7930_v14 = vmax.f32 %v9949_v59, 0.0  ;;  %v7596_v16 = vpop.f32.mrb[7].mxu0  ;;  %v7932_v17 = vmax.f32 %v9951_v2, 0.0  ;;  %v7924_v18 = vpop.f32.mrb[7].mxu1 }
 0x572   : > { %v7931_v39 = vmax.f32 %v9950_v38, 0.0  ;;  %v7933_v5 = vmax.f32 %v9952_v61, 0.0 }
 0x573   : > { %v7939_v19 = vpack.c.bf16 %v7930_v14, %v7930_v14  ;;  %v7941_v0 = vpack.c.bf16 %v7932_v17, %v7932_v17 }
 0x574   : > { %v7940_v36 = vpack.c.bf16 %v7931_v39, %v7931_v39  ;;  %v7942_v20 = vpack.c.bf16 %v7933_v5, %v7933_v5 }
 0x576   : > { %8567 = vmatprep.mubr.bf16.mxu0 %v7940_v36  ;;  %8607 = vmatprep.mubr.bf16.mxu1 %v7942_v20 }
 0x577   : > { %8568 = vmatmul.mubr.bf16.vlgmr.msra.gmra.mrb[12].mxu0 %v7939_v19  ;;  %8608 = vmatmul.mubr.bf16.vlgmr.msra.gmra.mrb[12].mxu1 %v7941_v0 }
 0x58e   : > { %v9873_v21 = vpop.f32.mrb[8].mxu0 }
 0x58f   : > { %v9895_v42 = vpop.f32.mrb[8].mxu1  ;;  %v9874_v26 = vpop.f32.mrb[9].mxu0 }
 0x590   : > { %v9875_v22 = vadd.f32 %v9874_v26, %v9873_v21  ;;  %v9896_v24 = vpop.f32.mrb[9].mxu1  ;;  %v9876_v4 = vpop.f32.mrb[10].mxu0 }
 0x591   : > { %v9897_v27 = vadd.f32 %v9896_v24, %v9895_v42  ;;  %v9898_v15 = vpop.f32.mrb[10].mxu1  ;;  %v9877_v28 = vpop.f32.mrb[11].mxu0 }
 0x592   : > { %v9899_v6 = vpop.f32.mrb[11].mxu1 }
 0x593   : > { %v8530_v29 = vadd.f32 %v9897_v27, %v9875_v22 }
 0x64a   : > { %v9917_v60 = vpop.f32.mrb[12].mxu0  ;;  %v9939_v62 = vpop.f32.mrb[12].mxu1 }
 0x64b   : > { %v9918_v30 = vpop.f32.mrb[13].mxu0  ;;  %v9940_v32 = vpop.f32.mrb[13].mxu1 }
 0x64c   : > { %v9919_v31 = vadd.f32 %v9918_v30, %v9917_v60  ;;  %v9920_v33 = vpop.f32.mrb[14].mxu0  ;;  %v9941_v35 = vadd.f32 %v9940_v32, %v9939_v62  ;;  %v9942_v53 = vpop.f32.mrb[14].mxu1 }
 0x64d   : > { %v9921_v47 = vpop.f32.mrb[15].mxu0  ;;  %v9943_v25 = vpop.f32.mrb[15].mxu1 }
 0x64e   : > { %v8570_v51 = vadd.f32 %v9919_v31, %v8530_v29  ;;  %8620 = sbr.rel (%p9848_p0) target bundleno = 1657 (0x679), region = 64 }
 0x650   : > { %v8610_v37 = vadd.f32 %v9941_v35, %v8570_v51 }
 0x652   : > { %v8615_v9 = vadd.f32 %v8610_v37, %v7934_v12 }
 0x654   : > { %8616 = vst [vmem:[#allocation2] sm:$0x1] %v8615_v9 }
 0x65b   : > { %v8621_v23 = vld [vmem:[#allocation2] sm:$0x1] }
 0x65c   : > { %v8623_v41 = vadd.f32 %v8622_v40, %v8621_v23 }
 0x65e   : > { %v9849_v8 = vmul.f32 -1.442695, %v8623_v41 }
 0x660   : > { %10204 = vpow2.f32 %v9849_v8 }
 0x66a   : > { %v10205_v11 = vpop.eup %10204 }
 0x66b   : > { %v8627_v43 = vadd.f32 1.0, %v10205_v11 }
 0x66d   : > { %10206 = vrcp.f32 %v8627_v43 }
 0x677   : > { %v10207_v3 = vpop.eup %10206 }
 0x678   : > { %8630 = vst [vmem:[#allocation11] sm:$0x1] %v10207_v3 }
 0x679 PF: > { %p10096_p4 = scmp.eq.s32.totalorder %s10524_s10, 3  ;;  %s10410_s9 = smov [#allocation11]  }
 0x67a   : > { %s8638_s24 = sshll.u32 %s10410_s9, 4  ;;  %s8639_s24 = int_to_ptr.vmem [resolvable:$true] %s8638_s24 }
 0x67b   : > { %s10326_s27 = scalar_lea.vmem %s8639_s24, 16  ;;  %s10332_s15 = scalar_lea.vmem %s8639_s24, 32 }
 0x67c   : > { %p10327_p1 = scmp.ne.s32.totalorder %s8639_s24, %s10326_s27  ;;  %p10333_p7 = scmp.lt.s32.totalorder %s8639_s24, %s8639_s24 }
 0x67d   : > { %p10334_p9 = scmp.lt.s32.totalorder %s10332_s15, %s10326_s27 }
 0x67e   : > { %p10328_p10 = pnand %p10327_p1, %p10096_p4 }
 0x67f   : > { %p10335_p11 = por %p10334_p9, %p10333_p7 }
 0x680   : > { %p10329_p5 = pneg %p10328_p10 }
 0x682   : > { %p10336_p12 = pnand %p10335_p11, %p10329_p5 }
 0x684   : > { %10339 = shalt.err (!%p10336_p12)
}
 0x685   : > { %s10340_s12 = scalar_lea.hbm %s11991_s5, 16 }
 0x686   : > { %p10341_p8 = scmp.ne.s32.totalorder %s11991_s5, %s10340_s12  ;;  %p10346_p6 = scmp.lt.u32.totalorder %s10340_s12, %s11991_s5 }
 0x688   : > { %p10342_p3 = pnand %p10341_p8, %p10096_p4 }
 0x68a   : > { %p10343_p2 = pneg %p10342_p3 }
 0x68c   : > { %p10348_p13 = pnand %p10346_p6, %p10343_p2 }
 0x68e   : > { %10351 = shalt.err (!%p10348_p13)
}
 0x68f   : > { %10076 = dma.vmem_to_hbm [thread:$0]  (%p10096_p4), %s8639_s24, 16, %s11991_s5, [#allocation5]  }
 0x690   : > { %10381 = dma.done.wait (%p10096_p4), [#allocation5], 16  }
 0x691   : > { %10383 = vsyncadd (%p10096_p4), [#allocation5], 4294967280 }
 0x692 PF: > { %p20_p0 = scmp.ge.s32.totalorder %s10462_s22, 6   ;;  %s12014_s18 = smov %s10390_s19 }
 0x693   : > { %s12015_s19 = smov %s10394_s20  ;;  %s12016_s20 = smov %s10472_s25 }
 0x694   : > { %s12017_s21 = smov %s10462_s22  ;;  %22 = sbr.rel (!%p20_p0) target bundleno = 9 (0x9), region = 113 }
 0x69b   :  { %8651 = vsyncpa [#allocation4], 1 }
 0x69c   :  { %8653 = vsyncpa [#allocation4 + $0x1], 1 }
 0x69d   :  { %8654 = vsyncpa [#allocation7], 1 }
 0x69e   :  { %8656 = vsyncpa [#allocation7 + $0x1], 1 }
 0x69f   :  { %8657 = vsyncpa [#allocation10], 1 }
 0x6a0   :  { %8658 = vsyncpa [#allocation5], 1 }
 0x6a1   :  { %8660 = vsyncpa [#allocation5 + $0x1], 1 }

</bundles_post_ra>
